<compile_context>
chip_gen: v6e
topology: v6e:2x2x1
jax: 0.10.0
libtpu: 0.0.40
codegen_flags: <defaults>
</compile_context>

<pallas_src>
import jax
import jax.numpy as jnp
from jax.experimental import pallas as pl
from jax.experimental.pallas import tpu as pltpu

EPS = 1e-5
LANE = 128


def _round_up(x, m):
    return ((x + m - 1) // m) * m


def _pick_tile(m, cap=1024):
    """Largest row-tile from a fixed menu that divides m and gives >= 2 grid steps."""
    for t in (cap, 512, 256, 128, 64, 32, 16, 8):
        if t <= m and m % t == 0 and m // t >= 2:
            return t
    return m


_COMPILER_PARAMS = pltpu.CompilerParams(
    dimension_semantics=("parallel",),
    vmem_limit_bytes=32 * 1024 * 1024,  # >= default scoped limit, below physical on all gens
)


def _tile_stats(y):
    """(sum, sum of squares) over rows, packed as (1, 2, C) for the stats output."""
    return jnp.concatenate(
        [jnp.sum(y, axis=0, keepdims=True),
         jnp.sum(y * y, axis=0, keepdims=True)], axis=0)[None]


# --------------------------------------------------------------------------- #
# Kernels
# --------------------------------------------------------------------------- #
def _conv1x1_stats_kernel(x_ref, w_ref, y_ref, st_ref):
    """y = x @ w (bf16 MXU operands, f32 accumulation) + per-tile BN partial stats."""
    y = jnp.dot(x_ref[...].astype(jnp.bfloat16), w_ref[...],
                preferred_element_type=jnp.float32)
    y_ref[...] = y.astype(y_ref.dtype)
    st_ref[...] = _tile_stats(y)


def _bn_relu_conv3x3_stats_kernel(y1_ref, sc_ref, sh_ref, w2_ref,
                                  y2_ref, st_ref, pad_ref):
    """Per image: BN1+ReLU, then 3x3 conv (stride=1, pad=1) as 9 shifted matmuls."""
    _, H, W, P = y1_ref.shape

    # BN1 + ReLU in f32 using pre-folded (scale, shift).
    sc = sc_ref[...].reshape(1, 1, P)
    sh = sh_ref[...].reshape(1, 1, P)
    a = jnp.maximum(y1_ref[0].astype(jnp.float32) * sc + sh, 0.0)

    # Zero only the 1-wide halo ring (no full-buffer zero-fill); interior is fully
    # overwritten each step.  Re-zeroed every iteration so it is correct under
    # megacore grid splitting (each core has its own uninitialized scratch).
    zrow = jnp.zeros((1, W + 2, P), pad_ref.dtype)
    zcol = jnp.zeros((H + 2, 1, P), pad_ref.dtype)
    pad_ref[0:1, :, :] = zrow
    pad_ref[H + 1:H + 2, :, :] = zrow
    pad_ref[:, 0:1, :] = zcol
    pad_ref[:, W + 1:W + 2, :] = zcol
    pad_ref[1:H + 1, 1:W + 1, :] = a.astype(pad_ref.dtype)

    acc = jnp.zeros((H * W, P), jnp.float32)
    for dh in range(3):          # static 3x3 taps -> fully unrolled, 9 MXU matmuls
        for dw in range(3):
            patch = pad_ref[dh:dh + H, dw:dw + W, :].reshape(H * W, P)
            acc = acc + jnp.dot(patch, w2_ref[dh, dw],
                                preferred_element_type=jnp.float32)

    y2_ref[0] = acc.reshape(H, W, P).astype(y2_ref.dtype)
    st_ref[...] = _tile_stats(acc)


def _bn_relu_conv1x1_stats_kernel(y_ref, sc_ref, sh_ref, w_ref, o_ref, st_ref):
    """BN2+ReLU then y @ w3 (bf16 MXU, f32 acc) + per-tile BN3 partial stats."""
    a = jnp.maximum(y_ref[...].astype(jnp.float32) * sc_ref[...] + sh_ref[...], 0.0)
    y = jnp.dot(a.astype(jnp.bfloat16), w_ref[...],
                preferred_element_type=jnp.float32)
    o_ref[...] = y.astype(o_ref.dtype)
    st_ref[...] = _tile_stats(y)


def _bn_add_relu_kernel(y_ref, sc_ref, sh_ref, r_ref, o_ref):
    """BN3, identity residual add, ReLU."""
    a = y_ref[...].astype(jnp.float32) * sc_ref[...] + sh_ref[...]
    o_ref[...] = jnp.maximum(a + r_ref[...].astype(jnp.float32), 0.0).astype(o_ref.dtype)


# --------------------------------------------------------------------------- #
# Wrapper
# --------------------------------------------------------------------------- #
def _fold_bn(partial_stats, gamma, beta, count):
    """Fold per-tile (sum, sumsq) into BatchNorm (scale, shift): bn(y) = y*scale + shift."""
    s = jnp.sum(partial_stats[:, 0, :], axis=0)
    ss = jnp.sum(partial_stats[:, 1, :], axis=0)
    mean = s / count
    var = jnp.maximum(ss / count - mean * mean, 0.0)   # biased variance (training mode)
    scale = gamma * jax.lax.rsqrt(var + EPS)
    shift = beta - mean * scale
    return scale.reshape(1, -1), shift.reshape(1, -1)


@jax.jit
def bottleneck_forward(x_nchw, params):
    w1, g1, b1, w2, g2, b2, w3, g3, b3 = params
    # TODO(synk): accept/produce NHWC at the API boundary to avoid these two extra
    # HBM round trips; kept NCHW here to match the PyTorch module's interface.
    x = jnp.transpose(x_nchw, (0, 2, 3, 1)).astype(jnp.float32)   # NCHW -> NHWC
    N, H, W, Cin = x.shape
    P = w1.shape[1]
    Cout = w3.shape[1]
    assert Cin == Cout, "downsample=None requires inplanes == planes*4"

    # Lane-dense channel padding (multiples of 128).  Padded channels stay exactly
    # zero through the whole block and are sliced off at the end.
    Cin_p = _round_up(Cin, LANE)
    P_p = _round_up(P, LANE)
    Cout_p = _round_up(Cout, LANE)

    xp = jnp.pad(x, ((0, 0), (0, 0), (0, 0), (0, Cin_p - Cin)))
    x_flat = xp.reshape(N * H * W, Cin_p)

    w1p = jnp.pad(w1, ((0, Cin_p - Cin), (0, P_p - P))).astype(jnp.bfloat16)
    w2p = jnp.pad(w2, ((0, 0), (0, 0), (0, P_p - P), (0, P_p - P))).astype(jnp.bfloat16)
    w3p = jnp.pad(w3, ((0, P_p - P), (0, Cout_p - Cout))).astype(jnp.bfloat16)
    g1p = jnp.pad(g1, (0, P_p - P), constant_values=1.0)
    b1p = jnp.pad(b1, (0, P_p - P))
    g2p = jnp.pad(g2, (0, P_p - P), constant_values=1.0)
    b2p = jnp.pad(b2, (0, P_p - P))
    g3p = jnp.pad(g3, (0, Cout_p - Cout), constant_values=1.0)
    b3p = jnp.pad(b3, (0, Cout_p - Cout))

    M = N * H * W
    TM = _pick_tile(M)
    T = M // TM

    row_spec = lambda c: pl.BlockSpec((TM, c), lambda i: (i, 0))
    vec_spec = lambda c: pl.BlockSpec((1, c), lambda i: (0, 0))
    st_spec = lambda c: pl.BlockSpec((1, 2, c), lambda i: (i, 0, 0))

    # ---- pass 1: conv1 (1x1) + BN1 partial stats --------------------------------
    y1_flat, st1 = pl.pallas_call(
        _conv1x1_stats_kernel,
        grid=(T,),
        in_specs=[row_spec(Cin_p),
                  pl.BlockSpec((Cin_p, P_p), lambda i: (0, 0))],
        out_specs=(row_spec(P_p), st_spec(P_p)),
        out_shape=(jax.ShapeDtypeStruct((M, P_p), jnp.bfloat16),
                   jax.ShapeDtypeStruct((T, 2, P_p), jnp.float32)),
        compiler_params=_COMPILER_PARAMS,
    )(x_flat, w1p)
    sc1, sh1 = _fold_bn(st1, g1p, b1p, M)

    # ---- pass 2: BN1+ReLU, conv2 (3x3, stride=1, pad=1) + BN2 partial stats -----
    y2_img, st2 = pl.pallas_call(
        _bn_relu_conv3x3_stats_kernel,
        grid=(N,),
        in_specs=[pl.BlockSpec((1, H, W, P_p), lambda n: (n, 0, 0, 0)),
                  vec_spec(P_p), vec_spec(P_p),
                  pl.BlockSpec((3, 3, P_p, P_p), lambda n: (0, 0, 0, 0))],
        out_specs=(pl.BlockSpec((1, H, W, P_p), lambda n: (n, 0, 0, 0)),
                   st_spec(P_p)),
        out_shape=(jax.ShapeDtypeStruct((N, H, W, P_p), jnp.bfloat16),
                   jax.ShapeDtypeStruct((N, 2, P_p), jnp.float32)),
        scratch_shapes=[pltpu.VMEM((H + 2, W + 2, P_p), jnp.bfloat16)],
        compiler_params=_COMPILER_PARAMS,
    )(y1_flat.reshape(N, H, W, P_p), sc1, sh1, w2p)
    sc2, sh2 = _fold_bn(st2, g2p, b2p, M)

    # ---- pass 3: BN2+ReLU, conv3 (1x1) + BN3 partial stats ----------------------
    y3_flat, st3 = pl.pallas_call(
        _bn_relu_conv1x1_stats_kernel,
        grid=(T,),
        in_specs=[row_spec(P_p), vec_spec(P_p), vec_spec(P_p),
                  pl.BlockSpec((P_p, Cout_p), lambda i: (0, 0))],
        out_specs=(row_spec(Cout_p), st_spec(Cout_p)),
        out_shape=(jax.ShapeDtypeStruct((M, Cout_p), jnp.bfloat16),
                   jax.ShapeDtypeStruct((T, 2, Cout_p), jnp.float32)),
        compiler_params=_COMPILER_PARAMS,
    )(y2_img.reshape(M, P_p), sc2, sh2, w3p)
    sc3, sh3 = _fold_bn(st3, g3p, b3p, M)

    # ---- pass 4: BN3 + identity residual + ReLU ---------------------------------
    out_flat = pl.pallas_call(
        _bn_add_relu_kernel,
        grid=(T,),
        in_specs=[row_spec(Cout_p), vec_spec(Cout_p), vec_spec(Cout_p),
                  row_spec(Cout_p)],
        out_specs=row_spec(Cout_p),
        out_shape=jax.ShapeDtypeStruct((M, Cout_p), jnp.float32),
        compiler_params=_COMPILER_PARAMS,
    )(y3_flat, sc3, sh3, x_flat)

    out = out_flat.reshape(N, H, W, Cout_p)[:, :, :, :Cout]
    return jnp.transpose(out, (0, 3, 1, 2))   # NHWC -> NCHW


# --------------------------------------------------------------------------- #
# Params / reference
# --------------------------------------------------------------------------- #
def init_params(key, inplanes, planes):
    k1, k2, k3 = jax.random.split(key, 3)
    # PyTorch OIHW conv weights (synthetic init), converted to kernel-friendly layouts.
    w1_t = 0.1 * jax.random.normal(k1, (planes, inplanes, 1, 1), jnp.float32)
    w2_t = 0.1 * jax.random.normal(k2, (planes, planes, 3, 3), jnp.float32)
    w3_t = 0.1 * jax.random.normal(k3, (planes * 4, planes, 1, 1), jnp.float32)
    w1 = w1_t[:, :, 0, 0].T                       # (Cin, P)
    w2 = jnp.transpose(w2_t, (2, 3, 1, 0))        # (kh, kw, Cin, Cout) == HWIO
    w3 = w3_t[:, :, 0, 0].T                       # (P, 4P)
    ones = lambda c: jnp.ones((c,), jnp.float32)    # BN weight default = 1
    zeros = lambda c: jnp.zeros((c,), jnp.float32)  # BN bias default = 0
    return (w1, ones(planes), zeros(planes),
            w2, ones(planes), zeros(planes),
            w3, ones(planes * 4), zeros(planes * 4))


@jax.jit
def reference_forward(x_nchw, params):
    # Pure-JAX f32 reference (training-mode BN, XLA convs) for correctness checking.
    w1, g1, b1, w2, g2, b2, w3, g3, b3 = params
    x = jnp.transpose(x_nchw, (0, 2, 3, 1))

    def bn(y, g, b):
        m = y.mean((0, 1, 2), keepdims=True)
        v = ((y - m) ** 2).mean((0, 1, 2), keepdims=True)
        return (y - m) * jax.lax.rsqrt(v + EPS) * g + b

    y = jnp.einsum('nhwc,cp->nhwp', x, w1)
    y = jax.nn.relu(bn(y, g1, b1))
    y = jax.lax.conv_general_dilated(
        y, w2, (1, 1), 'SAME', dimension_numbers=('NHWC', 'HWIO', 'NHWC'))
    y = jax.nn.relu(bn(y, g2, b2))
    y = jnp.einsum('nhwc,cp->nhwp', y, w3)
    y = bn(y, g3, b3)
    y = jax.nn.relu(y + x)
    return jnp.transpose(y, (0, 3, 1, 2))


if __name__ == "__main__":
    key = jax.random.PRNGKey(0)
    kx, kp = jax.random.split(key)

    # Small shapes consistent with the module: downsample=None, stride=1 requires
    # inplanes == planes * 4 so the identity residual is valid.
    planes = 4
    inplanes = planes * 4
    N, H, W = 2, 16, 16

    x = jax.random.normal(kx, (N, inplanes, H, W), jnp.float32)   # NCHW input
    params = init_params(kp, inplanes, planes)

    out = jax.block_until_ready(bottleneck_forward(x, params))
    ref = reference_forward(x, params)

    assert out.shape == (N, planes * 4, H, W)
    # bf16 MXU operands / bf16 intermediates vs a pure-f32 reference -> looser
    # tolerance than an f32-only kernel would need.
    err = float(jnp.max(jnp.abs(out - ref)))
    assert jnp.allclose(out, ref, atol=5e-2, rtol=5e-2), err

    print("KERNEL_OK")
</pallas_src>

<mosaic_0001>
module attributes {stable_mosaic.version = 11 : i64} {
  func.func @_conv1x1_stats_kernel(%arg0: i32, %arg1: memref<256x128xf32, #tpu.memory_space<vmem>>, %arg2: memref<128x128xbf16, #tpu.memory_space<vmem>>, %arg3: memref<256x128xbf16, #tpu.memory_space<vmem>>, %arg4: memref<1x2x128xf32, #tpu.memory_space<vmem>>) attributes {dimension_semantics = [#tpu.dimension_semantics<parallel>], iteration_bounds = array<i64: 2>, scalar_prefetch = 0 : i64, scratch_operands = 0 : i64, tpu.core_type = #tpu.core_type<tc>, window_params = [{transform_indices = @transform_0, window_bounds = array<i64: 256, 128>}, {pipeline_mode = #tpu.pipeline_mode<synchronous>, transform_indices = @transform_1, window_bounds = array<i64: 128, 128>}, {transform_indices = @transform_2, window_bounds = array<i64: 256, 128>}, {transform_indices = @transform_3, window_bounds = array<i64: 1, 2, 128>}]} {
    %c0 = arith.constant 0 : index
    %c0_0 = arith.constant 0 : index
    %0 = vector.load %arg1[%c0, %c0_0] : memref<256x128xf32, #tpu.memory_space<vmem>>, vector<256x128xf32>
    %1 = arith.truncf %0 : vector<256x128xf32> to vector<256x128xbf16>
    %c0_1 = arith.constant 0 : index
    %c0_2 = arith.constant 0 : index
    %2 = vector.load %arg2[%c0_1, %c0_2] : memref<128x128xbf16, #tpu.memory_space<vmem>>, vector<128x128xbf16>
    %cst = arith.constant dense<0.000000e+00> : vector<256x128xf32>
    %3 = tpu.matmul %1, %2, %cst {dimension_numbers = #tpu.dot_dimension_numbers<[1], [0], [0], [1], [0, 0, 1, 1], [], []>} : vector<256x128xbf16>, vector<128x128xbf16>, vector<256x128xf32> -> vector<256x128xf32>
    %4 = arith.truncf %3 : vector<256x128xf32> to vector<256x128xbf16>
    %c0_3 = arith.constant 0 : index
    %c0_4 = arith.constant 0 : index
    %5 = vector.load %arg3[%c0_3, %c0_4] : memref<256x128xbf16, #tpu.memory_space<vmem>>, vector<256x128xbf16>
    tpu.vector_store %arg3[%c0_3, %c0_4], %4 {strides = array<i32>} : memref<256x128xbf16, #tpu.memory_space<vmem>>, vector<256x128xbf16>,
    %cst_5 = arith.constant dense<0.000000e+00> : vector<128xf32>
    %6 = vector.multi_reduction <add>, %3, %cst_5 [0] : vector<256x128xf32> to vector<128xf32>
    %7 = vector.shape_cast %6 : vector<128xf32> to vector<1x128xf32>
    %8 = arith.mulf %3, %3 : vector<256x128xf32>
    %cst_6 = arith.constant dense<0.000000e+00> : vector<128xf32>
    %9 = vector.multi_reduction <add>, %8, %cst_6 [0] : vector<256x128xf32> to vector<128xf32>
    %10 = vector.shape_cast %9 : vector<128xf32> to vector<1x128xf32>
    %11 = tpu.concatenate %7, %10 in 0 : vector<1x128xf32>, vector<1x128xf32> -> vector<2x128xf32>
    %12 = vector.shape_cast %11 : vector<2x128xf32> to vector<1x2x128xf32>
    %c0_7 = arith.constant 0 : index
    %c0_8 = arith.constant 0 : index
    %c0_9 = arith.constant 0 : index
    %13 = vector.load %arg4[%c0_7, %c0_8, %c0_9] : memref<1x2x128xf32, #tpu.memory_space<vmem>>, vector<1x2x128xf32>
    tpu.vector_store %arg4[%c0_7, %c0_8, %c0_9], %12 {strides = array<i32>} : memref<1x2x128xf32, #tpu.memory_space<vmem>>, vector<1x2x128xf32>,
    return
  }
  func.func @transform_0(%arg0: i32) -> (i32, i32) {
    %c0_i32 = arith.constant 0 : i32
    %c0_i32_0 = arith.constant 0 : i32
    return %arg0, %c0_i32 : i32, i32
  }
  func.func @transform_1(%arg0: i32) -> (i32, i32) {
    %c0_i32 = arith.constant 0 : i32
    %c0_i32_0 = arith.constant 0 : i32
    %c0_i32_1 = arith.constant 0 : i32
    return %c0_i32, %c0_i32_0 : i32, i32
  }
  func.func @transform_2(%arg0: i32) -> (i32, i32) {
    %c0_i32 = arith.constant 0 : i32
    %c0_i32_0 = arith.constant 0 : i32
    return %arg0, %c0_i32 : i32, i32
  }
  func.func @transform_3(%arg0: i32) -> (i32, i32, i32) {
    %c0_i32 = arith.constant 0 : i32
    %c0_i32_0 = arith.constant 0 : i32
    %c0_i32_1 = arith.constant 0 : i32
    return %arg0, %c0_i32, %c0_i32_0 : i32, i32, i32
  }
}

module attributes {stable_mosaic.version = 11 : i64} {
  func.func @_bn_relu_conv3x3_stats_kernel(%arg0: i32, %arg1: memref<1x16x16x128xbf16, #tpu.memory_space<vmem>>, %arg2: memref<1x128xf32, #tpu.memory_space<vmem>>, %arg3: memref<1x128xf32, #tpu.memory_space<vmem>>, %arg4: memref<3x3x128x128xbf16, #tpu.memory_space<vmem>>, %arg5: memref<1x16x16x128xbf16, #tpu.memory_space<vmem>>, %arg6: memref<1x2x128xf32, #tpu.memory_space<vmem>>, %arg7: memref<18x18x128xbf16, #tpu.memory_space<vmem>>) attributes {dimension_semantics = [#tpu.dimension_semantics<parallel>], iteration_bounds = array<i64: 2>, scalar_prefetch = 0 : i64, scratch_operands = 1 : i64, tpu.core_type = #tpu.core_type<tc>, window_params = [{transform_indices = @transform_0, window_bounds = array<i64: 1, 16, 16, 128>}, {pipeline_mode = #tpu.pipeline_mode<synchronous>, transform_indices = @transform_1, window_bounds = array<i64: 1, 128>}, {pipeline_mode = #tpu.pipeline_mode<synchronous>, transform_indices = @transform_2, window_bounds = array<i64: 1, 128>}, {pipeline_mode = #tpu.pipeline_mode<synchronous>, transform_indices = @transform_3, window_bounds = array<i64: 3, 3, 128, 128>}, {transform_indices = @transform_4, window_bounds = array<i64: 1, 16, 16, 128>}, {transform_indices = @transform_5, window_bounds = array<i64: 1, 2, 128>}]} {
    %c0 = arith.constant 0 : index
    %c0_0 = arith.constant 0 : index
    %0 = vector.load %arg2[%c0, %c0_0] : memref<1x128xf32, #tpu.memory_space<vmem>>, vector<1x128xf32>
    %1 = vector.shape_cast %0 : vector<1x128xf32> to vector<1x1x128xf32>
    %c0_1 = arith.constant 0 : index
    %c0_2 = arith.constant 0 : index
    %2 = vector.load %arg3[%c0_1, %c0_2] : memref<1x128xf32, #tpu.memory_space<vmem>>, vector<1x128xf32>
    %3 = vector.shape_cast %2 : vector<1x128xf32> to vector<1x1x128xf32>
    %c0_3 = arith.constant 0 : index
    %c0_4 = arith.constant 0 : index
    %c0_5 = arith.constant 0 : index
    %c0_6 = arith.constant 0 : index
    %4 = vector.load %arg1[%c0_3, %c0_4, %c0_5, %c0_6] : memref<1x16x16x128xbf16, #tpu.memory_space<vmem>>, vector<1x16x16x128xbf16>
    %5 = vector.shape_cast %4 : vector<1x16x16x128xbf16> to vector<16x16x128xbf16>
    %6 = arith.extf %5 : vector<16x16x128xbf16> to vector<16x16x128xf32>
    %7 = vector.broadcast %1 : vector<1x1x128xf32> to vector<16x16x128xf32>
    %8 = arith.mulf %6, %7 : vector<16x16x128xf32>
    %9 = vector.broadcast %3 : vector<1x1x128xf32> to vector<16x16x128xf32>
    %10 = arith.addf %8, %9 : vector<16x16x128xf32>
    %cst = arith.constant 0.000000e+00 : f32
    %11 = vector.broadcast %cst : f32 to vector<16x16x128xf32>
    %12 = arith.maximumf %10, %11 : vector<16x16x128xf32>
    %cst_7 = arith.constant 0.000000e+00 : bf16
    %13 = vector.broadcast %cst_7 : bf16 to vector<1x18x128xbf16>
    %cst_8 = arith.constant 0.000000e+00 : bf16
    %14 = vector.broadcast %cst_8 : bf16 to vector<18x1x128xbf16>
    %c0_9 = arith.constant 0 : index
    %c0_10 = arith.constant 0 : index
    %c0_11 = arith.constant 0 : index
    %15 = vector.load %arg7[%c0_9, %c0_10, %c0_11] : memref<18x18x128xbf16, #tpu.memory_space<vmem>>, vector<1x18x128xbf16>
    tpu.vector_store %arg7[%c0_9, %c0_10, %c0_11], %13 {strides = array<i32>} : memref<18x18x128xbf16, #tpu.memory_space<vmem>>, vector<1x18x128xbf16>,
    %c17 = arith.constant 17 : index
    %c0_12 = arith.constant 0 : index
    %c0_13 = arith.constant 0 : index
    %16 = vector.load %arg7[%c17, %c0_12, %c0_13] : memref<18x18x128xbf16, #tpu.memory_space<vmem>>, vector<1x18x128xbf16>
    tpu.vector_store %arg7[%c17, %c0_12, %c0_13], %13 {strides = array<i32>} : memref<18x18x128xbf16, #tpu.memory_space<vmem>>, vector<1x18x128xbf16>,
    %c0_14 = arith.constant 0 : index
    %c0_15 = arith.constant 0 : index
    %c0_16 = arith.constant 0 : index
    %17 = vector.load %arg7[%c0_14, %c0_15, %c0_16] : memref<18x18x128xbf16, #tpu.memory_space<vmem>>, vector<18x1x128xbf16>
    tpu.vector_store %arg7[%c0_14, %c0_15, %c0_16], %14 {strides = array<i32>} : memref<18x18x128xbf16, #tpu.memory_space<vmem>>, vector<18x1x128xbf16>,
    %c0_17 = arith.constant 0 : index
    %c17_18 = arith.constant 17 : index
    %c0_19 = arith.constant 0 : index
    %18 = vector.load %arg7[%c0_17, %c17_18, %c0_19] : memref<18x18x128xbf16, #tpu.memory_space<vmem>>, vector<18x1x128xbf16>
    tpu.vector_store %arg7[%c0_17, %c17_18, %c0_19], %14 {strides = array<i32>} : memref<18x18x128xbf16, #tpu.memory_space<vmem>>, vector<18x1x128xbf16>,
    %19 = arith.truncf %12 : vector<16x16x128xf32> to vector<16x16x128xbf16>
    %c1 = arith.constant 1 : index
    %c1_20 = arith.constant 1 : index
    %c0_21 = arith.constant 0 : index
    %20 = vector.load %arg7[%c1, %c1_20, %c0_21] : memref<18x18x128xbf16, #tpu.memory_space<vmem>>, vector<16x16x128xbf16>
    tpu.vector_store %arg7[%c1, %c1_20, %c0_21], %19 {strides = array<i32>} : memref<18x18x128xbf16, #tpu.memory_space<vmem>>, vector<16x16x128xbf16>,
    %cst_22 = arith.constant 0.000000e+00 : f32
    %21 = vector.broadcast %cst_22 : f32 to vector<256x128xf32>
    %c0_23 = arith.constant 0 : index
    %c0_24 = arith.constant 0 : index
    %c0_25 = arith.constant 0 : index
    %22 = vector.load %arg7[%c0_23, %c0_24, %c0_25] : memref<18x18x128xbf16, #tpu.memory_space<vmem>>, vector<16x16x128xbf16>
    %23 = vector.shape_cast %22 : vector<16x16x128xbf16> to vector<256x128xbf16>
    %c0_26 = arith.constant 0 : index
    %c0_27 = arith.constant 0 : index
    %c0_28 = arith.constant 0 : index
    %c0_29 = arith.constant 0 : index
    %24 = vector.load %arg4[%c0_26, %c0_27, %c0_28, %c0_29] : memref<3x3x128x128xbf16, #tpu.memory_space<vmem>>, vector<1x1x128x128xbf16>
    %25 = vector.shape_cast %24 : vector<1x1x128x128xbf16> to vector<128x128xbf16>
    %cst_30 = arith.constant dense<0.000000e+00> : vector<256x128xf32>
    %26 = tpu.matmul %23, %25, %cst_30 {dimension_numbers = #tpu.dot_dimension_numbers<[1], [0], [0], [1], [0, 0, 1, 1], [], []>} : vector<256x128xbf16>, vector<128x128xbf16>, vector<256x128xf32> -> vector<256x128xf32>
    %27 = arith.addf %21, %26 : vector<256x128xf32>
    %c0_31 = arith.constant 0 : index
    %c1_32 = arith.constant 1 : index
    %c0_33 = arith.constant 0 : index
    %28 = vector.load %arg7[%c0_31, %c1_32, %c0_33] : memref<18x18x128xbf16, #tpu.memory_space<vmem>>, vector<16x16x128xbf16>
    %29 = vector.shape_cast %28 : vector<16x16x128xbf16> to vector<256x128xbf16>
    %c0_34 = arith.constant 0 : index
    %c1_35 = arith.constant 1 : index
    %c0_36 = arith.constant 0 : index
    %c0_37 = arith.constant 0 : index
    %30 = vector.load %arg4[%c0_34, %c1_35, %c0_36, %c0_37] : memref<3x3x128x128xbf16, #tpu.memory_space<vmem>>, vector<1x1x128x128xbf16>
    %31 = vector.shape_cast %30 : vector<1x1x128x128xbf16> to vector<128x128xbf16>
    %cst_38 = arith.constant dense<0.000000e+00> : vector<256x128xf32>
    %32 = tpu.matmul %29, %31, %cst_38 {dimension_numbers = #tpu.dot_dimension_numbers<[1], [0], [0], [1], [0, 0, 1, 1], [], []>} : vector<256x128xbf16>, vector<128x128xbf16>, vector<256x128xf32> -> vector<256x128xf32>
    %33 = arith.addf %27, %32 : vector<256x128xf32>
    %c0_39 = arith.constant 0 : index
    %c2 = arith.constant 2 : index
    %c0_40 = arith.constant 0 : index
    %34 = vector.load %arg7[%c0_39, %c2, %c0_40] : memref<18x18x128xbf16, #tpu.memory_space<vmem>>, vector<16x16x128xbf16>
    %35 = vector.shape_cast %34 : vector<16x16x128xbf16> to vector<256x128xbf16>
    %c0_41 = arith.constant 0 : index
    %c2_42 = arith.constant 2 : index
    %c0_43 = arith.constant 0 : index
    %c0_44 = arith.constant 0 : index
    %36 = vector.load %arg4[%c0_41, %c2_42, %c0_43, %c0_44] : memref<3x3x128x128xbf16, #tpu.memory_space<vmem>>, vector<1x1x128x128xbf16>
    %37 = vector.shape_cast %36 : vector<1x1x128x128xbf16> to vector<128x128xbf16>
    %cst_45 = arith.constant dense<0.000000e+00> : vector<256x128xf32>
    %38 = tpu.matmul %35, %37, %cst_45 {dimension_numbers = #tpu.dot_dimension_numbers<[1], [0], [0], [1], [0, 0, 1, 1], [], []>} : vector<256x128xbf16>, vector<128x128xbf16>, vector<256x128xf32> -> vector<256x128xf32>
    %39 = arith.addf %33, %38 : vector<256x128xf32>
    %c1_46 = arith.constant 1 : index
    %c0_47 = arith.constant 0 : index
    %c0_48 = arith.constant 0 : index
    %40 = vector.load %arg7[%c1_46, %c0_47, %c0_48] : memref<18x18x128xbf16, #tpu.memory_space<vmem>>, vector<16x16x128xbf16>
    %41 = vector.shape_cast %40 : vector<16x16x128xbf16> to vector<256x128xbf16>
    %c1_49 = arith.constant 1 : index
    %c0_50 = arith.constant 0 : index
    %c0_51 = arith.constant 0 : index
    %c0_52 = arith.constant 0 : index
    %42 = vector.load %arg4[%c1_49, %c0_50, %c0_51, %c0_52] : memref<3x3x128x128xbf16, #tpu.memory_space<vmem>>, vector<1x1x128x128xbf16>
    %43 = vector.shape_cast %42 : vector<1x1x128x128xbf16> to vector<128x128xbf16>
    %cst_53 = arith.constant dense<0.000000e+00> : vector<256x128xf32>
    %44 = tpu.matmul %41, %43, %cst_53 {dimension_numbers = #tpu.dot_dimension_numbers<[1], [0], [0], [1], [0, 0, 1, 1], [], []>} : vector<256x128xbf16>, vector<128x128xbf16>, vector<256x128xf32> -> vector<256x128xf32>
    %45 = arith.addf %39, %44 : vector<256x128xf32>
    %c1_54 = arith.constant 1 : index
    %c1_55 = arith.constant 1 : index
    %c0_56 = arith.constant 0 : index
    %46 = vector.load %arg7[%c1_54, %c1_55, %c0_56] : memref<18x18x128xbf16, #tpu.memory_space<vmem>>, vector<16x16x128xbf16>
    %47 = vector.shape_cast %46 : vector<16x16x128xbf16> to vector<256x128xbf16>
    %c1_57 = arith.constant 1 : index
    %c1_58 = arith.constant 1 : index
    %c0_59 = arith.constant 0 : index
    %c0_60 = arith.constant 0 : index
    %48 = vector.load %arg4[%c1_57, %c1_58, %c0_59, %c0_60] : memref<3x3x128x128xbf16, #tpu.memory_space<vmem>>, vector<1x1x128x128xbf16>
    %49 = vector.shape_cast %48 : vector<1x1x128x128xbf16> to vector<128x128xbf16>
    %cst_61 = arith.constant dense<0.000000e+00> : vector<256x128xf32>
    %50 = tpu.matmul %47, %49, %cst_61 {dimension_numbers = #tpu.dot_dimension_numbers<[1], [0], [0], [1], [0, 0, 1, 1], [], []>} : vector<256x128xbf16>, vector<128x128xbf16>, vector<256x128xf32> -> vector<256x128xf32>
    %51 = arith.addf %45, %50 : vector<256x128xf32>
    %c1_62 = arith.constant 1 : index
    %c2_63 = arith.constant 2 : index
    %c0_64 = arith.constant 0 : index
    %52 = vector.load %arg7[%c1_62, %c2_63, %c0_64] : memref<18x18x128xbf16, #tpu.memory_space<vmem>>, vector<16x16x128xbf16>
    %53 = vector.shape_cast %52 : vector<16x16x128xbf16> to vector<256x128xbf16>
    %c1_65 = arith.constant 1 : index
    %c2_66 = arith.constant 2 : index
    %c0_67 = arith.constant 0 : index
    %c0_68 = arith.constant 0 : index
    %54 = vector.load %arg4[%c1_65, %c2_66, %c0_67, %c0_68] : memref<3x3x128x128xbf16, #tpu.memory_space<vmem>>, vector<1x1x128x128xbf16>
    %55 = vector.shape_cast %54 : vector<1x1x128x128xbf16> to vector<128x128xbf16>
    %cst_69 = arith.constant dense<0.000000e+00> : vector<256x128xf32>
    %56 = tpu.matmul %53, %55, %cst_69 {dimension_numbers = #tpu.dot_dimension_numbers<[1], [0], [0], [1], [0, 0, 1, 1], [], []>} : vector<256x128xbf16>, vector<128x128xbf16>, vector<256x128xf32> -> vector<256x128xf32>
    %57 = arith.addf %51, %56 : vector<256x128xf32>
    %c2_70 = arith.constant 2 : index
    %c0_71 = arith.constant 0 : index
    %c0_72 = arith.constant 0 : index
    %58 = vector.load %arg7[%c2_70, %c0_71, %c0_72] : memref<18x18x128xbf16, #tpu.memory_space<vmem>>, vector<16x16x128xbf16>
    %59 = vector.shape_cast %58 : vector<16x16x128xbf16> to vector<256x128xbf16>
    %c2_73 = arith.constant 2 : index
    %c0_74 = arith.constant 0 : index
    %c0_75 = arith.constant 0 : index
    %c0_76 = arith.constant 0 : index
    %60 = vector.load %arg4[%c2_73, %c0_74, %c0_75, %c0_76] : memref<3x3x128x128xbf16, #tpu.memory_space<vmem>>, vector<1x1x128x128xbf16>
    %61 = vector.shape_cast %60 : vector<1x1x128x128xbf16> to vector<128x128xbf16>
    %cst_77 = arith.constant dense<0.000000e+00> : vector<256x128xf32>
    %62 = tpu.matmul %59, %61, %cst_77 {dimension_numbers = #tpu.dot_dimension_numbers<[1], [0], [0], [1], [0, 0, 1, 1], [], []>} : vector<256x128xbf16>, vector<128x128xbf16>, vector<256x128xf32> -> vector<256x128xf32>
    %63 = arith.addf %57, %62 : vector<256x128xf32>
    %c2_78 = arith.constant 2 : index
    %c1_79 = arith.constant 1 : index
    %c0_80 = arith.constant 0 : index
    %64 = vector.load %arg7[%c2_78, %c1_79, %c0_80] : memref<18x18x128xbf16, #tpu.memory_space<vmem>>, vector<16x16x128xbf16>
    %65 = vector.shape_cast %64 : vector<16x16x128xbf16> to vector<256x128xbf16>
    %c2_81 = arith.constant 2 : index
    %c1_82 = arith.constant 1 : index
    %c0_83 = arith.constant 0 : index
    %c0_84 = arith.constant 0 : index
    %66 = vector.load %arg4[%c2_81, %c1_82, %c0_83, %c0_84] : memref<3x3x128x128xbf16, #tpu.memory_space<vmem>>, vector<1x1x128x128xbf16>
    %67 = vector.shape_cast %66 : vector<1x1x128x128xbf16> to vector<128x128xbf16>
    %cst_85 = arith.constant dense<0.000000e+00> : vector<256x128xf32>
    %68 = tpu.matmul %65, %67, %cst_85 {dimension_numbers = #tpu.dot_dimension_numbers<[1], [0], [0], [1], [0, 0, 1, 1], [], []>} : vector<256x128xbf16>, vector<128x128xbf16>, vector<256x128xf32> -> vector<256x128xf32>
    %69 = arith.addf %63, %68 : vector<256x128xf32>
    %c2_86 = arith.constant 2 : index
    %c2_87 = arith.constant 2 : index
    %c0_88 = arith.constant 0 : index
    %70 = vector.load %arg7[%c2_86, %c2_87, %c0_88] : memref<18x18x128xbf16, #tpu.memory_space<vmem>>, vector<16x16x128xbf16>
    %71 = vector.shape_cast %70 : vector<16x16x128xbf16> to vector<256x128xbf16>
    %c2_89 = arith.constant 2 : index
    %c2_90 = arith.constant 2 : index
    %c0_91 = arith.constant 0 : index
    %c0_92 = arith.constant 0 : index
    %72 = vector.load %arg4[%c2_89, %c2_90, %c0_91, %c0_92] : memref<3x3x128x128xbf16, #tpu.memory_space<vmem>>, vector<1x1x128x128xbf16>
    %73 = vector.shape_cast %72 : vector<1x1x128x128xbf16> to vector<128x128xbf16>
    %cst_93 = arith.constant dense<0.000000e+00> : vector<256x128xf32>
    %74 = tpu.matmul %71, %73, %cst_93 {dimension_numbers = #tpu.dot_dimension_numbers<[1], [0], [0], [1], [0, 0, 1, 1], [], []>} : vector<256x128xbf16>, vector<128x128xbf16>, vector<256x128xf32> -> vector<256x128xf32>
    %75 = arith.addf %69, %74 : vector<256x128xf32>
    %76 = vector.shape_cast %75 : vector<256x128xf32> to vector<16x16x128xf32>
    %77 = arith.truncf %76 : vector<16x16x128xf32> to vector<16x16x128xbf16>
    %c0_94 = arith.constant 0 : index
    %c0_95 = arith.constant 0 : index
    %c0_96 = arith.constant 0 : index
    %c0_97 = arith.constant 0 : index
    %78 = vector.load %arg5[%c0_94, %c0_95, %c0_96, %c0_97] : memref<1x16x16x128xbf16, #tpu.memory_space<vmem>>, vector<1x16x16x128xbf16>
    %79 = vector.shape_cast %78 : vector<1x16x16x128xbf16> to vector<16x16x128xbf16>
    %80 = vector.shape_cast %77 : vector<16x16x128xbf16> to vector<1x16x16x128xbf16>
    tpu.vector_store %arg5[%c0_94, %c0_95, %c0_96, %c0_97], %80 {strides = array<i32>} : memref<1x16x16x128xbf16, #tpu.memory_space<vmem>>, vector<1x16x16x128xbf16>,
    %cst_98 = arith.constant dense<0.000000e+00> : vector<128xf32>
    %81 = vector.multi_reduction <add>, %75, %cst_98 [0] : vector<256x128xf32> to vector<128xf32>
    %82 = vector.shape_cast %81 : vector<128xf32> to vector<1x128xf32>
    %83 = arith.mulf %75, %75 : vector<256x128xf32>
    %cst_99 = arith.constant dense<0.000000e+00> : vector<128xf32>
    %84 = vector.multi_reduction <add>, %83, %cst_99 [0] : vector<256x128xf32> to vector<128xf32>
    %85 = vector.shape_cast %84 : vector<128xf32> to vector<1x128xf32>
    %86 = tpu.concatenate %82, %85 in 0 : vector<1x128xf32>, vector<1x128xf32> -> vector<2x128xf32>
    %87 = vector.shape_cast %86 : vector<2x128xf32> to vector<1x2x128xf32>
    %c0_100 = arith.constant 0 : index
    %c0_101 = arith.constant 0 : index
    %c0_102 = arith.constant 0 : index
    %88 = vector.load %arg6[%c0_100, %c0_101, %c0_102] : memref<1x2x128xf32, #tpu.memory_space<vmem>>, vector<1x2x128xf32>
    tpu.vector_store %arg6[%c0_100, %c0_101, %c0_102], %87 {strides = array<i32>} : memref<1x2x128xf32, #tpu.memory_space<vmem>>, vector<1x2x128xf32>,
    return
  }
  func.func @transform_0(%arg0: i32) -> (i32, i32, i32, i32) {
    %c0_i32 = arith.constant 0 : i32
    %c0_i32_0 = arith.constant 0 : i32
    %c0_i32_1 = arith.constant 0 : i32
    %c0_i32_2 = arith.constant 0 : i32
    return %arg0, %c0_i32, %c0_i32_0, %c0_i32_1 : i32, i32, i32, i32
  }
  func.func @transform_1(%arg0: i32) -> (i32, i32) {
    %c0_i32 = arith.constant 0 : i32
    %c0_i32_0 = arith.constant 0 : i32
    %c0_i32_1 = arith.constant 0 : i32
    return %c0_i32, %c0_i32_0 : i32, i32
  }
  func.func @transform_2(%arg0: i32) -> (i32, i32) {
    %c0_i32 = arith.constant 0 : i32
    %c0_i32_0 = arith.constant 0 : i32
    %c0_i32_1 = arith.constant 0 : i32
    return %c0_i32, %c0_i32_0 : i32, i32
  }
  func.func @transform_3(%arg0: i32) -> (i32, i32, i32, i32) {
    %c0_i32 = arith.constant 0 : i32
    %c0_i32_0 = arith.constant 0 : i32
    %c0_i32_1 = arith.constant 0 : i32
    %c0_i32_2 = arith.constant 0 : i32
    %c0_i32_3 = arith.constant 0 : i32
    return %c0_i32, %c0_i32_0, %c0_i32_1, %c0_i32_2 : i32, i32, i32, i32
  }
  func.func @transform_4(%arg0: i32) -> (i32, i32, i32, i32) {
    %c0_i32 = arith.constant 0 : i32
    %c0_i32_0 = arith.constant 0 : i32
    %c0_i32_1 = arith.constant 0 : i32
    %c0_i32_2 = arith.constant 0 : i32
    return %arg0, %c0_i32, %c0_i32_0, %c0_i32_1 : i32, i32, i32, i32
  }
  func.func @transform_5(%arg0: i32) -> (i32, i32, i32) {
    %c0_i32 = arith.constant 0 : i32
    %c0_i32_0 = arith.constant 0 : i32
    %c0_i32_1 = arith.constant 0 : i32
    return %arg0, %c0_i32, %c0_i32_0 : i32, i32, i32
  }
}

module attributes {stable_mosaic.version = 11 : i64} {
  func.func @_bn_add_relu_kernel(%arg0: i32, %arg1: memref<256x128xbf16, #tpu.memory_space<vmem>>, %arg2: memref<1x128xf32, #tpu.memory_space<vmem>>, %arg3: memref<1x128xf32, #tpu.memory_space<vmem>>, %arg4: memref<256x128xf32, #tpu.memory_space<vmem>>, %arg5: memref<256x128xf32, #tpu.memory_space<vmem>>) attributes {dimension_semantics = [#tpu.dimension_semantics<parallel>], iteration_bounds = array<i64: 2>, scalar_prefetch = 0 : i64, scratch_operands = 0 : i64, tpu.core_type = #tpu.core_type<tc>, window_params = [{transform_indices = @transform_0, window_bounds = array<i64: 256, 128>}, {pipeline_mode = #tpu.pipeline_mode<synchronous>, transform_indices = @transform_1, window_bounds = array<i64: 1, 128>}, {pipeline_mode = #tpu.pipeline_mode<synchronous>, transform_indices = @transform_2, window_bounds = array<i64: 1, 128>}, {transform_indices = @transform_3, window_bounds = array<i64: 256, 128>}, {transform_indices = @transform_4, window_bounds = array<i64: 256, 128>}]} {
    %c0 = arith.constant 0 : index
    %c0_0 = arith.constant 0 : index
    %0 = vector.load %arg1[%c0, %c0_0] : memref<256x128xbf16, #tpu.memory_space<vmem>>, vector<256x128xbf16>
    %1 = arith.extf %0 : vector<256x128xbf16> to vector<256x128xf32>
    %c0_1 = arith.constant 0 : index
    %c0_2 = arith.constant 0 : index
    %2 = vector.load %arg2[%c0_1, %c0_2] : memref<1x128xf32, #tpu.memory_space<vmem>>, vector<1x128xf32>
    %3 = vector.broadcast %2 : vector<1x128xf32> to vector<256x128xf32>
    %4 = arith.mulf %1, %3 : vector<256x128xf32>
    %c0_3 = arith.constant 0 : index
    %c0_4 = arith.constant 0 : index
    %5 = vector.load %arg3[%c0_3, %c0_4] : memref<1x128xf32, #tpu.memory_space<vmem>>, vector<1x128xf32>
    %6 = vector.broadcast %5 : vector<1x128xf32> to vector<256x128xf32>
    %7 = arith.addf %4, %6 : vector<256x128xf32>
    %c0_5 = arith.constant 0 : index
    %c0_6 = arith.constant 0 : index
    %8 = vector.load %arg4[%c0_5, %c0_6] : memref<256x128xf32, #tpu.memory_space<vmem>>, vector<256x128xf32>
    %9 = arith.addf %7, %8 : vector<256x128xf32>
    %cst = arith.constant 0.000000e+00 : f32
    %10 = vector.broadcast %cst : f32 to vector<256x128xf32>
    %11 = arith.maximumf %9, %10 : vector<256x128xf32>
    %c0_7 = arith.constant 0 : index
    %c0_8 = arith.constant 0 : index
    %12 = vector.load %arg5[%c0_7, %c0_8] : memref<256x128xf32, #tpu.memory_space<vmem>>, vector<256x128xf32>
    tpu.vector_store %arg5[%c0_7, %c0_8], %11 {strides = array<i32>} : memref<256x128xf32, #tpu.memory_space<vmem>>, vector<256x128xf32>,
    return
  }
  func.func @transform_0(%arg0: i32) -> (i32, i32) {
    %c0_i32 = arith.constant 0 : i32
    %c0_i32_0 = arith.constant 0 : i32
    return %arg0, %c0_i32 : i32, i32
  }
  func.func @transform_1(%arg0: i32) -> (i32, i32) {
    %c0_i32 = arith.constant 0 : i32
    %c0_i32_0 = arith.constant 0 : i32
    %c0_i32_1 = arith.constant 0 : i32
    return %c0_i32, %c0_i32_0 : i32, i32
  }
  func.func @transform_2(%arg0: i32) -> (i32, i32) {
    %c0_i32 = arith.constant 0 : i32
    %c0_i32_0 = arith.constant 0 : i32
    %c0_i32_1 = arith.constant 0 : i32
    return %c0_i32, %c0_i32_0 : i32, i32
  }
  func.func @transform_3(%arg0: i32) -> (i32, i32) {
    %c0_i32 = arith.constant 0 : i32
    %c0_i32_0 = arith.constant 0 : i32
    return %arg0, %c0_i32 : i32, i32
  }
  func.func @transform_4(%arg0: i32) -> (i32, i32) {
    %c0_i32 = arith.constant 0 : i32
    %c0_i32_0 = arith.constant 0 : i32
    return %arg0, %c0_i32 : i32, i32
  }
}

module attributes {stable_mosaic.version = 11 : i64} {
  func.func @_bn_relu_conv1x1_stats_kernel(%arg0: i32, %arg1: memref<256x128xbf16, #tpu.memory_space<vmem>>, %arg2: memref<1x128xf32, #tpu.memory_space<vmem>>, %arg3: memref<1x128xf32, #tpu.memory_space<vmem>>, %arg4: memref<128x128xbf16, #tpu.memory_space<vmem>>, %arg5: memref<256x128xbf16, #tpu.memory_space<vmem>>, %arg6: memref<1x2x128xf32, #tpu.memory_space<vmem>>) attributes {dimension_semantics = [#tpu.dimension_semantics<parallel>], iteration_bounds = array<i64: 2>, scalar_prefetch = 0 : i64, scratch_operands = 0 : i64, tpu.core_type = #tpu.core_type<tc>, window_params = [{transform_indices = @transform_0, window_bounds = array<i64: 256, 128>}, {pipeline_mode = #tpu.pipeline_mode<synchronous>, transform_indices = @transform_1, window_bounds = array<i64: 1, 128>}, {pipeline_mode = #tpu.pipeline_mode<synchronous>, transform_indices = @transform_2, window_bounds = array<i64: 1, 128>}, {pipeline_mode = #tpu.pipeline_mode<synchronous>, transform_indices = @transform_3, window_bounds = array<i64: 128, 128>}, {transform_indices = @transform_4, window_bounds = array<i64: 256, 128>}, {transform_indices = @transform_5, window_bounds = array<i64: 1, 2, 128>}]} {
    %c0 = arith.constant 0 : index
    %c0_0 = arith.constant 0 : index
    %0 = vector.load %arg1[%c0, %c0_0] : memref<256x128xbf16, #tpu.memory_space<vmem>>, vector<256x128xbf16>
    %1 = arith.extf %0 : vector<256x128xbf16> to vector<256x128xf32>
    %c0_1 = arith.constant 0 : index
    %c0_2 = arith.constant 0 : index
    %2 = vector.load %arg2[%c0_1, %c0_2] : memref<1x128xf32, #tpu.memory_space<vmem>>, vector<1x128xf32>
    %3 = vector.broadcast %2 : vector<1x128xf32> to vector<256x128xf32>
    %4 = arith.mulf %1, %3 : vector<256x128xf32>
    %c0_3 = arith.constant 0 : index
    %c0_4 = arith.constant 0 : index
    %5 = vector.load %arg3[%c0_3, %c0_4] : memref<1x128xf32, #tpu.memory_space<vmem>>, vector<1x128xf32>
    %6 = vector.broadcast %5 : vector<1x128xf32> to vector<256x128xf32>
    %7 = arith.addf %4, %6 : vector<256x128xf32>
    %cst = arith.constant 0.000000e+00 : f32
    %8 = vector.broadcast %cst : f32 to vector<256x128xf32>
    %9 = arith.maximumf %7, %8 : vector<256x128xf32>
    %10 = arith.truncf %9 : vector<256x128xf32> to vector<256x128xbf16>
    %c0_5 = arith.constant 0 : index
    %c0_6 = arith.constant 0 : index
    %11 = vector.load %arg4[%c0_5, %c0_6] : memref<128x128xbf16, #tpu.memory_space<vmem>>, vector<128x128xbf16>
    %cst_7 = arith.constant dense<0.000000e+00> : vector<256x128xf32>
    %12 = tpu.matmul %10, %11, %cst_7 {dimension_numbers = #tpu.dot_dimension_numbers<[1], [0], [0], [1], [0, 0, 1, 1], [], []>} : vector<256x128xbf16>, vector<128x128xbf16>, vector<256x128xf32> -> vector<256x128xf32>
    %13 = arith.truncf %12 : vector<256x128xf32> to vector<256x128xbf16>
    %c0_8 = arith.constant 0 : index
    %c0_9 = arith.constant 0 : index
    %14 = vector.load %arg5[%c0_8, %c0_9] : memref<256x128xbf16, #tpu.memory_space<vmem>>, vector<256x128xbf16>
    tpu.vector_store %arg5[%c0_8, %c0_9], %13 {strides = array<i32>} : memref<256x128xbf16, #tpu.memory_space<vmem>>, vector<256x128xbf16>,
    %cst_10 = arith.constant dense<0.000000e+00> : vector<128xf32>
    %15 = vector.multi_reduction <add>, %12, %cst_10 [0] : vector<256x128xf32> to vector<128xf32>
    %16 = vector.shape_cast %15 : vector<128xf32> to vector<1x128xf32>
    %17 = arith.mulf %12, %12 : vector<256x128xf32>
    %cst_11 = arith.constant dense<0.000000e+00> : vector<128xf32>
    %18 = vector.multi_reduction <add>, %17, %cst_11 [0] : vector<256x128xf32> to vector<128xf32>
    %19 = vector.shape_cast %18 : vector<128xf32> to vector<1x128xf32>
    %20 = tpu.concatenate %16, %19 in 0 : vector<1x128xf32>, vector<1x128xf32> -> vector<2x128xf32>
    %21 = vector.shape_cast %20 : vector<2x128xf32> to vector<1x2x128xf32>
    %c0_12 = arith.constant 0 : index
    %c0_13 = arith.constant 0 : index
    %c0_14 = arith.constant 0 : index
    %22 = vector.load %arg6[%c0_12, %c0_13, %c0_14] : memref<1x2x128xf32, #tpu.memory_space<vmem>>, vector<1x2x128xf32>
    tpu.vector_store %arg6[%c0_12, %c0_13, %c0_14], %21 {strides = array<i32>} : memref<1x2x128xf32, #tpu.memory_space<vmem>>, vector<1x2x128xf32>,
    return
  }
  func.func @transform_0(%arg0: i32) -> (i32, i32) {
    %c0_i32 = arith.constant 0 : i32
    %c0_i32_0 = arith.constant 0 : i32
    return %arg0, %c0_i32 : i32, i32
  }
  func.func @transform_1(%arg0: i32) -> (i32, i32) {
    %c0_i32 = arith.constant 0 : i32
    %c0_i32_0 = arith.constant 0 : i32
    %c0_i32_1 = arith.constant 0 : i32
    return %c0_i32, %c0_i32_0 : i32, i32
  }
  func.func @transform_2(%arg0: i32) -> (i32, i32) {
    %c0_i32 = arith.constant 0 : i32
    %c0_i32_0 = arith.constant 0 : i32
    %c0_i32_1 = arith.constant 0 : i32
    return %c0_i32, %c0_i32_0 : i32, i32
  }
  func.func @transform_3(%arg0: i32) -> (i32, i32) {
    %c0_i32 = arith.constant 0 : i32
    %c0_i32_0 = arith.constant 0 : i32
    %c0_i32_1 = arith.constant 0 : i32
    return %c0_i32, %c0_i32_0 : i32, i32
  }
  func.func @transform_4(%arg0: i32) -> (i32, i32) {
    %c0_i32 = arith.constant 0 : i32
    %c0_i32_0 = arith.constant 0 : i32
    return %arg0, %c0_i32 : i32, i32
  }
  func.func @transform_5(%arg0: i32) -> (i32, i32, i32) {
    %c0_i32 = arith.constant 0 : i32
    %c0_i32_0 = arith.constant 0 : i32
    %c0_i32_1 = arith.constant 0 : i32
    return %arg0, %c0_i32, %c0_i32_0 : i32, i32, i32
  }
}

</mosaic_0001>

<bundles_post_ra>
// kernel: bottleneck_forward.4
= control target key start
LH: loop header
LB: loop body
LE: loop exit
PB: predicated region body
PF: predicated region fallthrough
CT: control target
= control target key end

     0   :  { %s1126_s12 = smov 0   ;;  %s1315_s0 = inlined_call_operand.vmem [shape: f32[512,128], index: 0, kind: input, shape index: {}]   ;;  %s1316_s1 = inlined_call_operand.vmem [shape: bf16[128,128], index: 1, kind: input, shape index: {}]   ;;  %s1317_s2 = inlined_call_operand.vmem [shape: bf16[512,128], index: 2, kind: output, shape index: {0}]   ;;  %s1318_s3 = inlined_call_operand.vmem [shape: f32[2,2,128], index: 3, kind: output, shape index: {1}]  }
   0x1 LB: > { %s1132_s13 = sadd.s32 4294967295, %s1104_s12   ;;  %p819_p0 = scmp.ge.s32.totalorder %s1104_s12, 1  ;;  %s1104_s12 = sphi %s1126_s12, %s14_s12  }
   0x2   : > { %p141_p1 = scmp.lt.s32.totalorder %s1104_s12, 3 }
   0x4   : > { %p142_p2 = pnand %p819_p0, %p141_p1 }
   0x5   : > { %s820_s16 = sshll.u32 (!%p142_p2), %s1132_s13, 5  ;;  %p181_p4 = scmp.lt.s32.totalorder (!%p142_p2), %s1132_s13, 1 }
   0x6   : > { %145 = sbr.rel (%p142_p2) target bundleno = 321 (0x141), region = 28  ;;  %p170_p3 = scmp.lt.s32.totalorder (!%p142_p2), %s820_s16, 63 }
   0xb   : > { %v1090_v0 = vld [vmem:[%s1316_s1 + $0x38] sm:$0xff]   ;;  %v1091_v1 = vld [vmem:[%s1316_s1 + $0x30] sm:$0xff]   ;;  %s1320_s16 = smov (!%p170_p3, %s820_s16), 63  ;;  %v1092_v2 = vld [vmem:[%s1316_s1 + $0x28] sm:$0xff]   ;;  %s1322_s13 = smov (!%p181_p4, %s1132_s13), 1  ;;  %vm725_vm0 = vcmask 1040384  }
   0xc   : > { %1018 = vmatprep.subr.bf16.mxu0 %v1090_v0  ;;  %1066 = vmatprep.subr.bf16.mxu1 %v1090_v0  ;;  %s821_s21 = sshll.u32 %s1320_s16, 3  ;;  %v1093_v3 = vld [vmem:[%s1316_s1 + $0x20] sm:$0xff]   ;;  %v1094_v7 = vld [vmem:[%s1316_s1 + $0x18] sm:$0xff]   ;;  %v1095_v11 = vld [vmem:[%s1316_s1 + $0x10] sm:$0xff]   ;;  %s823_s8 = sshll.u32 %s1320_s16, 2 }
   0xd   : > { %1019 = vmatpush3.bf16.msra.mxu0 %v1090_v0  ;;  %1074 = vmatpush3.bf16.msra.mxu1 %v1090_v0  ;;  %s1152_s24 = scalar_lea.vmem %s1315_s0, %s821_s21  ;;  %v1096_v12 = vld [vmem:[%s1316_s1 + $0x8] sm:$0xff]   ;;  %v1097_v13 = vld [vmem:[%s1316_s1] sm:$0xff]   ;;  %s1209_s11 = scalar_lea.vmem %s1317_s2, %s823_s8 }
   0xe   : > { %1020 = vmatprep.subr.bf16.mxu0 %v1091_v1  ;;  %1067 = vmatprep.subr.bf16.mxu1 %v1091_v1  ;;  %v186_v4 = vld [vmem:[%s1152_s24] sm:$0xff]  ;;  %v187_v5 = vld [vmem:[%s1152_s24 + $0x8] sm:$0xff]  ;;  %v188_v14 = vld [vmem:[%s1152_s24 + $0x10] sm:$0xff]  ;;  %s824_s14 = sshll.u32 %s1322_s13, 1 }
   0xf   : > { %v218_v6 = vpack.c.bf16 %v187_v5, %v186_v4  ;;  %v202_v8 = vld [vmem:[%s1152_s24 + $0x80] sm:$0xff]  ;;  %v203_v9 = vld [vmem:[%s1152_s24 + $0x88] sm:$0xff]  ;;  %v189_v15 = vld [vmem:[%s1152_s24 + $0x18] sm:$0xff]  ;;  %s184_s17 = scalar_lea.vmem %s1318_s3, %s824_s14 }
  0x10   : > { %v226_v10 = vpack.c.bf16 %v203_v9, %v202_v8  ;;  %v190_v16 = vld [vmem:[%s1152_s24 + $0x20] sm:$0xff]  ;;  %v191_v17 = vld [vmem:[%s1152_s24 + $0x28] sm:$0xff]  ;;  %v204_v18 = vld [vmem:[%s1152_s24 + $0x90] sm:$0xff]  ;;  %v219_v22 = vpack.c.bf16 %v189_v15, %v188_v14 }
  0x11   : > { %1021 = vmatpush3.bf16.msra.mxu0 %v1091_v1  ;;  %1075 = vmatpush3.bf16.msra.mxu1 %v1091_v1  ;;  %v205_v19 = vld [vmem:[%s1152_s24 + $0x98] sm:$0xff]  ;;  %v206_v20 = vld [vmem:[%s1152_s24 + $0xa0] sm:$0xff]  ;;  %v207_v21 = vld [vmem:[%s1152_s24 + $0xa8] sm:$0xff]  ;;  %v220_v23 = vpack.c.bf16 %v191_v17, %v190_v16 }
  0x12   : > { %1022 = vmatprep.subr.bf16.mxu0 %v1092_v2  ;;  %1068 = vmatprep.subr.bf16.mxu1 %v1092_v2  ;;  %v227_v24 = vpack.c.bf16 %v205_v19, %v204_v18  ;;  %v228_v25 = vpack.c.bf16 %v207_v21, %v206_v20  ;;  %v192_v26 = vld [vmem:[%s1152_s24 + $0x30] sm:$0xff]  ;;  %v193_v27 = vld [vmem:[%s1152_s24 + $0x38] sm:$0xff]  ;;  %v194_v28 = vld [vmem:[%s1152_s24 + $0x40] sm:$0xff] }
  0x13   : > { %1034 = vmatprep.mubr.bf16.mxu0 %v218_v6  ;;  %1050 = vmatprep.mubr.bf16.mxu1 %v226_v10  ;;  %v195_v29 = vld [vmem:[%s1152_s24 + $0x48] sm:$0xff]  ;;  %v208_v30 = vld [vmem:[%s1152_s24 + $0xb0] sm:$0xff]  ;;  %v209_v31 = vld [vmem:[%s1152_s24 + $0xb8] sm:$0xff]  ;;  %v221_v34 = vpack.c.bf16 %v193_v27, %v192_v26 }
  0x14   : > { %v210_v32 = vld [vmem:[%s1152_s24 + $0xc0] sm:$0xff]  ;;  %v211_v33 = vld [vmem:[%s1152_s24 + $0xc8] sm:$0xff]  ;;  %v222_v35 = vpack.c.bf16 %v195_v29, %v194_v28  ;;  %v229_v36 = vpack.c.bf16 %v209_v31, %v208_v30  ;;  %v196_v38 = vld [vmem:[%s1152_s24 + $0x50] sm:$0xff] }
  0x15   : > { %1023 = vmatpush3.bf16.msra.mxu0 %v1092_v2  ;;  %1076 = vmatpush3.bf16.msra.mxu1 %v1092_v2  ;;  %v230_v37 = vpack.c.bf16 %v211_v33, %v210_v32  ;;  %v197_v39 = vld [vmem:[%s1152_s24 + $0x58] sm:$0xff]  ;;  %v198_v40 = vld [vmem:[%s1152_s24 + $0x60] sm:$0xff]  ;;  %v199_v41 = vld [vmem:[%s1152_s24 + $0x68] sm:$0xff] }
  0x16   : > { %1024 = vmatprep.subr.bf16.mxu0 %v1093_v3  ;;  %1069 = vmatprep.subr.bf16.mxu1 %v1093_v3  ;;  %v212_v42 = vld [vmem:[%s1152_s24 + $0xd0] sm:$0xff]  ;;  %v213_v43 = vld [vmem:[%s1152_s24 + $0xd8] sm:$0xff]  ;;  %v214_v44 = vld [vmem:[%s1152_s24 + $0xe0] sm:$0xff]  ;;  %v223_v46 = vpack.c.bf16 %v197_v39, %v196_v38  ;;  %v224_v47 = vpack.c.bf16 %v199_v41, %v198_v40 }
  0x17   : > { %v215_v45 = vld [vmem:[%s1152_s24 + $0xe8] sm:$0xff]  ;;  %v231_v48 = vpack.c.bf16 %v213_v43, %v212_v42  ;;  %v200_v50 = vld [vmem:[%s1152_s24 + $0x70] sm:$0xff]  ;;  %v201_v51 = vld [vmem:[%s1152_s24 + $0x78] sm:$0xff] }
  0x18   : > { %v232_v49 = vpack.c.bf16 %v215_v45, %v214_v44  ;;  %v216_v52 = vld [vmem:[%s1152_s24 + $0xf0] sm:$0xff]  ;;  %v217_v53 = vld [vmem:[%s1152_s24 + $0xf8] sm:$0xff]  ;;  %v225_v54 = vpack.c.bf16 %v201_v51, %v200_v50 }
  0x19   : > { %1025 = vmatpush3.bf16.msra.mxu0 %v1093_v3  ;;  %1077 = vmatpush3.bf16.msra.mxu1 %v1093_v3  ;;  %v233_v55 = vpack.c.bf16 %v217_v53, %v216_v52 }
  0x1a   : > { %1026 = vmatprep.subr.bf16.mxu0 %v1094_v7  ;;  %1070 = vmatprep.subr.bf16.mxu1 %v1094_v7 }
  0x1d   : > { %1027 = vmatpush3.bf16.msra.mxu0 %v1094_v7  ;;  %1078 = vmatpush3.bf16.msra.mxu1 %v1094_v7 }
  0x1e   : > { %1028 = vmatprep.subr.bf16.mxu0 %v1095_v11  ;;  %1071 = vmatprep.subr.bf16.mxu1 %v1095_v11 }
  0x21   : > { %1029 = vmatpush3.bf16.msra.mxu0 %v1095_v11  ;;  %1079 = vmatpush3.bf16.msra.mxu1 %v1095_v11 }
  0x22   : > { %1030 = vmatprep.subr.bf16.mxu0 %v1096_v12  ;;  %1072 = vmatprep.subr.bf16.mxu1 %v1096_v12 }
  0x25   : > { %1031 = vmatpush3.bf16.msra.mxu0 %v1096_v12  ;;  %1080 = vmatpush3.bf16.msra.mxu1 %v1096_v12 }
  0x26   : > { %1032 = vmatprep.subr.bf16.mxu0 %v1097_v13  ;;  %1073 = vmatprep.subr.bf16.mxu1 %v1097_v13 }
  0x29   : > { %1033 = vmatpush3.bf16.msra.mxu0 %v1097_v13  ;;  %1081 = vmatpush3.bf16.msra.mxu1 %v1097_v13 }
  0x2c   : > { %1035 = vmatmul.mubr.bf16.vlgmr.msra.gmra.mxu0 %v219_v22  ;;  %1051 = vmatmul.mubr.bf16.vlgmr.msra.gmra.mxu1 %v227_v24 }
  0x2d   : > { %1038 = vmatprep.mubr.bf16.mxu0 %v220_v23  ;;  %1054 = vmatprep.mubr.bf16.mxu1 %v228_v25 }
  0x34   : > { %1039 = vmatmul.mubr.bf16.gmra.mxu0 %v221_v34  ;;  %1055 = vmatmul.mubr.bf16.gmra.mxu1 %v229_v36 }
  0x35   : > { %1042 = vmatprep.mubr.bf16.mxu0 %v222_v35  ;;  %1058 = vmatprep.mubr.bf16.mxu1 %v230_v37 }
  0x3c   : > { %1043 = vmatmul.mubr.bf16.gmra.mxu0 %v223_v46  ;;  %1059 = vmatmul.mubr.bf16.gmra.mxu1 %v231_v48 }
  0x3d   : > { %1046 = vmatprep.mubr.bf16.mxu0 %v224_v47  ;;  %1062 = vmatprep.mubr.bf16.mxu1 %v232_v49 }
  0x44   : > { %1047 = vmatmul.mubr.bf16.gmra.mxu0 %v225_v54  ;;  %1063 = vmatmul.mubr.bf16.gmra.mxu1 %v233_v55 }
  0xec   : > { %v1036_v56 = vpop.f32.mrf.mxu0  ;;  %v1202_v57 = vpop.f32.mrf.mxu1 }
  0xed   : > { %v658_v8 = vmul.f32 %v1036_v56, %v1036_v56 }
  0xee   : > { %v332_v58 = vpop.f32.mrf.mxu0  ;;  %v1204_v59 = vpop.f32.mrf.mxu1 }
  0xef   : > { %v656_v1 = vmul.f32 %v332_v58, %v332_v58 }
  0xf0   : > { %v1037_v60 = vpop.f32.mrf.mxu0  ;;  %v1211_v62 = vpop.f32.mrf.mxu1 }
  0xf1   : > { %v907_v61 = vpack.c.bf16 %v1037_v60, %v1036_v56  ;;  %v947_v0 = vpack.c.bf16 %v1211_v62, %v1202_v57  ;;  %v659_v13 = vmul.f32 %v1037_v60, %v1037_v60 }
  0xf2   : > { %v335_v63 = vpop.f32.mrf.mxu0  ;;  %v1216_v5 = vpop.f32.mrf.mxu1 }
  0xf3   : > { %979 = vst [vmem:[%s1209_s11 + $0x8] sm:$0xff] %v907_v61   ;;  %v902_v2 = vpack.c.bf16 %v335_v63, %v332_v58  ;;  %v619_v3 = vadd.f32 %v335_v63, %v332_v58  ;;  %v657_v4 = vmul.f32 %v335_v63, %v335_v63  ;;  %987 = vst [vmem:[%s1209_s11 + $0x48] sm:$0xff] %v947_v0  }
  0xf4   : > { %v1040_v6 = vpop.f32.mrf.mxu0  ;;  %v942_v7 = vpack.c.bf16 %v1216_v5, %v1204_v59  ;;  %v1222_v11 = vpop.f32.mrf.mxu1 }
  0xf5   : > { %903 = vst [vmem:[%s1209_s11] sm:$0xff] %v902_v2   ;;  %v620_v9 = vadd.f32 %v1036_v56, %v619_v3  ;;  %v688_v10 = vadd.f32 %v657_v4, %v656_v1  ;;  %v662_v32 = vmul.f32 %v1040_v6, %v1040_v6 }
  0xf6   : > { %v348_v12 = vpop.f32.mrf.mxu0  ;;  %986 = vst [vmem:[%s1209_s11 + $0x40] sm:$0xff] %v942_v7   ;;  %v1225_v16 = vpop.f32.mrf.mxu1 }
  0xf7   : > { %v689_v14 = vadd.f32 %v688_v10, %v658_v8  ;;  %v621_v15 = vadd.f32 %v1037_v60, %v620_v9  ;;  %v660_v19 = vmul.f32 %v348_v12, %v348_v12 }
  0xf8   : > { %v1041_v17 = vpop.f32.mrf.mxu0  ;;  %v1227_v22 = vpop.f32.mrf.mxu1 }
  0xf9   : > { %v622_v18 = vadd.f32 %v621_v15, %v348_v12  ;;  %v690_v20 = vadd.f32 %v689_v14, %v659_v13  ;;  %v917_v21 = vpack.c.bf16 %v1041_v17, %v1040_v6  ;;  %v957_v24 = vpack.c.bf16 %v1227_v22, %v1222_v11 }
  0xfa   : > { %v351_v23 = vpop.f32.mrf.mxu0  ;;  %v1232_v29 = vpop.f32.mrf.mxu1  ;;  %v663_v37 = vmul.f32 %v1041_v17, %v1041_v17 }
  0xfb   : > { %v691_v25 = vadd.f32 %v690_v20, %v660_v19  ;;  %981 = vst [vmem:[%s1209_s11 + $0x18] sm:$0xff] %v917_v21   ;;  %v912_v26 = vpack.c.bf16 %v351_v23, %v348_v12  ;;  %v623_v27 = vadd.f32 %v622_v18, %v351_v23  ;;  %v661_v28 = vmul.f32 %v351_v23, %v351_v23 }
  0xfc   : > { %v1044_v30 = vpop.f32.mrf.mxu0  ;;  %989 = vst [vmem:[%s1209_s11 + $0x58] sm:$0xff] %v957_v24   ;;  %v952_v31 = vpack.c.bf16 %v1232_v29, %v1225_v16  ;;  %v1238_v35 = vpop.f32.mrf.mxu1 }
  0xfd   : > { %980 = vst [vmem:[%s1209_s11 + $0x10] sm:$0xff] %v912_v26   ;;  %v624_v33 = vadd.f32 %v1040_v6, %v623_v27  ;;  %v692_v34 = vadd.f32 %v691_v25, %v661_v28  ;;  %v666_v56 = vmul.f32 %v1044_v30, %v1044_v30  ;;  %v672_v28 = vmul.f32 %v1204_v59, %v1204_v59 }
  0xfe   : > { %v364_v36 = vpop.f32.mrf.mxu0  ;;  %988 = vst [vmem:[%s1209_s11 + $0x50] sm:$0xff] %v952_v31   ;;  %v1241_v40 = vpop.f32.mrf.mxu1 }
  0xff   : > { %v693_v38 = vadd.f32 %v692_v34, %v662_v32  ;;  %v625_v39 = vadd.f32 %v1041_v17, %v624_v33  ;;  %v664_v43 = vmul.f32 %v364_v36, %v364_v36  ;;  %v673_v33 = vmul.f32 %v1216_v5, %v1216_v5 }
 0x100   : > { %v1045_v41 = vpop.f32.mrf.mxu0  ;;  %v1243_v46 = vpop.f32.mrf.mxu1 }
 0x101   : > { %v626_v42 = vadd.f32 %v625_v39, %v364_v36  ;;  %v694_v44 = vadd.f32 %v693_v38, %v663_v37  ;;  %v927_v45 = vpack.c.bf16 %v1045_v41, %v1044_v30  ;;  %v967_v48 = vpack.c.bf16 %v1243_v46, %v1238_v35 }
 0x102   : > { %v367_v47 = vpop.f32.mrf.mxu0  ;;  %v1248_v53 = vpop.f32.mrf.mxu1  ;;  %v667_v0 = vmul.f32 %v1045_v41, %v1045_v41  ;;  %v675_v39 = vmul.f32 %v1211_v62, %v1211_v62 }
 0x103   : > { %v695_v49 = vadd.f32 %v694_v44, %v664_v43  ;;  %983 = vst [vmem:[%s1209_s11 + $0x28] sm:$0xff] %v927_v45   ;;  %v922_v50 = vpack.c.bf16 %v367_v47, %v364_v36  ;;  %v627_v51 = vadd.f32 %v626_v42, %v367_v47  ;;  %v665_v52 = vmul.f32 %v367_v47, %v367_v47 }
 0x104   : > { %v1048_v54 = vpop.f32.mrf.mxu0  ;;  %991 = vst [vmem:[%s1209_s11 + $0x68] sm:$0xff] %v967_v48   ;;  %v962_v55 = vpack.c.bf16 %v1248_v53, %v1241_v40  ;;  %v1254_v61 = vpop.f32.mrf.mxu1  ;;  %v674_v36 = vmul.f32 %v1202_v57, %v1202_v57  ;;  %v676_v43 = vmul.f32 %v1225_v16, %v1225_v16  ;;  %v677_v47 = vmul.f32 %v1232_v29, %v1232_v29 }
 0x105   : > { %982 = vst [vmem:[%s1209_s11 + $0x20] sm:$0xff] %v922_v50   ;;  %v628_v58 = vadd.f32 %v1044_v30, %v627_v51  ;;  %v696_v60 = vadd.f32 %v695_v49, %v665_v52  ;;  %v670_v21 = vmul.f32 %v1048_v54, %v1048_v54  ;;  %v680_v52 = vmul.f32 %v1241_v40, %v1241_v40 }
 0x106   : > { %v380_v63 = vpop.f32.mrf.mxu0  ;;  %990 = vst [vmem:[%s1209_s11 + $0x60] sm:$0xff] %v962_v55   ;;  %v444_v3 = vpop.f32.mrf.mxu1 }
 0x107   : > { %v697_v1 = vadd.f32 %v696_v60, %v666_v56  ;;  %v629_v2 = vadd.f32 %v1045_v41, %v628_v58  ;;  %v668_v7 = vmul.f32 %v380_v63, %v380_v63  ;;  %v681_v56 = vmul.f32 %v1248_v53, %v1248_v53 }
 0x108   : > { %v1049_v4 = vpop.f32.mrf.mxu0  ;;  %v1257_v10 = vpop.f32.mrf.mxu1 }
 0x109   : > { %v630_v6 = vadd.f32 %v629_v2, %v380_v63  ;;  %v698_v8 = vadd.f32 %v697_v1, %v667_v0  ;;  %v937_v9 = vpack.c.bf16 %v1049_v4, %v1048_v54  ;;  %v977_v13 = vpack.c.bf16 %v1257_v10, %v1254_v61 }
 0x10a   : > { %v383_v12 = vpop.f32.mrf.mxu0  ;;  %v447_v19 = vpop.f32.mrf.mxu1  ;;  %v671_v25 = vmul.f32 %v1049_v4, %v1049_v4  ;;  %v684_v1 = vmul.f32 %v444_v3, %v444_v3 }
 0x10b   : > { %v699_v14 = vadd.f32 %v698_v8, %v668_v7  ;;  %985 = vst [vmem:[%s1209_s11 + $0x38] sm:$0xff] %v937_v9   ;;  %v932_v15 = vpack.c.bf16 %v383_v12, %v380_v63  ;;  %v631_v17 = vadd.f32 %v630_v6, %v383_v12  ;;  %v669_v18 = vmul.f32 %v383_v12, %v383_v12 }
 0x10c   : > { %993 = vst [vmem:[%s1209_s11 + $0x78] sm:$0xff] %v977_v13   ;;  %v972_v20 = vpack.c.bf16 %v447_v19, %v444_v3  ;;  %v686_v7 = vmul.f32 %v1254_v61, %v1254_v61  ;;  %v687_v9 = vmul.f32 %v1257_v10, %v1257_v10 }
 0x10d   : > { %984 = vst [vmem:[%s1209_s11 + $0x30] sm:$0xff] %v932_v15   ;;  %v632_v23 = vadd.f32 %v1048_v54, %v631_v17  ;;  %v700_v24 = vadd.f32 %v699_v14, %v669_v18 }
 0x10e   : > { %992 = vst [vmem:[%s1209_s11 + $0x70] sm:$0xff] %v972_v20  }
 0x10f   : > { %v633_v26 = vadd.f32 %v1049_v4, %v632_v23  ;;  %v701_v27 = vadd.f32 %v700_v24, %v670_v21 }
 0x111   : > { %v702_v30 = vadd.f32 %v701_v27, %v671_v25  ;;  %v634_v31 = vadd.f32 %v633_v26, %v1204_v59 }
 0x113   : > { %v635_v32 = vadd.f32 %v634_v31, %v1216_v5  ;;  %v703_v34 = vadd.f32 %v702_v30, %v672_v28 }
 0x115   : > { %v636_v37 = vadd.f32 %v1202_v57, %v635_v32  ;;  %v704_v38 = vadd.f32 %v703_v34, %v673_v33  ;;  %v678_v57 = vmul.f32 %v1222_v11, %v1222_v11 }
 0x117   : > { %v705_v41 = vadd.f32 %v704_v38, %v674_v36  ;;  %v637_v42 = vadd.f32 %v1211_v62, %v636_v37  ;;  %v679_v62 = vmul.f32 %v1227_v22, %v1227_v22 }
 0x119   : > { %v638_v59 = vadd.f32 %v637_v42, %v1225_v16  ;;  %v706_v44 = vadd.f32 %v705_v41, %v675_v39 }
 0x11b   : > { %v707_v5 = vadd.f32 %v706_v44, %v676_v43  ;;  %v639_v45 = vadd.f32 %v638_v59, %v1232_v29 }
 0x11d   : > { %v640_v48 = vadd.f32 %v1222_v11, %v639_v45  ;;  %v708_v49 = vadd.f32 %v707_v5, %v677_v47  ;;  %v682_v11 = vmul.f32 %v1238_v35, %v1238_v35 }
 0x11f   : > { %v709_v50 = vadd.f32 %v708_v49, %v678_v57  ;;  %v641_v51 = vadd.f32 %v1227_v22, %v640_v48  ;;  %v683_v22 = vmul.f32 %v1243_v46, %v1243_v46 }
 0x121   : > { %v642_v16 = vadd.f32 %v641_v51, %v1241_v40  ;;  %v710_v54 = vadd.f32 %v709_v50, %v679_v62 }
 0x123   : > { %v711_v55 = vadd.f32 %v710_v54, %v680_v52  ;;  %v643_v29 = vadd.f32 %v642_v16, %v1248_v53  ;;  %v685_v53 = vmul.f32 %v447_v19, %v447_v19 }
 0x125   : > { %v644_v58 = vadd.f32 %v1238_v35, %v643_v29  ;;  %v712_v60 = vadd.f32 %v711_v55, %v681_v56 }
 0x127   : > { %v713_v63 = vadd.f32 %v712_v60, %v682_v11  ;;  %v645_v40 = vadd.f32 %v1243_v46, %v644_v58 }
 0x129   : > { %v646_v0 = vadd.f32 %v645_v40, %v444_v3  ;;  %v714_v2 = vadd.f32 %v713_v63, %v683_v22 }
 0x12b   : > { %v715_v4 = vadd.f32 %v714_v2, %v684_v1  ;;  %v647_v6 = vadd.f32 %v646_v0, %v447_v19 }
 0x12d   : > { %v648_v35 = vadd.f32 %v1254_v61, %v647_v6  ;;  %v716_v8 = vadd.f32 %v715_v4, %v685_v53 }
 0x12f   : > { %v649_v12 = vadd.f32 %v1257_v10, %v648_v35  ;;  %v717_v13 = vadd.f32 %v716_v8, %v686_v7 }
 0x131   : > { %v650_v46 = vrot.slane %v649_v12, 4  ;;  %v718_v14 = vadd.f32 %v717_v13, %v687_v9 }
 0x133   : > { %v651_v3 = vadd.f32 %v650_v46, %v649_v12  ;;  %v719_v15 = vrot.slane %v718_v14, 4 }
 0x135   : > { %v652_v17 = vrot.slane %v651_v3, 2  ;;  %v720_v18 = vadd.f32 %v719_v15, %v718_v14 }
 0x137   : > { %v653_v19 = vadd.f32 %v652_v17, %v651_v3  ;;  %v721_v20 = vrot.slane %v720_v18, 2 }
 0x139   : > { %v654_v21 = vrot.slane %v653_v19, 1  ;;  %v722_v23 = vadd.f32 %v721_v20, %v720_v18 }
 0x13b   : > { %v723_v61 = vrot.slane %v722_v23, 1  ;;  %v655_v10 = vadd.f32 %v654_v21, %v653_v19 }
 0x13d   : > { %v724_v24 = vadd.f32 %v723_v61, %v722_v23 }
 0x13f   : > { %v726_v25 = vsel %vm725_vm0, %v655_v10, %v724_v24 }
 0x140   : > { %727 = vst [vmem:[%s184_s17] sm:$0x3] %v726_v25 }
 0x141 PF: > { %s14_s12 = sadd.s32 1, %s1104_s12  }
 0x142   : > { %p11_p5 = scmp.ge.s32.totalorder %s14_s12, 4  }
 0x144   :  { %13 = sbr.rel (!%p11_p5) target bundleno = 1 (0x1), region = 70 }

// kernel: bottleneck_forward.7
= control target key start
LH: loop header
LB: loop body
LE: loop exit
PB: predicated region body
PF: predicated region fallthrough
CT: control target
= control target key end

     0   :  { %s696_s15 = smov 0   ;;  %s884_s0 = inlined_call_operand.vmem [shape: bf16[512,128], index: 0, kind: input, shape index: {}]   ;;  %s885_s1 = inlined_call_operand.vmem [shape: f32[1,128], index: 1, kind: input, shape index: {}]   ;;  %s886_s2 = inlined_call_operand.vmem [shape: f32[1,128], index: 2, kind: input, shape index: {}]   ;;  %s887_s3 = inlined_call_operand.vmem [shape: f32[512,128], index: 3, kind: input, shape index: {}]   ;;  %s888_s4 = inlined_call_operand.vmem [shape: f32[512,128], index: 4, kind: output, shape index: {}]  }
   0x1 LB: > { %s561_s16 = sadd.s32 4294967295, %s669_s15   ;;  %p565_p0 = scmp.ge.s32.totalorder %s669_s15, 1  ;;  %s669_s15 = sphi %s696_s15, %s14_s15  }
   0x2   : > { %p174_p1 = scmp.lt.s32.totalorder %s669_s15, 3 }
   0x4   : > { %p175_p2 = pnand %p565_p0, %p174_p1 }
   0x5   : > { %s566_s17 = sshll.u32 (!%p175_p2), %s561_s16, 5 }
   0x6   : > { %178 = sbr.rel (%p175_p2) target bundleno = 58 (0x3a), region = 36  ;;  %p206_p3 = scmp.lt.s32.totalorder (!%p175_p2), %s566_s17, 63 }
   0xb   : > { %s890_s17 = smov (!%p206_p3, %s566_s17), 63  ;;  %v717_v1 = vld [vmem:[%s885_s1] ss:$0 sm:$0xff] }
   0xc   : > { %s567_s18 = sshll.u32 %s890_s17, 2  ;;  %s569_s19 = sshll.u32 %s890_s17, 3  ;;  %v730_v5 = vld [vmem:[%s886_s2] ss:$0 sm:$0xff] }
   0xd   : > { %s711_s22 = scalar_lea.vmem %s884_s0, %s567_s18  ;;  %s724_s27 = scalar_lea.vmem %s887_s3, %s569_s19 }
   0xe   : > { %v577_v0 = vld [vmem:[%s711_s22] sm:$0xff]   ;;  %v640_v4 = vld [vmem:[%s711_s22 + $0x8] sm:$0xff]   ;;  %v641_v8 = vld [vmem:[%s711_s22 + $0x10] sm:$0xff]   ;;  %s761_s6 = scalar_lea.vmem %s888_s4, %s569_s19 }
   0xf   : > { %v578_v2 = vunpack.c.l.bf16 %v577_v0  ;;  %v579_v3 = vunpack.c.h.bf16 %v577_v0  ;;  %v582_v6 = vunpack.c.l.bf16 %v640_v4  ;;  %v583_v7 = vunpack.c.h.bf16 %v640_v4  ;;  %v642_v13 = vld [vmem:[%s711_s22 + $0x18] sm:$0xff]   ;;  %v365_v14 = vld [vmem:[%s724_s27] sm:$0xff]  ;;  %v366_v15 = vld [vmem:[%s724_s27 + $0x8] sm:$0xff] }
  0x10   : > { %v586_v11 = vunpack.c.l.bf16 %v641_v8  ;;  %v587_v12 = vunpack.c.h.bf16 %v641_v8  ;;  %v590_v18 = vunpack.c.l.bf16 %v642_v13  ;;  %v591_v19 = vunpack.c.h.bf16 %v642_v13  ;;  %v367_v22 = vld [vmem:[%s724_s27 + $0x10] sm:$0xff]  ;;  %v368_v23 = vld [vmem:[%s724_s27 + $0x18] sm:$0xff]  ;;  %v369_v28 = vld [vmem:[%s724_s27 + $0x20] sm:$0xff] }
  0x11   : > { %v294_v9 = vmul.f32 %v578_v2, %v717_v1  ;;  %v295_v10 = vmul.f32 %v579_v3, %v717_v1  ;;  %v296_v16 = vmul.f32 %v582_v6, %v717_v1  ;;  %v297_v17 = vmul.f32 %v583_v7, %v717_v1  ;;  %v370_v29 = vld [vmem:[%s724_s27 + $0x28] sm:$0xff]  ;;  %v371_v36 = vld [vmem:[%s724_s27 + $0x30] sm:$0xff]  ;;  %v372_v37 = vld [vmem:[%s724_s27 + $0x38] sm:$0xff] }
  0x12   : > { %v298_v24 = vmul.f32 %v586_v11, %v717_v1  ;;  %v299_v25 = vmul.f32 %v587_v12, %v717_v1  ;;  %v300_v30 = vmul.f32 %v590_v18, %v717_v1  ;;  %v301_v31 = vmul.f32 %v591_v19, %v717_v1  ;;  %v643_v42 = vld [vmem:[%s711_s22 + $0x20] sm:$0xff]   ;;  %v644_v47 = vld [vmem:[%s711_s22 + $0x28] sm:$0xff]   ;;  %v645_v52 = vld [vmem:[%s711_s22 + $0x30] sm:$0xff]  }
  0x13   : > { %v333_v20 = vadd.f32 %v730_v5, %v294_v9  ;;  %v334_v21 = vadd.f32 %v730_v5, %v295_v10  ;;  %v335_v26 = vadd.f32 %v730_v5, %v296_v16  ;;  %v336_v27 = vadd.f32 %v730_v5, %v297_v17  ;;  %v646_v57 = vld [vmem:[%s711_s22 + $0x38] sm:$0xff]   ;;  %v373_v3 = vld [vmem:[%s724_s27 + $0x40] sm:$0xff]  ;;  %v374_v4 = vld [vmem:[%s724_s27 + $0x48] sm:$0xff] }
  0x14   : > { %v337_v34 = vadd.f32 %v730_v5, %v298_v24  ;;  %v338_v35 = vadd.f32 %v730_v5, %v299_v25  ;;  %v339_v40 = vadd.f32 %v730_v5, %v300_v30  ;;  %v340_v41 = vadd.f32 %v730_v5, %v301_v31  ;;  %v375_v12 = vld [vmem:[%s724_s27 + $0x50] sm:$0xff]  ;;  %v376_v13 = vld [vmem:[%s724_s27 + $0x58] sm:$0xff]  ;;  %v377_v18 = vld [vmem:[%s724_s27 + $0x60] sm:$0xff] }
  0x15   : > { %v397_v32 = vadd.f32 %v365_v14, %v333_v20  ;;  %v398_v33 = vadd.f32 %v366_v15, %v334_v21  ;;  %v399_v38 = vadd.f32 %v367_v22, %v335_v26  ;;  %v400_v39 = vadd.f32 %v368_v23, %v336_v27  ;;  %v378_v19 = vld [vmem:[%s724_s27 + $0x68] sm:$0xff]  ;;  %v379_v26 = vld [vmem:[%s724_s27 + $0x70] sm:$0xff]  ;;  %v380_v27 = vld [vmem:[%s724_s27 + $0x78] sm:$0xff] }
  0x16   : > { %v401_v45 = vadd.f32 %v369_v28, %v337_v34  ;;  %v402_v46 = vadd.f32 %v370_v29, %v338_v35  ;;  %v403_v50 = vadd.f32 %v371_v36, %v339_v40  ;;  %v404_v51 = vadd.f32 %v372_v37, %v340_v41  ;;  %v648_v37 = vld [vmem:[%s711_s22 + $0x48] sm:$0xff]  }
  0x17   : > { %v429_v43 = vmax.f32 %v397_v32, 0.0  ;;  %v430_v44 = vmax.f32 %v398_v33, 0.0  ;;  %v431_v48 = vmax.f32 %v399_v38, 0.0  ;;  %v432_v49 = vmax.f32 %v400_v39, 0.0  ;;  %v647_v32 = vld [vmem:[%s711_s22 + $0x40] sm:$0xff]  }
  0x18   : > { %v433_v53 = vmax.f32 %v401_v45, 0.0  ;;  %v434_v54 = vmax.f32 %v402_v46, 0.0  ;;  %v594_v55 = vunpack.c.l.bf16 %v643_v42  ;;  %v595_v56 = vunpack.c.h.bf16 %v643_v42  ;;  %v649_v42 = vld [vmem:[%s711_s22 + $0x50] sm:$0xff]  }
  0x19   : > { %461 = vst [vmem:[%s761_s6] sm:$0xff] %v429_v43  ;;  %462 = vst [vmem:[%s761_s6 + $0x8] sm:$0xff] %v430_v44  ;;  %v435_v58 = vmax.f32 %v403_v50, 0.0  ;;  %v436_v59 = vmax.f32 %v404_v51, 0.0  ;;  %v598_v60 = vunpack.c.l.bf16 %v644_v47  ;;  %v599_v61 = vunpack.c.h.bf16 %v644_v47  ;;  %v650_v47 = vld [vmem:[%s711_s22 + $0x58] sm:$0xff]  }
  0x1a   : > { %463 = vst [vmem:[%s761_s6 + $0x10] sm:$0xff] %v431_v48  ;;  %464 = vst [vmem:[%s761_s6 + $0x18] sm:$0xff] %v432_v49  ;;  %v302_v62 = vmul.f32 %v594_v55, %v717_v1  ;;  %v303_v63 = vmul.f32 %v595_v56, %v717_v1  ;;  %v602_v0 = vunpack.c.l.bf16 %v645_v52  ;;  %v603_v2 = vunpack.c.h.bf16 %v645_v52  ;;  %v381_v56 = vld [vmem:[%s724_s27 + $0x80] sm:$0xff] }
  0x1b   : > { %465 = vst [vmem:[%s761_s6 + $0x20] sm:$0xff] %v433_v53  ;;  %466 = vst [vmem:[%s761_s6 + $0x28] sm:$0xff] %v434_v54  ;;  %v304_v6 = vmul.f32 %v598_v60, %v717_v1  ;;  %v305_v7 = vmul.f32 %v599_v61, %v717_v1  ;;  %v606_v8 = vunpack.c.l.bf16 %v646_v57  ;;  %v607_v9 = vunpack.c.h.bf16 %v646_v57  ;;  %v382_v57 = vld [vmem:[%s724_s27 + $0x88] sm:$0xff] }
  0x1c   : > { %467 = vst [vmem:[%s761_s6 + $0x30] sm:$0xff] %v435_v58  ;;  %468 = vst [vmem:[%s761_s6 + $0x38] sm:$0xff] %v436_v59  ;;  %v341_v10 = vadd.f32 %v730_v5, %v302_v62  ;;  %v342_v11 = vadd.f32 %v730_v5, %v303_v63  ;;  %v306_v14 = vmul.f32 %v602_v0, %v717_v1  ;;  %v610_v45 = vunpack.c.l.bf16 %v647_v32  ;;  %v383_v0 = vld [vmem:[%s724_s27 + $0x90] sm:$0xff] }
  0x1d   : > { %v307_v15 = vmul.f32 %v603_v2, %v717_v1  ;;  %v343_v16 = vadd.f32 %v730_v5, %v304_v6  ;;  %v344_v17 = vadd.f32 %v730_v5, %v305_v7  ;;  %v308_v20 = vmul.f32 %v606_v8, %v717_v1  ;;  %v384_v2 = vld [vmem:[%s724_s27 + $0x98] sm:$0xff]  ;;  %v385_v8 = vld [vmem:[%s724_s27 + $0xa0] sm:$0xff] }
  0x1e   : > { %v309_v21 = vmul.f32 %v607_v9, %v717_v1  ;;  %v405_v22 = vadd.f32 %v373_v3, %v341_v10  ;;  %v406_v23 = vadd.f32 %v374_v4, %v342_v11  ;;  %v345_v24 = vadd.f32 %v730_v5, %v306_v14  ;;  %v386_v9 = vld [vmem:[%s724_s27 + $0xa8] sm:$0xff] }
  0x1f   : > { %v346_v25 = vadd.f32 %v730_v5, %v307_v15  ;;  %v407_v28 = vadd.f32 %v375_v12, %v343_v16  ;;  %v408_v29 = vadd.f32 %v376_v13, %v344_v17  ;;  %v347_v30 = vadd.f32 %v730_v5, %v308_v20  ;;  %v387_v16 = vld [vmem:[%s724_s27 + $0xb0] sm:$0xff]  ;;  %v388_v17 = vld [vmem:[%s724_s27 + $0xb8] sm:$0xff] }
  0x20   : > { %v348_v31 = vadd.f32 %v730_v5, %v309_v21  ;;  %v437_v33 = vmax.f32 %v405_v22, 0.0  ;;  %v438_v34 = vmax.f32 %v406_v23, 0.0  ;;  %v409_v35 = vadd.f32 %v377_v18, %v345_v24  ;;  %v651_v22 = vld [vmem:[%s711_s22 + $0x60] sm:$0xff]  }
  0x21   : > { %v410_v36 = vadd.f32 %v378_v19, %v346_v25  ;;  %v439_v38 = vmax.f32 %v407_v28, 0.0  ;;  %v440_v39 = vmax.f32 %v408_v29, 0.0  ;;  %v411_v40 = vadd.f32 %v379_v26, %v347_v30 }
  0x22   : > { %v412_v41 = vadd.f32 %v380_v27, %v348_v31  ;;  %469 = vst [vmem:[%s761_s6 + $0x40] sm:$0xff] %v437_v33  ;;  %470 = vst [vmem:[%s761_s6 + $0x48] sm:$0xff] %v438_v34  ;;  %v441_v43 = vmax.f32 %v409_v35, 0.0  ;;  %v611_v46 = vunpack.c.h.bf16 %v647_v32  ;;  %v614_v50 = vunpack.c.l.bf16 %v648_v37  ;;  %v652_v27 = vld [vmem:[%s711_s22 + $0x68] sm:$0xff]   ;;  %v653_v32 = vld [vmem:[%s711_s22 + $0x70] sm:$0xff]  }
  0x23   : > { %v442_v44 = vmax.f32 %v410_v36, 0.0  ;;  %471 = vst [vmem:[%s761_s6 + $0x50] sm:$0xff] %v439_v38  ;;  %472 = vst [vmem:[%s761_s6 + $0x58] sm:$0xff] %v440_v39  ;;  %v443_v48 = vmax.f32 %v411_v40, 0.0  ;;  %v615_v51 = vunpack.c.h.bf16 %v648_v37  ;;  %v310_v52 = vmul.f32 %v610_v45, %v717_v1  ;;  %v654_v37 = vld [vmem:[%s711_s22 + $0x78] sm:$0xff]  }
  0x24   : > { %v444_v49 = vmax.f32 %v412_v41, 0.0  ;;  %473 = vst [vmem:[%s761_s6 + $0x60] sm:$0xff] %v441_v43  ;;  %v311_v53 = vmul.f32 %v611_v46, %v717_v1  ;;  %v618_v54 = vunpack.c.l.bf16 %v649_v42  ;;  %v619_v55 = vunpack.c.h.bf16 %v649_v42  ;;  %v389_v46 = vld [vmem:[%s724_s27 + $0xc0] sm:$0xff] }
  0x25   : > { %474 = vst [vmem:[%s761_s6 + $0x68] sm:$0xff] %v442_v44  ;;  %475 = vst [vmem:[%s761_s6 + $0x70] sm:$0xff] %v443_v48  ;;  %v312_v58 = vmul.f32 %v614_v50, %v717_v1  ;;  %v313_v59 = vmul.f32 %v615_v51, %v717_v1  ;;  %v622_v60 = vunpack.c.l.bf16 %v650_v47  ;;  %v623_v61 = vunpack.c.h.bf16 %v650_v47  ;;  %v390_v47 = vld [vmem:[%s724_s27 + $0xc8] sm:$0xff] }
  0x26   : > { %476 = vst [vmem:[%s761_s6 + $0x78] sm:$0xff] %v444_v49  ;;  %v349_v62 = vadd.f32 %v730_v5, %v310_v52  ;;  %v350_v63 = vadd.f32 %v730_v5, %v311_v53  ;;  %v314_v3 = vmul.f32 %v618_v54, %v717_v1  ;;  %v315_v4 = vmul.f32 %v619_v55, %v717_v1  ;;  %v391_v54 = vld [vmem:[%s724_s27 + $0xd0] sm:$0xff]  ;;  %v392_v55 = vld [vmem:[%s724_s27 + $0xd8] sm:$0xff] }
  0x27   : > { %v351_v6 = vadd.f32 %v730_v5, %v312_v58  ;;  %v352_v7 = vadd.f32 %v730_v5, %v313_v59  ;;  %v316_v10 = vmul.f32 %v622_v60, %v717_v1  ;;  %v317_v11 = vmul.f32 %v623_v61, %v717_v1  ;;  %v393_v60 = vld [vmem:[%s724_s27 + $0xe0] sm:$0xff]  ;;  %v394_v61 = vld [vmem:[%s724_s27 + $0xe8] sm:$0xff] }
  0x28   : > { %v413_v12 = vadd.f32 %v381_v56, %v349_v62  ;;  %v414_v13 = vadd.f32 %v382_v57, %v350_v63  ;;  %v353_v14 = vadd.f32 %v730_v5, %v314_v3  ;;  %v354_v15 = vadd.f32 %v730_v5, %v315_v4 }
  0x29   : > { %v415_v18 = vadd.f32 %v383_v0, %v351_v6  ;;  %v416_v19 = vadd.f32 %v384_v2, %v352_v7  ;;  %v355_v20 = vadd.f32 %v730_v5, %v316_v10  ;;  %v356_v21 = vadd.f32 %v730_v5, %v317_v11  ;;  %v395_v6 = vld [vmem:[%s724_s27 + $0xf0] sm:$0xff]  ;;  %v396_v7 = vld [vmem:[%s724_s27 + $0xf8] sm:$0xff] }
  0x2a   : > { %v445_v23 = vmax.f32 %v413_v12, 0.0  ;;  %v446_v24 = vmax.f32 %v414_v13, 0.0  ;;  %v417_v25 = vadd.f32 %v385_v8, %v353_v14  ;;  %v418_v26 = vadd.f32 %v386_v9, %v354_v15 }
  0x2b   : > { %v447_v28 = vmax.f32 %v415_v18, 0.0  ;;  %v448_v29 = vmax.f32 %v416_v19, 0.0  ;;  %v419_v30 = vadd.f32 %v387_v16, %v355_v20  ;;  %v420_v31 = vadd.f32 %v388_v17, %v356_v21 }
  0x2c   : > { %477 = vst [vmem:[%s761_s6 + $0x80] sm:$0xff] %v445_v23  ;;  %478 = vst [vmem:[%s761_s6 + $0x88] sm:$0xff] %v446_v24  ;;  %v449_v33 = vmax.f32 %v417_v25, 0.0  ;;  %v450_v34 = vmax.f32 %v418_v26, 0.0  ;;  %v626_v35 = vunpack.c.l.bf16 %v651_v22  ;;  %v627_v36 = vunpack.c.h.bf16 %v651_v22 }
  0x2d   : > { %479 = vst [vmem:[%s761_s6 + $0x90] sm:$0xff] %v447_v28  ;;  %480 = vst [vmem:[%s761_s6 + $0x98] sm:$0xff] %v448_v29  ;;  %v451_v38 = vmax.f32 %v419_v30, 0.0  ;;  %v452_v39 = vmax.f32 %v420_v31, 0.0  ;;  %v630_v40 = vunpack.c.l.bf16 %v652_v27  ;;  %v631_v41 = vunpack.c.h.bf16 %v652_v27 }
  0x2e   : > { %481 = vst [vmem:[%s761_s6 + $0xa0] sm:$0xff] %v449_v33  ;;  %482 = vst [vmem:[%s761_s6 + $0xa8] sm:$0xff] %v450_v34  ;;  %v318_v42 = vmul.f32 %v626_v35, %v717_v1  ;;  %v319_v43 = vmul.f32 %v627_v36, %v717_v1  ;;  %v634_v44 = vunpack.c.l.bf16 %v653_v32  ;;  %v635_v45 = vunpack.c.h.bf16 %v653_v32 }
  0x2f   : > { %483 = vst [vmem:[%s761_s6 + $0xb0] sm:$0xff] %v451_v38  ;;  %484 = vst [vmem:[%s761_s6 + $0xb8] sm:$0xff] %v452_v39  ;;  %v320_v48 = vmul.f32 %v630_v40, %v717_v1  ;;  %v321_v49 = vmul.f32 %v631_v41, %v717_v1  ;;  %v638_v50 = vunpack.c.l.bf16 %v654_v37  ;;  %v639_v51 = vunpack.c.h.bf16 %v654_v37 }
  0x30   : > { %v357_v52 = vadd.f32 %v730_v5, %v318_v42  ;;  %v358_v53 = vadd.f32 %v730_v5, %v319_v43  ;;  %v322_v56 = vmul.f32 %v634_v44, %v717_v1  ;;  %v323_v57 = vmul.f32 %v635_v45, %v717_v1 }
  0x31   : > { %v359_v58 = vadd.f32 %v730_v5, %v320_v48  ;;  %v360_v59 = vadd.f32 %v730_v5, %v321_v49  ;;  %v324_v62 = vmul.f32 %v638_v50, %v717_v1  ;;  %v325_v63 = vmul.f32 %v639_v51, %v717_v1 }
  0x32   : > { %v421_v0 = vadd.f32 %v389_v46, %v357_v52  ;;  %v422_v2 = vadd.f32 %v390_v47, %v358_v53  ;;  %v361_v3 = vadd.f32 %v730_v5, %v322_v56  ;;  %v362_v4 = vadd.f32 %v730_v5, %v323_v57 }
  0x33   : > { %v423_v8 = vadd.f32 %v391_v54, %v359_v58  ;;  %v424_v9 = vadd.f32 %v392_v55, %v360_v59  ;;  %v363_v10 = vadd.f32 %v730_v5, %v324_v62  ;;  %v364_v11 = vadd.f32 %v730_v5, %v325_v63 }
  0x34   : > { %v453_v12 = vmax.f32 %v421_v0, 0.0  ;;  %v454_v1 = vmax.f32 %v422_v2, 0.0  ;;  %v425_v13 = vadd.f32 %v393_v60, %v361_v3  ;;  %v426_v14 = vadd.f32 %v394_v61, %v362_v4 }
  0x35   : > { %v455_v15 = vmax.f32 %v423_v8, 0.0  ;;  %v456_v16 = vmax.f32 %v424_v9, 0.0  ;;  %v427_v17 = vadd.f32 %v395_v6, %v363_v10  ;;  %v428_v18 = vadd.f32 %v396_v7, %v364_v11 }
  0x36   : > { %485 = vst [vmem:[%s761_s6 + $0xc0] sm:$0xff] %v453_v12  ;;  %486 = vst [vmem:[%s761_s6 + $0xc8] sm:$0xff] %v454_v1  ;;  %v457_v19 = vmax.f32 %v425_v13, 0.0  ;;  %v458_v20 = vmax.f32 %v426_v14, 0.0 }
  0x37   : > { %487 = vst [vmem:[%s761_s6 + $0xd0] sm:$0xff] %v455_v15  ;;  %488 = vst [vmem:[%s761_s6 + $0xd8] sm:$0xff] %v456_v16  ;;  %v459_v21 = vmax.f32 %v427_v17, 0.0  ;;  %v460_v5 = vmax.f32 %v428_v18, 0.0 }
  0x38   : > { %489 = vst [vmem:[%s761_s6 + $0xe0] sm:$0xff] %v457_v19  ;;  %490 = vst [vmem:[%s761_s6 + $0xe8] sm:$0xff] %v458_v20 }
  0x39   : > { %491 = vst [vmem:[%s761_s6 + $0xf0] sm:$0xff] %v459_v21  ;;  %492 = vst [vmem:[%s761_s6 + $0xf8] sm:$0xff] %v460_v5 }
  0x3a PF: > { %s14_s15 = sadd.s32 1, %s669_s15  }
  0x3b   : > { %p11_p4 = scmp.ge.s32.totalorder %s14_s15, 4  }
  0x3d   :  { %13 = sbr.rel (!%p11_p4) target bundleno = 1 (0x1), region = 69 }

// kernel: bottleneck_forward.6
= control target key start
LH: loop header
LB: loop body
LE: loop exit
PB: predicated region body
PF: predicated region fallthrough
CT: control target
= control target key end

     0   :  { %s1413_s18 = smov 0   ;;  %s1687_s0 = inlined_call_operand.vmem [shape: bf16[512,128], index: 0, kind: input, shape index: {}]   ;;  %s1688_s1 = inlined_call_operand.vmem [shape: f32[1,128], index: 1, kind: input, shape index: {}]   ;;  %s1689_s2 = inlined_call_operand.vmem [shape: f32[1,128], index: 2, kind: input, shape index: {}]   ;;  %s1690_s3 = inlined_call_operand.vmem [shape: bf16[128,128], index: 3, kind: input, shape index: {}]   ;;  %s1691_s4 = inlined_call_operand.vmem [shape: bf16[512,128], index: 4, kind: output, shape index: {0}]   ;;  %s1692_s5 = inlined_call_operand.vmem [shape: f32[2,2,128], index: 5, kind: output, shape index: {1}]  }
   0x1 LB: > { %s1419_s19 = sadd.s32 4294967295, %s1381_s18   ;;  %p1015_p0 = scmp.ge.s32.totalorder %s1381_s18, 1  ;;  %s1381_s18 = sphi %s1413_s18, %s16_s18  }
   0x2   : > { %p191_p1 = scmp.lt.s32.totalorder %s1381_s18, 3 }
   0x4   : > { %p192_p2 = pnand %p1015_p0, %p191_p1 }
   0x5   : > { %s1016_s22 = sshll.u32 (!%p192_p2), %s1419_s19, 5  ;;  %p235_p4 = scmp.lt.s32.totalorder (!%p192_p2), %s1419_s19, 1 }
   0x6   : > { %195 = sbr.rel (%p192_p2) target bundleno = 321 (0x141), region = 36  ;;  %p224_p3 = scmp.lt.s32.totalorder (!%p192_p2), %s1016_s22, 63 }
   0xb   : > { %v1367_v0 = vld [vmem:[%s1690_s3 + $0x38] sm:$0xff]   ;;  %v1368_v1 = vld [vmem:[%s1690_s3 + $0x30] sm:$0xff]   ;;  %s1694_s22 = smov (!%p224_p3, %s1016_s22), 63  ;;  %v1369_v2 = vld [vmem:[%s1690_s3 + $0x28] sm:$0xff]   ;;  %s1696_s19 = smov (!%p235_p4, %s1419_s19), 1  ;;  %vm921_vm0 = vcmask 1040384  }
   0xc   : > { %1295 = vmatprep.subr.bf16.mxu0 %v1367_v0  ;;  %1343 = vmatprep.subr.bf16.mxu1 %v1367_v0  ;;  %s1017_s27 = sshll.u32 %s1694_s22, 2  ;;  %v1370_v3 = vld [vmem:[%s1690_s3 + $0x20] sm:$0xff]   ;;  %v1371_v21 = vld [vmem:[%s1690_s3 + $0x18] sm:$0xff]   ;;  %v1372_v35 = vld [vmem:[%s1690_s3 + $0x10] sm:$0xff]   ;;  %s1020_s22 = sshll.u32 %s1696_s19, 1 }
   0xd   : > { %1296 = vmatpush3.bf16.msra.mxu0 %v1367_v0  ;;  %1351 = vmatpush3.bf16.msra.mxu1 %v1367_v0  ;;  %s1441_s30 = scalar_lea.vmem %s1687_s0, %s1017_s27  ;;  %v1450_v5 = vld [vmem:[%s1688_s1] ss:$0 sm:$0xff]  ;;  %v1373_v50 = vld [vmem:[%s1690_s3 + $0x8] sm:$0xff]   ;;  %s1591_s25 = scalar_lea.vmem %s1691_s4, %s1017_s27 }
   0xe   : > { %1297 = vmatprep.subr.bf16.mxu0 %v1368_v1  ;;  %1344 = vmatprep.subr.bf16.mxu1 %v1368_v1  ;;  %v1098_v4 = vld [vmem:[%s1441_s30] sm:$0xff]   ;;  %v1241_v8 = vld [vmem:[%s1441_s30 + $0x8] sm:$0xff]   ;;  %v1242_v9 = vld [vmem:[%s1441_s30 + $0x10] sm:$0xff]   ;;  %s238_s28 = scalar_lea.vmem %s1692_s5, %s1020_s22 }
   0xf   : > { %v1099_v6 = vunpack.c.l.bf16 %v1098_v4  ;;  %v1100_v7 = vunpack.c.h.bf16 %v1098_v4  ;;  %v1243_v10 = vld [vmem:[%s1441_s30 + $0x18] sm:$0xff]   ;;  %v1458_v11 = vld [vmem:[%s1689_s2] ss:$0 sm:$0xff]  ;;  %v1103_v12 = vunpack.c.l.bf16 %v1241_v8  ;;  %v1104_v13 = vunpack.c.h.bf16 %v1241_v8  ;;  %v1245_v34 = vld [vmem:[%s1441_s30 + $0x28] sm:$0xff]  }
  0x10   : > { %v1107_v14 = vunpack.c.l.bf16 %v1242_v9  ;;  %v1108_v15 = vunpack.c.h.bf16 %v1242_v9  ;;  %v1111_v18 = vunpack.c.l.bf16 %v1243_v10  ;;  %v1112_v19 = vunpack.c.h.bf16 %v1243_v10  ;;  %v1244_v20 = vld [vmem:[%s1441_s30 + $0x20] sm:$0xff]   ;;  %v1246_v39 = vld [vmem:[%s1441_s30 + $0x30] sm:$0xff]   ;;  %v1495_v59 = vld [vmem:[%s1441_s30 + $0x38] sm:$0xff]  }
  0x11   : > { %1298 = vmatpush3.bf16.msra.mxu0 %v1368_v1  ;;  %1352 = vmatpush3.bf16.msra.mxu1 %v1368_v1  ;;  %v311_v16 = vmul.f32 %v1099_v6, %v1450_v5  ;;  %v312_v17 = vmul.f32 %v1100_v7, %v1450_v5  ;;  %v313_v22 = vmul.f32 %v1103_v12, %v1450_v5  ;;  %v1115_v30 = vunpack.c.l.bf16 %v1244_v20  ;;  %v1248_v60 = vld [vmem:[%s1441_s30 + $0x40] sm:$0xff]   ;;  %v1249_v6 = vld [vmem:[%s1441_s30 + $0x48] sm:$0xff]  }
  0x12   : > { %1299 = vmatprep.subr.bf16.mxu0 %v1369_v2  ;;  %1345 = vmatprep.subr.bf16.mxu1 %v1369_v2  ;;  %v314_v23 = vmul.f32 %v1104_v13, %v1450_v5  ;;  %v315_v24 = vmul.f32 %v1107_v14, %v1450_v5  ;;  %v316_v27 = vmul.f32 %v1108_v15, %v1450_v5  ;;  %v1116_v43 = vunpack.c.h.bf16 %v1244_v20  ;;  %v1374_v0 = vld [vmem:[%s1690_s3] sm:$0xff]  }
  0x13   : > { %v350_v25 = vadd.f32 %v1458_v11, %v311_v16  ;;  %v351_v26 = vadd.f32 %v1458_v11, %v312_v17  ;;  %v317_v28 = vmul.f32 %v1111_v18, %v1450_v5  ;;  %v318_v29 = vmul.f32 %v1112_v19, %v1450_v5  ;;  %v1250_v16 = vld [vmem:[%s1441_s30 + $0x50] sm:$0xff]  }
  0x14   : > { %v352_v33 = vadd.f32 %v1458_v11, %v313_v22  ;;  %v353_v36 = vadd.f32 %v1458_v11, %v314_v23  ;;  %v354_v37 = vadd.f32 %v1458_v11, %v315_v24  ;;  %v355_v38 = vadd.f32 %v1458_v11, %v316_v27 }
  0x15   : > { %1300 = vmatpush3.bf16.msra.mxu0 %v1369_v2  ;;  %1353 = vmatpush3.bf16.msra.mxu1 %v1369_v2  ;;  %v382_v31 = vmax.f32 %v350_v25, 0.0  ;;  %v383_v32 = vmax.f32 %v351_v26, 0.0  ;;  %v356_v41 = vadd.f32 %v1458_v11, %v317_v28  ;;  %v357_v42 = vadd.f32 %v1458_v11, %v318_v29 }
  0x16   : > { %1301 = vmatprep.subr.bf16.mxu0 %v1370_v3  ;;  %1346 = vmatprep.subr.bf16.mxu1 %v1370_v3  ;;  %v319_v44 = vmul.f32 %v1115_v30, %v1450_v5  ;;  %v1119_v45 = vunpack.c.l.bf16 %v1245_v34  ;;  %v384_v46 = vmax.f32 %v352_v33, 0.0  ;;  %v320_v47 = vmul.f32 %v1116_v43, %v1450_v5  ;;  %v1252_v30 = vld [vmem:[%s1441_s30 + $0x60] sm:$0xff]  }
  0x17   : > { %v414_v40 = vpack.c.bf16 %v383_v32, %v382_v31  ;;  %v1120_v48 = vunpack.c.h.bf16 %v1245_v34  ;;  %v1123_v49 = vunpack.c.l.bf16 %v1246_v39  ;;  %v385_v51 = vmax.f32 %v353_v36, 0.0 }
  0x18   : > { %v386_v52 = vmax.f32 %v354_v37, 0.0  ;;  %v387_v53 = vmax.f32 %v355_v38, 0.0  ;;  %v321_v54 = vmul.f32 %v1119_v45, %v1450_v5  ;;  %v388_v55 = vmax.f32 %v356_v41, 0.0 }
  0x19   : > { %1302 = vmatpush3.bf16.msra.mxu0 %v1370_v3  ;;  %1354 = vmatpush3.bf16.msra.mxu1 %v1370_v3  ;;  %v389_v56 = vmax.f32 %v357_v42, 0.0  ;;  %v1492_v57 = vadd.f32 %v1458_v11, %v319_v44  ;;  %v1124_v58 = vunpack.c.h.bf16 %v1246_v39  ;;  %v1499_v61 = vadd.f32 %v1458_v11, %v320_v47  ;;  %v1253_v47 = vld [vmem:[%s1441_s30 + $0x68] sm:$0xff]  }
  0x1a   : > { %1303 = vmatprep.subr.bf16.mxu0 %v1371_v21  ;;  %1347 = vmatprep.subr.bf16.mxu1 %v1371_v21  ;;  %v322_v62 = vmul.f32 %v1120_v48, %v1450_v5  ;;  %v323_v63 = vmul.f32 %v1123_v49, %v1450_v5  ;;  %v415_v1 = vpack.c.bf16 %v385_v51, %v384_v46  ;;  %v1127_v3 = vunpack.c.l.bf16 %v1495_v59 }
  0x1b   : > { %1311 = vmatprep.mubr.bf16.mxu0 %v414_v40  ;;  %v1507_v2 = vadd.f32 %v1458_v11, %v321_v54  ;;  %v1131_v4 = vunpack.c.l.bf16 %v1248_v60  ;;  %v416_v7 = vpack.c.bf16 %v387_v53, %v386_v52  ;;  %v1511_v8 = vpack.c.bf16 %v389_v56, %v388_v55  ;;  %v1254_v52 = vld [vmem:[%s1441_s30 + $0x70] sm:$0xff]  }
  0x1c   : > { %v390_v9 = vmax.f32 %v1492_v57, 0.0  ;;  %v324_v10 = vmul.f32 %v1124_v58, %v1450_v5  ;;  %v391_v12 = vmax.f32 %v1499_v61, 0.0  ;;  %v1128_v13 = vunpack.c.h.bf16 %v1495_v59 }
  0x1d   : > { %1304 = vmatpush3.bf16.msra.mxu0 %v1371_v21  ;;  %1355 = vmatpush3.bf16.msra.mxu1 %v1371_v21  ;;  %v1132_v14 = vunpack.c.h.bf16 %v1248_v60  ;;  %v327_v15 = vmul.f32 %v1131_v4, %v1450_v5  ;;  %v1520_v17 = vadd.f32 %v1458_v11, %v322_v62  ;;  %v1523_v18 = vadd.f32 %v1458_v11, %v323_v63  ;;  %v1251_v21 = vld [vmem:[%s1441_s30 + $0x58] sm:$0xff]  }
  0x1e   : > { %1305 = vmatprep.subr.bf16.mxu0 %v1372_v35  ;;  %1348 = vmatprep.subr.bf16.mxu1 %v1372_v35  ;;  %v1135_v19 = vunpack.c.l.bf16 %v1249_v6  ;;  %v1136_v20 = vunpack.c.h.bf16 %v1249_v6  ;;  %v392_v22 = vmax.f32 %v1507_v2, 0.0  ;;  %v1528_v23 = vmul.f32 %v1127_v3, %v1450_v5  ;;  %v1255_v6 = vld [vmem:[%s1441_s30 + $0x78] sm:$0xff]  }
  0x1f   : > { %v328_v24 = vmul.f32 %v1132_v14, %v1450_v5  ;;  %v366_v25 = vadd.f32 %v1458_v11, %v327_v15  ;;  %v1139_v28 = vunpack.c.l.bf16 %v1250_v16  ;;  %v1140_v29 = vunpack.c.h.bf16 %v1250_v16 }
  0x20   : > { %v329_v26 = vmul.f32 %v1135_v19, %v1450_v5  ;;  %v330_v27 = vmul.f32 %v1136_v20, %v1450_v5  ;;  %v1536_v31 = vadd.f32 %v1458_v11, %v324_v10  ;;  %v1143_v34 = vunpack.c.l.bf16 %v1251_v21 }
  0x21   : > { %1306 = vmatpush3.bf16.msra.mxu0 %v1372_v35  ;;  %1356 = vmatpush3.bf16.msra.mxu1 %v1372_v35  ;;  %v367_v32 = vadd.f32 %v1458_v11, %v328_v24  ;;  %v398_v33 = vmax.f32 %v366_v25, 0.0  ;;  %v331_v37 = vmul.f32 %v1139_v28, %v1450_v5  ;;  %v332_v38 = vmul.f32 %v1140_v29, %v1450_v5 }
  0x22   : > { %1307 = vmatprep.subr.bf16.mxu0 %v1373_v50  ;;  %1349 = vmatprep.subr.bf16.mxu1 %v1373_v50  ;;  %v368_v35 = vadd.f32 %v1458_v11, %v329_v26  ;;  %v369_v36 = vadd.f32 %v1458_v11, %v330_v27  ;;  %v1144_v40 = vunpack.c.h.bf16 %v1251_v21  ;;  %v333_v41 = vmul.f32 %v1143_v34, %v1450_v5 }
  0x23   : > { %v399_v39 = vmax.f32 %v367_v32, 0.0  ;;  %v1147_v42 = vunpack.c.l.bf16 %v1252_v30  ;;  %v370_v45 = vadd.f32 %v1458_v11, %v331_v37  ;;  %v371_v46 = vadd.f32 %v1458_v11, %v332_v38 }
  0x24   : > { %v400_v43 = vmax.f32 %v368_v35, 0.0  ;;  %v401_v44 = vmax.f32 %v369_v36, 0.0  ;;  %v334_v49 = vmul.f32 %v1144_v40, %v1450_v5  ;;  %v1148_v51 = vunpack.c.h.bf16 %v1252_v30 }
  0x25   : > { %1308 = vmatpush3.bf16.msra.mxu0 %v1373_v50  ;;  %1357 = vmatpush3.bf16.msra.mxu1 %v1373_v50  ;;  %v422_v48 = vpack.c.bf16 %v399_v39, %v398_v33  ;;  %v372_v50 = vadd.f32 %v1458_v11, %v333_v41  ;;  %v402_v54 = vmax.f32 %v370_v45, 0.0  ;;  %v403_v55 = vmax.f32 %v371_v46, 0.0 }
  0x26   : > { %1309 = vmatprep.subr.bf16.mxu0 %v1374_v0  ;;  %1350 = vmatprep.subr.bf16.mxu1 %v1374_v0  ;;  %v423_v53 = vpack.c.bf16 %v401_v44, %v400_v43  ;;  %v335_v56 = vmul.f32 %v1147_v42, %v1450_v5  ;;  %v373_v58 = vadd.f32 %v1458_v11, %v334_v49  ;;  %v1151_v63 = vunpack.c.l.bf16 %v1253_v47 }
  0x27   : > { %1327 = vmatprep.mubr.bf16.mxu1 %v422_v48  ;;  %v404_v60 = vmax.f32 %v372_v50, 0.0  ;;  %v336_v62 = vmul.f32 %v1148_v51, %v1450_v5  ;;  %v1152_v3 = vunpack.c.h.bf16 %v1253_v47  ;;  %v1155_v4 = vunpack.c.l.bf16 %v1254_v52 }
  0x28   : > { %v337_v14 = vmul.f32 %v1151_v63, %v1450_v5  ;;  %v1156_v15 = vunpack.c.h.bf16 %v1254_v52  ;;  %v418_v16 = vpack.c.bf16 %v391_v12, %v390_v9  ;;  %v326_v24 = vmul.f32 %v1128_v13, %v1450_v5 }
  0x29   : > { %1310 = vmatpush3.bf16.msra.mxu0 %v1374_v0  ;;  %1358 = vmatpush3.bf16.msra.mxu1 %v1374_v0  ;;  %v424_v0 = vpack.c.bf16 %v403_v55, %v402_v54  ;;  %v375_v10 = vadd.f32 %v1458_v11, %v336_v62  ;;  %v338_v20 = vmul.f32 %v1152_v3, %v1450_v5  ;;  %v1159_v27 = vunpack.c.l.bf16 %v1255_v6 }
  0x2a   : > { %v339_v21 = vmul.f32 %v1155_v4, %v1450_v5  ;;  %v340_v26 = vmul.f32 %v1156_v15, %v1450_v5  ;;  %v376_v57 = vadd.f32 %v1458_v11, %v337_v14  ;;  %v1160_v9 = vunpack.c.h.bf16 %v1255_v6 }
  0x2b   : > { %v407_v25 = vmax.f32 %v375_v10, 0.0  ;;  %v377_v61 = vadd.f32 %v1458_v11, %v338_v20  ;;  %v393_v12 = vmax.f32 %v1520_v17, 0.0  ;;  %v394_v13 = vmax.f32 %v1523_v18, 0.0 }
  0x2c   : > { %1312 = vmatmul.mubr.bf16.vlgmr.msra.gmra.mxu0 %v415_v1  ;;  %1328 = vmatmul.mubr.bf16.vlgmr.msra.gmra.mxu1 %v423_v53  ;;  %v374_v1 = vadd.f32 %v1458_v11, %v335_v56  ;;  %v378_v30 = vadd.f32 %v1458_v11, %v339_v21  ;;  %v379_v59 = vadd.f32 %v1458_v11, %v340_v26  ;;  %v395_v32 = vmax.f32 %v1536_v31, 0.0 }
  0x2d   : > { %1315 = vmatprep.mubr.bf16.mxu0 %v416_v7  ;;  %v405_v7 = vmax.f32 %v373_v58, 0.0  ;;  %1331 = vmatprep.mubr.bf16.mxu1 %v424_v0  ;;  %v364_v33 = vadd.f32 %v1458_v11, %v1528_v23  ;;  %v408_v34 = vmax.f32 %v376_v57, 0.0  ;;  %v409_v35 = vmax.f32 %v377_v61, 0.0 }
  0x2e   : > { %v406_v19 = vmax.f32 %v374_v1, 0.0  ;;  %v342_v17 = vmul.f32 %v1160_v9, %v1450_v5  ;;  %v419_v36 = vpack.c.bf16 %v393_v12, %v392_v22  ;;  %v365_v37 = vadd.f32 %v1458_v11, %v326_v24 }
  0x2f   : > { %v425_v28 = vpack.c.bf16 %v405_v7, %v404_v60  ;;  %v410_v38 = vmax.f32 %v378_v30, 0.0  ;;  %v411_v18 = vmax.f32 %v379_v59, 0.0  ;;  %v420_v39 = vpack.c.bf16 %v395_v32, %v394_v13 }
  0x30   : > { %v426_v29 = vpack.c.bf16 %v407_v25, %v406_v19  ;;  %v427_v31 = vpack.c.bf16 %v409_v35, %v408_v34  ;;  %v381_v23 = vadd.f32 %v1458_v11, %v342_v17  ;;  %v396_v41 = vmax.f32 %v364_v33, 0.0 }
  0x31   : > { %v397_v42 = vmax.f32 %v365_v37, 0.0  ;;  %v428_v43 = vpack.c.bf16 %v411_v18, %v410_v38 }
  0x32   : > { %v413_v2 = vmax.f32 %v381_v23, 0.0 }
  0x33   : > { %v421_v22 = vpack.c.bf16 %v397_v42, %v396_v41 }
  0x34   : > { %1316 = vmatmul.mubr.bf16.gmra.mxu0 %v1511_v8  ;;  %1332 = vmatmul.mubr.bf16.gmra.mxu1 %v425_v28  ;;  %v341_v8 = vmul.f32 %v1159_v27, %v1450_v5 }
  0x35   : > { %1319 = vmatprep.mubr.bf16.mxu0 %v418_v16  ;;  %1335 = vmatprep.mubr.bf16.mxu1 %v426_v29 }
  0x36   : > { %v380_v40 = vadd.f32 %v1458_v11, %v341_v8 }
  0x38   : > { %v412_v5 = vmax.f32 %v380_v40, 0.0 }
  0x3a   : > { %v429_v44 = vpack.c.bf16 %v413_v2, %v412_v5 }
  0x3c   : > { %1320 = vmatmul.mubr.bf16.gmra.mxu0 %v419_v36  ;;  %1336 = vmatmul.mubr.bf16.gmra.mxu1 %v427_v31 }
  0x3d   : > { %1323 = vmatprep.mubr.bf16.mxu0 %v420_v39  ;;  %1339 = vmatprep.mubr.bf16.mxu1 %v428_v43 }
  0x44   : > { %1324 = vmatmul.mubr.bf16.gmra.mxu0 %v421_v22  ;;  %1340 = vmatmul.mubr.bf16.gmra.mxu1 %v429_v44 }
  0xec   : > { %v1313_v45 = vpop.f32.mrf.mxu0  ;;  %v1584_v47 = vpop.f32.mrf.mxu1 }
  0xed   : > { %v854_v60 = vmul.f32 %v1313_v45, %v1313_v45 }
  0xee   : > { %v528_v46 = vpop.f32.mrf.mxu0  ;;  %v1593_v49 = vpop.f32.mrf.mxu1 }
  0xef   : > { %v852_v51 = vmul.f32 %v528_v46, %v528_v46 }
  0xf0   : > { %v1314_v11 = vpop.f32.mrf.mxu0  ;;  %v1596_v55 = vpop.f32.mrf.mxu1 }
  0xf1   : > { %v1169_v48 = vpack.c.bf16 %v1314_v11, %v1313_v45  ;;  %v1209_v58 = vpack.c.bf16 %v1596_v55, %v1584_v47  ;;  %v855_v4 = vmul.f32 %v1314_v11, %v1314_v11 }
  0xf2   : > { %v531_v50 = vpop.f32.mrf.mxu0  ;;  %v1601_v0 = vpop.f32.mrf.mxu1 }
  0xf3   : > { %1256 = vst [vmem:[%s1591_s25 + $0x8] sm:$0xff] %v1169_v48   ;;  %v1164_v52 = vpack.c.bf16 %v531_v50, %v528_v46  ;;  %v815_v53 = vadd.f32 %v531_v50, %v528_v46  ;;  %v853_v54 = vmul.f32 %v531_v50, %v531_v50  ;;  %1264 = vst [vmem:[%s1591_s25 + $0x48] sm:$0xff] %v1209_v58  }
  0xf4   : > { %v1317_v56 = vpop.f32.mrf.mxu0  ;;  %v1204_v3 = vpack.c.bf16 %v1601_v0, %v1593_v49  ;;  %v1606_v10 = vpop.f32.mrf.mxu1 }
  0xf5   : > { %1165 = vst [vmem:[%s1591_s25] sm:$0xff] %v1164_v52   ;;  %v816_v62 = vadd.f32 %v1313_v45, %v815_v53  ;;  %v884_v63 = vadd.f32 %v853_v54, %v852_v51  ;;  %v858_v12 = vmul.f32 %v1317_v56, %v1317_v56 }
  0xf6   : > { %v544_v1 = vpop.f32.mrf.mxu0  ;;  %1263 = vst [vmem:[%s1591_s25 + $0x40] sm:$0xff] %v1204_v3   ;;  %v1609_v21 = vpop.f32.mrf.mxu1 }
  0xf7   : > { %v885_v6 = vadd.f32 %v884_v63, %v854_v60  ;;  %v817_v7 = vadd.f32 %v1314_v11, %v816_v62  ;;  %v856_v16 = vmul.f32 %v544_v1, %v544_v1 }
  0xf8   : > { %v1318_v14 = vpop.f32.mrf.mxu0  ;;  %v1612_v57 = vpop.f32.mrf.mxu1 }
  0xf9   : > { %v818_v15 = vadd.f32 %v817_v7, %v544_v1  ;;  %v886_v19 = vadd.f32 %v885_v6, %v855_v4  ;;  %v1179_v20 = vpack.c.bf16 %v1318_v14, %v1317_v56  ;;  %v1219_v9 = vpack.c.bf16 %v1612_v57, %v1606_v10 }
  0xfa   : > { %v547_v24 = vpop.f32.mrf.mxu0  ;;  %v1617_v59 = vpop.f32.mrf.mxu1  ;;  %v859_v33 = vmul.f32 %v1318_v14, %v1318_v14 }
  0xfb   : > { %v887_v25 = vadd.f32 %v886_v19, %v856_v16  ;;  %1258 = vst [vmem:[%s1591_s25 + $0x18] sm:$0xff] %v1179_v20   ;;  %v1174_v26 = vpack.c.bf16 %v547_v24, %v544_v1  ;;  %v819_v27 = vadd.f32 %v818_v15, %v547_v24  ;;  %v857_v28 = vmul.f32 %v547_v24, %v547_v24 }
  0xfc   : > { %v1321_v61 = vpop.f32.mrf.mxu0  ;;  %1266 = vst [vmem:[%s1591_s25 + $0x58] sm:$0xff] %v1219_v9   ;;  %v1214_v32 = vpack.c.bf16 %v1617_v59, %v1609_v21  ;;  %v1622_v8 = vpop.f32.mrf.mxu1 }
  0xfd   : > { %1257 = vst [vmem:[%s1591_s25 + $0x10] sm:$0xff] %v1174_v26   ;;  %v820_v29 = vadd.f32 %v1317_v56, %v819_v27  ;;  %v888_v30 = vadd.f32 %v887_v25, %v857_v28  ;;  %v862_v22 = vmul.f32 %v1321_v61, %v1321_v61 }
  0xfe   : > { %v560_v13 = vpop.f32.mrf.mxu0  ;;  %1265 = vst [vmem:[%s1591_s25 + $0x50] sm:$0xff] %v1214_v32   ;;  %v1625_v39 = vpop.f32.mrf.mxu1  ;;  %v870_v32 = vmul.f32 %v1584_v47, %v1584_v47 }
  0xff   : > { %v889_v34 = vadd.f32 %v888_v30, %v858_v12  ;;  %v821_v35 = vadd.f32 %v1318_v14, %v820_v29  ;;  %v860_v37 = vmul.f32 %v560_v13, %v560_v13  ;;  %v869_v30 = vmul.f32 %v1601_v0, %v1601_v0 }
 0x100   : > { %v1322_v17 = vpop.f32.mrf.mxu0  ;;  %v1628_v43 = vpop.f32.mrf.mxu1 }
 0x101   : > { %v822_v36 = vadd.f32 %v821_v35, %v560_v13  ;;  %v890_v38 = vadd.f32 %v889_v34, %v859_v33  ;;  %v1189_v18 = vpack.c.bf16 %v1322_v17, %v1321_v61  ;;  %v1229_v2 = vpack.c.bf16 %v1628_v43, %v1622_v8 }
 0x102   : > { %v563_v31 = vpop.f32.mrf.mxu0  ;;  %v627_v46 = vpop.f32.mrf.mxu1  ;;  %v863_v50 = vmul.f32 %v1322_v17, %v1322_v17  ;;  %v871_v35 = vmul.f32 %v1596_v55, %v1596_v55 }
 0x103   : > { %v891_v40 = vadd.f32 %v890_v38, %v860_v37  ;;  %1260 = vst [vmem:[%s1591_s25 + $0x28] sm:$0xff] %v1189_v18   ;;  %v1184_v23 = vpack.c.bf16 %v563_v31, %v560_v13  ;;  %v823_v41 = vadd.f32 %v822_v36, %v563_v31  ;;  %v861_v42 = vmul.f32 %v563_v31, %v563_v31 }
 0x104   : > { %v1325_v5 = vpop.f32.mrf.mxu0  ;;  %1268 = vst [vmem:[%s1591_s25 + $0x68] sm:$0xff] %v1229_v2   ;;  %v1224_v48 = vpack.c.bf16 %v627_v46, %v1625_v39  ;;  %v1635_v53 = vpop.f32.mrf.mxu1  ;;  %v872_v37 = vmul.f32 %v1609_v21, %v1609_v21  ;;  %v873_v31 = vmul.f32 %v1617_v59, %v1617_v59 }
 0x105   : > { %1259 = vst [vmem:[%s1591_s25 + $0x20] sm:$0xff] %v1184_v23   ;;  %v824_v44 = vadd.f32 %v1321_v61, %v823_v41  ;;  %v892_v45 = vadd.f32 %v891_v40, %v861_v42  ;;  %v866_v16 = vmul.f32 %v1325_v5, %v1325_v5  ;;  %v868_v61 = vmul.f32 %v1593_v49, %v1593_v49 }
 0x106   : > { %v576_v11 = vpop.f32.mrf.mxu0  ;;  %1267 = vst [vmem:[%s1591_s25 + $0x60] sm:$0xff] %v1224_v48   ;;  %v640_v63 = vpop.f32.mrf.mxu1  ;;  %v879_v48 = vmul.f32 %v1628_v43, %v1628_v43 }
 0x107   : > { %v893_v51 = vadd.f32 %v892_v45, %v862_v22  ;;  %v825_v52 = vadd.f32 %v1322_v17, %v824_v44  ;;  %v864_v58 = vmul.f32 %v576_v11, %v576_v11  ;;  %v877_v44 = vmul.f32 %v627_v46, %v627_v46 }
 0x108   : > { %v1326_v54 = vpop.f32.mrf.mxu0  ;;  %v1342_v14 = vpop.f32.mrf.mxu1  ;;  %v878_v45 = vmul.f32 %v1622_v8, %v1622_v8 }
 0x109   : > { %v826_v56 = vadd.f32 %v825_v52, %v576_v11  ;;  %v894_v60 = vadd.f32 %v893_v51, %v863_v50  ;;  %v1199_v62 = vpack.c.bf16 %v1326_v54, %v1325_v5  ;;  %v1239_v15 = vpack.c.bf16 %v1342_v14, %v1635_v53 }
 0x10a   : > { %v579_v1 = vpop.f32.mrf.mxu0  ;;  %v643_v24 = vpop.f32.mrf.mxu1  ;;  %v867_v26 = vmul.f32 %v1326_v54, %v1326_v54  ;;  %v880_v52 = vmul.f32 %v640_v63, %v640_v63 }
 0x10b   : > { %v895_v3 = vadd.f32 %v894_v60, %v864_v58  ;;  %1262 = vst [vmem:[%s1591_s25 + $0x38] sm:$0xff] %v1199_v62   ;;  %v1194_v4 = vpack.c.bf16 %v579_v1, %v576_v11  ;;  %v827_v6 = vadd.f32 %v826_v56, %v579_v1  ;;  %v865_v7 = vmul.f32 %v579_v1, %v579_v1 }
 0x10c   : > { %1270 = vst [vmem:[%s1591_s25 + $0x78] sm:$0xff] %v1239_v15   ;;  %v1234_v25 = vpack.c.bf16 %v643_v24, %v640_v63  ;;  %v882_v58 = vmul.f32 %v1635_v53, %v1635_v53  ;;  %v883_v62 = vmul.f32 %v1342_v14, %v1342_v14 }
 0x10d   : > { %1261 = vst [vmem:[%s1591_s25 + $0x30] sm:$0xff] %v1194_v4   ;;  %v828_v19 = vadd.f32 %v1325_v5, %v827_v6  ;;  %v896_v20 = vadd.f32 %v895_v3, %v865_v7  ;;  %v876_v5 = vmul.f32 %v1625_v39, %v1625_v39 }
 0x10e   : > { %1269 = vst [vmem:[%s1591_s25 + $0x70] sm:$0xff] %v1234_v25  }
 0x10f   : > { %v829_v27 = vadd.f32 %v1326_v54, %v828_v19  ;;  %v897_v28 = vadd.f32 %v896_v20, %v866_v16 }
 0x111   : > { %v898_v9 = vadd.f32 %v897_v28, %v867_v26  ;;  %v830_v12 = vadd.f32 %v829_v27, %v1593_v49 }
 0x113   : > { %v831_v29 = vadd.f32 %v830_v12, %v1601_v0  ;;  %v899_v13 = vadd.f32 %v898_v9, %v868_v61 }
 0x115   : > { %v832_v33 = vadd.f32 %v1584_v47, %v831_v29  ;;  %v900_v34 = vadd.f32 %v899_v13, %v869_v30  ;;  %v874_v47 = vmul.f32 %v1606_v10, %v1606_v10 }
 0x117   : > { %v901_v17 = vadd.f32 %v900_v34, %v870_v32  ;;  %v833_v36 = vadd.f32 %v1596_v55, %v832_v33  ;;  %v875_v55 = vmul.f32 %v1612_v57, %v1612_v57 }
 0x119   : > { %v834_v49 = vadd.f32 %v833_v36, %v1609_v21  ;;  %v902_v38 = vadd.f32 %v901_v17, %v871_v35 }
 0x11b   : > { %v903_v0 = vadd.f32 %v902_v38, %v872_v37  ;;  %v835_v18 = vadd.f32 %v834_v49, %v1617_v59 }
 0x11d   : > { %v836_v40 = vadd.f32 %v1606_v10, %v835_v18  ;;  %v904_v23 = vadd.f32 %v903_v0, %v873_v31 }
 0x11f   : > { %v905_v41 = vadd.f32 %v904_v23, %v874_v47  ;;  %v837_v42 = vadd.f32 %v1612_v57, %v836_v40 }
 0x121   : > { %v838_v21 = vadd.f32 %v837_v42, %v1625_v39  ;;  %v906_v2 = vadd.f32 %v905_v41, %v875_v55 }
 0x123   : > { %v907_v22 = vadd.f32 %v906_v2, %v876_v5  ;;  %v839_v59 = vadd.f32 %v838_v21, %v627_v46  ;;  %v881_v46 = vmul.f32 %v643_v24, %v643_v24 }
 0x125   : > { %v840_v10 = vadd.f32 %v1622_v8, %v839_v59  ;;  %v908_v11 = vadd.f32 %v907_v22, %v877_v44 }
 0x127   : > { %v909_v50 = vadd.f32 %v908_v11, %v878_v45  ;;  %v841_v57 = vadd.f32 %v1628_v43, %v840_v10 }
 0x129   : > { %v842_v51 = vadd.f32 %v841_v57, %v640_v63  ;;  %v910_v39 = vadd.f32 %v909_v50, %v879_v48 }
 0x12b   : > { %v911_v54 = vadd.f32 %v910_v39, %v880_v52  ;;  %v843_v56 = vadd.f32 %v842_v51, %v643_v24 }
 0x12d   : > { %v844_v8 = vadd.f32 %v1635_v53, %v843_v56  ;;  %v912_v60 = vadd.f32 %v911_v54, %v881_v46 }
 0x12f   : > { %v845_v1 = vadd.f32 %v1342_v14, %v844_v8  ;;  %v913_v3 = vadd.f32 %v912_v60, %v882_v58 }
 0x131   : > { %v846_v4 = vrot.slane %v845_v1, 4  ;;  %v914_v6 = vadd.f32 %v913_v3, %v883_v62 }
 0x133   : > { %v847_v43 = vadd.f32 %v846_v4, %v845_v1  ;;  %v915_v7 = vrot.slane %v914_v6, 4 }
 0x135   : > { %v848_v63 = vrot.slane %v847_v43, 2  ;;  %v916_v15 = vadd.f32 %v915_v7, %v914_v6 }
 0x137   : > { %v849_v16 = vadd.f32 %v848_v63, %v847_v43  ;;  %v917_v19 = vrot.slane %v916_v15, 2 }
 0x139   : > { %v850_v20 = vrot.slane %v849_v16, 1  ;;  %v918_v24 = vadd.f32 %v917_v19, %v916_v15 }
 0x13b   : > { %v919_v25 = vrot.slane %v918_v24, 1  ;;  %v851_v53 = vadd.f32 %v850_v20, %v849_v16 }
 0x13d   : > { %v920_v14 = vadd.f32 %v919_v25, %v918_v24 }
 0x13f   : > { %v922_v26 = vsel %vm921_vm0, %v851_v53, %v920_v14 }
 0x140   : > { %923 = vst [vmem:[%s238_s28] sm:$0x3] %v922_v26 }
 0x141 PF: > { %s16_s18 = sadd.s32 1, %s1381_s18  }
 0x142   : > { %p13_p5 = scmp.ge.s32.totalorder %s16_s18, 4  }
 0x144   :  { %15 = sbr.rel (!%p13_p5) target bundleno = 1 (0x1), region = 78 }

// kernel: bottleneck_forward.5
= control target key start
LH: loop header
LB: loop body
LE: loop exit
PB: predicated region body
PF: predicated region fallthrough
CT: control target
= control target key end

     0   :  { %s7798_s18 = smov 0   ;;  %s10620_s0 = inlined_call_operand.vmem [shape: bf16[2,16,16,128], index: 0, kind: input, shape index: {}]   ;;  %s10621_s1 = inlined_call_operand.vmem [shape: f32[1,128], index: 1, kind: input, shape index: {}]   ;;  %s10622_s2 = inlined_call_operand.vmem [shape: f32[1,128], index: 2, kind: input, shape index: {}]   ;;  %s10623_s3 = inlined_call_operand.vmem [shape: bf16[3,3,128,128], index: 3, kind: input, shape index: {}]   ;;  %s10624_s4 = inlined_call_operand.vmem [shape: bf16[2,16,16,128], index: 4, kind: output, shape index: {0}]   ;;  %s10625_s5 = inlined_call_operand.vmem [shape: f32[2,2,128], index: 5, kind: output, shape index: {1}]  }
   0x1 LB: > { %s6227_s19 = sadd.s32 4294967295, %s7765_s18   ;;  %p6231_p0 = scmp.ge.s32.totalorder %s7765_s18, 1  ;;  %s7765_s18 = sphi %s7798_s18, %s16_s18  }
   0x2   : > { %p190_p1 = scmp.lt.s32.totalorder %s7765_s18, 3 }
   0x4   : > { %p191_p2 = pnand %p6231_p0, %p190_p1 }
   0x6   : > { %194 = sbr.rel (%p191_p2) target bundleno = 681 (0x2a9), region = 36 }
   0xb   : > { %v7610_v0 = vld [vmem:[%s10623_s3 + $0x78] sm:$0xff]   ;;  %v7611_v1 = vld [vmem:[%s10623_s3 + $0x70] sm:$0xff]   ;;  %v7767_v2 = vmov 0   ;;  %p222_p3 = scmp.lt.s32.totalorder %s6227_s19, 1  ;;  %v7612_v3 = vld [vmem:[%s10623_s3 + $0x68] sm:$0xff]   ;;  %vm418_vm0 = vcmask 1040384  }
   0xc   : > { %411 = vst [vmem:[#allocation2] sm:$0xf] %v7767_v2  ;;  %412 = vst [vmem:[#allocation2 + $0x4] sm:$0xf] %v7767_v2  ;;  %7153 = vmatprep.subr.bf16.mxu0 %v7610_v0  ;;  %7585 = vmatprep.subr.bf16.mxu1 %v7610_v0  ;;  %v7613_v4 = vld [vmem:[%s10623_s3 + $0x60] sm:$0xff]   ;;  %v10646_v10 = vmov 0 }
   0xd   : > { %413 = vst [vmem:[#allocation2 + $0x8] sm:$0x1] %v7767_v2  ;;  %415 = vst [vmem:[#allocation2 + $0xcc] sm:$0xf] %v7767_v2  ;;  %7154 = vmatpush3.bf16.msra.mxu0 %v7610_v0  ;;  %7593 = vmatpush3.bf16.msra.mxu1 %v7610_v0  ;;  %s10893_s19 = smov (!%p222_p3, %s6227_s19), 1  ;;  %v7614_v14 = vld [vmem:[%s10623_s3 + $0x58] sm:$0xff]  }
   0xe   : > { %416 = vst [vmem:[#allocation2 + $0xd0] sm:$0xf] %v7767_v2  ;;  %417 = vst [vmem:[#allocation2 + $0xd4] sm:$0x1] %v7767_v2  ;;  %7155 = vmatprep.subr.bf16.mxu0 %v7611_v1  ;;  %7586 = vmatprep.subr.bf16.mxu1 %v7611_v1  ;;  %s6697_s26 = sshll.u32 %s10893_s19, 7  ;;  %vm950_vm6 = vcmask 1043456  }
   0xf   : > { %s7826_s6 = scalar_lea.vmem %s10620_s0, %s6697_s26  ;;  %vm419_vm1 = vsmask.f32 256  ;;  %vm475_vm2 = vsmask.f32 7938  ;;  %vm1128_vm5 = vsmask.f32 3328  ;;  %s10480_s11 = scalar_lea.vmem %s10624_s4, %s6697_s26 }
  0x10   : > { %vm7830_vm3 = vmand %vm418_vm0, %vm419_vm1  ;;  %v6764_v13 = vld [vmem:[%s7826_s6] sm:$0xff]   ;;  %v424_v22 = vld [vmem:[#allocation2 + $0xc] sm:$0x1]  ;;  %vm1129_vm7 = vsmask.f32 7440  ;;  %vm2158_vm12 = vcmask 1042432  }
  0x11   : > { %7156 = vmatpush3.bf16.msra.mxu0 %v7611_v1  ;;  %7594 = vmatpush3.bf16.msra.mxu1 %v7611_v1  ;;  %vm7838_vm4 = vmand %vm418_vm0, %vm475_vm2  ;;  %v7851_v16 = vld [vmem:[%s10621_s1] ss:$0 sm:$0xff]  ;;  %v6765_v18 = vunpack.c.l.bf16 %v6764_v13  ;;  %v6766_v19 = vunpack.c.h.bf16 %v6764_v13  ;;  %v480_v23 = vld [vmem:[#allocation2 + $0x14] sm:$0x1]  ;;  %v425_v26 = vsel %vm7830_vm3, 0, %v424_v22  ;;  %vm2159_vm13 = vcmask 1046532  }
  0x12   : > { %7157 = vmatprep.subr.bf16.mxu0 %v7612_v3  ;;  %7587 = vmatprep.subr.bf16.mxu1 %v7612_v3  ;;  %v10647_v10 = vsel %vm7838_vm4, 4294967295, %v10646_v10  ;;  %v7856_v17 = vld [vmem:[%s10622_s2] ss:$0 sm:$0xff]  ;;  %v481_v27 = vsel %vm7838_vm4, 0, %v480_v23  ;;  %v6913_v28 = vld [vmem:[%s7826_s6 + $0x38] sm:$0xff]   ;;  %v7615_v30 = vld [vmem:[%s10623_s3 + $0x50] sm:$0xff]  }
  0x13   : > { %v421_v5 = vld [vmem:[#allocation2] sm:$0x1]  ;;  %v1065_v8 = vld [vmem:[#allocation2 + $0x4] sm:$0xf]  ;;  %10648 = vst [vmem:[#allocation3_spill] sm:$0xff] %v10647_v10  ;;  %v309_v24 = vmul.f32 %v6765_v18, %v7851_v16  ;;  %v310_v25 = vmul.f32 %v6766_v19, %v7851_v16  ;;  %v6793_v32 = vunpack.c.l.bf16 %v6913_v28  ;;  %v6794_v33 = vunpack.c.h.bf16 %v6913_v28  ;;  %v7616_v59 = vld [vmem:[%s10623_s3 + $0x48] sm:$0xff]  }
  0x14   : > { %v477_v7 = vld [vmem:[#allocation2 + $0x8] sm:$0x1]  ;;  %v422_v9 = vsel %vm7830_vm3, 0, %v421_v5  ;;  %v1141_v11 = vshll.u32 %v1065_v8, 16  ;;  %v1145_v12 = vshrl.u32 %v1065_v8, 16  ;;  %v7882_v42 = vld [vmem:[%s7826_s6 + $0x40] sm:$0xff]   ;;  %vm7901_vm9 = vmor %vm1128_vm5, %vm1129_vm7 }
  0x15   : > { %7158 = vmatpush3.bf16.msra.mxu0 %v7612_v3  ;;  %7595 = vmatpush3.bf16.msra.mxu1 %v7612_v3  ;;  %423 = vst [vmem:[#allocation2] sm:$0x1] %v422_v9  ;;  %v478_v15 = vsel %vm7838_vm4, 0, %v477_v7  ;;  %v445_v29 = vld [vmem:[#allocation2 + $0x60] sm:$0x1]  ;;  %v347_v35 = vadd.f32 %v7856_v17, %v309_v24  ;;  %v348_v36 = vadd.f32 %v7856_v17, %v310_v25  ;;  %v6797_v45 = vunpack.c.l.bf16 %v7882_v42  ;;  %vm7914_vm10 = vmand %vm950_vm6, %vm475_vm2  ;;  %s6236_s26 = sshll.u32 %s10893_s19, 1 }
  0x16   : > { %7159 = vmatprep.subr.bf16.mxu0 %v7613_v4  ;;  %7588 = vmatprep.subr.bf16.mxu1 %v7613_v4  ;;  %479 = vst [vmem:[#allocation2 + $0x8] sm:$0x1] %v478_v15  ;;  %v7858_v20 = vrot.slane %v1141_v11, 5  ;;  %v1147_v21 = vrot.slane %v1145_v12, 4  ;;  %426 = vst [vmem:[#allocation2 + $0xc] sm:$0x1] %v425_v26  ;;  %v323_v40 = vmul.f32 %v6793_v32, %v7851_v16  ;;  %v6798_v46 = vunpack.c.h.bf16 %v7882_v42  ;;  %s235_s14 = scalar_lea.vmem %s10625_s5, %s6236_s26 }
  0x17   : > { %482 = vst [vmem:[#allocation2 + $0x14] sm:$0x1] %v481_v27  ;;  %v501_v34 = vld [vmem:[#allocation2 + $0x68] sm:$0x1]  ;;  %v446_v37 = vsel %vm7830_vm3, 0, %v445_v29  ;;  %v324_v41 = vmul.f32 %v6794_v33, %v7851_v16  ;;  %v379_v43 = vmax.f32 %v347_v35, 0.0  ;;  %v325_v18 = vmul.f32 %v6797_v45, %v7851_v16  ;;  %vm8361_vm14 = vmor %vm2158_vm12, %vm2159_vm13 }
  0x18   : > { %v1148_v31 = vor.u32 %v1147_v21, %v7858_v20  ;;  %v502_v38 = vsel %vm7838_vm4, 0, %v501_v34  ;;  %vm627_vm8 = vsmask.f32 4368  ;;  %447 = vst [vmem:[#allocation2 + $0x60] sm:$0x1] %v446_v37  ;;  %v380_v44 = vmax.f32 %v348_v36, 0.0 }
  0x19   : > { %7160 = vmatpush3.bf16.msra.mxu0 %v7613_v4  ;;  %7596 = vmatpush3.bf16.msra.mxu1 %v7613_v4  ;;  %503 = vst [vmem:[#allocation2 + $0x68] sm:$0x1] %v502_v38  ;;  %v448_v47 = vld [vmem:[#allocation2 + $0x6c] sm:$0x1]  ;;  %v504_v48 = vld [vmem:[#allocation2 + $0x74] sm:$0x1]  ;;  %v361_v50 = vadd.f32 %v7856_v17, %v323_v40  ;;  %v362_v51 = vadd.f32 %v7856_v17, %v324_v41  ;;  %vm7920_vm11 = vmor %vm419_vm1, %vm627_vm8 }
  0x1a   : > { %7161 = vmatprep.subr.bf16.mxu0 %v7614_v14  ;;  %7589 = vmatprep.subr.bf16.mxu1 %v7614_v14  ;;  %v7877_v39 = vrot.slane %v1148_v31, 4  ;;  %v449_v52 = vsel %vm7830_vm3, 0, %v448_v47  ;;  %v505_v53 = vsel %vm7838_vm4, 0, %v504_v48  ;;  %v6699_v57 = vpack.c.bf16 %v379_v43, %v379_v43  ;;  %v7617_v19 = vld [vmem:[%s10623_s3 + $0x40] sm:$0xff]   ;;  %v7932_v38 = vld [vmem:[%s10623_s3 + $0x38] sm:$0xff]   ;;  %v6907_v40 = vld [vmem:[%s7826_s6 + $0x8] sm:$0xff]  }
  0x1b   : > { %v6700_v58 = vpack.c.bf16 %v380_v44, %v380_v44  ;;  %450 = vst [vmem:[#allocation2 + $0x6c] sm:$0x1] %v449_v52  ;;  %506 = vst [vmem:[#allocation2 + $0x74] sm:$0x1] %v505_v53  ;;  %v393_v62 = vmax.f32 %v361_v50, 0.0  ;;  %v394_v63 = vmax.f32 %v362_v51, 0.0  ;;  %v363_v51 = vadd.f32 %v7856_v17, %v325_v18 }
  0x1c   : > { %v1064_v49 = vld [vmem:[#allocation2] sm:$0xf]  ;;  %v630_v3 = vshrl.u32 %v6699_v57, 16  ;;  %v633_v4 = vshll.u32 %v6699_v57, 16  ;;  %v10651_v23 = vmov 0  ;;  %v10654_v27 = vmov 0 }
  0x1d   : > { %7162 = vmatpush3.bf16.msra.mxu0 %v7614_v14  ;;  %7597 = vmatpush3.bf16.msra.mxu1 %v7614_v14  ;;  %v7892_v54 = vld [vmem:[#allocation2 + $0x8] sm:$0x1]  ;;  %v1132_v55 = vshrl.u32 %v1064_v49, 16  ;;  %v1135_v56 = vshll.u32 %v1064_v49, 16  ;;  %v638_v7 = vshrl.u32 %v6700_v58, 16  ;;  %v641_v8 = vshll.u32 %v6700_v58, 16 }
  0x1e   : > { %7163 = vmatprep.subr.bf16.mxu0 %v7615_v30  ;;  %7590 = vmatprep.subr.bf16.mxu1 %v7615_v30  ;;  %v1151_v60 = vshll.u32 %v7892_v54, 16  ;;  %v2166_v61 = vrot.slane %v7892_v54, 5  ;;  %v6713_v9 = vpack.c.bf16 %v393_v62, %v393_v62  ;;  %v632_v12 = vrot.slane %v630_v3, 7  ;;  %v952_v13 = vld [vmem:[#allocation2 + $0xc] sm:$0xf]  ;;  %v7945_v42 = vld [vmem:[%s10623_s3 + $0xb8] sm:$0xff]  }
  0x1f   : > { %v1134_v1 = vrot.slane %v1132_v55, 4  ;;  %v1137_v2 = vrot.slane %v1135_v56, 5  ;;  %v956_v14 = vld [vmem:[#allocation2 + $0x14] sm:$0x1]  ;;  %v6714_v15 = vpack.c.bf16 %v394_v63, %v394_v63  ;;  %v640_v22 = vrot.slane %v638_v7, 7 }
  0x20   : > { %v1153_v5 = vrot.slane %v1151_v60, 5  ;;  %v10652_v23 = vsel %vm7914_vm10, 4294967295, %v10651_v23  ;;  %v749_v24 = vshrl.u32 %v6713_v9, 16  ;;  %v752_v25 = vshll.u32 %v6713_v9, 16  ;;  %v427_v41 = vld [vmem:[#allocation2 + $0x18] sm:$0x1] }
  0x21   : > { %7164 = vmatpush3.bf16.msra.mxu0 %v7615_v30  ;;  %7598 = vmatpush3.bf16.msra.mxu1 %v7615_v30  ;;  %v1138_v11 = vor.u32 %v1137_v2, %v1134_v1  ;;  %10653 = vst [vmem:[#allocation4_spill] sm:$0xff] %v10652_v23  ;;  %v10655_v27 = vsel %vm7920_vm11, 4294967295, %v10654_v27  ;;  %v635_v28 = vor.u32 %v633_v4, %v632_v12  ;;  %v636_v29 = vrot.slane %v632_v12, 4  ;;  %v1001_v47 = vld [vmem:[#allocation2 + $0x60] sm:$0xf] }
  0x22   : > { %7165 = vmatprep.subr.bf16.mxu0 %v7616_v59  ;;  %7591 = vmatprep.subr.bf16.mxu1 %v7616_v59  ;;  %v1154_v21 = vsel %vm7901_vm9, %v7877_v39, %v1153_v5  ;;  %10656 = vst [vmem:[#allocation5_spill] sm:$0xff] %v10655_v27  ;;  %v757_v30 = vshrl.u32 %v6714_v15, 16  ;;  %v643_v31 = vor.u32 %v641_v8, %v640_v22  ;;  %v645_v32 = vrot.slane %v640_v22, 4  ;;  %v1005_v48 = vld [vmem:[#allocation2 + $0x68] sm:$0x1] }
  0x23   : > { %v1139_v26 = vrot.slane %v1138_v11, 4  ;;  %v751_v33 = vrot.slane %v749_v24, 7  ;;  %v760_v34 = vshll.u32 %v6714_v15, 16  ;;  %v953_v36 = vsel %vm7914_vm10, %v635_v28, %v952_v13  ;;  %v483_v52 = vld [vmem:[#allocation2 + $0x20] sm:$0x1]  ;;  %v7969_v15 = vld [vmem:[%s7826_s6 + $0x48] sm:$0xff]  }
  0x24   : > { %v759_v37 = vrot.slane %v757_v30, 7  ;;  %v326_v39 = vmul.f32 %v6798_v46, %v7851_v16  ;;  %954 = vst [vmem:[#allocation2 + $0xc] sm:$0xf] %v953_v36  ;;  %v957_v44 = vsel %vm7830_vm3, %v645_v32, %v956_v14  ;;  %v430_v53 = vld [vmem:[#allocation2 + $0x24] sm:$0x1]  ;;  %v6769_v56 = vunpack.c.l.bf16 %v6907_v40 }
  0x25   : > { %7166 = vmatpush3.bf16.msra.mxu0 %v7616_v59  ;;  %7599 = vmatpush3.bf16.msra.mxu1 %v7616_v59  ;;  %v1144_v35 = vsel %vm7901_vm9, %v1139_v26, %v7858_v20  ;;  %v644_v20 = vsel %vm7920_vm11, %v636_v29, %v643_v31  ;;  %v755_v45 = vrot.slane %v751_v33, 4  ;;  %958 = vst [vmem:[#allocation2 + $0x14] sm:$0x1] %v957_v44  ;;  %v6770_v57 = vunpack.c.h.bf16 %v6907_v40  ;;  %v6908_v59 = vld [vmem:[%s7826_s6 + $0x10] sm:$0xff]   ;;  %v486_v60 = vld [vmem:[#allocation2 + $0x2c] sm:$0x1] }
  0x26   : > { %7167 = vmatprep.subr.bf16.mxu0 %v7617_v19  ;;  %7592 = vmatprep.subr.bf16.mxu1 %v7617_v19  ;;  %v6287_v43 = vcombine.low %v1144_v35, %v1154_v21  ;;  %955 = vst [vmem:[#allocation2 + $0x10] sm:$0xf] %v644_v20  ;;  %v754_v46 = vor.u32 %v752_v25, %v751_v33  ;;  %v764_v50 = vrot.slane %v759_v37, 4  ;;  %v428_v58 = vsel %vm7830_vm3, 0, %v427_v41 }
  0x27   : > { %v762_v49 = vor.u32 %v760_v34, %v759_v37  ;;  %v364_v55 = vadd.f32 %v7856_v17, %v326_v39  ;;  %v395_v2 = vmax.f32 %v363_v51, 0.0  ;;  %429 = vst [vmem:[#allocation2 + $0x18] sm:$0x1] %v428_v58  ;;  %v311_v4 = vmul.f32 %v6769_v56, %v7851_v16 }
  0x28   : > { %7169 = vmatprep.mubr.bf16.mxu0 %v6287_v43  ;;  %v1002_v63 = vsel %vm7914_vm10, %v754_v46, %v1001_v47  ;;  %v1006_v1 = vsel %vm7830_vm3, %v764_v50, %v1005_v48  ;;  %v312_v5 = vmul.f32 %v6770_v57, %v7851_v16  ;;  %v484_v7 = vsel %vm7838_vm4, 0, %v483_v52 }
  0x29   : > { %7168 = vmatpush3.bf16.msra.mxu0 %v7617_v19  ;;  %7600 = vmatpush3.bf16.msra.mxu1 %v7617_v19  ;;  %v763_v62 = vsel %vm7920_vm11, %v755_v45, %v762_v49  ;;  %1003 = vst [vmem:[#allocation2 + $0x60] sm:$0xf] %v1002_v63  ;;  %1007 = vst [vmem:[#allocation2 + $0x68] sm:$0x1] %v1006_v1  ;;  %v396_v3 = vmax.f32 %v364_v55, 0.0  ;;  %v6715_v8 = vpack.c.bf16 %v395_v2, %v395_v2 }
  0x2a   : > { %1004 = vst [vmem:[#allocation2 + $0x64] sm:$0xf] %v763_v62  ;;  %7201 = vmatprep.subr.bf16.mxu1 %v7932_v38  ;;  %7249 = vmatprep.subr.bf16.mxu0 %v7945_v42  ;;  %485 = vst [vmem:[#allocation2 + $0x20] sm:$0x1] %v484_v7  ;;  %v6773_v9 = vunpack.c.l.bf16 %v6908_v59  ;;  %v6774_v11 = vunpack.c.h.bf16 %v6908_v59  ;;  %v431_v12 = vsel %vm7830_vm3, 0, %v430_v53  ;;  %v487_v14 = vsel %vm7838_vm4, 0, %v486_v60 }
  0x2b   : > { %v6716_v13 = vpack.c.bf16 %v396_v3, %v396_v3  ;;  %432 = vst [vmem:[#allocation2 + $0x24] sm:$0x1] %v431_v12  ;;  %v1066_v18 = vld [vmem:[#allocation2 + $0xc] sm:$0xf]  ;;  %v766_v19 = vshrl.u32 %v6715_v8, 16  ;;  %v769_v21 = vshll.u32 %v6715_v8, 16  ;;  %v349_v22 = vadd.f32 %v7856_v17, %v311_v4 }
  0x2c   : > { %v7973_v24 = vadd.f32 %v7856_v17, %v312_v5  ;;  %488 = vst [vmem:[#allocation2 + $0x2c] sm:$0x1] %v487_v14  ;;  %v1113_v26 = vld [vmem:[#allocation2 + $0x14] sm:$0x1]  ;;  %v1156_v28 = vshrl.u32 %v1066_v18, 16  ;;  %v1159_v29 = vshll.u32 %v1066_v18, 16  ;;  %v313_v30 = vmul.f32 %v6773_v9, %v7851_v16 }
  0x2d   : > { %v1067_v25 = vld [vmem:[#allocation2 + $0x10] sm:$0xf]  ;;  %v314_v31 = vmul.f32 %v6774_v11, %v7851_v16  ;;  %v1175_v34 = vshll.u32 %v1113_v26, 16  ;;  %v6801_v35 = vunpack.c.l.bf16 %v7969_v15  ;;  %v768_v39 = vrot.slane %v766_v19, 7  ;;  %v1008_v62 = vld [vmem:[#allocation2 + $0x6c] sm:$0xf] }
  0x2e   : > { %v1165_v32 = vshll.u32 %v1067_v25, 16  ;;  %v1169_v33 = vshrl.u32 %v1067_v25, 16  ;;  %v1158_v36 = vrot.slane %v1156_v28, 4  ;;  %v1161_v37 = vrot.slane %v1159_v29, 5  ;;  %v1012_v14 = vld [vmem:[#allocation2 + $0x74] sm:$0x1] }
  0x2f   : > { %v6802_v40 = vunpack.c.h.bf16 %v7969_v15  ;;  %v1177_v20 = vrot.slane %v1175_v34, 5  ;;  %v774_v45 = vshrl.u32 %v6716_v13, 16  ;;  %v771_v51 = vor.u32 %v769_v21, %v768_v39  ;;  %v7621_v26 = vld [vmem:[%s10623_s3 + $0xb0] sm:$0xff]  }
  0x30   : > { %v1167_v41 = vrot.slane %v1165_v32, 5  ;;  %v1171_v43 = vrot.slane %v1169_v33, 4  ;;  %v1080_v44 = vld [vmem:[#allocation2 + $0x60] sm:$0xf]  ;;  %v1162_v47 = vor.u32 %v1161_v37, %v1158_v36  ;;  %v1120_v46 = vld [vmem:[#allocation2 + $0x68] sm:$0x1]  ;;  %v351_v33 = vadd.f32 %v7856_v17, %v313_v30 }
  0x31   : > { %v1081_v48 = vld [vmem:[#allocation2 + $0x64] sm:$0xf]  ;;  %v1324_v49 = vshrl.u32 %v1080_v44, 16  ;;  %v1327_v50 = vshll.u32 %v1080_v44, 16  ;;  %v1343_v56 = vshll.u32 %v1120_v46, 16  ;;  %v777_v60 = vshll.u32 %v6716_v13, 16 }
  0x32   : > { %v1172_v52 = vor.u32 %v1171_v43, %v1167_v41  ;;  %v1333_v53 = vshll.u32 %v1081_v48, 16  ;;  %v1337_v55 = vshrl.u32 %v1081_v48, 16  ;;  %v1163_v57 = vrot.slane %v1162_v47, 4  ;;  %v8018_v15 = vld [vmem:[%s7826_s6 + $0x50] sm:$0xff]  }
  0x33   : > { %v1326_v58 = vrot.slane %v1324_v49, 4  ;;  %v1329_v59 = vrot.slane %v1327_v50, 5  ;;  %v1345_v3 = vrot.slane %v1343_v56, 5  ;;  %v772_v7 = vrot.slane %v768_v39, 4  ;;  %v451_v39 = vld [vmem:[#allocation2 + $0x78] sm:$0x1] }
  0x34   : > { %v1173_v63 = vrot.slane %v1172_v52, 4  ;;  %v1335_v1 = vrot.slane %v1333_v53, 5  ;;  %v1339_v2 = vrot.slane %v1337_v55, 4  ;;  %v1168_v4 = vsel %vm7901_vm9, %v1163_v57, %v1167_v41  ;;  %v959_v50 = vld [vmem:[#allocation2 + $0x18] sm:$0xf] }
  0x35   : > { %v1330_v5 = vor.u32 %v1329_v59, %v1326_v58  ;;  %v776_v8 = vrot.slane %v774_v45, 7  ;;  %v1009_v12 = vsel %vm7914_vm10, %v771_v51, %v1008_v62  ;;  %v381_v13 = vmax.f32 %v349_v22, 0.0 }
  0x36   : > { %v1178_v9 = vsel %vm7901_vm9, %v1173_v63, %v1177_v20  ;;  %v1340_v11 = vor.u32 %v1339_v2, %v1335_v1  ;;  %1010 = vst [vmem:[#allocation2 + $0x6c] sm:$0xf] %v1009_v12  ;;  %v382_v29 = vmax.f32 %v7973_v24, 0.0  ;;  %v352_v37 = vadd.f32 %v7856_v17, %v314_v31  ;;  %v7623_v31 = vld [vmem:[%s10623_s3 + $0xa8] sm:$0xff]  }
  0x37   : > { %v6288_v18 = vcombine.low %v1168_v4, %v1178_v9  ;;  %v1331_v19 = vrot.slane %v1330_v5, 4  ;;  %v779_v21 = vor.u32 %v777_v60, %v776_v8  ;;  %v781_v25 = vrot.slane %v776_v8, 4  ;;  %v963_v5 = vld [vmem:[#allocation2 + $0x20] sm:$0x1] }
  0x38   : > { %v1341_v28 = vrot.slane %v1340_v11, 4  ;;  %v6701_v32 = vpack.c.bf16 %v381_v13, %v381_v13  ;;  %v6702_v24 = vpack.c.bf16 %v382_v29, %v382_v29  ;;  %v383_v44 = vmax.f32 %v351_v33, 0.0  ;;  %v507_v29 = vld [vmem:[#allocation2 + $0x80] sm:$0x1] }
  0x39   : > { %7170 = vmatmul.mubr.bf16.vlgmr.msra.gmra.mxu0 %v6288_v18  ;;  %v1336_v34 = vsel %vm7901_vm9, %v1331_v19, %v1335_v1  ;;  %v780_v22 = vsel %vm7920_vm11, %v772_v7, %v779_v21  ;;  %v1013_v36 = vsel %vm7830_vm3, %v781_v25, %v1012_v14  ;;  %v384_v45 = vmax.f32 %v352_v37, 0.0  ;;  %v7625_v1 = vld [vmem:[%s10623_s3 + $0xa0] sm:$0xff]  }
  0x3a   : > { %v1346_v41 = vsel %vm7901_vm9, %v1341_v28, %v1345_v3  ;;  %1011 = vst [vmem:[#allocation2 + $0x70] sm:$0xf] %v780_v22  ;;  %1014 = vst [vmem:[#allocation2 + $0x74] sm:$0x1] %v1013_v36  ;;  %7250 = vmatpush3.bf16.msra.mxu0 %v7945_v42  ;;  %v647_v30 = vshrl.u32 %v6701_v32, 16  ;;  %v650_v43 = vshll.u32 %v6701_v32, 16  ;;  %v327_v47 = vmul.f32 %v6801_v35, %v7851_v16 }
  0x3b   : > { %v6295_v20 = vcombine.low %v1336_v34, %v1346_v41  ;;  %7251 = vmatprep.subr.bf16.mxu0 %v7621_v26  ;;  %v655_v46 = vshrl.u32 %v6702_v24, 16  ;;  %v658_v49 = vshll.u32 %v6702_v24, 16  ;;  %v328_v42 = vmul.f32 %v6802_v40, %v7851_v16  ;;  %v970_v28 = vld [vmem:[#allocation2 + $0x2c] sm:$0x1]  ;;  %v7627_v32 = vld [vmem:[%s10623_s3 + $0x98] sm:$0xff]  }
  0x3c   : > { %v649_v48 = vrot.slane %v647_v30, 7  ;;  %v6703_v51 = vpack.c.bf16 %v383_v44, %v383_v44  ;;  %v6704_v52 = vpack.c.bf16 %v384_v45, %v384_v45  ;;  %v8010_v53 = vadd.f32 %v7856_v17, %v327_v47 }
  0x3d   : > { %7185 = vmatprep.mubr.bf16.mxu1 %v6295_v20  ;;  %v452_v35 = vsel %vm7830_vm3, 0, %v451_v39  ;;  %v1082_v55 = vld [vmem:[#allocation2 + $0x6c] sm:$0xf]  ;;  %v657_v58 = vrot.slane %v655_v46, 7  ;;  %v8015_v59 = vadd.f32 %v7856_v17, %v328_v42  ;;  %v6805_v14 = vunpack.c.l.bf16 %v8018_v15 }
  0x3e   : > { %7252 = vmatpush3.bf16.msra.mxu0 %v7621_v26  ;;  %v652_v56 = vor.u32 %v650_v43, %v649_v48  ;;  %v653_v57 = vrot.slane %v649_v48, 4  ;;  %453 = vst [vmem:[#allocation2 + $0x78] sm:$0x1] %v452_v35  ;;  %v1348_v40 = vshrl.u32 %v1082_v55, 16  ;;  %v1351_v60 = vshll.u32 %v1082_v55, 16 }
  0x3f   : > { %v664_v62 = vshrl.u32 %v6703_v51, 16  ;;  %v667_v63 = vshll.u32 %v6703_v51, 16  ;;  %7253 = vmatprep.subr.bf16.mxu0 %v7623_v31  ;;  %v660_v2 = vor.u32 %v658_v49, %v657_v58  ;;  %v662_v3 = vrot.slane %v657_v58, 4  ;;  %v966_v26 = vld [vmem:[#allocation2 + $0x24] sm:$0xf]  ;;  %v7629_v51 = vld [vmem:[%s10623_s3 + $0x90] sm:$0xff]  }
  0x40   : > { %v960_v4 = vsel %vm7914_vm10, %v652_v56, %v959_v50  ;;  %v672_v7 = vshrl.u32 %v6704_v52, 16  ;;  %v1350_v11 = vrot.slane %v1348_v40, 4  ;;  %v1353_v12 = vrot.slane %v1351_v60, 5  ;;  %v7620_v60 = vld [vmem:[%s10623_s3 + $0x30] sm:$0xff]  }
  0x41   : > { %v1083_v8 = vld [vmem:[#allocation2 + $0x70] sm:$0xf]  ;;  %v1121_v9 = vld [vmem:[#allocation2 + $0x74] sm:$0x1]  ;;  %961 = vst [vmem:[#allocation2 + $0x18] sm:$0xf] %v960_v4  ;;  %v6806_v13 = vunpack.c.h.bf16 %v8018_v15  ;;  %v661_v25 = vsel %vm7920_vm11, %v653_v57, %v660_v2  ;;  %v964_v34 = vsel %vm7830_vm3, %v662_v3, %v963_v5 }
  0x42   : > { %v1357_v18 = vshll.u32 %v1083_v8, 16  ;;  %v1361_v19 = vshrl.u32 %v1083_v8, 16  ;;  %v1367_v21 = vshll.u32 %v1121_v9, 16  ;;  %7254 = vmatpush3.bf16.msra.mxu0 %v7623_v31  ;;  %v1354_v33 = vor.u32 %v1353_v12, %v1350_v11  ;;  %962 = vst [vmem:[#allocation2 + $0x1c] sm:$0xf] %v661_v25  ;;  %v7631_v9 = vld [vmem:[%s10623_s3 + $0x88] sm:$0xff]  }
  0x43   : > { %v666_v22 = vrot.slane %v664_v62, 7  ;;  %v674_v36 = vrot.slane %v672_v7, 7  ;;  %7255 = vmatprep.subr.bf16.mxu0 %v7625_v1  ;;  %965 = vst [vmem:[#allocation2 + $0x20] sm:$0x1] %v964_v34  ;;  %v675_v24 = vshll.u32 %v6704_v52, 16  ;;  %v397_v31 = vmax.f32 %v8010_v53, 0.0 }
  0x44   : > { %v1359_v37 = vrot.slane %v1357_v18, 5  ;;  %v1363_v39 = vrot.slane %v1361_v19, 4  ;;  %v1369_v41 = vrot.slane %v1367_v21, 5  ;;  %v1355_v30 = vrot.slane %v1354_v33, 4  ;;  %v8062_v25 = vld [vmem:[%s10623_s3 + $0x28] sm:$0xff]  }
  0x45   : > { %v669_v43 = vor.u32 %v667_v63, %v666_v22  ;;  %v670_v20 = vrot.slane %v666_v22, 4  ;;  %v679_v44 = vrot.slane %v674_v36, 4  ;;  %v677_v47 = vor.u32 %v675_v24, %v674_v36  ;;  %v1015_v34 = vld [vmem:[#allocation2 + $0x78] sm:$0xf]  ;;  %v7633_v22 = vld [vmem:[%s10623_s3 + $0x80] sm:$0xff]  }
  0x46   : > { %v1364_v45 = vor.u32 %v1363_v39, %v1359_v37  ;;  %v398_v48 = vmax.f32 %v8015_v59, 0.0  ;;  %7256 = vmatpush3.bf16.msra.mxu0 %v7625_v1  ;;  %v1360_v46 = vsel %vm7901_vm9, %v1355_v30, %v1359_v37  ;;  %v508_v50 = vsel %vm7838_vm4, 0, %v507_v29 }
  0x47   : > { %v967_v49 = vsel %vm7914_vm10, %v669_v43, %v966_v26  ;;  %v971_v42 = vsel %vm7830_vm3, %v679_v44, %v970_v28  ;;  %7257 = vmatprep.subr.bf16.mxu0 %v7627_v32  ;;  %v678_v35 = vsel %vm7920_vm11, %v670_v20, %v677_v47  ;;  %509 = vst [vmem:[#allocation2 + $0x80] sm:$0x1] %v508_v50  ;;  %v454_v47 = vld [vmem:[#allocation2 + $0x84] sm:$0x1] }
  0x48   : > { %v1365_v52 = vrot.slane %v1364_v45, 4  ;;  %v1068_v53 = vld [vmem:[#allocation2 + $0x18] sm:$0xf]  ;;  %968 = vst [vmem:[#allocation2 + $0x24] sm:$0xf] %v967_v49  ;;  %v6717_v55 = vpack.c.bf16 %v397_v31, %v397_v31  ;;  %v6718_v56 = vpack.c.bf16 %v398_v48, %v398_v48  ;;  %v329_v59 = vmul.f32 %v6805_v14, %v7851_v16 }
  0x49   : > { %972 = vst [vmem:[#allocation2 + $0x2c] sm:$0x1] %v971_v42  ;;  %v1180_v57 = vshrl.u32 %v1068_v53, 16  ;;  %v1183_v58 = vshll.u32 %v1068_v53, 16  ;;  %969 = vst [vmem:[#allocation2 + $0x28] sm:$0xf] %v678_v35  ;;  %v330_v15 = vmul.f32 %v6806_v13, %v7851_v16 }
  0x4a   : > { %v1370_v40 = vsel %vm7901_vm9, %v1365_v52, %v1369_v41  ;;  %v1069_v62 = vld [vmem:[#allocation2 + $0x1c] sm:$0xf]  ;;  %v783_v63 = vshrl.u32 %v6717_v55, 16  ;;  %v786_v1 = vshll.u32 %v6717_v55, 16  ;;  %v791_v2 = vshrl.u32 %v6718_v56, 16  ;;  %7258 = vmatpush3.bf16.msra.mxu0 %v7627_v32 }
  0x4b   : > { %v6296_v3 = vcombine.low %v1360_v46, %v1370_v40  ;;  %v1114_v4 = vld [vmem:[#allocation2 + $0x20] sm:$0x1]  ;;  %v1182_v5 = vrot.slane %v1180_v57, 4  ;;  %v1185_v7 = vrot.slane %v1183_v58, 5  ;;  %v1189_v8 = vshll.u32 %v1069_v62, 16  ;;  %7259 = vmatprep.subr.bf16.mxu0 %v7629_v51  ;;  %v6909_v40 = vld [vmem:[%s7826_s6 + $0x18] sm:$0xff]  }
  0x4c   : > { %v1193_v11 = vshrl.u32 %v1069_v62, 16  ;;  %v1199_v12 = vshll.u32 %v1114_v4, 16  ;;  %v785_v14 = vrot.slane %v783_v63, 7  ;;  %v793_v13 = vrot.slane %v791_v2, 7  ;;  %v510_v31 = vld [vmem:[#allocation2 + $0x8c] sm:$0x1] }
  0x4d   : > { %7186 = vmatmul.mubr.bf16.vlgmr.msra.gmra.mxu1 %v6296_v3  ;;  %v1186_v18 = vor.u32 %v1185_v7, %v1182_v5  ;;  %v1191_v19 = vrot.slane %v1189_v8, 5  ;;  %v794_v21 = vshll.u32 %v6718_v56, 16  ;;  %v367_v26 = vadd.f32 %v7856_v17, %v329_v59  ;;  %v433_v56 = vld [vmem:[#allocation2 + $0x30] sm:$0x1]  ;;  %v489_v62 = vld [vmem:[#allocation2 + $0x38] sm:$0x1] }
  0x4e   : > { %7202 = vmatpush3.bf16.msra.mxu1 %v7932_v38  ;;  %v1195_v28 = vrot.slane %v1193_v11, 4  ;;  %v1201_v29 = vrot.slane %v1199_v12, 5  ;;  %v788_v32 = vor.u32 %v786_v1, %v785_v14  ;;  %v789_v33 = vrot.slane %v785_v14, 4  ;;  %7260 = vmatpush3.bf16.msra.mxu0 %v7629_v51  ;;  %v1019_v50 = vld [vmem:[#allocation2 + $0x80] sm:$0x1] }
  0x4f   : > { %7203 = vmatprep.subr.bf16.mxu1 %v7620_v60  ;;  %v1187_v36 = vrot.slane %v1186_v18, 4  ;;  %v1070_v37 = vld [vmem:[#allocation2 + $0x24] sm:$0xf]  ;;  %v796_v41 = vor.u32 %v794_v21, %v793_v13  ;;  %v798_v24 = vrot.slane %v793_v13, 4  ;;  %v368_v30 = vadd.f32 %v7856_v17, %v330_v15  ;;  %7261 = vmatprep.subr.bf16.mxu0 %v7631_v9 }
  0x50   : > { %v1115_v39 = vld [vmem:[#allocation2 + $0x2c] sm:$0x1]  ;;  %v1196_v38 = vor.u32 %v1195_v28, %v1191_v19  ;;  %v1071_v43 = vld [vmem:[#allocation2 + $0x28] sm:$0xf]  ;;  %v1204_v20 = vshrl.u32 %v1070_v37, 16  ;;  %v1207_v44 = vshll.u32 %v1070_v37, 16  ;;  %v1016_v59 = vsel %vm7914_vm10, %v788_v32, %v1015_v34 }
  0x51   : > { %v1223_v45 = vshll.u32 %v1115_v39, 16  ;;  %v1192_v48 = vsel %vm7901_vm9, %v1187_v36, %v1191_v19  ;;  %v1213_v46 = vshll.u32 %v1071_v43, 16  ;;  %v1217_v49 = vshrl.u32 %v1071_v43, 16  ;;  %v7624_v51 = vld [vmem:[%s10623_s3 + $0x20] sm:$0xff]   ;;  %1017 = vst [vmem:[#allocation2 + $0x78] sm:$0xf] %v1016_v59 }
  0x52   : > { %v797_v42 = vsel %vm7920_vm11, %v789_v33, %v796_v41  ;;  %7204 = vmatpush3.bf16.msra.mxu1 %v7620_v60  ;;  %v1197_v52 = vrot.slane %v1196_v38, 4  ;;  %v1206_v53 = vrot.slane %v1204_v20, 4  ;;  %v1209_v35 = vrot.slane %v1207_v44, 5  ;;  %7262 = vmatpush3.bf16.msra.mxu0 %v7631_v9  ;;  %v7637_v60 = vld [vmem:[%s10623_s3 + $0x138] sm:$0xff]   ;;  %v8103_v33 = vld [vmem:[%s7826_s6 + $0x20] sm:$0xff]  }
  0x53   : > { %v1225_v55 = vrot.slane %v1223_v45, 5  ;;  %1018 = vst [vmem:[#allocation2 + $0x7c] sm:$0xf] %v797_v42  ;;  %v1215_v57 = vrot.slane %v1213_v46, 5  ;;  %v1219_v58 = vrot.slane %v1217_v49, 4  ;;  %v1020_v15 = vsel %vm7830_vm3, %v798_v24, %v1019_v50  ;;  %7205 = vmatprep.subr.bf16.mxu1 %v8062_v25  ;;  %7263 = vmatprep.subr.bf16.mxu0 %v7633_v22 }
  0x54   : > { %v1202_v63 = vsel %vm7901_vm9, %v1197_v52, %v1201_v29  ;;  %v1210_v1 = vor.u32 %v1209_v35, %v1206_v53  ;;  %1021 = vst [vmem:[#allocation2 + $0x80] sm:$0x1] %v1020_v15  ;;  %v399_v2 = vmax.f32 %v367_v26, 0.0  ;;  %v400_v3 = vmax.f32 %v368_v30, 0.0  ;;  %v7626_v26 = vld [vmem:[%s10623_s3 + $0x18] sm:$0xff]  }
  0x55   : > { %v6289_v4 = vcombine.low %v1192_v48, %v1202_v63  ;;  %v1220_v5 = vor.u32 %v1219_v58, %v1215_v57  ;;  %v455_v7 = vsel %vm7830_vm3, 0, %v454_v47  ;;  %v511_v8 = vsel %vm7838_vm4, 0, %v510_v31  ;;  %v7628_v48 = vld [vmem:[%s10623_s3 + $0x10] sm:$0xff]   ;;  %v436_v50 = vld [vmem:[#allocation2 + $0x3c] sm:$0x1] }
  0x56   : > { %v1211_v9 = vrot.slane %v1210_v1, 4  ;;  %456 = vst [vmem:[#allocation2 + $0x84] sm:$0x1] %v455_v7  ;;  %512 = vst [vmem:[#allocation2 + $0x8c] sm:$0x1] %v511_v8  ;;  %v6719_v11 = vpack.c.bf16 %v399_v2, %v399_v2  ;;  %v6720_v12 = vpack.c.bf16 %v400_v3, %v400_v3  ;;  %7206 = vmatpush3.bf16.msra.mxu1 %v8062_v25  ;;  %v6777_v14 = vunpack.c.l.bf16 %v6909_v40  ;;  %v8120_v1 = vld [vmem:[%s7826_s6 + $0x58] sm:$0xff]  }
  0x57   : > { %7264 = vmatpush3.bf16.msra.mxu0 %v7633_v22  ;;  %7173 = vmatprep.mubr.bf16.mxu0 %v6289_v4  ;;  %v1221_v13 = vrot.slane %v1220_v5, 4  ;;  %v6778_v18 = vunpack.c.h.bf16 %v6909_v40  ;;  %v434_v19 = vsel %vm7830_vm3, 0, %v433_v56  ;;  %v490_v21 = vsel %vm7838_vm4, 0, %v489_v62  ;;  %v492_v63 = vld [vmem:[#allocation2 + $0x44] sm:$0x1]  ;;  %v7630_v2 = vld [vmem:[%s10623_s3 + $0x8] sm:$0xff]  }
  0x58   : > { %7207 = vmatprep.subr.bf16.mxu1 %v7624_v51  ;;  %v1216_v25 = vsel %vm7901_vm9, %v1211_v9, %v1215_v57  ;;  %v800_v28 = vshrl.u32 %v6719_v11, 16  ;;  %v803_v29 = vshll.u32 %v6719_v11, 16  ;;  %v808_v32 = vshrl.u32 %v6720_v12, 16  ;;  %435 = vst [vmem:[#allocation2 + $0x30] sm:$0x1] %v434_v19  ;;  %7345 = vmatprep.subr.bf16.mxu0 %v7637_v60 }
  0x59   : > { %491 = vst [vmem:[#allocation2 + $0x38] sm:$0x1] %v490_v21  ;;  %v1226_v34 = vsel %vm7901_vm9, %v1221_v13, %v1225_v55  ;;  %v811_v36 = vshll.u32 %v6720_v12, 16  ;;  %v315_v37 = vmul.f32 %v6777_v14, %v7851_v16  ;;  %v316_v39 = vmul.f32 %v6778_v18, %v7851_v16  ;;  %v1084_v43 = vld [vmem:[#allocation2 + $0x78] sm:$0xf]  ;;  %v7632_v18 = vld [vmem:[%s10623_s3] sm:$0xff]  }
  0x5a   : > { %v1085_v22 = vld [vmem:[#allocation2 + $0x7c] sm:$0xf]  ;;  %v6290_v41 = vcombine.low %v1216_v25, %v1226_v34  ;;  %v802_v38 = vrot.slane %v800_v28, 7  ;;  %7208 = vmatpush3.bf16.msra.mxu1 %v7624_v51  ;;  %v810_v44 = vrot.slane %v808_v32, 7  ;;  %v6781_v31 = vunpack.c.l.bf16 %v8103_v33  ;;  %v8131_v11 = vld [vmem:[%s10621_s1] ss:$0 sm:$0xff] }
  0x5b   : > { %v1381_v24 = vshll.u32 %v1085_v22, 16  ;;  %v1385_v30 = vshrl.u32 %v1085_v22, 16  ;;  %v1122_v20 = vld [vmem:[#allocation2 + $0x80] sm:$0x1]  ;;  %v353_v45 = vadd.f32 %v7856_v17, %v315_v37  ;;  %v354_v47 = vadd.f32 %v7856_v17, %v316_v39  ;;  %7209 = vmatprep.subr.bf16.mxu1 %v7626_v26  ;;  %v457_v13 = vld [vmem:[#allocation2 + $0x90] sm:$0x1] }
  0x5c   : > { %7174 = vmatmul.mubr.bf16.gmra.mxu0 %v6290_v41  ;;  %v1372_v16 = vshrl.u32 %v1084_v43, 16  ;;  %v1375_v46 = vshll.u32 %v1084_v43, 16  ;;  %v1391_v51 = vshll.u32 %v1122_v20, 16  ;;  %v805_v52 = vor.u32 %v803_v29, %v802_v38  ;;  %v7635_v20 = vld [vmem:[%s10623_s3 + $0xf8] sm:$0xff]   ;;  %v8672_v10 = vld [vmem:[#allocation2 + $0x28] sm:$0xf] }
  0x5d   : > { %v1383_v49 = vrot.slane %v1381_v24, 5  ;;  %v1387_v42 = vrot.slane %v1385_v30, 4  ;;  %v806_v53 = vrot.slane %v802_v38, 4  ;;  %v813_v35 = vor.u32 %v811_v36, %v810_v44  ;;  %v1022_v55 = vld [vmem:[#allocation2 + $0x84] sm:$0xf] }
  0x5e   : > { %v1026_v17 = vld [vmem:[#allocation2 + $0x8c] sm:$0x1]  ;;  %v1374_v56 = vrot.slane %v1372_v16, 4  ;;  %v1377_v57 = vrot.slane %v1375_v46, 5  ;;  %v815_v59 = vrot.slane %v810_v44, 4  ;;  %7210 = vmatpush3.bf16.msra.mxu1 %v7626_v26  ;;  %v1393_v15 = vrot.slane %v1391_v51, 5 }
  0x5f   : > { %v1388_v58 = vor.u32 %v1387_v42, %v1383_v49  ;;  %v814_v40 = vsel %vm7920_vm11, %v806_v53, %v813_v35  ;;  %v1023_v62 = vsel %vm7914_vm10, %v805_v52, %v1022_v55  ;;  %v385_v60 = vmax.f32 %v353_v45, 0.0  ;;  %7211 = vmatprep.subr.bf16.mxu1 %v7628_v48  ;;  %v973_v30 = vld [vmem:[#allocation2 + $0x30] sm:$0xf] }
  0x60   : > { %v1378_v3 = vor.u32 %v1377_v57, %v1374_v56  ;;  %1024 = vst [vmem:[#allocation2 + $0x84] sm:$0xf] %v1023_v62  ;;  %1025 = vst [vmem:[#allocation2 + $0x88] sm:$0xf] %v814_v40  ;;  %v1027_v5 = vsel %vm7830_vm3, %v815_v59, %v1026_v17  ;;  %v386_v7 = vmax.f32 %v354_v47, 0.0  ;;  %v6782_v9 = vunpack.c.h.bf16 %v8103_v33 }
  0x61   : > { %v1389_v4 = vrot.slane %v1388_v58, 4  ;;  %1028 = vst [vmem:[#allocation2 + $0x8c] sm:$0x1] %v1027_v5  ;;  %v6705_v8 = vpack.c.bf16 %v385_v60, %v385_v60  ;;  %v317_v12 = vmul.f32 %v8131_v11, %v6781_v31  ;;  %v437_v14 = vsel %vm7830_vm3, 0, %v436_v50  ;;  %v8147_v33 = vld [vmem:[%s10622_s2] ss:$0 sm:$0xff] }
  0x62   : > { %v1379_v19 = vrot.slane %v1378_v3, 4  ;;  %v6706_v26 = vpack.c.bf16 %v386_v7, %v386_v7  ;;  %438 = vst [vmem:[#allocation2 + $0x3c] sm:$0x1] %v437_v14  ;;  %v493_v25 = vsel %vm7838_vm4, 0, %v492_v63  ;;  %7212 = vmatpush3.bf16.msra.mxu1 %v7628_v48  ;;  %v318_v32 = vmul.f32 %v8131_v11, %v6782_v9  ;;  %v977_v45 = vld [vmem:[#allocation2 + $0x38] sm:$0x1] }
  0x63   : > { %v1394_v21 = vsel %vm7901_vm9, %v1389_v4, %v1393_v15  ;;  %v681_v28 = vshrl.u32 %v6705_v8, 16  ;;  %v684_v29 = vshll.u32 %v6705_v8, 16  ;;  %v355_v34 = vadd.f32 %v8147_v33, %v317_v12  ;;  %494 = vst [vmem:[#allocation2 + $0x44] sm:$0x1] %v493_v25  ;;  %7213 = vmatprep.subr.bf16.mxu1 %v7630_v2  ;;  %v513_v63 = vld [vmem:[#allocation2 + $0x98] sm:$0x1] }
  0x64   : > { %v1384_v22 = vsel %vm7901_vm9, %v1379_v19, %v1383_v49  ;;  %v689_v36 = vshrl.u32 %v6706_v26, 16  ;;  %v692_v37 = vshll.u32 %v6706_v26, 16  ;;  %v6809_v39 = vunpack.c.l.bf16 %v8120_v1  ;;  %v6918_v12 = vld [vmem:[%s7826_s6 + $0x60] sm:$0xff]  }
  0x65   : > { %v6297_v41 = vcombine.low %v1384_v22, %v1394_v21  ;;  %v683_v24 = vrot.slane %v681_v28, 7  ;;  %v356_v38 = vadd.f32 %v8147_v33, %v318_v32  ;;  %v387_v43 = vmax.f32 %v355_v34, 0.0 }
  0x66   : > { %v691_v44 = vrot.slane %v689_v36, 7  ;;  %v6810_v47 = vunpack.c.h.bf16 %v8120_v1  ;;  %v331_v31 = vmul.f32 %v8131_v11, %v6809_v39  ;;  %v458_v48 = vsel %vm7830_vm3, 0, %v457_v13  ;;  %7214 = vmatpush3.bf16.msra.mxu1 %v7630_v2 }
  0x67   : > { %7189 = vmatprep.mubr.bf16.mxu1 %v6297_v41  ;;  %v1086_v16 = vld [vmem:[#allocation2 + $0x84] sm:$0xf]  ;;  %v1087_v46 = vld [vmem:[#allocation2 + $0x88] sm:$0xf]  ;;  %v686_v49 = vor.u32 %v684_v29, %v683_v24  ;;  %v687_v42 = vrot.slane %v683_v24, 4  ;;  %v388_v50 = vmax.f32 %v356_v38, 0.0  ;;  %v6707_v51 = vpack.c.bf16 %v387_v43, %v387_v43  ;;  %7215 = vmatprep.subr.bf16.mxu1 %v7632_v18 }
  0x68   : > { %459 = vst [vmem:[#allocation2 + $0x90] sm:$0x1] %v458_v48  ;;  %v1123_v52 = vld [vmem:[#allocation2 + $0x8c] sm:$0x1]  ;;  %v1396_v53 = vshrl.u32 %v1086_v16, 16  ;;  %v1399_v35 = vshll.u32 %v1086_v16, 16  ;;  %v694_v57 = vor.u32 %v692_v37, %v691_v44  ;;  %v369_v21 = vadd.f32 %v8147_v33, %v331_v31 }
  0x69   : > { %v1405_v55 = vshll.u32 %v1087_v46, 16  ;;  %v1409_v17 = vshrl.u32 %v1087_v46, 16  ;;  %v1415_v56 = vshll.u32 %v1123_v52, 16  ;;  %v696_v58 = vrot.slane %v691_v44, 4  ;;  %v980_v19 = vld [vmem:[#allocation2 + $0x3c] sm:$0xf] }
  0x6a   : > { %v974_v59 = vsel %vm7914_vm10, %v686_v49, %v973_v30  ;;  %v1398_v15 = vrot.slane %v1396_v53, 4  ;;  %v1401_v40 = vrot.slane %v1399_v35, 5  ;;  %7216 = vmatpush3.bf16.msra.mxu1 %v7632_v18  ;;  %v695_v2 = vsel %vm7920_vm11, %v687_v42, %v694_v57  ;;  %v984_v29 = vld [vmem:[#allocation2 + $0x44] sm:$0x1] }
  0x6b   : > { %v1407_v62 = vrot.slane %v1405_v55, 5  ;;  %v1411_v60 = vrot.slane %v1409_v17, 4  ;;  %975 = vst [vmem:[#allocation2 + $0x30] sm:$0xf] %v974_v59  ;;  %v1417_v1 = vrot.slane %v1415_v56, 5  ;;  %v978_v3 = vsel %vm7830_vm3, %v696_v58, %v977_v45  ;;  %7297 = vmatprep.subr.bf16.mxu1 %v7635_v20 }
  0x6c   : > { %v6708_v4 = vpack.c.bf16 %v388_v50, %v388_v50  ;;  %v1402_v5 = vor.u32 %v1401_v40, %v1398_v15  ;;  %976 = vst [vmem:[#allocation2 + $0x34] sm:$0xf] %v695_v2  ;;  %979 = vst [vmem:[#allocation2 + $0x38] sm:$0x1] %v978_v3  ;;  %v698_v8 = vshrl.u32 %v6707_v51, 16  ;;  %v701_v9 = vshll.u32 %v6707_v51, 16 }
  0x6d   : > { %v1412_v7 = vor.u32 %v1411_v60, %v1407_v62  ;;  %v332_v18 = vmul.f32 %v8131_v11, %v6810_v47  ;;  %v514_v32 = vsel %vm7838_vm4, 0, %v513_v63  ;;  %v401_v36 = vmax.f32 %v369_v21, 0.0  ;;  %v460_v15 = vld [vmem:[#allocation2 + $0x9c] sm:$0x1] }
  0x6e   : > { %v706_v14 = vshrl.u32 %v6708_v4, 16  ;;  %v709_v13 = vshll.u32 %v6708_v4, 16  ;;  %v1403_v26 = vrot.slane %v1402_v5, 4  ;;  %v700_v28 = vrot.slane %v698_v8, 7  ;;  %515 = vst [vmem:[#allocation2 + $0x98] sm:$0x1] %v514_v32 }
  0x6f   : > { %v1413_v25 = vrot.slane %v1412_v7, 4  ;;  %v370_v22 = vadd.f32 %v8147_v33, %v332_v18  ;;  %v6813_v37 = vunpack.c.l.bf16 %v6918_v12  ;;  %v6721_v16 = vpack.c.bf16 %v401_v36, %v401_v36 }
  0x70   : > { %v708_v34 = vrot.slane %v706_v14, 7  ;;  %v1408_v39 = vsel %vm7901_vm9, %v1403_v26, %v1407_v62  ;;  %v703_v24 = vor.u32 %v701_v9, %v700_v28  ;;  %v704_v30 = vrot.slane %v700_v28, 4 }
  0x71   : > { %v1418_v41 = vsel %vm7901_vm9, %v1413_v25, %v1417_v1  ;;  %v402_v45 = vmax.f32 %v370_v22, 0.0  ;;  %v6814_v52 = vunpack.c.h.bf16 %v6918_v12  ;;  %v817_v57 = vshrl.u32 %v6721_v16, 16  ;;  %v1029_v1 = vld [vmem:[#allocation2 + $0x90] sm:$0xf] }
  0x72   : > { %v6298_v38 = vcombine.low %v1408_v39, %v1418_v41  ;;  %v8177_v43 = vld [vmem:[#allocation2 + $0x30] sm:$0xf]  ;;  %v711_v20 = vor.u32 %v709_v13, %v708_v34  ;;  %v713_v44 = vrot.slane %v708_v34, 4  ;;  %v981_v48 = vsel %vm7914_vm10, %v703_v24, %v980_v19  ;;  %v516_v34 = vld [vmem:[#allocation2 + $0xa4] sm:$0x1] }
  0x73   : > { %v1228_v47 = vshrl.u32 %v8177_v43, 16  ;;  %v1231_v31 = vshll.u32 %v8177_v43, 16  ;;  %v8183_v46 = vld [vmem:[#allocation2 + $0x34] sm:$0xf]  ;;  %v8185_v49 = vld [vmem:[#allocation2 + $0x38] sm:$0x1]  ;;  %v6722_v51 = vpack.c.bf16 %v402_v45, %v402_v45  ;;  %v333_v5 = vmul.f32 %v8131_v11, %v6813_v37 }
  0x74   : > { %7190 = vmatmul.mubr.bf16.gmra.mxu1 %v6298_v38  ;;  %v712_v42 = vsel %vm7920_vm11, %v704_v30, %v711_v20  ;;  %982 = vst [vmem:[#allocation2 + $0x3c] sm:$0xf] %v981_v48  ;;  %v985_v50 = vsel %vm7830_vm3, %v713_v44, %v984_v29  ;;  %v1237_v55 = vshll.u32 %v8183_v46, 16  ;;  %v1241_v17 = vshrl.u32 %v8183_v46, 16  ;;  %v6911_v45 = vld [vmem:[%s7826_s6 + $0x28] sm:$0xff]  }
  0x75   : > { %v1230_v53 = vrot.slane %v1228_v47, 4  ;;  %v1233_v35 = vrot.slane %v1231_v31, 5  ;;  %983 = vst [vmem:[#allocation2 + $0x40] sm:$0xf] %v712_v42  ;;  %986 = vst [vmem:[#allocation2 + $0x44] sm:$0x1] %v985_v50  ;;  %v334_v9 = vmul.f32 %v8131_v11, %v6814_v52  ;;  %v371_v29 = vadd.f32 %v8147_v33, %v333_v5 }
  0x76   : > { %v1247_v56 = vshll.u32 %v8185_v49, 16  ;;  %v820_v58 = vshll.u32 %v6721_v16, 16  ;;  %v825_v59 = vshrl.u32 %v6722_v51, 16  ;;  %v1239_v62 = vrot.slane %v1237_v55, 5  ;;  %v1033_v28 = vld [vmem:[#allocation2 + $0x98] sm:$0x1] }
  0x77   : > { %v1234_v40 = vor.u32 %v1233_v35, %v1230_v53  ;;  %v1243_v60 = vrot.slane %v1241_v17, 4  ;;  %v828_v63 = vshll.u32 %v6722_v51, 16  ;;  %v819_v3 = vrot.slane %v817_v57, 7  ;;  %v439_v42 = vld [vmem:[#allocation2 + $0x48] sm:$0x1] }
  0x78   : > { %v1249_v2 = vrot.slane %v1247_v56, 5  ;;  %v827_v4 = vrot.slane %v825_v59, 7  ;;  %v461_v12 = vsel %vm7830_vm3, 0, %v460_v15  ;;  %v372_v32 = vadd.f32 %v8147_v33, %v334_v9  ;;  %v495_v35 = vld [vmem:[#allocation2 + $0x50] sm:$0x1] }
  0x79   : > { %v1235_v7 = vrot.slane %v1234_v40, 4  ;;  %v1244_v8 = vor.u32 %v1243_v60, %v1239_v62  ;;  %v822_v14 = vor.u32 %v820_v58, %v819_v3  ;;  %v823_v13 = vrot.slane %v819_v3, 4  ;;  %462 = vst [vmem:[#allocation2 + $0x9c] sm:$0x1] %v461_v12 }
  0x7a   : > { %v830_v19 = vor.u32 %v828_v63, %v827_v4  ;;  %v832_v18 = vrot.slane %v827_v4, 4  ;;  %v403_v53 = vmax.f32 %v371_v29, 0.0  ;;  %v404_v17 = vmax.f32 %v372_v32, 0.0 }
  0x7b   : > { %v1240_v21 = vsel %vm7901_vm9, %v1235_v7, %v1239_v62  ;;  %v1245_v26 = vrot.slane %v1244_v8, 4  ;;  %v8200_v25 = vld [vmem:[#allocation2 + $0x3c] sm:$0xf]  ;;  %v1030_v24 = vsel %vm7914_vm10, %v822_v14, %v1029_v1  ;;  %v517_v56 = vsel %vm7838_vm4, 0, %v516_v34 }
  0x7c   : > { %v8204_v22 = vld [vmem:[#allocation2 + $0x40] sm:$0xf]  ;;  %v8206_v36 = vld [vmem:[#allocation2 + $0x44] sm:$0x1]  ;;  %v1252_v37 = vshrl.u32 %v8200_v25, 16  ;;  %v1255_v39 = vshll.u32 %v8200_v25, 16  ;;  %v831_v41 = vsel %vm7920_vm11, %v823_v13, %v830_v19  ;;  %v1034_v16 = vsel %vm7830_vm3, %v832_v18, %v1033_v28 }
  0x7d   : > { %v1250_v30 = vsel %vm7901_vm9, %v1245_v26, %v1249_v2  ;;  %v1261_v38 = vshll.u32 %v8204_v22, 16  ;;  %v1265_v20 = vshrl.u32 %v8204_v22, 16  ;;  %v1271_v44 = vshll.u32 %v8206_v36, 16  ;;  %1031 = vst [vmem:[#allocation2 + $0x90] sm:$0xf] %v1030_v24 }
  0x7e   : > { %1032 = vst [vmem:[#allocation2 + $0x94] sm:$0xf] %v831_v41  ;;  %v6291_v47 = vcombine.low %v1240_v21, %v1250_v30  ;;  %v1254_v31 = vrot.slane %v1252_v37, 4  ;;  %v1257_v48 = vrot.slane %v1255_v39, 5  ;;  %1035 = vst [vmem:[#allocation2 + $0x98] sm:$0x1] %v1034_v16  ;;  %v6785_v57 = vunpack.c.l.bf16 %v6911_v45 }
  0x7f   : > { %v1263_v50 = vrot.slane %v1261_v38, 5  ;;  %v1267_v51 = vrot.slane %v1265_v20, 4  ;;  %v1273_v52 = vrot.slane %v1271_v44, 5  ;;  %518 = vst [vmem:[#allocation2 + $0xa4] sm:$0x1] %v517_v56  ;;  %v6723_v59 = vpack.c.bf16 %v403_v53, %v403_v53 }
  0x80   : > { %7177 = vmatprep.mubr.bf16.mxu0 %v6291_v47  ;;  %v1258_v55 = vor.u32 %v1257_v48, %v1254_v31  ;;  %v6786_v15 = vunpack.c.h.bf16 %v6911_v45  ;;  %v440_v40 = vsel %vm7830_vm3, 0, %v439_v42  ;;  %v6724_v60 = vpack.c.bf16 %v404_v17, %v404_v17  ;;  %v1036_v38 = vld [vmem:[#allocation2 + $0x9c] sm:$0xf]  ;;  %v6912_v48 = vld [vmem:[%s7826_s6 + $0x30] sm:$0xff]  }
  0x81   : > { %v1268_v58 = vor.u32 %v1267_v51, %v1263_v50  ;;  %v319_v63 = vmul.f32 %v8131_v11, %v6785_v57  ;;  %441 = vst [vmem:[#allocation2 + $0x48] sm:$0x1] %v440_v40  ;;  %v496_v1 = vsel %vm7838_vm4, 0, %v495_v35  ;;  %v834_v3 = vshrl.u32 %v6723_v59, 16  ;;  %v498_v56 = vld [vmem:[#allocation2 + $0x5c] sm:$0x1] }
  0x82   : > { %v1259_v62 = vrot.slane %v1258_v55, 4  ;;  %v837_v4 = vshll.u32 %v6723_v59, 16  ;;  %v320_v5 = vmul.f32 %v8131_v11, %v6786_v15  ;;  %497 = vst [vmem:[#allocation2 + $0x50] sm:$0x1] %v496_v1  ;;  %v842_v12 = vshrl.u32 %v6724_v60, 16 }
  0x83   : > { %v1269_v2 = vrot.slane %v1268_v58, 4  ;;  %v845_v14 = vshll.u32 %v6724_v60, 16  ;;  %v357_v13 = vadd.f32 %v8147_v33, %v319_v63  ;;  %v836_v34 = vrot.slane %v834_v3, 7 }
  0x84   : > { %v1264_v7 = vsel %vm7901_vm9, %v1259_v62, %v1263_v50  ;;  %v8232_v8 = vld [vmem:[#allocation2 + $0x90] sm:$0xf]  ;;  %v844_v37 = vrot.slane %v842_v12, 7  ;;  %v358_v51 = vadd.f32 %v8147_v33, %v320_v5  ;;  %v6789_v15 = vunpack.c.l.bf16 %v6912_v48  ;;  %v6919_v5 = vld [vmem:[%s7826_s6 + $0x68] sm:$0xff]  }
  0x85   : > { %v8234_v9 = vld [vmem:[#allocation2 + $0x94] sm:$0xf]  ;;  %v1274_v19 = vsel %vm7901_vm9, %v1269_v2, %v1273_v52  ;;  %v1420_v18 = vshrl.u32 %v8232_v8, 16  ;;  %v1423_v21 = vshll.u32 %v8232_v8, 16  ;;  %v8242_v29 = vld [vmem:[#allocation2 + $0x98] sm:$0x1]  ;;  %v839_v44 = vor.u32 %v837_v4, %v836_v34 }
  0x86   : > { %v1429_v26 = vshll.u32 %v8234_v9, 16  ;;  %v6292_v28 = vcombine.low %v1264_v7, %v1274_v19  ;;  %v1433_v32 = vshrl.u32 %v8234_v9, 16  ;;  %v1439_v30 = vshll.u32 %v8242_v29, 16  ;;  %v1040_v31 = vld [vmem:[#allocation2 + $0xa4] sm:$0x1] }
  0x87   : > { %v1422_v39 = vrot.slane %v1420_v18, 4  ;;  %v1425_v41 = vrot.slane %v1423_v21, 5  ;;  %v840_v45 = vrot.slane %v836_v34, 4  ;;  %v847_v47 = vor.u32 %v845_v14, %v844_v37  ;;  %v442_v52 = vld [vmem:[#allocation2 + $0x54] sm:$0x1] }
  0x88   : > { %v1431_v24 = vrot.slane %v1429_v26, 5  ;;  %7178 = vmatmul.mubr.bf16.gmra.mxu0 %v6292_v28  ;;  %v1435_v20 = vrot.slane %v1433_v32, 4  ;;  %v1441_v42 = vrot.slane %v1439_v30, 5  ;;  %v849_v50 = vrot.slane %v844_v37, 4  ;;  %v463_v19 = vld [vmem:[#allocation2 + $0xa8] sm:$0x1] }
  0x89   : > { %v1426_v16 = vor.u32 %v1425_v41, %v1422_v39  ;;  %v848_v35 = vsel %vm7920_vm11, %v840_v45, %v847_v47  ;;  %v1037_v55 = vsel %vm7914_vm10, %v839_v44, %v1036_v38  ;;  %v389_v17 = vmax.f32 %v357_v13, 0.0  ;;  %v519_v18 = vld [vmem:[#allocation2 + $0xb0] sm:$0x1]  ;;  %v987_v37 = vld [vmem:[#allocation2 + $0x48] sm:$0xf] }
  0x8a   : > { %v1436_v53 = vor.u32 %v1435_v20, %v1431_v24  ;;  %1038 = vst [vmem:[#allocation2 + $0x9c] sm:$0xf] %v1037_v55  ;;  %1039 = vst [vmem:[#allocation2 + $0xa0] sm:$0xf] %v848_v35  ;;  %v1041_v58 = vsel %vm7830_vm3, %v849_v50, %v1040_v31  ;;  %v390_v59 = vmax.f32 %v358_v51, 0.0  ;;  %v6790_v60 = vunpack.c.h.bf16 %v6912_v48 }
  0x8b   : > { %v1427_v57 = vrot.slane %v1426_v16, 4  ;;  %1042 = vst [vmem:[#allocation2 + $0xa4] sm:$0x1] %v1041_v58  ;;  %v6709_v62 = vpack.c.bf16 %v389_v17, %v389_v17  ;;  %v443_v63 = vsel %vm7830_vm3, 0, %v442_v52  ;;  %v321_v3 = vmul.f32 %v8131_v11, %v6789_v15  ;;  %v991_v38 = vld [vmem:[#allocation2 + $0x50] sm:$0x1] }
  0x8c   : > { %v1437_v40 = vrot.slane %v1436_v53, 4  ;;  %v6710_v2 = vpack.c.bf16 %v390_v59, %v390_v59  ;;  %444 = vst [vmem:[#allocation2 + $0x54] sm:$0x1] %v443_v63  ;;  %v499_v4 = vsel %vm7838_vm4, 0, %v498_v56  ;;  %v322_v13 = vmul.f32 %v8131_v11, %v6790_v60  ;;  %v6920_v60 = vld [vmem:[%s7826_s6 + $0x70] sm:$0xff]  }
  0x8d   : > { %v1432_v1 = vsel %vm7901_vm9, %v1427_v57, %v1431_v24  ;;  %v715_v12 = vshrl.u32 %v6709_v62, 16  ;;  %v718_v14 = vshll.u32 %v6709_v62, 16  ;;  %500 = vst [vmem:[#allocation2 + $0x5c] sm:$0x1] %v499_v4  ;;  %v359_v32 = vadd.f32 %v8147_v33, %v321_v3 }
  0x8e   : > { %v1442_v7 = vsel %vm7901_vm9, %v1437_v40, %v1441_v42  ;;  %v723_v26 = vshrl.u32 %v6710_v2, 16  ;;  %v726_v28 = vshll.u32 %v6710_v2, 16  ;;  %v360_v39 = vadd.f32 %v8147_v33, %v322_v13 }
  0x8f   : > { %v6299_v21 = vcombine.low %v1432_v1, %v1442_v7  ;;  %v717_v34 = vrot.slane %v715_v12, 7  ;;  %v6817_v41 = vunpack.c.l.bf16 %v6919_v5  ;;  %v6818_v24 = vunpack.c.h.bf16 %v6919_v5 }
  0x90   : > { %v725_v30 = vrot.slane %v723_v26, 7  ;;  %v391_v20 = vmax.f32 %v359_v32, 0.0  ;;  %v464_v44 = vsel %vm7830_vm3, 0, %v463_v19  ;;  %v520_v45 = vsel %vm7838_vm4, 0, %v519_v18 }
  0x91   : > { %7193 = vmatprep.mubr.bf16.mxu1 %v6299_v21  ;;  %v8271_v47 = vld [vmem:[#allocation2 + $0x9c] sm:$0xf]  ;;  %v8273_v31 = vld [vmem:[#allocation2 + $0xa0] sm:$0xf]  ;;  %v720_v48 = vor.u32 %v718_v14, %v717_v34  ;;  %v721_v16 = vrot.slane %v717_v34, 4  ;;  %v392_v42 = vmax.f32 %v360_v39, 0.0  ;;  %v335_v50 = vmul.f32 %v8131_v11, %v6817_v41 }
  0x92   : > { %465 = vst [vmem:[#allocation2 + $0xa8] sm:$0x1] %v464_v44  ;;  %521 = vst [vmem:[#allocation2 + $0xb0] sm:$0x1] %v520_v45  ;;  %v8276_v51 = vld [vmem:[#allocation2 + $0xa4] sm:$0x1]  ;;  %v728_v56 = vor.u32 %v726_v28, %v725_v30  ;;  %v6711_v3 = vpack.c.bf16 %v391_v20, %v391_v20  ;;  %v336_v12 = vmul.f32 %v8131_v11, %v6818_v24  ;;  %v6821_v18 = vunpack.c.l.bf16 %v6920_v60 }
  0x93   : > { %v1444_v52 = vshrl.u32 %v8271_v47, 16  ;;  %v1447_v53 = vshll.u32 %v8271_v47, 16  ;;  %v1453_v35 = vshll.u32 %v8273_v31, 16  ;;  %v1457_v55 = vshrl.u32 %v8273_v31, 16  ;;  %v994_v20 = vld [vmem:[#allocation2 + $0x54] sm:$0xf] }
  0x94   : > { %v1463_v17 = vshll.u32 %v8276_v51, 16  ;;  %v730_v57 = vrot.slane %v725_v30, 4  ;;  %v988_v58 = vsel %vm7914_vm10, %v720_v48, %v987_v37  ;;  %v729_v1 = vsel %vm7920_vm11, %v721_v16, %v728_v56 }
  0x95   : > { %v1446_v59 = vrot.slane %v1444_v52, 4  ;;  %v1449_v15 = vrot.slane %v1447_v53, 5  ;;  %v1455_v40 = vrot.slane %v1453_v35, 5  ;;  %v1459_v62 = vrot.slane %v1457_v55, 4  ;;  %989 = vst [vmem:[#allocation2 + $0x48] sm:$0xf] %v988_v58 }
  0x96   : > { %v1465_v63 = vrot.slane %v1463_v17, 5  ;;  %v992_v2 = vsel %vm7830_vm3, %v730_v57, %v991_v38  ;;  %990 = vst [vmem:[#allocation2 + $0x4c] sm:$0xf] %v729_v1  ;;  %v6712_v7 = vpack.c.bf16 %v392_v42, %v392_v42  ;;  %v732_v14 = vshrl.u32 %v6711_v3, 16  ;;  %v998_v17 = vld [vmem:[#allocation2 + $0x5c] sm:$0x1] }
  0x97   : > { %v1450_v4 = vor.u32 %v1449_v15, %v1446_v59  ;;  %v1460_v5 = vor.u32 %v1459_v62, %v1455_v40  ;;  %993 = vst [vmem:[#allocation2 + $0x50] sm:$0x1] %v992_v2  ;;  %v735_v13 = vshll.u32 %v6711_v3, 16  ;;  %v373_v19 = vadd.f32 %v8147_v33, %v335_v50  ;;  %v466_v2 = vld [vmem:[#allocation2 + $0xb4] sm:$0x1] }
  0x98   : > { %v740_v28 = vshrl.u32 %v6712_v7, 16  ;;  %v743_v32 = vshll.u32 %v6712_v7, 16  ;;  %v734_v34 = vrot.slane %v732_v14, 7  ;;  %v374_v37 = vadd.f32 %v8147_v33, %v336_v12 }
  0x99   : > { %v1451_v21 = vrot.slane %v1450_v4, 4  ;;  %v1461_v26 = vrot.slane %v1460_v5, 4  ;;  %v405_v39 = vmax.f32 %v373_v19, 0.0  ;;  %v6822_v41 = vunpack.c.h.bf16 %v6920_v60  ;;  %v522_v19 = vld [vmem:[#allocation2 + $0xbc] sm:$0x1] }
  0x9a   : > { %v742_v38 = vrot.slane %v740_v28, 7  ;;  %v337_v44 = vmul.f32 %v8131_v11, %v6821_v18  ;;  %v737_v16 = vor.u32 %v735_v13, %v734_v34  ;;  %v738_v42 = vrot.slane %v734_v34, 4 }
  0x9b   : > { %v1456_v30 = vsel %vm7901_vm9, %v1451_v21, %v1455_v40  ;;  %v1466_v24 = vsel %vm7901_vm9, %v1461_v26, %v1465_v63  ;;  %v406_v50 = vmax.f32 %v374_v37, 0.0  ;;  %v6725_v59 = vpack.c.bf16 %v405_v39, %v405_v39  ;;  %v1047_v39 = vld [vmem:[#allocation2 + $0xb0] sm:$0x1] }
  0x9c   : > { %v6300_v45 = vcombine.low %v1456_v30, %v1466_v24  ;;  %v8298_v48 = vld [vmem:[#allocation2 + $0x48] sm:$0xf]  ;;  %v745_v35 = vor.u32 %v743_v32, %v742_v38  ;;  %v747_v55 = vrot.slane %v742_v38, 4  ;;  %v995_v58 = vsel %vm7914_vm10, %v737_v16, %v994_v20 }
  0x9d   : > { %v1276_v52 = vshrl.u32 %v8298_v48, 16  ;;  %v1279_v53 = vshll.u32 %v8298_v48, 16  ;;  %v8302_v56 = vld [vmem:[#allocation2 + $0x4c] sm:$0xf]  ;;  %v6726_v15 = vpack.c.bf16 %v406_v50, %v406_v50  ;;  %v338_v40 = vmul.f32 %v8131_v11, %v6822_v41  ;;  %996 = vst [vmem:[#allocation2 + $0x54] sm:$0xf] %v995_v58 }
  0x9e   : > { %7194 = vmatmul.mubr.bf16.gmra.mxu1 %v6300_v45  ;;  %v8304_v57 = vld [vmem:[#allocation2 + $0x50] sm:$0x1]  ;;  %v1285_v63 = vshll.u32 %v8302_v56, 16  ;;  %v1289_v1 = vshrl.u32 %v8302_v56, 16  ;;  %v746_v4 = vsel %vm7920_vm11, %v738_v42, %v745_v35  ;;  %v999_v5 = vsel %vm7830_vm3, %v747_v55, %v998_v17  ;;  %v1043_v32 = vld [vmem:[#allocation2 + $0xa8] sm:$0xf] }
  0x9f   : > { %v1278_v62 = vrot.slane %v1276_v52, 4  ;;  %v1281_v60 = vrot.slane %v1279_v53, 5  ;;  %v1295_v3 = vshll.u32 %v8304_v57, 16  ;;  %v851_v7 = vshrl.u32 %v6725_v59, 16  ;;  %997 = vst [vmem:[#allocation2 + $0x58] sm:$0xf] %v746_v4 }
  0xa0   : > { %v1287_v14 = vrot.slane %v1285_v63, 5  ;;  %v1291_v11 = vrot.slane %v1289_v1, 4  ;;  %1000 = vst [vmem:[#allocation2 + $0x5c] sm:$0x1] %v999_v5  ;;  %v854_v13 = vshll.u32 %v6725_v59, 16  ;;  %v859_v26 = vshrl.u32 %v6726_v15, 16 }
  0xa1   : > { %v1282_v12 = vor.u32 %v1281_v60, %v1278_v62  ;;  %v1297_v18 = vrot.slane %v1295_v3, 5  ;;  %v853_v21 = vrot.slane %v851_v7, 7  ;;  %v862_v28 = vshll.u32 %v6726_v15, 16 }
  0xa2   : > { %v1292_v37 = vor.u32 %v1291_v11, %v1287_v14  ;;  %v375_v41 = vadd.f32 %v8147_v33, %v337_v44  ;;  %v376_v30 = vadd.f32 %v8147_v33, %v338_v40  ;;  %v861_v20 = vrot.slane %v859_v26, 7 }
  0xa3   : > { %v1283_v34 = vrot.slane %v1282_v12, 4  ;;  %v856_v24 = vor.u32 %v854_v13, %v853_v21  ;;  %v857_v38 = vrot.slane %v853_v21, 4  ;;  %v467_v45 = vsel %vm7830_vm3, 0, %v466_v2  ;;  %v2110_v12 = vld [vmem:[#allocation2] sm:$0xe] }
  0xa4   : > { %v1293_v42 = vrot.slane %v1292_v37, 4  ;;  %v407_v50 = vmax.f32 %v375_v41, 0.0  ;;  %v408_v52 = vmax.f32 %v376_v30, 0.0  ;;  %468 = vst [vmem:[#allocation2 + $0xb4] sm:$0x1] %v467_v45  ;;  %v864_v35 = vor.u32 %v862_v28, %v861_v20 }
  0xa5   : > { %v1288_v16 = vsel %vm7901_vm9, %v1283_v34, %v1287_v14  ;;  %v8322_v53 = vld [vmem:[#allocation2 + $0x54] sm:$0xf]  ;;  %v866_v55 = vrot.slane %v861_v20, 4  ;;  %v1044_v33 = vsel %vm7914_vm10, %v856_v24, %v1043_v32  ;;  %v523_v44 = vsel %vm7838_vm4, 0, %v522_v19 }
  0xa6   : > { %v1298_v17 = vsel %vm7901_vm9, %v1293_v42, %v1297_v18  ;;  %v1300_v58 = vshrl.u32 %v8322_v53, 16  ;;  %v1303_v59 = vshll.u32 %v8322_v53, 16  ;;  %1045 = vst [vmem:[#allocation2 + $0xa8] sm:$0xf] %v1044_v33  ;;  %524 = vst [vmem:[#allocation2 + $0xbc] sm:$0x1] %v523_v44  ;;  %v6727_v15 = vpack.c.bf16 %v407_v50, %v407_v50 }
  0xa7   : > { %v6293_v40 = vcombine.low %v1288_v16, %v1298_v17  ;;  %v8332_v62 = vld [vmem:[#allocation2 + $0x58] sm:$0xf]  ;;  %v8334_v60 = vld [vmem:[#allocation2 + $0x5c] sm:$0x1]  ;;  %v865_v63 = vsel %vm7920_vm11, %v857_v38, %v864_v35  ;;  %v1048_v1 = vsel %vm7830_vm3, %v866_v55, %v1047_v39  ;;  %v6728_v2 = vpack.c.bf16 %v408_v52, %v408_v52 }
  0xa8   : > { %v1302_v3 = vrot.slane %v1300_v58, 4  ;;  %v1305_v4 = vrot.slane %v1303_v59, 5  ;;  %v1309_v5 = vshll.u32 %v8332_v62, 16  ;;  %v1313_v7 = vshrl.u32 %v8332_v62, 16  ;;  %1046 = vst [vmem:[#allocation2 + $0xac] sm:$0xf] %v865_v63 }
  0xa9   : > { %1049 = vst [vmem:[#allocation2 + $0xb0] sm:$0x1] %v1048_v1  ;;  %7181 = vmatprep.mubr.bf16.mxu0 %v6293_v40  ;;  %v1319_v14 = vshll.u32 %v8334_v60, 16  ;;  %v868_v11 = vshrl.u32 %v6727_v15, 16  ;;  %v871_v13 = vshll.u32 %v6727_v15, 16  ;;  %v876_v19 = vshrl.u32 %v6728_v2, 16 }
  0xaa   : > { %v1306_v18 = vor.u32 %v1305_v4, %v1302_v3  ;;  %v1311_v21 = vrot.slane %v1309_v5, 5  ;;  %v1315_v26 = vrot.slane %v1313_v7, 4  ;;  %v879_v28 = vshll.u32 %v6728_v2, 16  ;;  %v8365_v63 = vld [vmem:[#allocation2 + $0x4] sm:$0xf] }
  0xab   : > { %v1321_v32 = vrot.slane %v1319_v14, 5  ;;  %v870_v34 = vrot.slane %v868_v11, 7  ;;  %v878_v37 = vrot.slane %v876_v19, 7  ;;  %v1050_v39 = vld [vmem:[#allocation2 + $0xb4] sm:$0xf]  ;;  %v6335_v24 = vrot.slane %v2110_v12, 9 }
  0xac   : > { %v1307_v41 = vrot.slane %v1306_v18, 4  ;;  %v1316_v30 = vor.u32 %v1315_v26, %v1311_v21  ;;  %v2163_v1 = vrot.slane %v8365_v63, 5  ;;  %v2111_v7 = vld [vmem:[#allocation2 + $0xc] sm:$0xe] }
  0xad   : > { %v8343_v38 = vld [vmem:[#allocation2 + $0xa8] sm:$0xf]  ;;  %v873_v20 = vor.u32 %v871_v13, %v870_v34  ;;  %v874_v45 = vrot.slane %v870_v34, 4  ;;  %v881_v16 = vor.u32 %v879_v28, %v878_v37  ;;  %v883_v42 = vrot.slane %v878_v37, 4  ;;  %v1054_v50 = vld [vmem:[#allocation2 + $0xbc] sm:$0x1] }
  0xae   : > { %v1312_v52 = vsel %vm7901_vm9, %v1307_v41, %v1311_v21  ;;  %v1317_v35 = vrot.slane %v1316_v30, 4  ;;  %v1468_v55 = vshrl.u32 %v8343_v38, 16  ;;  %v1471_v33 = vshll.u32 %v8343_v38, 16  ;;  %v2112_v13 = vld [vmem:[#allocation2 + $0x18] sm:$0xe] }
  0xaf   : > { %v8349_v44 = vld [vmem:[#allocation2 + $0xac] sm:$0xf]  ;;  %v882_v58 = vsel %vm7920_vm11, %v874_v45, %v881_v16  ;;  %v1051_v59 = vsel %vm7914_vm10, %v873_v20, %v1050_v39  ;;  %v1055_v15 = vsel %vm7830_vm3, %v883_v42, %v1054_v50  ;;  %v2164_v21 = vsel %vm8361_vm14, %v6335_v24, %v2163_v1  ;;  %v7733_v28 = vld [vmem:[#allocation2 + $0x14] sm:$0x1]  ;;  %v8375_v39 = vld [vmem:[#allocation2 + $0x10] sm:$0xf] }
  0xb0   : > { %v8351_v17 = vld [vmem:[#allocation2 + $0xb0] sm:$0x1]  ;;  %v1322_v2 = vsel %vm7901_vm9, %v1317_v35, %v1321_v32  ;;  %v1470_v3 = vrot.slane %v1468_v55, 4  ;;  %v1473_v4 = vrot.slane %v1471_v33, 5  ;;  %v1477_v5 = vshll.u32 %v8349_v44, 16 }
  0xb1   : > { %1052 = vst [vmem:[#allocation2 + $0xb4] sm:$0xf] %v1051_v59  ;;  %1053 = vst [vmem:[#allocation2 + $0xb8] sm:$0xf] %v882_v58  ;;  %v6294_v12 = vcombine.low %v1312_v52, %v1322_v2  ;;  %v1481_v14 = vshrl.u32 %v8349_v44, 16  ;;  %v1487_v11 = vshll.u32 %v8351_v17, 16 }
  0xb2   : > { %1056 = vst [vmem:[#allocation2 + $0xbc] sm:$0x1] %v1055_v15  ;;  %v1474_v19 = vor.u32 %v1473_v4, %v1470_v3  ;;  %v1479_v18 = vrot.slane %v1477_v5, 5  ;;  %v2165_v26 = vrot.slane %v2163_v1, 4  ;;  %v2173_v32 = vrot.slane %v7733_v28, 5 }
  0xb3   : > { %7182 = vmatmul.mubr.bf16.gmra.mxu0 %v6294_v12  ;;  %v1483_v34 = vrot.slane %v1481_v14, 4  ;;  %v6336_v37 = vrot.slane %v2111_v7, 9  ;;  %v2170_v41 = vrot.slane %v8375_v39, 5  ;;  %v8378_v30 = vld [vmem:[#allocation2 + $0x68] sm:$0x1]  ;;  %v1489_v16 = vrot.slane %v1487_v11, 5 }
  0xb4   : > { %v2222_v20 = vrot.slane %v8378_v30, 5  ;;  %v1475_v45 = vrot.slane %v1474_v19, 4  ;;  %v2167_v24 = vsel %vm8361_vm14, %v2165_v26, %v2166_v61  ;;  %v2113_v42 = vld [vmem:[#allocation2 + $0x24] sm:$0xe]  ;;  %v6337_v55 = vrot.slane %v2112_v13, 9 }
  0xb5   : > { %v1484_v50 = vor.u32 %v1483_v34, %v1479_v18  ;;  %v6367_v52 = vcombine.low %v2164_v21, %v2167_v24  ;;  %v2172_v35 = vrot.slane %v2170_v41, 4  ;;  %v8385_v33 = vld [vmem:[#allocation2] sm:$0xf]  ;;  %v2171_v59 = vsel %vm8361_vm14, %v6336_v37, %v2170_v41  ;;  %v8391_v15 = vld [vmem:[#allocation2 + $0x1c] sm:$0xf]  ;;  %v7641_v34 = vld [vmem:[%s10623_s3 + $0x130] sm:$0xff]  }
  0xb6   : > { %v6311_v58 = vcombine.low %v8385_v33, %v8365_v63  ;;  %v2177_v54 = vrot.slane %v8391_v15, 5  ;;  %v7738_v1 = vld [vmem:[#allocation2 + $0x20] sm:$0x1]  ;;  %v1480_v61 = vsel %vm7901_vm9, %v1475_v45, %v1479_v18  ;;  %v6338_v12 = vrot.slane %v2113_v42, 9  ;;  %v2114_v37 = vld [vmem:[#allocation2 + $0x30] sm:$0xe] }
  0xb7   : > { %v2180_v2 = vrot.slane %v7738_v1, 5  ;;  %v1485_v3 = vrot.slane %v1484_v50, 4  ;;  %7265 = vmatprep.mubr.bf16.mxu0 %v6367_v52  ;;  %v2174_v7 = vsel %vm8361_vm14, %v2172_v35, %v2173_v32  ;;  %v7653_v33 = vld [vmem:[%s10623_s3 + $0x118] sm:$0xff]  }
  0xb8   : > { %v8396_v4 = vld [vmem:[#allocation2 + $0xb4] sm:$0xf]  ;;  %v8398_v5 = vld [vmem:[#allocation2 + $0xb8] sm:$0xf]  ;;  %v6368_v28 = vcombine.low %v2171_v59, %v2174_v7  ;;  %v2178_v32 = vsel %vm8361_vm14, %v6337_v55, %v2177_v54  ;;  %v2179_v35 = vrot.slane %v2177_v54, 4  ;;  %v6339_v7 = vrot.slane %v2114_v37, 9 }
  0xb9   : > { %v8402_v14 = vld [vmem:[#allocation2 + $0xbc] sm:$0x1]  ;;  %v1492_v11 = vshrl.u32 %v8396_v4, 16  ;;  %v1495_v13 = vshll.u32 %v8396_v4, 16  ;;  %v1501_v19 = vshll.u32 %v8398_v5, 16  ;;  %v1505_v18 = vshrl.u32 %v8398_v5, 16 }
  0xba   : > { %v1490_v21 = vsel %vm7901_vm9, %v1485_v3, %v1489_v16  ;;  %v1511_v26 = vshll.u32 %v8402_v14, 16  ;;  %v8416_v16 = vld [vmem:[#allocation2 + $0x28] sm:$0xf]  ;;  %v7740_v55 = vld [vmem:[%s10623_s3 + $0x138] sm:$0xff]   ;;  %v7741_v3 = vld [vmem:[#allocation2 + $0x2c] sm:$0x1]  ;;  %v2181_v54 = vsel %vm8361_vm14, %v2179_v35, %v2180_v2 }
  0xbb   : > { %v6301_v41 = vcombine.low %v1480_v61, %v1490_v21  ;;  %v1494_v45 = vrot.slane %v1492_v11, 4  ;;  %v1497_v24 = vrot.slane %v1495_v13, 5  ;;  %v1503_v42 = vrot.slane %v1501_v19, 5  ;;  %7266 = vmatmul.mubr.bf16.vlgmr.msra.gmra.mxu0 %v6368_v28  ;;  %v2115_v21 = vld [vmem:[#allocation2 + $0x3c] sm:$0xe] }
  0xbc   : > { %v1507_v50 = vrot.slane %v1505_v18, 4  ;;  %v1513_v52 = vrot.slane %v1511_v26, 5  ;;  %v2184_v59 = vrot.slane %v8416_v16, 5  ;;  %7346 = vmatpush3.bf16.msra.mxu0 %v7740_v55  ;;  %v2187_v61 = vrot.slane %v7741_v3, 5  ;;  %v7645_v26 = vld [vmem:[%s10623_s3 + $0x128] sm:$0xff]  }
  0xbd   : > { %7197 = vmatprep.mubr.bf16.mxu1 %v6301_v41  ;;  %v1498_v1 = vor.u32 %v1497_v24, %v1494_v45  ;;  %v2191_v11 = vrot.slane %v8183_v46, 5  ;;  %7347 = vmatprep.subr.bf16.mxu0 %v7641_v34  ;;  %v8430_v41 = vld [vmem:[#allocation2 + $0xc] sm:$0xf]  ;;  %v6369_v45 = vcombine.low %v2178_v32, %v2181_v54  ;;  %v2194_v35 = vrot.slane %v8185_v49, 5  ;;  %v2117_v55 = vld [vmem:[#allocation2 + $0x54] sm:$0xe] }
  0xbe   : > { %v1508_v13 = vor.u32 %v1507_v50, %v1503_v42  ;;  %v2185_v19 = vsel %vm8361_vm14, %v6338_v12, %v2184_v59  ;;  %v2186_v18 = vrot.slane %v2184_v59, 4  ;;  %v2116_v59 = vld [vmem:[#allocation2 + $0x48] sm:$0xe]  ;;  %v6340_v37 = vrot.slane %v2115_v21, 9  ;;  %v8451_v54 = vld [vmem:[#allocation2 + $0x24] sm:$0xf] }
  0xbf   : > { %v1499_v28 = vrot.slane %v1498_v1, 4  ;;  %v2193_v24 = vrot.slane %v2191_v11, 4  ;;  %v2192_v12 = vsel %vm8361_vm14, %v6339_v7, %v2191_v11  ;;  %7269 = vmatprep.mubr.bf16.mxu0 %v6369_v45  ;;  %v2198_v32 = vrot.slane %v8204_v22, 5 }
  0xc0   : > { %v1509_v50 = vrot.slane %v1508_v13, 4  ;;  %v2188_v2 = vsel %vm8361_vm14, %v2186_v18, %v2187_v61  ;;  %7348 = vmatpush3.bf16.msra.mxu0 %v7641_v34  ;;  %v8444_v61 = vld [vmem:[#allocation2 + $0x18] sm:$0xf]  ;;  %v2201_v11 = vrot.slane %v8206_v36, 5  ;;  %v2205_v36 = vrot.slane %v8302_v56, 5 }
  0xc1   : > { %v1504_v1 = vsel %vm7901_vm9, %v1499_v28, %v1503_v42  ;;  %v6370_v3 = vcombine.low %v2185_v19, %v2188_v2  ;;  %v6313_v7 = vcombine.low %v8444_v61, %v8391_v15  ;;  %v2195_v49 = vsel %vm8361_vm14, %v2193_v24, %v2194_v35  ;;  %7349 = vmatprep.subr.bf16.mxu0 %v7645_v26  ;;  %v2118_v24 = vld [vmem:[#allocation2 + $0x60] sm:$0xe]  ;;  %v7643_v15 = vld [vmem:[%s10623_s3 + $0xe8] sm:$0xff]   ;;  %v2984_v34 = vld [vmem:[#allocation2 + $0x18] sm:$0xf] }
  0xc2   : > { %v1514_v13 = vsel %vm7901_vm9, %v1509_v50, %v1513_v52  ;;  %v6371_v19 = vcombine.low %v2192_v12, %v2195_v49  ;;  %v2200_v18 = vrot.slane %v2198_v32, 4  ;;  %v7649_v52 = vld [vmem:[%s10623_s3 + $0x120] sm:$0xff]   ;;  %v2199_v21 = vsel %vm8361_vm14, %v6340_v37, %v2198_v32 }
  0xc3   : > { %v6302_v42 = vcombine.low %v1504_v1, %v1514_v13  ;;  %7270 = vmatmul.mubr.bf16.gmra.mxu0 %v6370_v3  ;;  %v6341_v28 = vrot.slane %v2116_v59, 9  ;;  %v2208_v45 = vrot.slane %v8304_v57, 5  ;;  %v6342_v2 = vrot.slane %v2117_v55, 9  ;;  %v2119_v1 = vld [vmem:[#allocation2 + $0x6c] sm:$0xe] }
  0xc4   : > { %7273 = vmatprep.mubr.bf16.mxu0 %v6371_v19  ;;  %v2202_v50 = vsel %vm8361_vm14, %v2200_v18, %v2201_v11  ;;  %v2212_v12 = vrot.slane %v8332_v62, 5  ;;  %v2215_v35 = vrot.slane %v8334_v60, 5  ;;  %7350 = vmatpush3.bf16.msra.mxu0 %v7645_v26  ;;  %v2207_v55 = vrot.slane %v2205_v36, 4  ;;  %v8477_v13 = vld [vmem:[#allocation2 + $0x64] sm:$0xf] }
  0xc5   : > { %7198 = vmatmul.mubr.bf16.gmra.mxu1 %v6302_v42  ;;  %v2206_v59 = vsel %vm8361_vm14, %v6341_v28, %v2205_v36  ;;  %7351 = vmatprep.subr.bf16.mxu0 %v7649_v52  ;;  %v6343_v32 = vrot.slane %v2118_v24, 9  ;;  %v2219_v63 = vrot.slane %v8477_v13, 5  ;;  %v6344_v49 = vrot.slane %v2119_v1, 9  ;;  %v8485_v11 = vld [vmem:[#allocation2 + $0x70] sm:$0xf] }
  0xc6   : > { %7217 = vmatprep.mubr.bf16.mxu1 %v6311_v58  ;;  %v2214_v60 = vrot.slane %v2212_v12, 4  ;;  %v6372_v58 = vcombine.low %v2199_v21, %v2202_v50  ;;  %v2209_v26 = vsel %vm8361_vm14, %v2207_v55, %v2208_v45  ;;  %v2226_v42 = vrot.slane %v8485_v11, 5  ;;  %v2120_v19 = vld [vmem:[#allocation2 + $0x78] sm:$0xe]  ;;  %v8488_v18 = vld [vmem:[#allocation2 + $0x84] sm:$0xe] }
  0xc7   : > { %v8493_v28 = vld [vmem:[%s10623_s3 + $0xf0] sm:$0xff]   ;;  %v6373_v36 = vcombine.low %v2206_v59, %v2209_v26  ;;  %v8497_v21 = vsel %vm8361_vm14, %v6342_v2, %v2212_v12  ;;  %v2221_v24 = vrot.slane %v2219_v63, 4  ;;  %v8509_v55 = vsel %vm8361_vm14, %v6343_v32, %v2219_v63  ;;  %v8517_v12 = vld [vmem:[#allocation2 + $0x60] sm:$0xf] }
  0xc8   : > { %v8501_v45 = vsel %vm8361_vm14, %v2214_v60, %v2215_v35  ;;  %v8503_v50 = vld [vmem:[#allocation2 + $0x90] sm:$0xe]  ;;  %7352 = vmatpush3.bf16.msra.mxu0 %v7649_v52  ;;  %v2228_v59 = vrot.slane %v2226_v42, 4  ;;  %v7747_v26 = vld [vmem:[#allocation2 + $0x74] sm:$0x1]  ;;  %v6345_v52 = vrot.slane %v2120_v19, 9  ;;  %v8528_v30 = vsel %vm8361_vm14, %v6344_v49, %v2226_v42 }
  0xc9   : > { %v2229_v3 = vrot.slane %v7747_v26, 5  ;;  %v8515_v2 = vsel %vm8361_vm14, %v2221_v24, %v2222_v20  ;;  %7353 = vmatprep.subr.bf16.mxu0 %v7653_v33  ;;  %v8521_v60 = vld [vmem:[#allocation2 + $0x7c] sm:$0xf]  ;;  %v6374_v63 = vcombine.low %v8497_v21, %v8501_v45  ;;  %v7750_v24 = vld [vmem:[#allocation2 + $0x80] sm:$0x1]  ;;  %v7657_v19 = vld [vmem:[%s10623_s3 + $0x110] sm:$0xff]  }
  0xca   : > { %v2233_v32 = vrot.slane %v8521_v60, 5  ;;  %v2236_v26 = vrot.slane %v7750_v24, 5  ;;  %v6375_v21 = vcombine.low %v8509_v55, %v8515_v2  ;;  %v8542_v49 = vld [vmem:[#allocation2 + $0x6c] sm:$0xf]  ;;  %v6346_v45 = vrot.slane %v8488_v18, 9  ;;  %v7752_v24 = vld [vmem:[%s10623_s3 + $0xf8] sm:$0xff]  }
  0xcb   : > { %7274 = vmatmul.mubr.bf16.gmra.mxu0 %v6372_v58  ;;  %v8532_v20 = vsel %vm8361_vm14, %v2228_v59, %v2229_v3  ;;  %v10659_v58 = vcombine.low %v8430_v41, %v8375_v39  ;;  %v2123_v59 = vld [vmem:[#allocation2 + $0x9c] sm:$0xe]  ;;  %v8553_v39 = vld [vmem:[#allocation2 + $0x78] sm:$0xf]  ;;  %v7755_v18 = vld [vmem:[#allocation2 + $0x8c] sm:$0x1] }
  0xcc   : > { %7277 = vmatprep.mubr.bf16.mxu0 %v6373_v36  ;;  %v2235_v42 = vrot.slane %v2233_v32, 4  ;;  %v8557_v36 = vld [vmem:[#allocation2 + $0x88] sm:$0xf]  ;;  %v2243_v2 = vrot.slane %v7755_v18, 5  ;;  %7354 = vmatpush3.bf16.msra.mxu0 %v7653_v33  ;;  %v2250_v18 = vrot.slane %v8242_v29, 5  ;;  %v7647_v29 = vld [vmem:[%s10623_s3 + $0xe0] sm:$0xff]  }
  0xcd   : > { %7218 = vmatmul.mubr.bf16.vlgmr.msra.gmra.mxu1 %v10659_v58  ;;  %v2240_v55 = vrot.slane %v8557_v36, 5  ;;  %v6347_v58 = vrot.slane %v8503_v50, 9  ;;  %v7661_v50 = vld [vmem:[%s10623_s3 + $0x108] sm:$0xff]   ;;  %v8580_v35 = vld [vmem:[#allocation2 + $0x84] sm:$0xf]  ;;  %7355 = vmatprep.subr.bf16.mxu0 %v7657_v19  ;;  %v3057_v23 = vshll.u32 %v2984_v34, 16 }
  0xce   : > { %7298 = vmatpush3.bf16.msra.mxu1 %v7752_v24  ;;  %7221 = vmatprep.mubr.bf16.mxu1 %v6313_v7  ;;  %v8569_v7 = vsel %vm8361_vm14, %v6345_v52, %v2233_v32  ;;  %v2247_v24 = vrot.slane %v8234_v9, 5  ;;  %v8578_v41 = vsel %vm8361_vm14, %v2235_v42, %v2236_v26  ;;  %v6348_v52 = vrot.slane %v2123_v59, 9  ;;  %v2124_v32 = vld [vmem:[#allocation2 + $0xa8] sm:$0xe] }
  0xcf   : > { %7299 = vmatprep.subr.bf16.mxu1 %v8493_v28  ;;  %v2242_v3 = vrot.slane %v2240_v55, 4  ;;  %v8589_v1 = vsel %vm8361_vm14, %v6346_v45, %v2240_v55  ;;  %v2254_v26 = vrot.slane %v8273_v31, 5  ;;  %v2257_v42 = vrot.slane %v8276_v51, 5  ;;  %v7665_v55 = vld [vmem:[%s10623_s3 + $0x100] sm:$0xff]   ;;  %v2981_v51 = vld [vmem:[#allocation2 + $0xc] sm:$0xf] }
  0xd0   : > { %v2249_v57 = vrot.slane %v2247_v24, 4  ;;  %v8600_v59 = vsel %vm8361_vm14, %v6347_v58, %v2247_v24  ;;  %v2261_v45 = vrot.slane %v8349_v44, 5  ;;  %7356 = vmatpush3.bf16.msra.mxu0 %v7657_v19  ;;  %v6349_v58 = vrot.slane %v2124_v32, 9  ;;  %v8616_v24 = vld [vmem:[#allocation2 + $0x10] sm:$0xf] }
  0xd1   : > { %v8596_v33 = vsel %vm8361_vm14, %v2242_v3, %v2243_v2  ;;  %v8614_v3 = vsel %vm8361_vm14, %v6348_v52, %v2254_v26  ;;  %v2256_v2 = vrot.slane %v2254_v26, 4  ;;  %10660 = vst [vmem:[#allocation6_spill] sm:$0xff] %v8616_v24  ;;  %v6377_v61 = vcombine.low %v8569_v7, %v8578_v41  ;;  %7357 = vmatprep.subr.bf16.mxu0 %v7661_v50  ;;  %v8664_v26 = vld [vmem:[#allocation2 + $0x20] sm:$0x1] }
  0xd2   : > { %7300 = vmatpush3.bf16.msra.mxu1 %v8493_v28  ;;  %v8610_v28 = vsel %vm8361_vm14, %v2249_v57, %v2250_v18  ;;  %v2263_v19 = vrot.slane %v2261_v45, 4  ;;  %v2264_v57 = vrot.slane %v8351_v17, 5  ;;  %v2125_v18 = vld [vmem:[#allocation2 + $0xb4] sm:$0xe]  ;;  %v10661_v52 = vcombine.low %v8451_v54, %v8416_v16  ;;  %v2987_v54 = vld [vmem:[#allocation2 + $0x24] sm:$0xf] }
  0xd3   : > { %7301 = vmatprep.subr.bf16.mxu1 %v7643_v15  ;;  %7278 = vmatmul.mubr.bf16.gmra.mxu0 %v6374_v63  ;;  %v7651_v63 = vld [vmem:[%s10623_s3 + $0xd8] sm:$0xff]   ;;  %v8633_v7 = vsel %vm8361_vm14, %v2256_v2, %v2257_v42  ;;  %v2268_v32 = vrot.slane %v8398_v5, 5  ;;  %v10662_v16 = vcombine.low %v8177_v43, %v8183_v46  ;;  %v8647_v42 = vld [vmem:[#allocation2 + $0x14] sm:$0x1]  ;;  %v8658_v43 = vsel %vm8361_vm14, %v6349_v58, %v2261_v45 }
  0xd4   : > { %7281 = vmatprep.mubr.bf16.mxu0 %v6375_v21  ;;  %10663 = vst [vmem:[#allocation7_spill] sm:$0xff] %v8647_v42  ;;  %v8649_v2 = vld [vmem:[#allocation2 + $0x1c] sm:$0xf]  ;;  %7358 = vmatpush3.bf16.msra.mxu0 %v7661_v50  ;;  %v8662_v46 = vsel %vm8361_vm14, %v2263_v19, %v2264_v57  ;;  %v2271_v17 = vrot.slane %v8402_v14, 5  ;;  %v3033_v37 = vshll.u32 %v2981_v51, 16  ;;  %v3039_v21 = vshll.u32 %v8616_v24, 16 }
  0xd5   : > { %7222 = vmatmul.mubr.bf16.gmra.mxu1 %v10661_v52  ;;  %v8654_v52 = vld [vmem:[%s10623_s3 + $0x1b8] sm:$0xff]   ;;  %7359 = vmatprep.subr.bf16.mxu0 %v7665_v55  ;;  %v3043_v50 = vshrl.u32 %v8616_v24, 16  ;;  %v2270_v41 = vrot.slane %v2268_v32, 4  ;;  %v3054_v58 = vshrl.u32 %v2984_v34, 16  ;;  %v3049_v27 = vshll.u32 %v8647_v42, 16  ;;  %v7655_v14 = vld [vmem:[%s10623_s3 + $0xd0] sm:$0xff]  }
  0xd6   : > { %7225 = vmatprep.mubr.bf16.mxu1 %v10662_v16  ;;  %7302 = vmatpush3.bf16.msra.mxu1 %v7643_v15  ;;  %v6350_v15 = vrot.slane %v2125_v18, 9  ;;  %v3030_v16 = vshrl.u32 %v2981_v51, 16  ;;  %v3035_v19 = vrot.slane %v3033_v37, 5  ;;  %v8669_v57 = vrot.slane %v3039_v21, 5 }
  0xd7   : > { %7303 = vmatprep.subr.bf16.mxu1 %v7647_v29  ;;  %v3045_v18 = vrot.slane %v3043_v50, 4  ;;  %v3056_v34 = vrot.slane %v3054_v58, 4  ;;  %v3063_v37 = vshll.u32 %v8649_v2, 16  ;;  %v10664_v21 = vcombine.low %v8528_v30, %v8532_v20 }
  0xd8   : > { %v3032_v45 = vrot.slane %v3030_v16, 4  ;;  %v8679_v51 = vsel %vm8361_vm14, %v6350_v15, %v2268_v32  ;;  %7360 = vmatpush3.bf16.msra.mxu0 %v7665_v55  ;;  %v3067_v42 = vshrl.u32 %v8649_v2, 16  ;;  %v3073_v24 = vshll.u32 %v8664_v26, 16  ;;  %v8694_v15 = vld [vmem:[#allocation2 + $0x2c] sm:$0x1] }
  0xd9   : > { %v3046_v50 = vor.u32 %v3045_v18, %v8669_v57  ;;  %7441 = vmatprep.subr.bf16.mxu0 %v8654_v52  ;;  %v10665_v55 = vcombine.low %v8200_v25, %v8204_v22  ;;  %v8692_v32 = vrot.slane %v3063_v37, 5  ;;  %v3078_v30 = vshrl.u32 %v2987_v54, 16 }
  0xda   : > { %7304 = vmatpush3.bf16.msra.mxu1 %v7647_v29  ;;  %v3059_v29 = vrot.slane %v3057_v23, 5  ;;  %v3036_v16 = vor.u32 %v3035_v19, %v3032_v45  ;;  %v3081_v20 = vshll.u32 %v2987_v54, 16  ;;  %v2990_v45 = vld [vmem:[#allocation2 + $0x30] sm:$0xf]  ;;  %v10666_v58 = vcombine.low %v8298_v48, %v8302_v56  ;;  %v7659_v19 = vld [vmem:[%s10623_s3 + $0xc8] sm:$0xff]  }
  0xdb   : > { %7305 = vmatprep.subr.bf16.mxu1 %v7651_v63  ;;  %7282 = vmatmul.mubr.bf16.gmra.mxu0 %v10664_v21  ;;  %v8704_v25 = vsel %vm8361_vm14, %v2270_v41, %v2271_v17  ;;  %v3069_v18 = vrot.slane %v3067_v42, 4  ;;  %v3047_v54 = vrot.slane %v3046_v50, 4  ;;  %v3087_v48 = vshll.u32 %v8672_v10, 16  ;;  %v2993_v50 = vld [vmem:[#allocation2 + $0x3c] sm:$0xf] }
  0xdc   : > { %7285 = vmatprep.mubr.bf16.mxu0 %v6377_v61  ;;  %v3060_v23 = vor.u32 %v3059_v29, %v3056_v34  ;;  %v3037_v22 = vrot.slane %v3036_v16, 4  ;;  %v3051_v61 = vrot.slane %v3049_v27, 5  ;;  %v8706_v34 = vld [vmem:[#allocation2 + $0x34] sm:$0xf]  ;;  %v3080_v29 = vrot.slane %v3078_v30, 4 }
  0xdd   : > { %7226 = vmatmul.mubr.bf16.gmra.mxu1 %v10665_v55  ;;  %v3083_v37 = vrot.slane %v3081_v20, 5  ;;  %v3070_v21 = vor.u32 %v3069_v18, %v8692_v32  ;;  %v3091_v41 = vshrl.u32 %v8672_v10, 16  ;;  %v3075_v17 = vrot.slane %v3073_v24, 5  ;;  %v8718_v56 = vld [vmem:[#allocation2 + $0x40] sm:$0xf] }
  0xde   : > { %7229 = vmatprep.mubr.bf16.mxu1 %v10666_v58  ;;  %7306 = vmatpush3.bf16.msra.mxu1 %v7651_v63  ;;  %v3061_v63 = vrot.slane %v3060_v23, 4  ;;  %v8715_v16 = vrot.slane %v3087_v48, 5  ;;  %v3097_v20 = vshll.u32 %v8694_v15, 16  ;;  %v3102_v58 = vshrl.u32 %v2990_v45, 16  ;;  %v7663_v23 = vld [vmem:[%s10623_s3 + $0xc0] sm:$0xff]  }
  0xdf   : > { %7307 = vmatprep.subr.bf16.mxu1 %v7655_v14  ;;  %v3084_v42 = vor.u32 %v3083_v37, %v3080_v29  ;;  %v3071_v55 = vrot.slane %v3070_v21, 4  ;;  %v3093_v30 = vrot.slane %v3091_v41, 4  ;;  %v3042_v24 = vsel %vm7901_vm9, %v3037_v22, %v8669_v57  ;;  %v8726_v18 = vld [vmem:[#allocation2 + $0x38] sm:$0x1] }
  0xe0   : > { %v3105_v29 = vshll.u32 %v2990_v45, 16  ;;  %v3115_v37 = vshrl.u32 %v8706_v34, 16  ;;  %v10667_v48 = vcombine.low %v8589_v1, %v8596_v33  ;;  %v3052_v21 = vsel %vm7901_vm9, %v3047_v54, %v3051_v61 }
  0xe1   : > { %v3066_v41 = vsel %vm7901_vm9, %v3061_v63, %v8692_v32  ;;  %v3094_v57 = vor.u32 %v3093_v30, %v8715_v16  ;;  %v3104_v22 = vrot.slane %v3102_v58, 4  ;;  %v10668_v45 = vcombine.low %v8322_v53, %v8332_v62  ;;  %v2996_v32 = vld [vmem:[#allocation2 + $0x48] sm:$0xf] }
  0xe2   : > { %7308 = vmatpush3.bf16.msra.mxu1 %v7655_v14  ;;  %v3111_v14 = vshll.u32 %v8706_v34, 16  ;;  %v10669_v27 = vcombine.low %v8600_v59, %v8610_v28  ;;  %v3076_v1 = vsel %vm7901_vm9, %v3071_v55, %v3075_v17  ;;  %v3085_v33 = vrot.slane %v3084_v42, 4  ;;  %v8754_v28 = vld [vmem:[#allocation2 + $0x4c] sm:$0xf] }
  0xe3   : > { %7309 = vmatprep.subr.bf16.mxu1 %v7659_v19  ;;  %7286 = vmatmul.mubr.bf16.gmra.mxu0 %v10667_v48  ;;  %v3107_v61 = vrot.slane %v3105_v29, 5  ;;  %v8749_v48 = vld [vmem:[#allocation2 + $0x44] sm:$0x1]  ;;  %v10670_v63 = vcombine.low %v8517_v12, %v8477_v13  ;;  %v3095_v53 = vrot.slane %v3094_v57, 4  ;;  %v3099_v62 = vrot.slane %v3097_v20, 5 }
  0xe4   : > { %7289 = vmatprep.mubr.bf16.mxu0 %v10669_v27  ;;  %v8747_v54 = vrot.slane %v3111_v14, 5  ;;  %v3117_v30 = vrot.slane %v3115_v37, 4  ;;  %v3126_v59 = vshrl.u32 %v2993_v50, 16  ;;  %v8759_v27 = vld [vmem:[%s10623_s3 + $0x178] sm:$0xff]   ;;  %v3129_v42 = vshll.u32 %v2993_v50, 16 }
  0xe5   : > { %7230 = vmatmul.mubr.bf16.gmra.mxu1 %v10668_v45  ;;  %v3108_v17 = vor.u32 %v3107_v61, %v3104_v22  ;;  %v3135_v55 = vshll.u32 %v8718_v56, 16  ;;  %v3139_v13 = vshrl.u32 %v8718_v56, 16  ;;  %v8763_v12 = vcombine.low %v3042_v24, %v3052_v21  ;;  %v8774_v50 = vld [vmem:[#allocation2 + $0x50] sm:$0x1]  ;;  %v2999_v22 = vld [vmem:[#allocation2 + $0x54] sm:$0xf] }
  0xe6   : > { %7233 = vmatprep.mubr.bf16.mxu1 %v10670_v63  ;;  %7310 = vmatpush3.bf16.msra.mxu1 %v7659_v19  ;;  %v3118_v19 = vor.u32 %v3117_v30, %v8747_v54  ;;  %v3121_v20 = vshll.u32 %v8726_v18, 16  ;;  %v3128_v58 = vrot.slane %v3126_v59, 4  ;;  %v8767_v29 = vcombine.low %v3066_v41, %v3076_v1  ;;  %v8779_v63 = vld [vmem:[#allocation2 + $0x58] sm:$0xf] }
  0xe7   : > { %7311 = vmatprep.subr.bf16.mxu1 %v7663_v23  ;;  %v3090_v14 = vsel %vm7901_vm9, %v3085_v33, %v8715_v16  ;;  %v3131_v37 = vrot.slane %v3129_v42, 5  ;;  %v8772_v57 = vrot.slane %v3135_v55, 5  ;;  %v8776_v24 = vrot.slane %v3108_v17, 4 }
  0xe8   : > { %v3141_v21 = vrot.slane %v3139_v13, 4  ;;  %v3145_v45 = vshll.u32 %v8749_v48, 16  ;;  %v3150_v61 = vshrl.u32 %v2996_v32, 16  ;;  %v3100_v16 = vsel %vm7901_vm9, %v3095_v53, %v3099_v62 }
  0xe9   : > { %v3132_v41 = vor.u32 %v3131_v37, %v3128_v58  ;;  %v3153_v1 = vshll.u32 %v2996_v32, 16  ;;  %v3159_v33 = vshll.u32 %v8754_v28, 16  ;;  %v3119_v30 = vrot.slane %v3118_v19, 4 }
  0xea   : > { %7312 = vmatpush3.bf16.msra.mxu1 %v7663_v23  ;;  %v10671_v23 = vcombine.low %v8614_v3, %v8633_v7  ;;  %v3123_v59 = vrot.slane %v3121_v20, 5  ;;  %v3142_v17 = vor.u32 %v3141_v21, %v8772_v57  ;;  %v3152_v42 = vrot.slane %v3150_v61, 4  ;;  %v8797_v3 = vld [vmem:[#allocation2 + $0x5c] sm:$0x1]  ;;  %v3002_v7 = vld [vmem:[#allocation2 + $0x60] sm:$0xf] }
  0xeb   : > { %7393 = vmatprep.subr.bf16.mxu1 %v8759_v27  ;;  %v10672_v55 = vcombine.low %v8542_v49, %v8485_v11  ;;  %v10673_v53 = vcombine.low %v8658_v43, %v8662_v46  ;;  %v3133_v32 = vrot.slane %v3132_v41, 4  ;;  %v3147_v62 = vrot.slane %v3145_v45, 5 }
  0xec   : > { %7290 = vmatmul.mubr.bf16.gmra.mxu0 %v10671_v23  ;;  %v3155_v13 = vrot.slane %v3153_v1, 5  ;;  %v8795_v58 = vrot.slane %v3159_v33, 5  ;;  %v10674_v19 = vcombine.low %v8553_v39, %v8521_v60  ;;  %v3143_v20 = vrot.slane %v3142_v17, 4  ;;  %v8813_v1 = vld [vmem:[#allocation2 + $0x64] sm:$0xf] }
  0xed   : > { %7234 = vmatmul.mubr.bf16.gmra.mxu1 %v10672_v55  ;;  %7293 = vmatprep.mubr.bf16.mxu0 %v10673_v53  ;;  %v3163_v11 = vshrl.u32 %v8754_v28, 16  ;;  %v3169_v49 = vshll.u32 %v8774_v50, 16  ;;  %v3174_v37 = vshrl.u32 %v2999_v22, 16  ;;  %v8804_v43 = vcombine.low %v3090_v14, %v3100_v16 }
  0xee   : > { %7237 = vmatprep.mubr.bf16.mxu1 %v10674_v19  ;;  %v3114_v46 = vsel %vm7901_vm9, %v8776_v24, %v8747_v54  ;;  %v3177_v21 = vshll.u32 %v2999_v22, 16  ;;  %v3183_v45 = vshll.u32 %v8779_v63, 16  ;;  %v3124_v60 = vsel %vm7901_vm9, %v3119_v30, %v3123_v59  ;;  %v8822_v54 = vld [vmem:[#allocation2 + $0x68] sm:$0x1]  ;;  %v3005_v22 = vld [vmem:[#allocation2 + $0x6c] sm:$0xf] }
  0xef   : > { %v3156_v39 = vor.u32 %v3155_v13, %v3152_v42  ;;  %v3165_v61 = vrot.slane %v3163_v11, 4  ;;  %v3176_v41 = vrot.slane %v3174_v37, 4  ;;  %v3138_v14 = vsel %vm7901_vm9, %v3133_v32, %v8772_v57  ;;  %v8833_v37 = vld [vmem:[#allocation2 + $0x70] sm:$0xf] }
  0xf0   : > { %v8818_v16 = vrot.slane %v3169_v49, 5  ;;  %v3179_v33 = vrot.slane %v3177_v21, 5  ;;  %v8820_v23 = vrot.slane %v3183_v45, 5  ;;  %v3187_v30 = vshrl.u32 %v8779_v63, 16 }
  0xf1   : > { %v3166_v24 = vor.u32 %v3165_v61, %v8795_v58  ;;  %v3193_v59 = vshll.u32 %v8797_v3, 16  ;;  %v3198_v17 = vshrl.u32 %v3002_v7, 16  ;;  %v3148_v42 = vsel %vm7901_vm9, %v3143_v20, %v3147_v62 }
  0xf2   : > { %v3180_v55 = vor.u32 %v3179_v33, %v3176_v41  ;;  %v3201_v57 = vshll.u32 %v3002_v7, 16  ;;  %v3207_v53 = vshll.u32 %v8813_v1, 16  ;;  %v10675_v32 = vcombine.low %v8679_v51, %v8704_v25  ;;  %v8842_v51 = vld [vmem:[#allocation2 + $0x74] sm:$0x1]  ;;  %v3008_v25 = vld [vmem:[#allocation2 + $0x78] sm:$0xf] }
  0xf3   : > { %v3157_v13 = vrot.slane %v3156_v39, 4  ;;  %v3167_v19 = vrot.slane %v3166_v24, 4  ;;  %v3189_v11 = vrot.slane %v3187_v30, 4  ;;  %v3200_v49 = vrot.slane %v3198_v17, 4 }
  0xf4   : > { %7294 = vmatmul.mubr.bf16.gmra.mxu0 %v10675_v32  ;;  %v10676_v21 = vcombine.low %v8580_v35, %v8557_v36  ;;  %v3195_v62 = vrot.slane %v3193_v59, 5  ;;  %v3203_v7 = vrot.slane %v3201_v57, 5  ;;  %v8839_v20 = vrot.slane %v3207_v53, 5 }
  0xf5   : > { %7361 = vmatprep.mubr.bf16.mxu0 %v8763_v12  ;;  %v3211_v45 = vshrl.u32 %v8813_v1, 16  ;;  %v10677_v39 = vcombine.low %v8232_v8, %v8234_v9  ;;  %v8847_v61 = vcombine.low %v3114_v46, %v3124_v60  ;;  %v3190_v35 = vor.u32 %v3189_v11, %v8820_v23  ;;  %v8856_v9 = vld [vmem:[#allocation2 + $0x7c] sm:$0xf]  ;;  %v7673_v46 = vld [vmem:[%s10623_s3 + $0x1b0] sm:$0xff]   ;;  %v3011_v11 = vld [vmem:[#allocation2 + $0x84] sm:$0xf] }
  0xf6   : > { %7238 = vmatmul.mubr.bf16.gmra.mxu1 %v10676_v21  ;;  %v3217_v36 = vshll.u32 %v8822_v54, 16  ;;  %v3222_v12 = vshrl.u32 %v3005_v22, 16  ;;  %v8851_v41 = vcombine.low %v3138_v14, %v3148_v42  ;;  %v3181_v33 = vrot.slane %v3180_v55, 4 }
  0xf7   : > { %7241 = vmatprep.mubr.bf16.mxu1 %v10677_v39  ;;  %v3204_v24 = vor.u32 %v3203_v7, %v3200_v49  ;;  %v3213_v30 = vrot.slane %v3211_v45, 4  ;;  %v3162_v59 = vsel %vm7901_vm9, %v3157_v13, %v8795_v58  ;;  %v3191_v17 = vrot.slane %v3190_v35, 4  ;;  %v8867_v58 = vld [vmem:[#allocation2 + $0x80] sm:$0x1]  ;;  %v7677_v7 = vld [vmem:[%s10623_s3 + $0x1a8] sm:$0xff]  }
  0xf8   : > { %v3224_v57 = vrot.slane %v3222_v12, 4  ;;  %v3225_v8 = vshll.u32 %v3005_v22, 16  ;;  %v3172_v60 = vsel %vm7901_vm9, %v3167_v19, %v8818_v16  ;;  %v3231_v42 = vshll.u32 %v8833_v37, 16  ;;  %v8883_v12 = vld [vmem:[#allocation2 + $0x88] sm:$0xf] }
  0xf9   : > { %v3214_v14 = vor.u32 %v3213_v30, %v8839_v20  ;;  %v3235_v55 = vshrl.u32 %v8833_v37, 16  ;;  %v8869_v53 = vrot.slane %v3217_v36, 5  ;;  %v3241_v32 = vshll.u32 %v8842_v51, 16  ;;  %v8891_v30 = vld [vmem:[#allocation2 + $0x8c] sm:$0x1] }
  0xfa   : > { %v3227_v22 = vrot.slane %v3225_v8, 5  ;;  %v3246_v13 = vshrl.u32 %v3008_v25, 16  ;;  %v3186_v49 = vsel %vm7901_vm9, %v3181_v33, %v8820_v23  ;;  %v3196_v16 = vsel %vm7901_vm9, %v3191_v17, %v3195_v62  ;;  %10679 = vst [vmem:[#allocation8_spill] sm:$0xff] %v8891_v30 }
  0xfb   : > { %v3205_v19 = vrot.slane %v3204_v24, 4  ;;  %v8877_v21 = vrot.slane %v3231_v42, 5  ;;  %v3215_v45 = vrot.slane %v3214_v14, 4  ;;  %v3237_v35 = vrot.slane %v3235_v55, 4  ;;  %v7666_v55 = vld [vmem:[#allocation2 + $0xc] sm:$0xff]  }
  0xfc   : > { %7362 = vmatmul.mubr.bf16.vlgmr.msra.gmra.mxu0 %v8767_v29  ;;  %v3228_v39 = vor.u32 %v3227_v22, %v3224_v57  ;;  %v3243_v36 = vrot.slane %v3241_v32, 5  ;;  %v10678_v23 = vcombine.low %v8271_v47, %v8273_v31  ;;  %v3248_v62 = vrot.slane %v3246_v13, 4 }
  0xfd   : > { %7442 = vmatpush3.bf16.msra.mxu0 %v8654_v52  ;;  %v3249_v33 = vshll.u32 %v3008_v25, 16  ;;  %v3255_v29 = vshll.u32 %v8856_v9, 16  ;;  %v3259_v24 = vshrl.u32 %v8856_v9, 16  ;;  %v10680_v17 = vcombine.low %v8343_v38, %v8349_v44  ;;  %7365 = vmatprep.mubr.bf16.mxu0 %v8804_v43 }
  0xfe   : > { %7242 = vmatmul.mubr.bf16.gmra.mxu1 %v10678_v23  ;;  %v8897_v57 = vcombine.low %v3162_v59, %v3172_v60  ;;  %v3229_v47 = vrot.slane %v3228_v39, 4  ;;  %v3238_v31 = vor.u32 %v3237_v35, %v8877_v21  ;;  %v3265_v52 = vshll.u32 %v8867_v58, 16  ;;  %7443 = vmatprep.subr.bf16.mxu0 %v7673_v46  ;;  %v3014_v59 = vld [vmem:[#allocation2 + $0x90] sm:$0xf]  ;;  %v8908_v60 = vld [vmem:[#allocation2 + $0x94] sm:$0xf] }
  0xff   : > { %7245 = vmatprep.mubr.bf16.mxu1 %v10680_v17  ;;  %v3251_v25 = vrot.slane %v3249_v33, 5  ;;  %v8901_v8 = vrot.slane %v3255_v29, 5  ;;  %v3261_v14 = vrot.slane %v3259_v24, 4  ;;  %v3270_v42 = vshrl.u32 %v3011_v11, 16  ;;  %10681 = vst [vmem:[#allocation9_spill] sm:$0xff] %v8908_v60 }
 0x100   : > { %v8903_v22 = vcombine.low %v3186_v49, %v3196_v16  ;;  %v3210_v38 = vsel %vm7901_vm9, %v3205_v19, %v8839_v20  ;;  %v3239_v44 = vrot.slane %v3238_v31, 4  ;;  %v3273_v43 = vshll.u32 %v3011_v11, 16  ;;  %v7681_v20 = vld [vmem:[%s10623_s3 + $0x1a0] sm:$0xff]   ;;  %v3017_v31 = vld [vmem:[#allocation2 + $0x9c] sm:$0xf] }
 0x101   : > { %7444 = vmatpush3.bf16.msra.mxu0 %v7673_v46  ;;  %v3252_v32 = vor.u32 %v3251_v25, %v3248_v62  ;;  %v3262_v13 = vor.u32 %v3261_v14, %v8901_v8  ;;  %v3272_v39 = vrot.slane %v3270_v42, 4  ;;  %v3279_v35 = vshll.u32 %v8883_v12, 16  ;;  %v7685_v14 = vld [vmem:[%s10623_s3 + $0x198] sm:$0xff]  }
 0x102   : > { %7445 = vmatprep.subr.bf16.mxu0 %v7677_v7  ;;  %v3220_v49 = vsel %vm7901_vm9, %v3215_v45, %v8869_v53  ;;  %v3275_v11 = vrot.slane %v3273_v43, 5  ;;  %v3283_v16 = vshrl.u32 %v8883_v12, 16  ;;  %v3289_v46 = vshll.u32 %v8891_v30, 16  ;;  %v8929_v53 = vld [vmem:[#allocation2 + $0x98] sm:$0x1] }
 0x103   : > { %v3234_v19 = vsel %vm7901_vm9, %v3229_v47, %v8877_v21  ;;  %v3244_v23 = vsel %vm7901_vm9, %v3239_v44, %v3243_v36  ;;  %v8925_v62 = vrot.slane %v3265_v52, 5  ;;  %v8927_v33 = vrot.slane %v3279_v35, 5  ;;  %10682 = vst [vmem:[#allocation10_spill] sm:$0xff] %v8929_v53  ;;  %v469_v30 = vld [vmem:[#allocation2 + $0xc0] sm:$0x1] }
 0x104   : > { %7366 = vmatmul.mubr.bf16.gmra.mxu0 %v8847_v61  ;;  %v8932_v45 = vrot.slane %v3252_v32, 4  ;;  %v8934_v29 = vrot.slane %v3262_v13, 4  ;;  %v3285_v24 = vrot.slane %v3283_v16, 4  ;;  %v3294_v17 = vshrl.u32 %v3014_v59, 16  ;;  %v3020_v32 = vld [vmem:[#allocation2 + $0xa8] sm:$0xf] }
 0x105   : > { %v10683_v21 = vcombine.low %v8396_v4, %v8398_v5  ;;  %7369 = vmatprep.mubr.bf16.mxu0 %v8851_v41  ;;  %v8940_v36 = vcombine.low %v3210_v38, %v3220_v49  ;;  %v3276_v47 = vor.u32 %v3275_v11, %v3272_v39  ;;  %v3297_v52 = vshll.u32 %v3014_v59, 16  ;;  %7446 = vmatpush3.bf16.msra.mxu0 %v7677_v7  ;;  %v8951_v41 = vld [vmem:[#allocation2 + $0xa0] sm:$0xf]  ;;  %v7668_v38 = vld [vmem:[#allocation2 + $0x18] sm:$0xff]   ;;  %v8957_v59 = vld [vmem:[#allocation2 + $0xa4] sm:$0x1] }
 0x106   : > { %v3303_v25 = vshll.u32 %v8908_v60, 16  ;;  %v8943_v61 = vcombine.low %v3234_v19, %v3244_v23  ;;  %v3286_v42 = vor.u32 %v3285_v24, %v8927_v33  ;;  %v8949_v4 = vrot.slane %v3289_v46, 5  ;;  %10684 = vst [vmem:[#allocation11_spill] sm:$0xff] %v8951_v41  ;;  %7447 = vmatprep.subr.bf16.mxu0 %v7681_v20  ;;  %10685 = vst [vmem:[#allocation12_spill] sm:$0xff] %v8957_v59  ;;  %v8967_v11 = vld [vmem:[#allocation2 + $0xac] sm:$0xf] }
 0x107   : > { %7246 = vmatmul.mubr.bf16.gmra.mxu1 %v10683_v21  ;;  %v3296_v5 = vrot.slane %v3294_v17, 4  ;;  %v3299_v44 = vrot.slane %v3297_v52, 5  ;;  %v3307_v7 = vshrl.u32 %v8908_v60, 16  ;;  %v3318_v35 = vshrl.u32 %v3017_v31, 16  ;;  %10686 = vst [vmem:[#allocation13_spill] sm:$0xff] %v8967_v11  ;;  %v7670_v16 = vld [vmem:[#allocation2 + $0x24] sm:$0xff]  }
 0x108   : > { %7313 = vmatprep.mubr.bf16.mxu1 %v7666_v55  ;;  %v8953_v43 = vrot.slane %v3303_v25, 5  ;;  %v3313_v55 = vshll.u32 %v8929_v53, 16  ;;  %v3321_v49 = vshll.u32 %v3017_v31, 16  ;;  %v8969_v46 = vrot.slane %v3276_v47, 4  ;;  %v7671_v31 = vld [vmem:[%s10623_s3 + $0x170] sm:$0xff]  }
 0x109   : > { %v3300_v19 = vor.u32 %v3299_v44, %v3296_v5  ;;  %v3309_v23 = vrot.slane %v3307_v7, 4  ;;  %v3327_v24 = vshll.u32 %v8951_v41, 16  ;;  %7448 = vmatpush3.bf16.msra.mxu0 %v7681_v20  ;;  %v8972_v17 = vrot.slane %v3286_v42, 4  ;;  %v7689_v20 = vld [vmem:[%s10623_s3 + $0x190] sm:$0xff]  }
 0x10a   : > { %v3320_v21 = vrot.slane %v3318_v35, 4  ;;  %v3323_v52 = vrot.slane %v3321_v49, 5  ;;  %v3331_v25 = vshrl.u32 %v8951_v41, 16  ;;  %7449 = vmatprep.subr.bf16.mxu0 %v7685_v14  ;;  %v8981_v5 = vrot.slane %v3313_v55, 5  ;;  %v7672_v55 = vld [vmem:[#allocation2 + $0x30] sm:$0xff]   ;;  %v7674_v41 = vld [vmem:[#allocation2 + $0x3c] sm:$0xff]  }
 0x10b   : > { %v8978_v13 = vrot.slane %v3300_v19, 4  ;;  %v3310_v47 = vor.u32 %v3309_v23, %v8953_v43  ;;  %v8983_v44 = vrot.slane %v3327_v24, 5  ;;  %v3337_v35 = vshll.u32 %v8957_v59, 16 }
 0x10c   : > { %7370 = vmatmul.mubr.bf16.gmra.mxu0 %v8897_v57  ;;  %v3324_v42 = vor.u32 %v3323_v52, %v3320_v21  ;;  %v3333_v7 = vrot.slane %v3331_v25, 4  ;;  %v3342_v49 = vshrl.u32 %v3020_v32, 16  ;;  %v8997_v57 = vld [vmem:[#allocation2 + $0xb0] sm:$0x1]  ;;  %v3345_v23 = vshll.u32 %v3020_v32, 16 }
 0x10d   : > { %7373 = vmatprep.mubr.bf16.mxu0 %v8903_v22  ;;  %v8995_v19 = vrot.slane %v3310_v47, 4  ;;  %10687 = vst [vmem:[#allocation14_spill] sm:$0xff] %v8997_v57  ;;  %v3351_v24 = vshll.u32 %v8967_v11, 16  ;;  %v9004_v22 = vrot.slane %v3337_v35, 5  ;;  %v3023_v25 = vld [vmem:[#allocation2 + $0xb4] sm:$0xf]  ;;  %7450 = vmatpush3.bf16.msra.mxu0 %v7685_v14 }
 0x10e   : > { %v9001_v21 = vrot.slane %v3324_v42, 4  ;;  %v3344_v52 = vrot.slane %v3342_v49, 4  ;;  %v7675_v47 = vld [vmem:[%s10623_s3 + $0x168] sm:$0xff]   ;;  %v3347_v32 = vrot.slane %v3345_v23, 5  ;;  %v3355_v42 = vshrl.u32 %v8967_v11, 16  ;;  %7451 = vmatprep.subr.bf16.mxu0 %v7689_v20 }
 0x10f   : > { %7314 = vmatmul.mubr.bf16.vlgmr.msra.gmra.mxu1 %v7668_v38  ;;  %v3334_v38 = vor.u32 %v3333_v7, %v8983_v44  ;;  %v9016_v7 = vld [vmem:[#allocation2 + $0xb8] sm:$0xf]  ;;  %v3361_v23 = vshll.u32 %v8997_v57, 16  ;;  %v9032_v11 = vld [vmem:[#allocation2 + $0xbc] sm:$0x1]  ;;  %v3366_v35 = vshrl.u32 %v3023_v25, 16 }
 0x110   : > { %7394 = vmatpush3.bf16.msra.mxu1 %v8759_v27  ;;  %7317 = vmatprep.mubr.bf16.mxu1 %v7670_v16  ;;  %v9013_v16 = vrot.slane %v3351_v24, 5  ;;  %10688 = vst [vmem:[#allocation15_spill] sm:$0xff] %v9016_v7  ;;  %v7693_v24 = vld [vmem:[%s10623_s3 + $0x188] sm:$0xff]   ;;  %v3348_v27 = vor.u32 %v3347_v32, %v3344_v52  ;;  %v3357_v39 = vrot.slane %v3355_v42, 4  ;;  %v3369_v59 = vshll.u32 %v3023_v25, 16 }
 0x111   : > { %7395 = vmatprep.subr.bf16.mxu1 %v7671_v31  ;;  %v9026_v49 = vrot.slane %v3334_v38, 4  ;;  %v7679_v38 = vld [vmem:[%s10623_s3 + $0x160] sm:$0xff]   ;;  %v3330_v14 = vsel %vm7901_vm9, %v9001_v21, %v8983_v44  ;;  %v3375_v32 = vshll.u32 %v9016_v7, 16  ;;  %v3379_v25 = vshrl.u32 %v9016_v7, 16  ;;  %7452 = vmatpush3.bf16.msra.mxu0 %v7689_v20  ;;  %v525_v20 = vld [vmem:[#allocation2 + $0xc8] sm:$0x1] }
 0x112   : > { %v3349_v42 = vrot.slane %v3348_v27, 4  ;;  %v3358_v57 = vor.u32 %v3357_v39, %v9013_v16  ;;  %v3363_v53 = vrot.slane %v3361_v23, 5  ;;  %v3368_v60 = vrot.slane %v3366_v35, 4  ;;  %v7697_v44 = vld [vmem:[%s10623_s3 + $0x180] sm:$0xff]   ;;  %7453 = vmatprep.subr.bf16.mxu0 %v7693_v24 }
 0x113   : > { %v3340_v52 = vsel %vm7901_vm9, %v9026_v49, %v9004_v22  ;;  %v3371_v21 = vrot.slane %v3369_v59, 5  ;;  %v9053_v22 = vrot.slane %v3375_v32, 5  ;;  %v3381_v49 = vrot.slane %v3379_v25, 4 }
 0x114   : > { %7396 = vmatpush3.bf16.msra.mxu1 %v7671_v31  ;;  %v6921_v31 = vld [vmem:[%s7826_s6 + $0x78] sm:$0xff]   ;;  %7374 = vmatmul.mubr.bf16.gmra.mxu0 %v8940_v36  ;;  %v3385_v7 = vshll.u32 %v9032_v11, 16  ;;  %v3354_v39 = vsel %vm7901_vm9, %v3349_v42, %v9013_v16  ;;  %v3359_v27 = vrot.slane %v3358_v57, 4  ;;  %v470_v25 = vsel %vm7830_vm3, 0, %v469_v30  ;;  %v9073_v30 = vld [vmem:[#allocation2 + $0xc] sm:$0xe] }
 0x115   : > { %7397 = vmatprep.subr.bf16.mxu1 %v7675_v47  ;;  %7377 = vmatprep.mubr.bf16.mxu0 %v8943_v61  ;;  %v6825_v35 = vunpack.c.l.bf16 %v6921_v31  ;;  %v6826_v23 = vunpack.c.h.bf16 %v6921_v31  ;;  %v3372_v36 = vor.u32 %v3371_v21, %v3368_v60  ;;  %v3382_v59 = vor.u32 %v3381_v49, %v9053_v22  ;;  %v7683_v61 = vld [vmem:[%s10623_s3 + $0x158] sm:$0xff]   ;;  %471 = vst [vmem:[#allocation2 + $0xc0] sm:$0x1] %v470_v25  ;;  %v10696_v25 = vld [vmem:[#allocation6_spill] sm:$0xff] }
 0x116   : > { %v3387_v32 = vrot.slane %v3385_v7, 5  ;;  %7454 = vmatpush3.bf16.msra.mxu0 %v7693_v24  ;;  %v526_v16 = vsel %vm7838_vm4, 0, %v525_v20  ;;  %v3736_v7 = vld [vmem:[#allocation2 + $0x18] sm:$0xe]  ;;  %v10690_v31 = vsel %vm7901_vm9, %v8934_v29, %v8925_v62  ;;  %v10692_v42 = vsel %vm7901_vm9, %v8972_v17, %v8949_v4  ;;  %v7676_v62 = vld [vmem:[#allocation2 + $0x48] sm:$0xff]  }
 0x117   : > { %7318 = vmatmul.mubr.bf16.gmra.mxu1 %v7672_v55  ;;  %v3364_v55 = vsel %vm7901_vm9, %v3359_v27, %v3363_v53  ;;  %v10691_v53 = vsel %vm7901_vm9, %v8932_v45, %v8901_v8  ;;  %v10693_v21 = vsel %vm7901_vm9, %v8969_v46, %v8927_v33  ;;  %v3373_v20 = vrot.slane %v3372_v36, 4  ;;  %527 = vst [vmem:[#allocation2 + $0xc8] sm:$0x1] %v526_v16  ;;  %v9098_v8 = vld [vmem:[%s10623_s3 + $0x238] sm:$0xff]   ;;  %v7758_v46 = vld [vmem:[%s10622_s2] ss:$0 sm:$0xff] }
 0x118   : > { %7321 = vmatprep.mubr.bf16.mxu1 %v7674_v41  ;;  %7398 = vmatpush3.bf16.msra.mxu1 %v7675_v47  ;;  %v7757_v41 = vld [vmem:[%s10621_s1] ss:$0 sm:$0xff]  ;;  %v6456_v24 = vcombine.low %v10691_v53, %v10690_v31  ;;  %v6457_v49 = vcombine.low %v10693_v21, %v10692_v42  ;;  %v3383_v27 = vrot.slane %v3382_v59, 4  ;;  %v10694_v45 = vsel %vm7901_vm9, %v8995_v19, %v8981_v5  ;;  %v10697_v53 = vld [vmem:[#allocation7_spill] sm:$0xff] }
 0x119   : > { %7399 = vmatprep.subr.bf16.mxu1 %v7679_v38  ;;  %v339_v60 = vmul.f32 %v7757_v41, %v6825_v35  ;;  %v340_v57 = vmul.f32 %v7757_v41, %v6826_v23  ;;  %7455 = vmatprep.subr.bf16.mxu0 %v7697_v44  ;;  %v10695_v33 = vsel %vm7901_vm9, %v8978_v13, %v8953_v43  ;;  %v7678_v23 = vld [vmem:[#allocation2 + $0x54] sm:$0xff]   ;;  %v6471_v5 = vrot.slane %v9073_v30, 9  ;;  %v3737_v43 = vld [vmem:[#allocation2 + $0x24] sm:$0xe] }
 0x11a   : > { %v9110_v29 = vcombine.low %v10695_v33, %v10694_v45  ;;  %v9112_v4 = vcombine.low %v3330_v14, %v3340_v52  ;;  %v9117_v36 = vcombine.low %v3354_v39, %v3364_v55  ;;  %v6472_v19 = vrot.slane %v3736_v7, 9  ;;  %v7687_v13 = vld [vmem:[%s10623_s3 + $0x150] sm:$0xff]   ;;  %7456 = vmatpush3.bf16.msra.mxu0 %v7697_v44  ;;  %v7691_v7 = vld [vmem:[%s10623_s3 + $0x148] sm:$0xff]  }
 0x11b   : > { %v377_v17 = vadd.f32 %v7758_v46, %v339_v60  ;;  %v378_v35 = vadd.f32 %v7758_v46, %v340_v57  ;;  %v3808_v59 = vrot.slane %v8649_v2, 5  ;;  %v3378_v14 = vsel %vm7901_vm9, %v3373_v20, %v9053_v22  ;;  %7537 = vmatprep.subr.bf16.mxu0 %v9098_v8  ;;  %v3738_v44 = vld [vmem:[#allocation2 + $0x30] sm:$0xe] }
 0x11c   : > { %7400 = vmatpush3.bf16.msra.mxu1 %v7679_v38  ;;  %v3388_v38 = vsel %vm7901_vm9, %v3383_v27, %v3387_v32  ;;  %7378 = vmatmul.mubr.bf16.gmra.mxu0 %v6456_v24  ;;  %v3801_v55 = vrot.slane %v10696_v25, 5  ;;  %v3811_v60 = vrot.slane %v8664_v26, 5  ;;  %v6473_v32 = vrot.slane %v3737_v43, 9  ;;  %v7680_v27 = vld [vmem:[#allocation2 + $0x60] sm:$0xff]  }
 0x11d   : > { %7401 = vmatprep.subr.bf16.mxu1 %v7683_v61  ;;  %v409_v52 = vmax.f32 %v377_v17, 0.0  ;;  %v410_v39 = vmax.f32 %v378_v35, 0.0  ;;  %v9132_v2 = vsel %vm8361_vm14, %v6472_v19, %v3808_v59  ;;  %v3810_v41 = vrot.slane %v3808_v59, 4  ;;  %7381 = vmatprep.mubr.bf16.mxu0 %v6457_v49  ;;  %v7682_v59 = vld [vmem:[#allocation2 + $0x6c] sm:$0xff]  }
 0x11e   : > { %v3815_v16 = vrot.slane %v8672_v10, 5  ;;  %v9140_v31 = vcombine.low %v3378_v14, %v3388_v38  ;;  %v3804_v26 = vrot.slane %v10697_v53, 5  ;;  %v3818_v42 = vrot.slane %v8694_v15, 5  ;;  %v1061_v43 = vld [vmem:[#allocation2 + $0xc8] sm:$0x1]  ;;  %v9370_v53 = vpop.f32.mrf.mxu0 }
 0x11f   : > { %7322 = vmatmul.mubr.bf16.gmra.mxu1 %v7676_v62  ;;  %v6729_v22 = vpack.c.bf16 %v409_v52, %v409_v52  ;;  %v6730_v57 = vpack.c.bf16 %v410_v39, %v410_v39  ;;  %v9145_v24 = vsel %vm8361_vm14, %v3810_v41, %v3811_v60  ;;  %v6474_v46 = vrot.slane %v3738_v44, 9  ;;  %10710 = vst [vmem:[#allocation5_spill] sm:$0xff] %v9370_v53 }
 0x120   : > { %7325 = vmatprep.mubr.bf16.mxu1 %v7678_v23  ;;  %7402 = vmatpush3.bf16.msra.mxu1 %v7683_v61  ;;  %v3739_v61 = vld [vmem:[#allocation2 + $0x3c] sm:$0xe]  ;;  %v6504_v62 = vcombine.low %v9132_v2, %v9145_v24  ;;  %v9152_v45 = vsel %vm8361_vm14, %v6473_v32, %v3815_v16  ;;  %v3817_v33 = vrot.slane %v3815_v16, 4  ;;  %v1057_v23 = vld [vmem:[#allocation2 + $0xc0] sm:$0xf]  ;;  %v3822_v15 = vrot.slane %v8706_v34, 5 }
 0x121   : > { %7403 = vmatprep.subr.bf16.mxu1 %v7687_v13  ;;  %v885_v21 = vshrl.u32 %v6729_v22, 16  ;;  %v888_v10 = vshll.u32 %v6729_v22, 16  ;;  %v893_v49 = vshrl.u32 %v6730_v57, 16  ;;  %v896_v20 = vshll.u32 %v6730_v57, 16  ;;  %v7695_v34 = vld [vmem:[%s10623_s3 + $0x140] sm:$0xff]  }
 0x122   : > { %v3825_v19 = vrot.slane %v8726_v18, 5  ;;  %v9158_v14 = vsel %vm8361_vm14, %v3817_v33, %v3818_v42  ;;  %v6475_v38 = vrot.slane %v3739_v61, 9  ;;  %v3829_v52 = vrot.slane %v8718_v56, 5  ;;  %v3740_v18 = vld [vmem:[#allocation2 + $0x48] sm:$0xe] }
 0x123   : > { %v887_v17 = vrot.slane %v885_v21, 7  ;;  %v895_v35 = vrot.slane %v893_v49, 7  ;;  %v3832_v39 = vrot.slane %v8749_v48, 5  ;;  %v9170_v56 = vsel %vm8361_vm14, %v6474_v46, %v3822_v15  ;;  %v3741_v16 = vld [vmem:[#allocation2 + $0x54] sm:$0xe]  ;;  %v9192_v46 = vld [vmem:[%s10623_s3 + $0x1f8] sm:$0xff]  }
 0x124   : > { %7404 = vmatpush3.bf16.msra.mxu1 %v7687_v13  ;;  %7382 = vmatmul.mubr.bf16.gmra.mxu0 %v9110_v29  ;;  %v6505_v13 = vcombine.low %v9152_v45, %v9158_v14  ;;  %v3824_v48 = vrot.slane %v3822_v15, 4  ;;  %v9174_v32 = vsel %vm8361_vm14, %v6475_v38, %v3829_v52  ;;  %v3831_v49 = vrot.slane %v3829_v52, 4  ;;  %v3742_v33 = vld [vmem:[#allocation2 + $0x60] sm:$0xe] }
 0x125   : > { %7405 = vmatprep.subr.bf16.mxu1 %v7691_v7  ;;  %v890_v41 = vor.u32 %v888_v10, %v887_v17  ;;  %v891_v60 = vrot.slane %v887_v17, 4  ;;  %v898_v22 = vor.u32 %v896_v20, %v895_v35  ;;  %v900_v57 = vrot.slane %v895_v35, 4  ;;  %7385 = vmatprep.mubr.bf16.mxu0 %v9112_v4 }
 0x126   : > { %v9185_v20 = vsel %vm8361_vm14, %v3824_v48, %v3825_v19  ;;  %v6476_v4 = vrot.slane %v3740_v18, 9  ;;  %v3836_v61 = vrot.slane %v8754_v28, 5  ;;  %v9198_v17 = vsel %vm8361_vm14, %v3831_v49, %v3832_v39  ;;  %v3743_v28 = vld [vmem:[#allocation2 + $0x6c] sm:$0xe] }
 0x127   : > { %7326 = vmatmul.mubr.bf16.gmra.mxu1 %v7680_v27  ;;  %v899_v42 = vsel %vm7920_vm11, %v891_v60, %v898_v22  ;;  %v1058_v21 = vsel %vm7914_vm10, %v890_v41, %v1057_v23  ;;  %v1062_v10 = vsel %vm7830_vm3, %v900_v57, %v1061_v43  ;;  %v3839_v27 = vrot.slane %v8774_v50, 5  ;;  %v7684_v43 = vld [vmem:[#allocation2 + $0x78] sm:$0xff]   ;;  %v7686_v41 = vld [vmem:[#allocation2 + $0x84] sm:$0xff]  }
 0x128   : > { %7329 = vmatprep.mubr.bf16.mxu1 %v7682_v59  ;;  %7406 = vmatpush3.bf16.msra.mxu1 %v7691_v7  ;;  %1059 = vst [vmem:[#allocation2 + $0xc0] sm:$0xf] %v1058_v21  ;;  %1060 = vst [vmem:[#allocation2 + $0xc4] sm:$0xf] %v899_v42  ;;  %v6477_v35 = vrot.slane %v3741_v16, 9  ;;  %v3843_v23 = vrot.slane %v8779_v63, 5  ;;  %v9205_v15 = vsel %vm8361_vm14, %v6476_v4, %v3836_v61 }
 0x129   : > { %1063 = vst [vmem:[#allocation2 + $0xc8] sm:$0x1] %v1062_v10  ;;  %7407 = vmatprep.subr.bf16.mxu1 %v7695_v34  ;;  %v3838_v19 = vrot.slane %v3836_v61, 4  ;;  %v3846_v59 = vrot.slane %v8797_v3, 5  ;;  %v6478_v39 = vrot.slane %v3742_v33, 9  ;;  %v3850_v63 = vrot.slane %v8813_v1, 5 }
 0x12a   : > { %v9210_v38 = vsel %vm8361_vm14, %v6477_v35, %v3843_v23  ;;  %v3845_v52 = vrot.slane %v3843_v23, 4  ;;  %v3853_v22 = vrot.slane %v8822_v54, 5  ;;  %v6479_v57 = vrot.slane %v3743_v28, 9  ;;  %v3744_v42 = vld [vmem:[#allocation2 + $0x78] sm:$0xe] }
 0x12b   : > { %v9215_v60 = vsel %vm8361_vm14, %v3838_v19, %v3839_v27  ;;  %v3857_v3 = vrot.slane %v8833_v37, 5  ;;  %v9221_v18 = vrot.slane %v3801_v55, 4  ;;  %v3852_v48 = vrot.slane %v3850_v63, 4  ;;  %v3745_v4 = vld [vmem:[#allocation2 + $0x84] sm:$0xe]  ;;  %v7694_v50 = vld [vmem:[#allocation2 + $0xb4] sm:$0xff]  }
 0x12c   : > { %7408 = vmatpush3.bf16.msra.mxu1 %v7695_v34  ;;  %v9228_v34 = vsel %vm8361_vm14, %v3845_v52, %v3846_v59  ;;  %7386 = vmatmul.mubr.bf16.gmra.mxu0 %v9117_v36  ;;  %v9235_v37 = vsel %vm8361_vm14, %v6478_v39, %v3850_v63  ;;  %v3860_v44 = vrot.slane %v8842_v51, 5  ;;  %v6480_v28 = vrot.slane %v3744_v42, 9  ;;  %v3746_v19 = vld [vmem:[#allocation2 + $0x90] sm:$0xe]  ;;  %v3747_v42 = vld [vmem:[#allocation2 + $0x9c] sm:$0xe] }
 0x12d   : > { %7489 = vmatprep.subr.bf16.mxu1 %v9192_v46  ;;  %v3859_v16 = vrot.slane %v3857_v3, 4  ;;  %7389 = vmatprep.mubr.bf16.mxu0 %v9140_v31  ;;  %v9245_v36 = vsel %vm8361_vm14, %v3852_v48, %v3853_v22  ;;  %v9249_v49 = vsel %vm8361_vm14, %v6479_v57, %v3857_v3  ;;  %v7688_v63 = vld [vmem:[#allocation2 + $0x90] sm:$0xff]   ;;  %v3864_v57 = vrot.slane %v8856_v9, 5  ;;  %v7690_v48 = vld [vmem:[#allocation2 + $0x9c] sm:$0xff]  }
 0x12e   : > { %v3867_v3 = vrot.slane %v8867_v58, 5 }
 0x12f   : > { %7330 = vmatmul.mubr.bf16.gmra.mxu1 %v7684_v43  ;;  %v3026_v29 = vld [vmem:[#allocation2 + $0xc0] sm:$0xf]  ;;  %v9239_v21 = vld [vmem:[#allocation2 + $0xc4] sm:$0xf]  ;;  %v9258_v23 = vsel %vm8361_vm14, %v3859_v16, %v3860_v44  ;;  %v6481_v16 = vrot.slane %v3745_v4, 9  ;;  %v3871_v44 = vrot.slane %v8883_v12, 5 }
 0x130   : > { %v9241_v10 = vld [vmem:[#allocation2 + $0xc8] sm:$0x1]  ;;  %7333 = vmatprep.mubr.bf16.mxu1 %v7686_v41  ;;  %v3390_v51 = vshrl.u32 %v3026_v29, 16  ;;  %v3393_v61 = vshll.u32 %v3026_v29, 16  ;;  %v3399_v27 = vshll.u32 %v9239_v21, 16  ;;  %v3403_v31 = vshrl.u32 %v9239_v21, 16 }
 0x131   : > { %v3409_v33 = vshll.u32 %v9241_v10, 16  ;;  %v9272_v9 = vsel %vm8361_vm14, %v6481_v16, %v3871_v44  ;;  %v3873_v58 = vrot.slane %v3871_v44, 4  ;;  %v10701_v4 = vld [vmem:[#allocation9_spill] sm:$0xff]  ;;  %v3749_v16 = vld [vmem:[#allocation2 + $0xb4] sm:$0xe]  ;;  %v3909_v6 = vrot.slane %v9241_v10, 5 }
 0x132   : > { %v3392_v59 = vrot.slane %v3390_v51, 4  ;;  %v3395_v43 = vrot.slane %v3393_v61, 5  ;;  %v3401_v52 = vrot.slane %v3399_v27, 5  ;;  %v3405_v39 = vrot.slane %v3403_v31, 4  ;;  %v10700_v27 = vld [vmem:[#allocation8_spill] sm:$0xff] }
 0x133   : > { %v3411_v41 = vrot.slane %v3409_v33, 5  ;;  %v9267_v51 = vsel %vm8361_vm14, %v6480_v28, %v3864_v57  ;;  %v3866_v61 = vrot.slane %v3864_v57, 4  ;;  %v3874_v31 = vrot.slane %v10700_v27, 5  ;;  %v10702_v28 = vld [vmem:[#allocation10_spill] sm:$0xff]  ;;  %v3748_v57 = vld [vmem:[#allocation2 + $0xa8] sm:$0xe] }
 0x134   : > { %v3396_v29 = vor.u32 %v3395_v43, %v3392_v59  ;;  %v3406_v35 = vor.u32 %v3405_v39, %v3401_v52  ;;  %v6482_v33 = vrot.slane %v3746_v19, 9  ;;  %v3878_v59 = vrot.slane %v10701_v4, 5  ;;  %v10705_v4 = vld [vmem:[#allocation13_spill] sm:$0xff]  ;;  %v7696_v25 = vld [vmem:[#allocation2 + $0xc0] sm:$0xff]  }
 0x135   : > { %v9276_v12 = vsel %vm8361_vm14, %v3866_v61, %v3867_v3  ;;  %v3881_v43 = vrot.slane %v10702_v28, 5  ;;  %v6483_v39 = vrot.slane %v3747_v42, 9  ;;  %v9288_v3 = vsel %vm8361_vm14, %v3873_v58, %v3874_v31  ;;  %v7692_v31 = vld [vmem:[#allocation2 + $0xa8] sm:$0xff]  }
 0x136   : > { %v3397_v22 = vrot.slane %v3396_v29, 4  ;;  %v3407_v54 = vrot.slane %v3406_v35, 4  ;;  %v7698_v29 = vld [vmem:[#allocation2 + $0x18] sm:$0xff]   ;;  %v6484_v27 = vrot.slane %v3748_v57, 9  ;;  %v3892_v28 = vrot.slane %v10705_v4, 5 }
 0x137   : > { %7334 = vmatmul.mubr.bf16.gmra.mxu1 %v7688_v63  ;;  %v472_v63 = vld [vmem:[#allocation2 + $0xcc] sm:$0x1]  ;;  %v6485_v42 = vrot.slane %v3749_v16, 9  ;;  %v3802_v10 = vsel %vm8361_vm14, %v6471_v5, %v3801_v55 }
 0x138   : > { %7337 = vmatprep.mubr.bf16.mxu1 %v7690_v48  ;;  %v3402_v35 = vsel %vm7901_vm9, %v3397_v22, %v3401_v52  ;;  %v3412_v19 = vsel %vm7901_vm9, %v3407_v54, %v3411_v41  ;;  %v9294_v48 = vsel %vm8361_vm14, %v6482_v33, %v3878_v59  ;;  %v3880_v52 = vrot.slane %v3878_v59, 4  ;;  %v10703_v22 = vld [vmem:[#allocation11_spill] sm:$0xff]  ;;  %v10704_v41 = vld [vmem:[#allocation12_spill] sm:$0xff]  ;;  %v7709_v55 = vld [vmem:[%s10623_s3 + $0x228] sm:$0xff]  }
 0x139   : > { %v6462_v44 = vcombine.low %v3402_v35, %v3412_v19  ;;  %v3885_v54 = vrot.slane %v10703_v22, 5  ;;  %v3888_v61 = vrot.slane %v10704_v41, 5  ;;  %v10706_v35 = vld [vmem:[#allocation14_spill] sm:$0xff]  ;;  %v10707_v33 = vld [vmem:[#allocation15_spill] sm:$0xff]  ;;  %v3750_v59 = vld [vmem:[#allocation2 + $0xc0] sm:$0xe] }
 0x13a   : > { %v9301_v58 = vsel %vm8361_vm14, %v3880_v52, %v3881_v43  ;;  %v3895_v19 = vrot.slane %v10706_v35, 5  ;;  %v3899_v1 = vrot.slane %v10707_v33, 5  ;;  %v9313_v43 = vsel %vm8361_vm14, %v6484_v27, %v3892_v28  ;;  %v7699_v27 = vld [vmem:[#allocation2 + $0x24] sm:$0xff]  }
 0x13b   : > { %7390 = vmatmul.mubr.bf16.gmra.mxu0 %v6462_v44  ;;  %v9309_v22 = vsel %vm8361_vm14, %v6483_v39, %v3885_v54  ;;  %v3887_v44 = vrot.slane %v3885_v54, 4  ;;  %v3894_v52 = vrot.slane %v3892_v28, 4  ;;  %v473_v39 = vsel %vm7830_vm3, 0, %v472_v63  ;;  %v7702_v63 = vld [vmem:[#allocation2 + $0x30] sm:$0xff]  }
 0x13c   : > { %7457 = vmatprep.mubr.bf16.mxu0 %v7698_v29  ;;  %v9317_v16 = vsel %vm8361_vm14, %v6485_v42, %v3899_v1  ;;  %v3901_v41 = vrot.slane %v3899_v1, 4  ;;  %v3902_v29 = vrot.slane %v9032_v11, 5  ;;  %v6486_v54 = vrot.slane %v3750_v59, 9  ;;  %474 = vst [vmem:[#allocation2 + $0xcc] sm:$0x1] %v473_v39  ;;  %v7713_v59 = vld [vmem:[%s10623_s3 + $0x220] sm:$0xff]  }
 0x13d   : > { %v9322_v4 = vsel %vm8361_vm14, %v3887_v44, %v3888_v61  ;;  %v3906_v35 = vrot.slane %v9239_v21, 5  ;;  %v9331_v1 = vsel %vm8361_vm14, %v3894_v52, %v3895_v19  ;;  %v7705_v19 = vld [vmem:[%s10623_s3 + $0x230] sm:$0xff]   ;;  %v4621_v44 = vld [vmem:[#allocation2 + $0x1c] sm:$0xf]  ;;  %v9375_v52 = vpop.f32.mrf.mxu0  ;;  %v5374_v39 = vld [vmem:[#allocation2 + $0x18] sm:$0xe] }
 0x13e   : > { %v9335_v11 = vsel %vm8361_vm14, %v3901_v41, %v3902_v29  ;;  %10711 = vst [vmem:[#allocation4_spill] sm:$0xff] %v9375_v52  ;;  %v9377_v41 = vld [vmem:[#allocation2 + $0x20] sm:$0x1]  ;;  %v5440_v29 = vrot.slane %v4621_v44, 5  ;;  %v9403_v42 = vld [vmem:[#allocation2 + $0x2c] sm:$0x1] }
 0x13f   : > { %7338 = vmatmul.mubr.bf16.gmra.mxu1 %v7692_v31  ;;  %v9344_v61 = vsel %vm8361_vm14, %v6486_v54, %v3906_v35  ;;  %v3908_v31 = vrot.slane %v3906_v35, 4 }
 0x140   : > { %7341 = vmatprep.mubr.bf16.mxu1 %v7694_v50  ;;  %10708 = vst [vmem:[#allocation6_spill] sm:$0xff] %v9344_v61  ;;  %v3805_v50 = vsel %vm8361_vm14, %v9221_v18, %v3804_v26  ;;  %v7703_v26 = vld [vmem:[#allocation2 + $0x3c] sm:$0xff]   ;;  %v7706_v18 = vld [vmem:[#allocation2 + $0x48] sm:$0xff]  }
 0x141   : > { %v9362_v33 = vsel %vm8361_vm14, %v3908_v31, %v3909_v6  ;;  %v6503_v5 = vcombine.low %v3802_v10, %v3805_v50  ;;  %v4682_v6 = vshrl.u32 %v4621_v44, 16  ;;  %v7707_v31 = vld [vmem:[#allocation2 + $0x54] sm:$0xff]   ;;  %v9385_v50 = vpop.f32.mrf.mxu0 }
 0x142   : > { %10709 = vst [vmem:[#allocation7_spill] sm:$0xff] %v9362_v33  ;;  %v7717_v10 = vld [vmem:[%s10623_s3 + $0x218] sm:$0xff]   ;;  %10712 = vst [vmem:[#allocation8_spill] sm:$0xff] %v9385_v50  ;;  %v9435_v50 = vpop.f32.mrf.mxu1  ;;  %v10723_v33 = vcombine.low %v9210_v38, %v9228_v34 }
 0x143   : > { %7458 = vmatmul.mubr.bf16.vlgmr.msra.gmra.mxu0 %v7699_v27  ;;  %v4678_v27 = vshll.u32 %v4621_v44, 16  ;;  %v4623_v44 = vld [vmem:[#allocation2 + $0x24] sm:$0xf]  ;;  %v4684_v24 = vrot.slane %v4682_v6, 4  ;;  %v9405_v28 = vpop.f32.mrf.mxu0  ;;  %v4688_v6 = vshll.u32 %v9377_v41, 16  ;;  %10716 = vst [vmem:[#allocation11_spill] sm:$0xff] %v9435_v50 }
 0x144   : > { %7538 = vmatpush3.bf16.msra.mxu0 %v9098_v8  ;;  %7461 = vmatprep.mubr.bf16.mxu0 %v7702_v63  ;;  %v4620_v8 = vld [vmem:[#allocation2 + $0x18] sm:$0xf]  ;;  %v7704_v63 = vld [vmem:[%s10623_s3 + $0x1f0] sm:$0xff]   ;;  %10713 = vst [vmem:[#allocation9_spill] sm:$0xff] %v9405_v28  ;;  %v4693_v45 = vshrl.u32 %v4623_v44, 16  ;;  %v4696_v14 = vshll.u32 %v4623_v44, 16 }
 0x145   : > { %7539 = vmatprep.subr.bf16.mxu0 %v7705_v19  ;;  %v4669_v54 = vshrl.u32 %v4620_v8, 16  ;;  %v4672_v35 = vshll.u32 %v4620_v8, 16  ;;  %v9398_v2 = vrot.slane %v4678_v27, 5  ;;  %v9439_v52 = vrot.slane %v4688_v6, 5  ;;  %v4629_v6 = vld [vmem:[#allocation2 + $0x3c] sm:$0xf] }
 0x147   : > { %7342 = vmatmul.mubr.bf16.gmra.mxu1 %v7696_v25  ;;  %v7708_v25 = vld [vmem:[%s10623_s3 + $0x1e8] sm:$0xff]   ;;  %v4671_v8 = vrot.slane %v4669_v54, 4  ;;  %v4674_v30 = vrot.slane %v4672_v35, 5  ;;  %v9407_v35 = vld [vmem:[#allocation2 + $0x34] sm:$0xf]  ;;  %v4685_v44 = vor.u32 %v4684_v24, %v9398_v2 }
 0x148   : > { %7409 = vmatprep.mubr.bf16.mxu1 %v6503_v5  ;;  %7540 = vmatpush3.bf16.msra.mxu0 %v7705_v19  ;;  %v4624_v19 = vld [vmem:[#allocation2 + $0x28] sm:$0xf]  ;;  %v7710_v5 = vld [vmem:[#allocation2 + $0x60] sm:$0xff]  }
 0x149   : > { %7541 = vmatprep.subr.bf16.mxu0 %v7709_v55  ;;  %v5447_v21 = vrot.slane %v4624_v19, 5  ;;  %v4706_v54 = vshrl.u32 %v4624_v19, 16  ;;  %v4675_v7 = vor.u32 %v4674_v30, %v4671_v8  ;;  %v7725_v30 = vld [vmem:[%s10623_s3 + $0x208] sm:$0xff]   ;;  %v4698_v8 = vrot.slane %v4696_v14, 5  ;;  %v9445_v14 = vld [vmem:[#allocation2 + $0x40] sm:$0xf] }
 0x14b   : > { %7462 = vmatmul.mubr.bf16.gmra.mxu0 %v7703_v26  ;;  %v5442_v26 = vrot.slane %v5440_v29, 4 }
 0x14c   : > { %7465 = vmatprep.mubr.bf16.mxu0 %v7706_v18  ;;  %7542 = vmatpush3.bf16.msra.mxu0 %v7709_v55  ;;  %v6607_v55 = vrot.slane %v5374_v39, 9  ;;  %v5443_v18 = vrot.slane %v9377_v41, 5  ;;  %v7721_v39 = vld [vmem:[%s10623_s3 + $0x210] sm:$0xff]   ;;  %v4730_v41 = vshrl.u32 %v9407_v35, 16 }
 0x14d   : > { %7543 = vmatprep.subr.bf16.mxu0 %v7713_v59 }
 0x14e   : > { %v9415_v27 = vsel %vm8361_vm14, %v5442_v26, %v5443_v18  ;;  %v4726_v26 = vshll.u32 %v9407_v35, 16  ;;  %v4695_v18 = vrot.slane %v4693_v45, 4  ;;  %v5376_v45 = vld [vmem:[#allocation2 + $0x30] sm:$0xe] }
 0x14f   : > { %7410 = vmatmul.mubr.bf16.vlgmr.msra.gmra.mxu1 %v6504_v62  ;;  %v5375_v62 = vld [vmem:[#allocation2 + $0x24] sm:$0xe] }
 0x150   : > { %7490 = vmatpush3.bf16.msra.mxu1 %v9192_v46  ;;  %7413 = vmatprep.mubr.bf16.mxu1 %v6505_v13  ;;  %v4626_v46 = vld [vmem:[#allocation2 + $0x30] sm:$0xf]  ;;  %v4702_v13 = vshll.u32 %v4624_v19, 16  ;;  %v6608_v57 = vrot.slane %v5375_v62, 9  ;;  %v10715_v62 = vcombine.low %v9170_v56, %v9185_v20  ;;  %v9450_v56 = vrot.slane %v4675_v7, 4 }
 0x151   : > { %7491 = vmatprep.subr.bf16.mxu1 %v7704_v63  ;;  %7544 = vmatpush3.bf16.msra.mxu0 %v7713_v59  ;;  %v9411_v59 = vsel %vm8361_vm14, %v6607_v55, %v5440_v29  ;;  %v4717_v19 = vshrl.u32 %v4626_v46, 16  ;;  %v4720_v28 = vshll.u32 %v4626_v46, 16  ;;  %v7712_v29 = vld [vmem:[%s10623_s3 + $0x1e0] sm:$0xff]   ;;  %v5450_v55 = vrot.slane %v9403_v42, 5  ;;  %v7714_v46 = vld [vmem:[#allocation2 + $0x78] sm:$0xff]  }
 0x152   : > { %7545 = vmatprep.subr.bf16.mxu0 %v7717_v10  ;;  %v9430_v24 = vrot.slane %v4702_v13, 5  ;;  %v9443_v53 = vsel %vm8361_vm14, %v6608_v57, %v5447_v21  ;;  %v10717_v13 = vcombine.low %v9174_v32, %v9198_v17  ;;  %v9452_v20 = vrot.slane %v4685_v44, 4  ;;  %v7716_v57 = vld [vmem:[%s10623_s3 + $0x1d8] sm:$0xff]  }
 0x153   : > { %7466 = vmatmul.mubr.bf16.gmra.mxu0 %v7707_v31  ;;  %v5449_v31 = vrot.slane %v5447_v21, 4  ;;  %v4712_v32 = vshll.u32 %v9403_v42, 16  ;;  %v9462_v17 = vld [vmem:[#allocation2 + $0x38] sm:$0x1]  ;;  %v9464_v7 = vrot.slane %v4726_v26, 5  ;;  %v9473_v42 = vpop.f32.mrf.mxu1  ;;  %v4744_v26 = vshll.u32 %v4629_v6, 16 }
 0x154   : > { %7492 = vmatpush3.bf16.msra.mxu1 %v7704_v63  ;;  %7469 = vmatprep.mubr.bf16.mxu0 %v7710_v5  ;;  %v7711_v63 = vld [vmem:[#allocation2 + $0x6c] sm:$0xff]   ;;  %v9425_v5 = vpop.f32.mrf.mxu0  ;;  %10719 = vst [vmem:[#allocation13_spill] sm:$0xff] %v9473_v42 }
 0x155   : > { %7493 = vmatprep.subr.bf16.mxu1 %v7708_v25  ;;  %7546 = vmatpush3.bf16.msra.mxu0 %v7717_v10  ;;  %10714 = vst [vmem:[#allocation10_spill] sm:$0xff] %v9425_v5  ;;  %v4708_v10 = vrot.slane %v4706_v54, 4  ;;  %v4719_v54 = vrot.slane %v4717_v19, 4  ;;  %v9459_v21 = vsel %vm8361_vm14, %v5449_v31, %v5450_v55  ;;  %v4699_v19 = vor.u32 %v4698_v8, %v4695_v18  ;;  %v5377_v18 = vld [vmem:[#allocation2 + $0x3c] sm:$0xe] }
 0x156   : > { %7547 = vmatprep.subr.bf16.mxu0 %v7721_v39  ;;  %v9466_v44 = vpop.f32.mrf.mxu0  ;;  %v5454_v31 = vrot.slane %v9407_v35, 5  ;;  %v4741_v55 = vshrl.u32 %v4629_v6, 16  ;;  %v4754_v5 = vshrl.u32 %v9445_v14, 16  ;;  %v4736_v8 = vshll.u32 %v9462_v17, 16 }
 0x157   : > { %7414 = vmatmul.mubr.bf16.gmra.mxu1 %v10715_v62  ;;  %v4722_v62 = vrot.slane %v4720_v28, 5  ;;  %10718 = vst [vmem:[#allocation12_spill] sm:$0xff] %v9466_v44  ;;  %v7729_v28 = vld [vmem:[%s10623_s3 + $0x200] sm:$0xff]   ;;  %v5461_v35 = vrot.slane %v9445_v14, 5  ;;  %v9509_v44 = vpop.f32.mrf.mxu1  ;;  %v4746_v47 = vrot.slane %v4744_v26, 5  ;;  %v6610_v61 = vrot.slane %v5377_v18, 9 }
 0x158   : > { %7417 = vmatprep.mubr.bf16.mxu1 %v10717_v13  ;;  %7494 = vmatpush3.bf16.msra.mxu1 %v7708_v25  ;;  %v4732_v25 = vrot.slane %v4730_v41, 4  ;;  %v6609_v13 = vrot.slane %v5376_v45, 9  ;;  %v4750_v41 = vshll.u32 %v9445_v14, 16  ;;  %v5457_v45 = vrot.slane %v9462_v17, 5  ;;  %10722 = vst [vmem:[#allocation15_spill] sm:$0xff] %v9509_v44  ;;  %v7718_v14 = vld [vmem:[#allocation2 + $0x90] sm:$0xff]  }
 0x159   : > { %7495 = vmatprep.subr.bf16.mxu1 %v7712_v29  ;;  %7548 = vmatpush3.bf16.msra.mxu0 %v7721_v39  ;;  %v4709_v39 = vor.u32 %v4708_v10, %v9430_v24  ;;  %v9486_v10 = vld [vmem:[#allocation2 + $0x44] sm:$0x1]  ;;  %v10721_v17 = vcombine.low %v9205_v15, %v9215_v60  ;;  %v4633_v60 = vld [vmem:[#allocation2 + $0x4c] sm:$0xf] }
 0x15a   : > { %7549 = vmatprep.subr.bf16.mxu0 %v7725_v30  ;;  %v4733_v6 = vor.u32 %v4732_v25, %v9464_v7  ;;  %v9504_v50 = vsel %vm8361_vm14, %v6609_v13, %v5454_v31  ;;  %v7715_v25 = vld [vmem:[#allocation2 + $0x84] sm:$0xff]   ;;  %v5464_v15 = vrot.slane %v9486_v10, 5 }
 0x15b   : > { %7470 = vmatmul.mubr.bf16.gmra.mxu0 %v7711_v63  ;;  %v4723_v63 = vor.u32 %v4722_v62, %v4719_v54  ;;  %v9496_v54 = vpop.f32.mrf.mxu0  ;;  %v9498_v62 = vrot.slane %v4699_v19, 4  ;;  %v9500_v42 = vrot.slane %v4709_v39, 4  ;;  %v9511_v19 = vrot.slane %v4750_v41, 5 }
 0x15c   : > { %7496 = vmatpush3.bf16.msra.mxu1 %v7712_v29  ;;  %7473 = vmatprep.mubr.bf16.mxu0 %v7714_v46  ;;  %v7720_v29 = vld [vmem:[%s10623_s3 + $0x1d0] sm:$0xff]   ;;  %v9491_v46 = vrot.slane %v4712_v32, 5  ;;  %10720 = vst [vmem:[#allocation14_spill] sm:$0xff] %v9496_v54  ;;  %v4632_v32 = vld [vmem:[#allocation2 + $0x48] sm:$0xf]  ;;  %v4743_v54 = vrot.slane %v4741_v55, 4 }
 0x15d   : > { %7497 = vmatprep.subr.bf16.mxu1 %v7716_v57  ;;  %7550 = vmatpush3.bf16.msra.mxu0 %v7725_v30  ;;  %v5456_v30 = vrot.slane %v5454_v31, 4  ;;  %v4756_v39 = vrot.slane %v4754_v5, 4  ;;  %v4724_v13 = vrot.slane %v4723_v63, 4  ;;  %v4738_v31 = vrot.slane %v4736_v8, 5  ;;  %v7724_v55 = vld [vmem:[%s10623_s3 + $0x1c8] sm:$0xff]   ;;  %v9520_v44 = vpop.f32.mrf.mxu0 }
 0x15e   : > { %7551 = vmatprep.subr.bf16.mxu0 %v7729_v28  ;;  %v4734_v26 = vrot.slane %v4733_v6, 4  ;;  %v5463_v41 = vrot.slane %v5461_v35, 4  ;;  %v4765_v5 = vshrl.u32 %v4632_v32, 16  ;;  %10724 = vst [vmem:[#allocation16_spill] sm:$0xff] %v9520_v44  ;;  %v4705_v38 = vsel %vm7901_vm9, %v9498_v62, %v9430_v24  ;;  %v9534_v8 = vld [vmem:[#allocation2 + $0x50] sm:$0x1] }
 0x15f   : > { %7418 = vmatmul.mubr.bf16.gmra.mxu1 %v10721_v17  ;;  %v4768_v17 = vshll.u32 %v4632_v32, 16  ;;  %v9528_v34 = vsel %vm8361_vm14, %v5456_v30, %v5457_v45  ;;  %v4747_v18 = vor.u32 %v4746_v47, %v4743_v54  ;;  %v4757_v63 = vor.u32 %v4756_v39, %v9511_v19  ;;  %v5378_v6 = vld [vmem:[#allocation2 + $0x48] sm:$0xe]  ;;  %v7728_v45 = vld [vmem:[%s10623_s3 + $0x1c0] sm:$0xff]  }
 0x160   : > { %7421 = vmatprep.mubr.bf16.mxu1 %v10723_v33  ;;  %7498 = vmatpush3.bf16.msra.mxu1 %v7716_v57  ;;  %v4760_v33 = vshll.u32 %v9486_v10, 16  ;;  %v5468_v57 = vrot.slane %v4633_v60, 5  ;;  %v4774_v32 = vshll.u32 %v4633_v60, 16  ;;  %v4778_v44 = vshrl.u32 %v4633_v60, 16  ;;  %v7719_v62 = vld [vmem:[#allocation2 + $0x9c] sm:$0xff]  }
 0x161   : > { %7499 = vmatprep.subr.bf16.mxu1 %v7720_v29  ;;  %7552 = vmatpush3.bf16.msra.mxu0 %v7729_v28  ;;  %v9531_v28 = vpop.f32.mrf.mxu1  ;;  %v4715_v24 = vsel %vm7901_vm9, %v9500_v42, %v9491_v46  ;;  %v4729_v10 = vsel %vm7901_vm9, %v4724_v13, %v9464_v7  ;;  %v9545_v47 = vsel %vm8361_vm14, %v6610_v61, %v5461_v35  ;;  %v4767_v42 = vrot.slane %v4765_v5, 4  ;;  %v9556_v7 = vpop.f32.mrf.mxu0  ;;  %v7722_v5 = vld [vmem:[#allocation2 + $0xa8] sm:$0xff]  }
 0x162   : > { %10725 = vst [vmem:[#allocation17_spill] sm:$0xff] %v9531_v28  ;;  %v9554_v54 = vsel %vm8361_vm14, %v5463_v41, %v5464_v15  ;;  %v4770_v46 = vrot.slane %v4768_v17, 5  ;;  %v4762_v30 = vrot.slane %v4760_v33, 5  ;;  %v6611_v61 = vrot.slane %v5378_v6, 9  ;;  %v4636_v33 = vld [vmem:[#allocation2 + $0x58] sm:$0xf] }
 0x163   : > { %7474 = vmatmul.mubr.bf16.gmra.mxu0 %v7715_v25  ;;  %v5470_v35 = vrot.slane %v5468_v57, 4  ;;  %v5471_v25 = vrot.slane %v9534_v8, 5  ;;  %v9562_v39 = vpop.f32.mrf.mxu1  ;;  %v4748_v13 = vrot.slane %v4747_v18, 4  ;;  %v9564_v15 = vrot.slane %v4774_v32, 5  ;;  %v4635_v18 = vld [vmem:[#allocation2 + $0x54] sm:$0xf] }
 0x164   : > { %7477 = vmatprep.mubr.bf16.mxu0 %v7718_v14  ;;  %7500 = vmatpush3.bf16.msra.mxu1 %v7720_v29  ;;  %v4739_v29 = vsel %vm7901_vm9, %v4734_v26, %v4738_v31  ;;  %v10726_v14 = vcombine.low %v9235_v37, %v9245_v36  ;;  %10727 = vst [vmem:[#allocation18_spill] sm:$0xff] %v9562_v39  ;;  %v4758_v31 = vrot.slane %v4757_v63, 4  ;;  %v4780_v60 = vrot.slane %v4778_v44, 4  ;;  %v5379_v26 = vld [vmem:[#allocation2 + $0x54] sm:$0xe] }
 0x165   : > { %7501 = vmatprep.subr.bf16.mxu1 %v7724_v55  ;;  %v10728_v41 = vcombine.low %v9249_v49, %v9258_v23  ;;  %v10729_v37 = vsel %vm7901_vm9, %v9452_v20, %v9439_v52  ;;  %v10730_v36 = vsel %vm7901_vm9, %v9450_v56, %v9398_v2  ;;  %v9585_v23 = vcombine.low %v4705_v38, %v4715_v24  ;;  %v9591_v2 = vpop.f32.mrf.mxu0  ;;  %v4638_v32 = vld [vmem:[#allocation2 + $0x60] sm:$0xf]  ;;  %v9602_v24 = vpop.f32.mrf.mxu1 }
 0x166   : > { %v9579_v17 = vcombine.low %v10730_v36, %v10729_v37  ;;  %v4771_v20 = vor.u32 %v4770_v46, %v4767_v42  ;;  %10731 = vst [vmem:[#allocation19_spill] sm:$0xff] %v9591_v2  ;;  %v9595_v56 = vsel %vm8361_vm14, %v6611_v61, %v5468_v57  ;;  %v9599_v63 = vsel %vm8361_vm14, %v5470_v35, %v5471_v25  ;;  %v9610_v42 = vld [vmem:[#allocation2 + $0x5c] sm:$0x1]  ;;  %v9612_v25 = vld [vmem:[#allocation2 + $0x64] sm:$0xf] }
 0x167   : > { %7422 = vmatmul.mubr.bf16.gmra.mxu1 %v10726_v14  ;;  %v4784_v38 = vshll.u32 %v9534_v8, 16  ;;  %v6612_v6 = vrot.slane %v5379_v26, 9  ;;  %10732 = vst [vmem:[#allocation20_spill] sm:$0xff] %v9602_v24  ;;  %v4781_v57 = vor.u32 %v4780_v60, %v9564_v15  ;;  %v5475_v46 = vrot.slane %v4636_v33, 5  ;;  %v9618_v60 = vpop.f32.mrf.mxu0  ;;  %v9629_v37 = vld [vmem:[#allocation2 + $0x70] sm:$0xf] }
 0x168   : > { %7425 = vmatprep.mubr.bf16.mxu1 %v10728_v41  ;;  %7502 = vmatpush3.bf16.msra.mxu1 %v7724_v55  ;;  %v9587_v55 = vcombine.low %v4729_v10, %v4739_v29  ;;  %v4753_v10 = vsel %vm7901_vm9, %v4748_v13, %v9511_v19  ;;  %v4763_v29 = vsel %vm7901_vm9, %v4758_v31, %v4762_v30  ;;  %v4789_v8 = vshrl.u32 %v4635_v18, 16  ;;  %v7723_v31 = vld [vmem:[#allocation2 + $0xb4] sm:$0xff]  }
 0x169   : > { %7503 = vmatprep.subr.bf16.mxu1 %v7728_v45  ;;  %v4792_v61 = vshll.u32 %v4635_v18, 16  ;;  %v4798_v35 = vshll.u32 %v4636_v33, 16  ;;  %v9616_v19 = vrot.slane %v4771_v20, 4  ;;  %v4813_v13 = vshrl.u32 %v4638_v32, 16  ;;  %10733 = vst [vmem:[#allocation21_spill] sm:$0xff] %v9618_v60  ;;  %v9634_v20 = vpop.f32.mrf.mxu1 }
 0x16a   : > { %v4816_v30 = vshll.u32 %v4638_v32, 16  ;;  %v9620_v26 = vcombine.low %v4753_v10, %v4763_v29  ;;  %v9622_v41 = vrot.slane %v4784_v38, 5  ;;  %v10734_v36 = vcombine.low %v9267_v51, %v9276_v12  ;;  %10735 = vst [vmem:[#allocation22_spill] sm:$0xff] %v9634_v20  ;;  %v4641_v10 = vld [vmem:[#allocation2 + $0x6c] sm:$0xf]  ;;  %v7726_v29 = vld [vmem:[#allocation2 + $0xc0] sm:$0xff]   ;;  %v9650_v20 = vpop.f32.mrf.mxu0 }
 0x16b   : > { %7478 = vmatmul.mubr.bf16.gmra.mxu0 %v7719_v62  ;;  %v4802_v62 = vshrl.u32 %v4636_v33, 16  ;;  %v9636_v33 = vrot.slane %v4781_v57, 4  ;;  %v5477_v18 = vrot.slane %v5475_v46, 4  ;;  %v4822_v38 = vshll.u32 %v9612_v25, 16  ;;  %v5380_v57 = vld [vmem:[#allocation2 + $0x60] sm:$0xe] }
 0x16c   : > { %7481 = vmatprep.mubr.bf16.mxu0 %v7722_v5  ;;  %7504 = vmatpush3.bf16.msra.mxu1 %v7728_v45  ;;  %v9626_v45 = vsel %vm8361_vm14, %v6612_v6, %v5475_v46  ;;  %v5478_v5 = vrot.slane %v9610_v42, 5  ;;  %v4826_v32 = vshrl.u32 %v9612_v25, 16  ;;  %v10736_v6 = vcombine.low %v9272_v9, %v9288_v3  ;;  %10737 = vst [vmem:[#allocation23_spill] sm:$0xff] %v9650_v20  ;;  %v4640_v9 = vld [vmem:[#allocation2 + $0x68] sm:$0x1] }
 0x16d   : > { %v4791_v14 = vrot.slane %v4789_v8, 4  ;;  %v4794_v52 = vrot.slane %v4792_v61, 5  ;;  %v9643_v49 = vrot.slane %v4798_v35, 5  ;;  %v4804_v51 = vrot.slane %v4802_v62, 4  ;;  %v9654_v35 = vpop.f32.mrf.mxu1  ;;  %v4643_v20 = vld [vmem:[#allocation2 + $0x74] sm:$0x1] }
 0x16e   : > { %v5482_v46 = vrot.slane %v9612_v25, 5  ;;  %v4818_v44 = vrot.slane %v4816_v30, 5  ;;  %v4837_v3 = vshrl.u32 %v4641_v10, 16  ;;  %v4846_v8 = vshll.u32 %v9629_v37, 16  ;;  %10738 = vst [vmem:[#allocation24_spill] sm:$0xff] %v9654_v35 }
 0x16f   : > { %7426 = vmatmul.mubr.bf16.gmra.mxu1 %v10734_v36  ;;  %v4815_v36 = vrot.slane %v4813_v13, 4  ;;  %v4850_v61 = vshrl.u32 %v9629_v37, 16  ;;  %v9658_v62 = vsel %vm8361_vm14, %v5477_v18, %v5478_v5  ;;  %v4808_v25 = vshll.u32 %v9610_v42, 16 }
 0x170   : > { %7429 = vmatprep.mubr.bf16.mxu1 %v10736_v6  ;;  %v4840_v6 = vshll.u32 %v4641_v10, 16  ;;  %v9661_v13 = vrot.slane %v4822_v38, 5  ;;  %v4828_v30 = vrot.slane %v4826_v32, 4  ;;  %v4787_v10 = vsel %vm7901_vm9, %v9636_v33, %v9622_v41  ;;  %v5381_v38 = vld [vmem:[#allocation2 + $0x6c] sm:$0xe] }
 0x171   : > { %v4795_v12 = vor.u32 %v4794_v52, %v4791_v14  ;;  %v4805_v24 = vor.u32 %v4804_v51, %v9643_v49  ;;  %v6613_v35 = vrot.slane %v5380_v57, 9  ;;  %v5484_v39 = vrot.slane %v5482_v46, 4  ;;  %v9675_v14 = vpop.f32.mrf.mxu1  ;;  %v7727_v41 = vld [vmem:[#allocation2 + $0xcc] sm:$0xff]  }
 0x172   : > { %v5485_v28 = vrot.slane %v4640_v9, 5  ;;  %v4819_v5 = vor.u32 %v4818_v44, %v4815_v36  ;;  %v4832_v18 = vshll.u32 %v4640_v9, 16  ;;  %v4839_v32 = vrot.slane %v4837_v3, 4  ;;  %10741 = vst [vmem:[#allocation26_spill] sm:$0xff] %v9675_v14 }
 0x173   : > { %7482 = vmatmul.mubr.bf16.gmra.mxu0 %v7723_v31  ;;  %v4644_v31 = vld [vmem:[#allocation2 + $0x78] sm:$0xf]  ;;  %v9668_v42 = vpop.f32.mrf.mxu0  ;;  %v9670_v60 = vrot.slane %v4846_v8, 5  ;;  %v4852_v2 = vrot.slane %v4850_v61, 4  ;;  %v10740_v52 = vcombine.low %v9294_v48, %v9301_v58  ;;  %v4829_v33 = vor.u32 %v4828_v30, %v9661_v13 }
 0x174   : > { %7485 = vmatprep.mubr.bf16.mxu0 %v7726_v29  ;;  %10739 = vst [vmem:[#allocation25_spill] sm:$0xff] %v9668_v42  ;;  %v4842_v29 = vrot.slane %v4840_v6, 5  ;;  %v5489_v44 = vrot.slane %v9629_v37, 5  ;;  %v4861_v51 = vshrl.u32 %v4644_v31, 16  ;;  %v4864_v57 = vshll.u32 %v4644_v31, 16 }
 0x175   : > { %v10742_v36 = vcombine.low %v9309_v22, %v9322_v4  ;;  %v9682_v9 = vpop.f32.mrf.mxu0  ;;  %v4796_v3 = vrot.slane %v4795_v12, 4  ;;  %v4806_v6 = vrot.slane %v4805_v24, 4  ;;  %v4810_v8 = vrot.slane %v4808_v25, 5  ;;  %v9695_v24 = vld [vmem:[#allocation2 + $0x7c] sm:$0xf]  ;;  %v9697_v25 = vpop.f32.mrf.mxu1 }
 0x176   : > { %10743 = vst [vmem:[#allocation27_spill] sm:$0xff] %v9682_v9  ;;  %v9686_v48 = vsel %vm8361_vm14, %v6613_v35, %v5482_v46  ;;  %v9690_v58 = vsel %vm8361_vm14, %v5484_v39, %v5485_v28  ;;  %v4834_v37 = vrot.slane %v4832_v18, 5  ;;  %v6614_v61 = vrot.slane %v5381_v38, 9  ;;  %10745 = vst [vmem:[#allocation29_spill] sm:$0xff] %v9697_v25 }
 0x177   : > { %7430 = vmatmul.mubr.bf16.gmra.mxu1 %v10740_v52  ;;  %v5492_v30 = vrot.slane %v4643_v20, 5  ;;  %v9692_v31 = vpop.f32.mrf.mxu0  ;;  %v4820_v22 = vrot.slane %v4819_v5, 4  ;;  %v4843_v4 = vor.u32 %v4842_v29, %v4839_v32  ;;  %v4853_v52 = vor.u32 %v4852_v2, %v9670_v60  ;;  %v4647_v29 = vld [vmem:[#allocation2 + $0x84] sm:$0xf] }
 0x178   : > { %7433 = vmatprep.mubr.bf16.mxu1 %v10742_v36  ;;  %10744 = vst [vmem:[#allocation28_spill] sm:$0xff] %v9692_v31  ;;  %v4856_v12 = vshll.u32 %v4643_v20, 16  ;;  %v4830_v46 = vrot.slane %v4829_v33, 4  ;;  %v5491_v35 = vrot.slane %v5489_v44, 4  ;;  %v4863_v36 = vrot.slane %v4861_v51, 4 }
 0x179   : > { %v4866_v28 = vrot.slane %v4864_v57, 5  ;;  %v9699_v39 = vpop.f32.mrf.mxu0  ;;  %v10747_v18 = vcombine.low %v9411_v59, %v9415_v27  ;;  %v10748_v2 = vsel %vm7901_vm9, %v9616_v19, %v9564_v15  ;;  %v4801_v38 = vsel %vm7901_vm9, %v4796_v3, %v9643_v49  ;;  %v5382_v27 = vld [vmem:[#allocation2 + $0x78] sm:$0xe]  ;;  %v4646_v3 = vld [vmem:[#allocation2 + $0x80] sm:$0x1] }
 0x17a   : > { %10746 = vst [vmem:[#allocation30_spill] sm:$0xff] %v9699_v39  ;;  %v9709_v20 = vcombine.low %v10748_v2, %v4787_v10  ;;  %v4811_v32 = vsel %vm7901_vm9, %v4806_v6, %v4810_v8  ;;  %v4870_v15 = vshll.u32 %v9695_v24, 16  ;;  %v4874_v19 = vshrl.u32 %v9695_v24, 16  ;;  %v9732_v8 = vpop.f32.mrf.mxu1  ;;  %v4656_v39 = vld [vmem:[#allocation2 + $0xa8] sm:$0xf] }
 0x17b   : > { %7486 = vmatmul.mubr.bf16.gmra.mxu0 %v7727_v41  ;;  %v5496_v41 = vrot.slane %v9695_v24, 5  ;;  %v9723_v10 = vpop.f32.mrf.mxu0  ;;  %v9727_v33 = vsel %vm8361_vm14, %v6614_v61, %v5489_v44  ;;  %v4844_v49 = vrot.slane %v4843_v4, 4  ;;  %v4854_v51 = vrot.slane %v4853_v52, 4  ;;  %10750 = vst [vmem:[#allocation31_spill] sm:$0xff] %v9732_v8 }
 0x17c   : > { %7553 = vmatprep.mubr.bf16.mxu0 %v10747_v18  ;;  %v4858_v57 = vrot.slane %v4856_v12, 5  ;;  %v10749_v6 = vcombine.low %v9313_v43, %v9331_v1  ;;  %v4825_v24 = vsel %vm7901_vm9, %v4820_v22, %v9661_v13  ;;  %v4835_v18 = vsel %vm7901_vm9, %v4830_v46, %v4834_v37  ;;  %v5383_v12 = vld [vmem:[#allocation2 + $0x84] sm:$0xe] }
 0x17d   : > { %v9741_v44 = vsel %vm8361_vm14, %v5491_v35, %v5492_v30  ;;  %v4867_v61 = vor.u32 %v4866_v28, %v4863_v36  ;;  %v10751_v4 = vcombine.low %v9317_v16, %v9335_v11  ;;  %v9746_v43 = vpop.f32.mrf.mxu0  ;;  %v9748_v1 = vcombine.low %v4801_v38, %v4811_v32  ;;  %v4648_v30 = vld [vmem:[#allocation2 + $0x88] sm:$0xf]  ;;  %v9763_v38 = vld [vmem:[#allocation2 + $0x94] sm:$0xf]  ;;  %v9765_v32 = vpop.f32.mrf.mxu1 }
 0x17e   : > { %v6615_v52 = vrot.slane %v5382_v27, 9  ;;  %v4885_v2 = vshrl.u32 %v4647_v29, 16  ;;  %v4888_v13 = vshll.u32 %v4647_v29, 16  ;;  %v5498_v22 = vrot.slane %v5496_v41, 4  ;;  %10752 = vst [vmem:[#allocation32_spill] sm:$0xff] %v9765_v32 }
 0x17f   : > { %7434 = vmatmul.mubr.bf16.gmra.mxu1 %v10749_v6  ;;  %v5499_v6 = vrot.slane %v4646_v3, 5  ;;  %v9750_v37 = vrot.slane %v4870_v15, 5  ;;  %v4876_v46 = vrot.slane %v4874_v19, 4  ;;  %v9752_v35 = vpop.f32.mrf.mxu0  ;;  %v9754_v36 = vcombine.low %v4825_v24, %v4835_v18  ;;  %v4650_v18 = vld [vmem:[#allocation2 + $0x90] sm:$0xf] }
 0x180   : > { %7437 = vmatprep.mubr.bf16.mxu1 %v10751_v4  ;;  %v4849_v11 = vsel %vm7901_vm9, %v4844_v49, %v9670_v60  ;;  %v4859_v28 = vsel %vm7901_vm9, %v4854_v51, %v4858_v57  ;;  %v10753_v29 = vcombine.low %v9443_v53, %v9459_v21  ;;  %v9770_v27 = vrot.slane %v4867_v61, 4  ;;  %v4649_v49 = vld [vmem:[#allocation2 + $0x8c] sm:$0x1] }
 0x181   : > { %v4880_v15 = vshll.u32 %v4646_v3, 16  ;;  %v6616_v19 = vrot.slane %v5383_v12, 9  ;;  %v5503_v24 = vrot.slane %v4648_v30, 5  ;;  %v9772_v4 = vpop.f32.mrf.mxu0  ;;  %v10754_v60 = vcombine.low %v9504_v50, %v9528_v34  ;;  %v5384_v50 = vld [vmem:[#allocation2 + $0x90] sm:$0xe] }
 0x182   : > { %v4887_v51 = vrot.slane %v4885_v2, 4  ;;  %v4890_v57 = vrot.slane %v4888_v13, 5  ;;  %v4894_v16 = vshll.u32 %v4648_v30, 16  ;;  %v4898_v59 = vshrl.u32 %v4648_v30, 16 }
 0x183   : > { %7554 = vmatmul.mubr.bf16.vlgmr.msra.gmra.mxu0 %v10753_v29  ;;  %v9777_v5 = vcombine.low %v4849_v11, %v4859_v28  ;;  %v9781_v53 = vsel %vm8361_vm14, %v6615_v52, %v5496_v41  ;;  %v9785_v21 = vsel %vm8361_vm14, %v5498_v22, %v5499_v6  ;;  %v4877_v3 = vor.u32 %v4876_v46, %v9750_v37  ;;  %v9788_v61 = vpop.f32.mrf.mxu0  ;;  %v10757_v11 = vld [vmem:[#allocation6_spill] sm:$0xff]  ;;  %v10758_v41 = vld [vmem:[#allocation7_spill] sm:$0xff] }
 0x184   : > { %7557 = vmatprep.mubr.bf16.mxu0 %v10754_v60  ;;  %v4909_v34 = vshrl.u32 %v4650_v18, 16  ;;  %v4912_v12 = vshll.u32 %v4650_v18, 16  ;;  %v4918_v2 = vshll.u32 %v9763_v38, 16  ;;  %v4922_v13 = vshrl.u32 %v9763_v38, 16 }
 0x185   : > { %10755 = vst [vmem:[#allocation33_spill] sm:$0xff] %v9777_v5  ;;  %v9792_v30 = vpop.f32.mrf.mxu1  ;;  %v10759_v52 = vcombine.low %v10757_v11, %v10758_v41  ;;  %v9797_v28 = vrot.slane %v4880_v15, 5  ;;  %v9801_v22 = vsel %vm8361_vm14, %v6616_v19, %v5503_v24  ;;  %v5505_v6 = vrot.slane %v5503_v24, 4  ;;  %v9804_v29 = vpop.f32.mrf.mxu0  ;;  %v9812_v41 = vld [vmem:[#allocation2 + $0xa0] sm:$0xf] }
 0x186   : > { %10756 = vst [vmem:[#allocation34_spill] sm:$0xff] %v9792_v30  ;;  %v5506_v46 = vrot.slane %v4649_v49, 5  ;;  %10760 = vst [vmem:[#allocation6_spill] sm:$0xff] %v9804_v29  ;;  %v4891_v60 = vor.u32 %v4890_v57, %v4887_v51  ;;  %v9810_v11 = vrot.slane %v4894_v16, 5  ;;  %v4900_v15 = vrot.slane %v4898_v59, 4 }
 0x187   : > { %7438 = vmatmul.mubr.bf16.gmra.mxu1 %v10759_v52  ;;  %v4653_v52 = vld [vmem:[#allocation2 + $0x9c] sm:$0xf]  ;;  %v9814_v19 = vpop.f32.mrf.mxu1  ;;  %v9816_v24 = vrot.slane %v4877_v3, 4  ;;  %v4904_v30 = vshll.u32 %v4649_v49, 16  ;;  %v6617_v32 = vrot.slane %v5384_v50, 9  ;;  %v5510_v8 = vrot.slane %v9763_v38, 5  ;;  %v9821_v25 = vpop.f32.mrf.mxu0 }
 0x188   : > { %7505 = vmatprep.mubr.bf16.mxu1 %v9579_v17  ;;  %10761 = vst [vmem:[#allocation7_spill] sm:$0xff] %v9814_v19  ;;  %v9818_v17 = vld [vmem:[#allocation2 + $0x98] sm:$0x1]  ;;  %10762 = vst [vmem:[#allocation35_spill] sm:$0xff] %v9821_v25  ;;  %v4911_v18 = vrot.slane %v4909_v34, 4  ;;  %v4914_v51 = vrot.slane %v4912_v12, 5  ;;  %v10764_v19 = vcombine.low %v9545_v47, %v9554_v54  ;;  %v10766_v34 = vcombine.low %v9595_v56, %v9599_v63 }
 0x189   : > { %v9823_v16 = vrot.slane %v4918_v2, 5  ;;  %v4924_v59 = vrot.slane %v4922_v13, 4  ;;  %v9825_v57 = vpop.f32.mrf.mxu1  ;;  %v4933_v3 = vshrl.u32 %v4653_v52, 16  ;;  %v4936_v49 = vshll.u32 %v4653_v52, 16  ;;  %v9832_v38 = vpop.f32.mrf.mxu0  ;;  %v9878_v25 = vld [vmem:[#allocation2 + $0xb0] sm:$0x1] }
 0x18a   : > { %10763 = vst [vmem:[#allocation36_spill] sm:$0xff] %v9825_v57  ;;  %v4942_v14 = vshll.u32 %v9812_v41, 16  ;;  %v4946_v50 = vshrl.u32 %v9812_v41, 16  ;;  %10765 = vst [vmem:[#allocation37_spill] sm:$0xff] %v9832_v38  ;;  %v9839_v12 = vsel %vm8361_vm14, %v5505_v6, %v5506_v46  ;;  %v9841_v2 = vrot.slane %v4891_v60, 4 }
 0x18b   : > { %7558 = vmatmul.mubr.bf16.gmra.mxu0 %v10764_v19  ;;  %v4901_v47 = vor.u32 %v4900_v15, %v9810_v11  ;;  %v4928_v54 = vshll.u32 %v9818_v17, 16  ;;  %v9845_v13 = vpop.f32.mrf.mxu1  ;;  %v9851_v19 = vrot.slane %v4904_v30, 5  ;;  %v9855_v56 = vsel %vm8361_vm14, %v6617_v32, %v5510_v8  ;;  %v5385_v6 = vld [vmem:[#allocation2 + $0x9c] sm:$0xe]  ;;  %v9858_v46 = vpop.f32.mrf.mxu0 }
 0x18c   : > { %7561 = vmatprep.mubr.bf16.mxu0 %v10766_v34  ;;  %10767 = vst [vmem:[#allocation38_spill] sm:$0xff] %v9845_v13  ;;  %v5513_v63 = vrot.slane %v9818_v17, 5  ;;  %10768 = vst [vmem:[#allocation39_spill] sm:$0xff] %v9858_v46  ;;  %v5512_v60 = vrot.slane %v5510_v8, 4  ;;  %v4915_v15 = vor.u32 %v4914_v51, %v4911_v18  ;;  %v4925_v34 = vor.u32 %v4924_v59, %v9823_v16  ;;  %v4655_v13 = vld [vmem:[#allocation2 + $0xa4] sm:$0x1] }
 0x18d   : > { %v5517_v57 = vrot.slane %v9812_v41, 5  ;;  %v9862_v52 = vpop.f32.mrf.mxu1  ;;  %v4935_v30 = vrot.slane %v4933_v3, 4  ;;  %v4938_v32 = vrot.slane %v4936_v49, 5  ;;  %v9865_v31 = vrot.slane %v4942_v14, 5  ;;  %v9868_v9 = vpop.f32.mrf.mxu0  ;;  %v4657_v59 = vld [vmem:[#allocation2 + $0xac] sm:$0xf] }
 0x18e   : > { %v4948_v17 = vrot.slane %v4946_v50, 4  ;;  %10769 = vst [vmem:[#allocation40_spill] sm:$0xff] %v9868_v9  ;;  %v4897_v8 = vsel %vm7901_vm9, %v9841_v2, %v9810_v11  ;;  %v4902_v18 = vrot.slane %v4901_v47, 4  ;;  %v4930_v41 = vrot.slane %v4928_v54, 5  ;;  %v5386_v3 = vld [vmem:[#allocation2 + $0xa8] sm:$0xe] }
 0x18f   : > { %7506 = vmatmul.mubr.bf16.vlgmr.msra.gmra.mxu1 %v9585_v23  ;;  %v6618_v51 = vrot.slane %v5385_v6, 9  ;;  %v9874_v42 = vpop.f32.mrf.mxu1  ;;  %v5520_v23 = vrot.slane %v4655_v13, 5  ;;  %v5524_v14 = vrot.slane %v4657_v59, 5  ;;  %v4957_v49 = vshrl.u32 %v4656_v39, 16  ;;  %v9876_v5 = vpop.f32.mrf.mxu0 }
 0x190   : > { %7509 = vmatprep.mubr.bf16.mxu1 %v9587_v55  ;;  %v4960_v50 = vshll.u32 %v4656_v39, 16  ;;  %v4916_v55 = vrot.slane %v4915_v15, 4  ;;  %v4926_v9 = vrot.slane %v4925_v34, 4  ;;  %v5519_v46 = vrot.slane %v5517_v57, 4 }
 0x191   : > { %v4952_v38 = vshll.u32 %v4655_v13, 16  ;;  %v9880_v11 = vpop.f32.mrf.mxu1  ;;  %v10770_v2 = vcombine.low %v9626_v45, %v9658_v62  ;;  %v4939_v47 = vor.u32 %v4938_v32, %v4935_v30  ;;  %v4949_v54 = vor.u32 %v4948_v17, %v9865_v31  ;;  %v9886_v39 = vpop.f32.mrf.mxu0 }
 0x192   : > { %v4966_v6 = vshll.u32 %v4657_v59, 16  ;;  %v4970_v29 = vshrl.u32 %v4657_v59, 16  ;;  %v10771_v15 = vcombine.low %v9686_v48, %v9690_v58  ;;  %v4907_v13 = vsel %vm7901_vm9, %v4902_v18, %v9851_v19 }
 0x193   : > { %7562 = vmatmul.mubr.bf16.gmra.mxu0 %v10770_v2  ;;  %v9896_v34 = vsel %vm8361_vm14, %v5512_v60, %v5513_v63  ;;  %v9900_v45 = vsel %vm8361_vm14, %v6618_v51, %v5517_v57  ;;  %v6619_v62 = vrot.slane %v5386_v3, 9  ;;  %v1986_v30 = vpop.f32.mrf.mxu1  ;;  %v5526_v32 = vrot.slane %v5524_v14, 4  ;;  %v9903_v58 = vpop.f32.mrf.mxu0 }
 0x194   : > { %7565 = vmatprep.mubr.bf16.mxu0 %v10771_v15  ;;  %v5527_v17 = vrot.slane %v9878_v25, 5  ;;  %v4959_v59 = vrot.slane %v4957_v49, 4  ;;  %v4962_v48 = vrot.slane %v4960_v50, 5  ;;  %v4921_v19 = vsel %vm7901_vm9, %v4916_v55, %v9823_v16  ;;  %v528_v16 = vld [vmem:[#allocation2 + $0xd4] sm:$0x1] }
 0x195   : > { %v4931_v63 = vsel %vm7901_vm9, %v4926_v9, %v4930_v41  ;;  %v9912_v57 = vsel %vm8361_vm14, %v5519_v46, %v5520_v23  ;;  %v9914_v60 = vrot.slane %v4952_v38, 5  ;;  %v7223_v18 = vpop.f32.mrf.mxu1  ;;  %v9917_v51 = vrot.slane %v4939_v47, 4  ;;  %v9924_v9 = vpop.f32.mrf.mxu0  ;;  %v5387_v23 = vld [vmem:[#allocation2 + $0xb4] sm:$0xe] }
 0x196   : > { %v9919_v3 = vrot.slane %v4949_v54, 4  ;;  %v9921_v49 = vrot.slane %v4966_v6, 5  ;;  %v4972_v50 = vrot.slane %v4970_v29, 4  ;;  %v6647_v46 = vcombine.low %v9781_v53, %v9785_v21  ;;  %v9963_v54 = vld [vmem:[#allocation2 + $0xb4] sm:$0xf] }
 0x197   : > { %7510 = vmatmul.mubr.bf16.gmra.mxu1 %v9620_v26  ;;  %v10772_v26 = vsel %vm7901_vm9, %v9816_v24, %v9797_v28  ;;  %v10773_v38 = vsel %vm7901_vm9, %v9770_v27, %v9750_v37  ;;  %v1999_v53 = vpop.f32.mrf.mxu1  ;;  %v9944_v21 = vcombine.low %v4897_v8, %v4907_v13  ;;  %v9948_v28 = vsel %vm8361_vm14, %v6619_v62, %v5524_v14  ;;  %v9954_v27 = vld [vmem:[#allocation2 + $0xbc] sm:$0x1]  ;;  %v9956_v55 = vpop.f32.mrf.mxu0 }
 0x198   : > { %7513 = vmatprep.mubr.bf16.mxu1 %v9709_v20  ;;  %v9938_v41 = vcombine.low %v10773_v38, %v10772_v26  ;;  %v9952_v24 = vsel %vm8361_vm14, %v5526_v32, %v5527_v17  ;;  %v4963_v37 = vor.u32 %v4962_v48, %v4959_v59  ;;  %v9958_v2 = vcombine.low %v4921_v19, %v4931_v63  ;;  %v9979_v17 = vld [vmem:[#allocation2 + $0xb8] sm:$0xf]  ;;  %v10776_v48 = vld [vmem:[#allocation5_spill] sm:$0xff]  ;;  %v10777_v26 = vld [vmem:[#allocation4_spill] sm:$0xff] }
 0x199   : > { %v4976_v8 = vshll.u32 %v9878_v25, 16  ;;  %v529_v6 = vsel %vm7838_vm4, 0, %v528_v16  ;;  %v7224_v15 = vpop.f32.mrf.mxu1  ;;  %v10775_v13 = vcombine.low %v9727_v33, %v9741_v44  ;;  %v4973_v32 = vor.u32 %v4972_v50, %v9921_v49  ;;  %v9983_v44 = vpop.f32.mrf.mxu0  ;;  %v10778_v38 = vld [vmem:[#allocation8_spill] sm:$0xff] }
 0x19a   : > { %v6620_v59 = vrot.slane %v5387_v23, 9  ;;  %530 = vst [vmem:[#allocation2 + $0xd4] sm:$0x1] %v529_v6  ;;  %v1992_v33 = vadd.f32 %v9862_v52, %v10776_v48  ;;  %v5531_v63 = vrot.slane %v9979_v17, 5  ;;  %v1984_v50 = vadd.f32 %v9874_v42, %v10777_v26  ;;  %v10780_v48 = vld [vmem:[#allocation10_spill] sm:$0xff]  ;;  %v10782_v16 = vld [vmem:[#allocation12_spill] sm:$0xff] }
 0x19b   : > { %7566 = vmatmul.mubr.bf16.gmra.mxu0 %v10775_v13  ;;  %v1995_v23 = vadd.f32 %v9880_v11, %v10778_v38  ;;  %v2002_v14 = vpop.f32.mrf.mxu1  ;;  %v9993_v6 = vrot.slane %v4963_v37, 4  ;;  %v4981_v52 = vshrl.u32 %v9963_v54, 16  ;;  %v10779_v13 = vld [vmem:[#allocation9_spill] sm:$0xff]  ;;  %v2008_v62 = vadd.f32 %v7223_v18, %v10780_v48  ;;  %v9998_v19 = vpop.f32.mrf.mxu0  ;;  %v4663_v18 = vld [vmem:[#allocation2 + $0xc4] sm:$0xf]  ;;  %v10783_v38 = vld [vmem:[#allocation14_spill] sm:$0xff] }
 0x19c   : > { %7569 = vmatprep.mubr.bf16.mxu0 %v6647_v46  ;;  %v1987_v46 = vadd.f32 %v1986_v30, %v10779_v13  ;;  %10781 = vst [vmem:[#allocation3_spill] sm:$0xff] %v9998_v19  ;;  %v10000_v25 = vrot.slane %v4976_v8, 5  ;;  %v4984_v47 = vshll.u32 %v9963_v54, 16  ;;  %v2000_v42 = vadd.f32 %v1999_v53, %v10782_v16  ;;  %v10784_v8 = vld [vmem:[#allocation16_spill] sm:$0xff]  ;;  %v10017_v16 = vld [vmem:[#allocation2 + $0xc8] sm:$0x1] }
 0x19d   : > { %v7227_v26 = vpop.f32.mrf.mxu1  ;;  %v10005_v11 = vrot.slane %v4973_v32, 4  ;;  %v10009_v37 = vsel %vm8361_vm14, %v6620_v59, %v5531_v63  ;;  %v4990_v30 = vshll.u32 %v9979_v17, 16  ;;  %v2011_v13 = vadd.f32 %v7224_v15, %v10783_v38  ;;  %v10015_v54 = vpop.f32.mrf.mxu0  ;;  %v4662_v19 = vld [vmem:[#allocation2 + $0xc0] sm:$0xf] }
 0x19e   : > { %v2003_v48 = vadd.f32 %v2002_v14, %v10784_v8  ;;  %v5533_v53 = vrot.slane %v5531_v63, 4  ;;  %v10020_v32 = vadd.f32 %v9723_v10, %v1992_v33  ;;  %v2024_v59 = vadd.f32 %v7227_v26, %v9556_v7  ;;  %v10788_v26 = vld [vmem:[#allocation6_spill] sm:$0xff] }
 0x19f   : > { %7514 = vmatmul.mubr.bf16.gmra.mxu1 %v9748_v1  ;;  %v5388_v1 = vld [vmem:[#allocation2 + $0xc0] sm:$0xe]  ;;  %v2015_v29 = vpop.f32.mrf.mxu1  ;;  %v5538_v20 = vrot.slane %v4663_v18, 5  ;;  %v10024_v15 = vadd.f32 %v9746_v43, %v1984_v50  ;;  %v10027_v14 = vadd.f32 %v9752_v35, %v1995_v23  ;;  %v10030_v63 = vpop.f32.mrf.mxu0  ;;  %v4969_v10 = vsel %vm7901_vm9, %v9993_v6, %v9921_v49  ;;  %v10790_v49 = vld [vmem:[#allocation21_spill] sm:$0xff] }
 0x1a0   : > { %7517 = vmatprep.mubr.bf16.mxu1 %v9754_v36  ;;  %v10785_v36 = vld [vmem:[#allocation19_spill] sm:$0xff]  ;;  %v10037_v7 = vadd.f32 %v9772_v4, %v1987_v46  ;;  %v10040_v33 = vadd.f32 %v9788_v61, %v2008_v62  ;;  %v10787_v35 = vcombine.low %v9801_v22, %v9839_v12  ;;  %v6621_v50 = vrot.slane %v5388_v1, 9  ;;  %v10793_v12 = vld [vmem:[#allocation37_spill] sm:$0xff] }
 0x1a1   : > { %v2016_v38 = vadd.f32 %v2015_v29, %v10785_v36  ;;  %v7228_v43 = vpop.f32.mrf.mxu1  ;;  %v4994_v29 = vshrl.u32 %v9979_v17, 16  ;;  %v5541_v23 = vrot.slane %v10017_v16, 5  ;;  %v10048_v8 = vadd.f32 %v10788_v26, %v2000_v42  ;;  %v10051_v4 = vpop.f32.mrf.mxu0  ;;  %v10792_v46 = vld [vmem:[#allocation35_spill] sm:$0xff] }
 0x1a2   : > { %10786 = vst [vmem:[#allocation5_spill] sm:$0xff] %v10040_v33  ;;  %v2027_v6 = vadd.f32 %v7228_v43, %v10790_v49  ;;  %v10791_v61 = vcombine.low %v9855_v56, %v9896_v34  ;;  %v5005_v62 = vshrl.u32 %v4662_v19, 16  ;;  %v10057_v22 = vadd.f32 %v10792_v46, %v2011_v13  ;;  %v10794_v26 = vld [vmem:[#allocation39_spill] sm:$0xff]  ;;  %v10796_v34 = vld [vmem:[#allocation40_spill] sm:$0xff]  ;;  %v10797_v46 = vld [vmem:[#allocation33_spill] sm:$0xff] }
 0x1a3   : > { %7570 = vmatmul.mubr.bf16.gmra.mxu0 %v10787_v35  ;;  %10789 = vst [vmem:[#allocation4_spill] sm:$0xff] %v10048_v8  ;;  %v10060_v17 = vadd.f32 %v10793_v12, %v2003_v48  ;;  %v2018_v1 = vpop.f32.mrf.mxu1  ;;  %v5540_v36 = vrot.slane %v5538_v20, 4  ;;  %v5008_v35 = vshll.u32 %v4662_v19, 16  ;;  %v5014_v42 = vshll.u32 %v4663_v18, 16  ;;  %v10795_v43 = vld [vmem:[#allocation23_spill] sm:$0xff]  ;;  %v10066_v33 = vpop.f32.mrf.mxu0 }
 0x1a4   : > { %7573 = vmatprep.mubr.bf16.mxu0 %v10791_v61  ;;  %v10063_v8 = vadd.f32 %v10794_v26, %v2024_v59  ;;  %v2019_v49 = vadd.f32 %v2018_v1, %v10795_v43  ;;  %v5018_v56 = vshrl.u32 %v4663_v18, 16  ;;  %v10069_v61 = vadd.f32 %v10796_v34, %v2016_v38  ;;  %v10798_v26 = vld [vmem:[#allocation25_spill] sm:$0xff] }
 0x1a5   : > { %v10072_v13 = vadd.f32 %v9876_v5, %v2027_v6  ;;  %v7231_v48 = vpop.f32.mrf.mxu1  ;;  %v4979_v19 = vsel %vm7901_vm9, %v10005_v11, %v10000_v25  ;;  %v4983_v59 = vrot.slane %v4981_v52, 4  ;;  %v4986_v12 = vrot.slane %v4984_v47, 5  ;;  %v10083_v38 = vpop.f32.mrf.mxu0 }
 0x1a6   : > { %v10079_v1 = vrot.slane %v4990_v30, 5  ;;  %v2040_v18 = vadd.f32 %v7231_v48, %v10798_v26  ;;  %v10799_v5 = vrot.slane %v9954_v27, 5  ;;  %v4996_v43 = vrot.slane %v4994_v29, 4  ;;  %v10800_v30 = vld [vmem:[#allocation27_spill] sm:$0xff] }
 0x1a7   : > { %7518 = vmatmul.mubr.bf16.gmra.mxu1 %v10797_v46  ;;  %v10090_v34 = vadd.f32 %v9886_v39, %v2019_v49  ;;  %v2031_v25 = vpop.f32.mrf.mxu1  ;;  %v10094_v47 = vsel %vm8361_vm14, %v6621_v50, %v5538_v20  ;;  %v10098_v52 = vsel %vm8361_vm14, %v5540_v36, %v5541_v23  ;;  %v5010_v11 = vrot.slane %v5008_v35, 5  ;;  %v10101_v46 = vpop.f32.mrf.mxu0 }
 0x1a8   : > { %7521 = vmatprep.mubr.bf16.mxu1 %v9938_v41  ;;  %v5535_v6 = vsel %vm8361_vm14, %v5533_v53, %v10799_v5  ;;  %v5007_v41 = vrot.slane %v5005_v62, 4  ;;  %v2032_v48 = vadd.f32 %v2031_v25, %v10800_v30  ;;  %v10103_v53 = vrot.slane %v5014_v42, 5  ;;  %v4666_v42 = vld [vmem:[#allocation2 + $0xd0] sm:$0xf]  ;;  %v10140_v5 = vld [vmem:[#allocation2 + $0xd4] sm:$0x1] }
 0x1a9   : > { %v5020_v29 = vrot.slane %v5018_v56, 4  ;;  %v10106_v39 = vadd.f32 %v9903_v58, %v2040_v18  ;;  %v7232_v49 = vpop.f32.mrf.mxu1  ;;  %v10801_v20 = vcombine.low %v9900_v45, %v9912_v57  ;;  %v10802_v50 = vsel %vm7901_vm9, %v9919_v3, %v9914_v60  ;;  %v5389_v45 = vld [vmem:[#allocation2 + $0xcc] sm:$0xe]  ;;  %v10804_v57 = vld [vmem:[#allocation28_spill] sm:$0xff]  ;;  %v10127_v26 = vpop.f32.mrf.mxu0 }
 0x1aa   : > { %v10803_v23 = vsel %vm7901_vm9, %v9917_v51, %v9865_v31  ;;  %v10123_v36 = vcombine.low %v4969_v10, %v4979_v19  ;;  %v6652_v58 = vcombine.low %v10009_v37, %v5535_v6  ;;  %v4987_v35 = vor.u32 %v4986_v12, %v4983_v59  ;;  %v4665_v51 = vld [vmem:[#allocation2 + $0xcc] sm:$0xf] }
 0x1ab   : > { %7574 = vmatmul.mubr.bf16.gmra.mxu0 %v10801_v20  ;;  %v10121_v62 = vcombine.low %v10803_v23, %v10802_v50  ;;  %v2043_v56 = vadd.f32 %v7232_v49, %v10804_v57  ;;  %v10805_v60 = vcombine.low %v9948_v28, %v9952_v24  ;;  %v5000_v3 = vshll.u32 %v9954_v27, 16  ;;  %v2034_v19 = vpop.f32.mrf.mxu1  ;;  %v10806_v28 = vld [vmem:[#allocation30_spill] sm:$0xff]  ;;  %v10808_v57 = vld [vmem:[#allocation13_spill] sm:$0xff] }
 0x1ac   : > { %v5545_v31 = vrot.slane %v4666_v42, 5  ;;  %v10134_v10 = vadd.f32 %v9924_v9, %v2032_v48  ;;  %v4997_v37 = vor.u32 %v4996_v43, %v10079_v1  ;;  %v6653_v59 = vcombine.low %v10094_v47, %v10098_v52  ;;  %v10143_v6 = vpop.f32.mrf.mxu0 }
 0x1ad   : > { %7577 = vmatprep.mubr.bf16.mxu0 %v10805_v60  ;;  %v5011_v12 = vor.u32 %v5010_v11, %v5007_v41  ;;  %v5024_v18 = vshll.u32 %v10017_v16, 16  ;;  %v2035_v24 = vadd.f32 %v2034_v19, %v10806_v28  ;;  %v5021_v27 = vor.u32 %v5020_v29, %v10103_v53  ;;  %v7235_v30 = vpop.f32.mrf.mxu1  ;;  %v10807_v16 = vld [vmem:[#allocation11_spill] sm:$0xff] }
 0x1ae   : > { %v6622_v25 = vrot.slane %v5389_v45, 9  ;;  %v10147_v9 = vadd.f32 %v9956_v55, %v2043_v56  ;;  %v5029_v43 = vshrl.u32 %v4665_v51, 16  ;;  %v5032_v47 = vshll.u32 %v4665_v51, 16  ;;  %v10152_v48 = vpop.f32.mrf.mxu0 }
 0x1af   : > { %7522 = vmatmul.mubr.bf16.gmra.mxu1 %v9944_v21  ;;  %v5038_v52 = vshll.u32 %v4666_v42, 16  ;;  %v5042_v41 = vshrl.u32 %v4666_v42, 16  ;;  %v2056_v11 = vadd.f32 %v7235_v30, %v10807_v16  ;;  %v5547_v49 = vrot.slane %v5545_v31, 4  ;;  %v2047_v55 = vpop.f32.mrf.mxu1 }
 0x1b0   : > { %7525 = vmatprep.mubr.bf16.mxu1 %v9958_v2  ;;  %v5548_v29 = vrot.slane %v10140_v5, 5  ;;  %v10156_v20 = vadd.f32 %v9983_v44, %v2035_v24  ;;  %v4988_v50 = vrot.slane %v4987_v35, 4  ;;  %v4998_v23 = vrot.slane %v4997_v37, 4  ;;  %v10159_v42 = vpop.f32.mrf.mxu0  ;;  %v10809_v2 = vld [vmem:[#allocation3_spill] sm:$0xff] }
 0x1b1   : > { %v5002_v21 = vrot.slane %v5000_v3, 5  ;;  %v5026_v45 = vrot.slane %v5024_v18, 5  ;;  %v2048_v56 = vadd.f32 %v2047_v55, %v10808_v57  ;;  %v5012_v60 = vrot.slane %v5011_v12, 4  ;;  %v7236_v28 = vpop.f32.mrf.mxu1  ;;  %v10810_v37 = vld [vmem:[#allocation15_spill] sm:$0xff] }
 0x1b2   : > { %v5022_v51 = vrot.slane %v5021_v27, 4  ;;  %v10162_v19 = vadd.f32 %v10809_v2, %v2056_v11  ;;  %v5546_v44 = vsel %vm8361_vm14, %v6622_v25, %v5545_v31  ;;  %v5031_v24 = vrot.slane %v5029_v43, 4  ;;  %v10167_v18 = vpop.f32.mrf.mxu0 }
 0x1b3   : > { %7578 = vmatmul.mubr.bf16.gmra.mxu0 %v6652_v58  ;;  %v5034_v30 = vrot.slane %v5032_v47, 5  ;;  %v5040_v35 = vrot.slane %v5038_v52, 5  ;;  %v2059_v3 = vadd.f32 %v7236_v28, %v10810_v37  ;;  %v5549_v12 = vsel %vm8361_vm14, %v5547_v49, %v5548_v29  ;;  %v2050_v11 = vpop.f32.mrf.mxu1  ;;  %v10811_v58 = vld [vmem:[#allocation17_spill] sm:$0xff]  ;;  %v10815_v37 = vld [vmem:[#allocation24_spill] sm:$0xff] }
 0x1b4   : > { %7581 = vmatprep.mubr.bf16.mxu0 %v6653_v59  ;;  %v5044_v27 = vrot.slane %v5042_v41, 4  ;;  %v10172_v16 = vadd.f32 %v10015_v54, %v2048_v56  ;;  %v2051_v55 = vadd.f32 %v2050_v11, %v10811_v58  ;;  %v4993_v31 = vsel %vm7901_vm9, %v4988_v50, %v10079_v1  ;;  %v7295_v43 = vpop.f32.mrf.mxu0  ;;  %v10812_v1 = vld [vmem:[#allocation18_spill] sm:$0xff] }
 0x1b5   : > { %v5003_v25 = vsel %vm7901_vm9, %v4998_v23, %v5002_v21  ;;  %v10181_v59 = vadd.f32 %v10030_v63, %v2059_v3  ;;  %v5017_v54 = vsel %vm7901_vm9, %v5012_v60, %v10103_v53  ;;  %v5027_v47 = vsel %vm7901_vm9, %v5022_v51, %v5026_v45  ;;  %v10813_v21 = vld [vmem:[#allocation20_spill] sm:$0xff]  ;;  %v10816_v11 = vld [vmem:[#allocation26_spill] sm:$0xff] }
 0x1b6   : > { %v7239_v40 = vpop.f32.mrf.mxu1  ;;  %v6654_v52 = vcombine.low %v5546_v44, %v5549_v12  ;;  %v5035_v41 = vor.u32 %v5034_v30, %v5031_v24  ;;  %v5045_v29 = vor.u32 %v5044_v27, %v5040_v35  ;;  %v5048_v63 = vshll.u32 %v10140_v5, 16  ;;  %v2548_v50 = vpop.f32.mrf.mxu0 }
 0x1b7   : > { %7526 = vmatmul.mubr.bf16.gmra.mxu1 %v10121_v62  ;;  %v2072_v49 = vadd.f32 %v7239_v40, %v10812_v1  ;;  %v10193_v23 = vadd.f32 %v10051_v4, %v2051_v55  ;;  %v6596_v60 = vcombine.low %v4993_v31, %v5003_v25  ;;  %v6597_v51 = vcombine.low %v5017_v54, %v5027_v47  ;;  %v10817_v54 = vld [vmem:[#allocation29_spill] sm:$0xff] }
 0x1b8   : > { %7529 = vmatprep.mubr.bf16.mxu1 %v10123_v36  ;;  %v2063_v62 = vpop.f32.mrf.mxu1  ;;  %v7296_v53 = vpop.f32.mrf.mxu0  ;;  %v5036_v2 = vrot.slane %v5035_v41, 4  ;;  %v10814_v36 = vld [vmem:[#allocation22_spill] sm:$0xff]  ;;  %v5046_v44 = vrot.slane %v5045_v29, 4  ;;  %v5050_v5 = vrot.slane %v5048_v63, 5 }
 0x1b9   : > { %v2064_v57 = vadd.f32 %v2063_v62, %v10813_v21  ;;  %v10197_v56 = vadd.f32 %v10066_v33, %v2072_v49  ;;  %v10818_v49 = vld [vmem:[#allocation31_spill] sm:$0xff]  ;;  %v10819_v62 = vld [vmem:[#allocation32_spill] sm:$0xff] }
 0x1ba   : > { %v7240_v45 = vpop.f32.mrf.mxu1  ;;  %v2551_v24 = vpop.f32.mrf.mxu0  ;;  %v5041_v55 = vsel %vm7901_vm9, %v5036_v2, %v5040_v35  ;;  %v5051_v31 = vsel %vm7901_vm9, %v5046_v44, %v5050_v5 }
 0x1bb   : > { %7582 = vmatmul.mubr.bf16.gmra.mxu0 %v6654_v52  ;;  %v2075_v28 = vadd.f32 %v7240_v45, %v10814_v36  ;;  %v10201_v4 = vadd.f32 %v10083_v38, %v2064_v57  ;;  %v6598_v1 = vcombine.low %v5041_v55, %v5051_v31 }
 0x1bc   : > { %v2066_v30 = vpop.f32.mrf.mxu1  ;;  %v7363_v12 = vpop.f32.mrf.mxu0 }
 0x1bd   : > { %v2067_v3 = vadd.f32 %v2066_v30, %v10815_v37  ;;  %v10205_v33 = vadd.f32 %v10101_v46, %v2075_v28  ;;  %v10821_v28 = vld [vmem:[#allocation7_spill] sm:$0xff]  ;;  %v10822_v37 = vld [vmem:[#allocation36_spill] sm:$0xff] }
 0x1be   : > { %v7243_v27 = vpop.f32.mrf.mxu1  ;;  %v3576_v38 = vpop.f32.mrf.mxu0 }
 0x1bf   : > { %7530 = vmatmul.mubr.bf16.gmra.mxu1 %v6596_v60  ;;  %v2088_v58 = vadd.f32 %v7243_v27, %v10816_v11  ;;  %v10213_v25 = vadd.f32 %v10127_v26, %v2067_v3  ;;  %v10820_v60 = vld [vmem:[#allocation34_spill] sm:$0xff] }
 0x1c0   : > { %7533 = vmatprep.mubr.bf16.mxu1 %v6597_v51  ;;  %v2079_v40 = vpop.f32.mrf.mxu1  ;;  %v7364_v46 = vpop.f32.mrf.mxu0 }
 0x1c1   : > { %v2080_v47 = vadd.f32 %v2079_v40, %v10817_v54  ;;  %v10217_v52 = vadd.f32 %v10143_v6, %v2088_v58  ;;  %v10823_v58 = vld [vmem:[#allocation38_spill] sm:$0xff] }
 0x1c2   : > { %v7244_v41 = vpop.f32.mrf.mxu1  ;;  %v3579_v63 = vpop.f32.mrf.mxu0 }
 0x1c3   : > { %v2091_v29 = vadd.f32 %v7244_v41, %v10818_v49  ;;  %v10221_v35 = vadd.f32 %v10152_v48, %v2080_v47 }
 0x1c4   : > { %v2082_v0 = vpop.f32.mrf.mxu1  ;;  %v7367_v26 = vpop.f32.mrf.mxu0 }
 0x1c5   : > { %v2083_v21 = vadd.f32 %v2082_v0, %v10819_v62  ;;  %v10225_v57 = vadd.f32 %v10159_v42, %v2091_v29 }
 0x1c6   : > { %v3592_v51 = vpop.f32.mrf.mxu0 }
 0x1c7   : > { %v7247_v45 = vpop.f32.mrf.mxu1  ;;  %7534 = vmatmul.mubr.bf16.gmra.mxu1 %v6598_v1  ;;  %v10229_v2 = vadd.f32 %v10167_v18, %v2083_v21 }
 0x1c8   : > { %v2104_v6 = vadd.f32 %v7247_v45, %v10820_v60  ;;  %v7368_v48 = vpop.f32.mrf.mxu0 }
 0x1c9   : > { %v2095_v36 = vpop.f32.mrf.mxu1 }
 0x1ca   : > { %v2096_v44 = vadd.f32 %v2095_v36, %v10821_v28  ;;  %v10232_v5 = vadd.f32 %v7295_v43, %v2104_v6  ;;  %v3595_v27 = vpop.f32.mrf.mxu0  ;;  %v10824_v6 = vld [vmem:[#allocation5_spill] sm:$0xff] }
 0x1cb   : > { %v7248_v30 = vpop.f32.mrf.mxu1 }
 0x1cc   : > { %v2107_v3 = vadd.f32 %v7248_v30, %v10822_v37  ;;  %v10235_v42 = vadd.f32 %v2548_v50, %v2096_v44  ;;  %v7371_v31 = vpop.f32.mrf.mxu0  ;;  %v10825_v44 = vld [vmem:[#allocation4_spill] sm:$0xff] }
 0x1cd   : > { %v2098_v11 = vpop.f32.mrf.mxu1 }
 0x1ce   : > { %v2099_v55 = vadd.f32 %v2098_v11, %v10823_v58  ;;  %v10238_v40 = vadd.f32 %v7296_v53, %v2107_v3  ;;  %v3608_v47 = vpop.f32.mrf.mxu0 }
 0x1cf   : > { %v7315_v18 = vpop.f32.mrf.mxu1 }
 0x1d0   : > { %v2951_v54 = vadd.f32 %v7315_v18, %v10020_v32  ;;  %v10241_v41 = vadd.f32 %v2551_v24, %v2099_v55  ;;  %v7372_v49 = vpop.f32.mrf.mxu0 }
 0x1d1   : > { %v2822_v43 = vpop.f32.mrf.mxu1 }
 0x1d2   : > { %v2949_v1 = vadd.f32 %v2822_v43, %v10024_v15  ;;  %v10244_v29 = vadd.f32 %v7363_v12, %v2951_v54  ;;  %v3611_v62 = vpop.f32.mrf.mxu0 }
 0x1d3   : > { %v7316_v50 = vpop.f32.mrf.mxu1 }
 0x1d4   : > { %v2952_v0 = vadd.f32 %v7316_v50, %v10027_v14  ;;  %v10247_v21 = vadd.f32 %v3576_v38, %v2949_v1  ;;  %v7375_v60 = vpop.f32.mrf.mxu0 }
 0x1d5   : > { %v2825_v53 = vpop.f32.mrf.mxu1 }
 0x1d6   : > { %v2950_v45 = vadd.f32 %v2825_v53, %v10037_v7  ;;  %v10250_v32 = vadd.f32 %v7364_v46, %v2952_v0  ;;  %v3624_v28 = vpop.f32.mrf.mxu0 }
 0x1d7   : > { %v7319_v24 = vpop.f32.mrf.mxu1 }
 0x1d8   : > { %v2955_v36 = vadd.f32 %v7319_v24, %v10824_v6  ;;  %v10253_v15 = vadd.f32 %v3579_v63, %v2950_v45  ;;  %v7376_v37 = vpop.f32.mrf.mxu0 }
 0x1d9   : > { %v2838_v12 = vpop.f32.mrf.mxu1 }
 0x1da   : > { %v2953_v30 = vadd.f32 %v2838_v12, %v10825_v44  ;;  %v10256_v14 = vadd.f32 %v7367_v26, %v2955_v36  ;;  %v3627_v11 = vpop.f32.mrf.mxu0 }
 0x1db   : > { %v7320_v38 = vpop.f32.mrf.mxu1 }
 0x1dc   : > { %v2956_v3 = vadd.f32 %v7320_v38, %v10057_v22  ;;  %v10259_v7 = vadd.f32 %v3592_v51, %v2953_v30  ;;  %v7379_v55 = vpop.f32.mrf.mxu0 }
 0x1dd   : > { %v2841_v46 = vpop.f32.mrf.mxu1 }
 0x1de   : > { %v2954_v58 = vadd.f32 %v2841_v46, %v10060_v17  ;;  %v10262_v18 = vadd.f32 %v7368_v48, %v2956_v3  ;;  %v3640_v43 = vpop.f32.mrf.mxu0 }
 0x1df   : > { %v7323_v63 = vpop.f32.mrf.mxu1 }
 0x1e0   : > { %v2959_v54 = vadd.f32 %v7323_v63, %v10063_v8  ;;  %v10265_v1 = vadd.f32 %v3595_v27, %v2954_v58  ;;  %v7380_v0 = vpop.f32.mrf.mxu0 }
 0x1e1   : > { %v2854_v26 = vpop.f32.mrf.mxu1 }
 0x1e2   : > { %v2957_v50 = vadd.f32 %v2854_v26, %v10069_v61  ;;  %v10268_v22 = vadd.f32 %v7371_v31, %v2959_v54  ;;  %v3643_v45 = vpop.f32.mrf.mxu0 }
 0x1e3   : > { %v7324_v51 = vpop.f32.mrf.mxu1 }
 0x1e4   : > { %v2960_v53 = vadd.f32 %v7324_v51, %v10072_v13  ;;  %v10271_v17 = vadd.f32 %v3608_v47, %v2957_v50  ;;  %v7383_v6 = vpop.f32.mrf.mxu0 }
 0x1e5   : > { %v2857_v48 = vpop.f32.mrf.mxu1 }
 0x1e6   : > { %v2958_v24 = vadd.f32 %v2857_v48, %v10090_v34  ;;  %v10274_v8 = vadd.f32 %v7372_v49, %v2960_v53  ;;  %v3656_v12 = vpop.f32.mrf.mxu0 }
 0x1e7   : > { %v7327_v27 = vpop.f32.mrf.mxu1 }
 0x1e8   : > { %v2963_v36 = vadd.f32 %v7327_v27, %v10106_v39  ;;  %v10277_v61 = vadd.f32 %v3611_v62, %v2958_v24  ;;  %v7384_v30 = vpop.f32.mrf.mxu0 }
 0x1e9   : > { %v2870_v31 = vpop.f32.mrf.mxu1 }
 0x1ea   : > { %v2961_v44 = vadd.f32 %v2870_v31, %v10134_v10  ;;  %v10280_v13 = vadd.f32 %v7375_v60, %v2963_v36  ;;  %v3659_v3 = vpop.f32.mrf.mxu0 }
 0x1eb   : > { %v7328_v47 = vpop.f32.mrf.mxu1 }
 0x1ec   : > { %v2964_v38 = vadd.f32 %v7328_v47, %v10147_v9  ;;  %v10283_v34 = vadd.f32 %v3624_v28, %v2961_v44  ;;  %v7387_v58 = vpop.f32.mrf.mxu0 }
 0x1ed   : > { %v2873_v49 = vpop.f32.mrf.mxu1 }
 0x1ee   : > { %v2962_v46 = vadd.f32 %v2873_v49, %v10156_v20  ;;  %v10286_v39 = vadd.f32 %v7376_v37, %v2964_v38  ;;  %v3672_v54 = vpop.f32.mrf.mxu0 }
 0x1ef   : > { %v7331_v62 = vpop.f32.mrf.mxu1 }
 0x1f0   : > { %v2967_v63 = vadd.f32 %v7331_v62, %v10162_v19  ;;  %v10289_v10 = vadd.f32 %v3627_v11, %v2962_v46  ;;  %v7388_v28 = vpop.f32.mrf.mxu0 }
 0x1f1   : > { %v2886_v60 = vpop.f32.mrf.mxu1 }
 0x1f2   : > { %v2965_v26 = vadd.f32 %v2886_v60, %v10172_v16  ;;  %v10292_v50 = vadd.f32 %v7379_v55, %v2967_v63  ;;  %v3675_v24 = vpop.f32.mrf.mxu0 }
 0x1f3   : > { %v7332_v9 = vpop.f32.mrf.mxu1 }
 0x1f4   : > { %v2968_v51 = vadd.f32 %v7332_v9, %v10181_v59  ;;  %v10295_v53 = vadd.f32 %v3640_v43, %v2965_v26 }
 0x1f5   : > { %v2889_v20 = vpop.f32.mrf.mxu1 }
 0x1f6   : > { %v2966_v37 = vadd.f32 %v2889_v20, %v10193_v23  ;;  %v10298_v48 = vadd.f32 %v7380_v0, %v2968_v51 }
 0x1f7   : > { %v7335_v19 = vpop.f32.mrf.mxu1 }
 0x1f8   : > { %v2971_v11 = vadd.f32 %v7335_v19, %v10197_v56  ;;  %v10301_v27 = vadd.f32 %v3643_v45, %v2966_v37 }
 0x1f9   : > { %v2902_v16 = vpop.f32.mrf.mxu1 }
 0x1fa   : > { %v2969_v55 = vadd.f32 %v2902_v16, %v10201_v4  ;;  %v10304_v36 = vadd.f32 %v7383_v6, %v2971_v11 }
 0x1fb   : > { %v7336_v31 = vpop.f32.mrf.mxu1  ;;  %v7391_v59 = vpop.f32.mrf.mxu0 }
 0x1fc   : > { %v2972_v43 = vadd.f32 %v7336_v31, %v10205_v33  ;;  %v10307_v44 = vadd.f32 %v3656_v12, %v2969_v55 }
 0x1fd   : > { %v2905_v23 = vpop.f32.mrf.mxu1  ;;  %v3688_v0 = vpop.f32.mrf.mxu0 }
 0x1fe   : > { %10826 = vst [vmem:[#allocation8_spill] sm:$0xff] %v10307_v44  ;;  %v2970_v47 = vadd.f32 %v2905_v23, %v10213_v25  ;;  %v10310_v38 = vadd.f32 %v7384_v30, %v2972_v43 }
 0x1ff   : > { %v7339_v56 = vpop.f32.mrf.mxu1  ;;  %v7392_v45 = vpop.f32.mrf.mxu0 }
 0x200   : > { %10827 = vst [vmem:[#allocation9_spill] sm:$0xff] %v10310_v38  ;;  %v2975_v49 = vadd.f32 %v7339_v56, %v10217_v52  ;;  %v10313_v46 = vadd.f32 %v3659_v3, %v2970_v47 }
 0x201   : > { %v2918_v4 = vpop.f32.mrf.mxu1  ;;  %v3691_v6 = vpop.f32.mrf.mxu0 }
 0x202   : > { %10828 = vst [vmem:[#allocation10_spill] sm:$0xff] %v10313_v46  ;;  %v2973_v62 = vadd.f32 %v2918_v4, %v10221_v35  ;;  %v10316_v63 = vadd.f32 %v7387_v58, %v2975_v49 }
 0x203   : > { %v7340_v33 = vpop.f32.mrf.mxu1  ;;  %v7459_v12 = vpop.f32.mrf.mxu0 }
 0x204   : > { %v2976_v60 = vadd.f32 %v7340_v33, %v10225_v57  ;;  %v10319_v26 = vadd.f32 %v3672_v54, %v2973_v62 }
 0x205   : > { %v2921_v25 = vpop.f32.mrf.mxu1  ;;  %v4461_v30 = vpop.f32.mrf.mxu0 }
 0x206   : > { %10829 = vst [vmem:[#allocation12_spill] sm:$0xff] %v10319_v26  ;;  %v2974_v9 = vadd.f32 %v2921_v25, %v10229_v2  ;;  %v10322_v51 = vadd.f32 %v7388_v28, %v2976_v60 }
 0x207   : > { %v7343_v52 = vpop.f32.mrf.mxu1  ;;  %v10324_v3 = vpop.f32.mrf.mxu0 }
 0x208   : > { %10830 = vst [vmem:[#allocation14_spill] sm:$0xff] %v10322_v51  ;;  %v2979_v20 = vadd.f32 %v7343_v52, %v10232_v5  ;;  %v10327_v35 = vadd.f32 %v3675_v24, %v2974_v9 }
 0x209   : > { %v2934_v58 = vpop.f32.mrf.mxu1  ;;  %v10329_v37 = vpop.f32.mrf.mxu0 }
 0x20a   : > { %10831 = vst [vmem:[#allocation16_spill] sm:$0xff] %v10327_v35  ;;  %v2977_v57 = vadd.f32 %v2934_v58, %v10235_v42  ;;  %v10332_v54 = vadd.f32 %v7391_v59, %v2979_v20 }
 0x20b   : > { %v7344_v19 = vpop.f32.mrf.mxu1  ;;  %v7463_v11 = vpop.f32.mrf.mxu0 }
 0x20c   : > { %v2980_v2 = vadd.f32 %v7344_v19, %v10238_v40  ;;  %v10335_v28 = vadd.f32 %v3688_v0, %v2977_v57 }
 0x20d   : > { %v2937_v16 = vpop.f32.mrf.mxu1  ;;  %v10337_v55 = vpop.f32.mrf.mxu0 }
 0x20e   : > { %10832 = vst [vmem:[#allocation19_spill] sm:$0xff] %v10335_v28  ;;  %v2978_v5 = vadd.f32 %v2937_v16, %v10241_v41  ;;  %v10340_v24 = vadd.f32 %v7392_v45, %v2980_v2 }
 0x20f   : > { %v7411_v31 = vpop.f32.mrf.mxu1  ;;  %v10342_v43 = vpop.f32.mrf.mxu0 }
 0x210   : > { %10833 = vst [vmem:[#allocation6_spill] sm:$0xff] %v10340_v24  ;;  %v4203_v42 = vadd.f32 %v7411_v31, %v10244_v29  ;;  %v10345_v59 = vadd.f32 %v3691_v6, %v2978_v5 }
 0x211   : > { %v4074_v23 = vpop.f32.mrf.mxu1  ;;  %v10347_v47 = vpop.f32.mrf.mxu0 }
 0x212   : > { %10834 = vst [vmem:[#allocation21_spill] sm:$0xff] %v10345_v59  ;;  %v4201_v40 = vadd.f32 %v4074_v23, %v10247_v21  ;;  %v10350_v0 = vadd.f32 %v7459_v12, %v4203_v42 }
 0x213   : > { %v10352_v56 = vpop.f32.mrf.mxu1  ;;  %v7467_v49 = vpop.f32.mrf.mxu0 }
 0x214   : > { %v10354_v41 = vadd.f32 %v4461_v30, %v4201_v40 }
 0x215   : > { %v10356_v45 = vpop.f32.mrf.mxu1  ;;  %v10358_v4 = vpop.f32.mrf.mxu0 }
 0x217   : > { %v7415_v62 = vpop.f32.mrf.mxu1  ;;  %v10360_v29 = vpop.f32.mrf.mxu0 }
 0x218   : > { %v4207_v6 = vadd.f32 %v7415_v62, %v10256_v14 }
 0x219   : > { %v10363_v33 = vpop.f32.mrf.mxu1  ;;  %v10365_v60 = vpop.f32.mrf.mxu0 }
 0x21a   : > { %v10367_v21 = vadd.f32 %v7463_v11, %v4207_v6 }
 0x21b   : > { %v10369_v12 = vpop.f32.mrf.mxu1  ;;  %v7471_v25 = vpop.f32.mrf.mxu0 }
 0x21d   : > { %v10371_v30 = vpop.f32.mrf.mxu1  ;;  %v10373_v9 = vpop.f32.mrf.mxu0 }
 0x21f   : > { %v7419_v52 = vpop.f32.mrf.mxu1  ;;  %v10375_v20 = vpop.f32.mrf.mxu0 }
 0x220   : > { %v4211_v58 = vadd.f32 %v7419_v52, %v10268_v22 }
 0x221   : > { %v10378_v57 = vpop.f32.mrf.mxu1  ;;  %v10380_v14 = vpop.f32.mrf.mxu0 }
 0x222   : > { %v10382_v19 = vadd.f32 %v7467_v49, %v4211_v58 }
 0x223   : > { %v10384_v11 = vpop.f32.mrf.mxu1  ;;  %v7475_v2 = vpop.f32.mrf.mxu0 }
 0x225   : > { %v10386_v16 = vpop.f32.mrf.mxu1  ;;  %v10388_v5 = vpop.f32.mrf.mxu0 }
 0x227   : > { %v7423_v31 = vpop.f32.mrf.mxu1  ;;  %v10390_v42 = vpop.f32.mrf.mxu0 }
 0x228   : > { %10835 = vst [vmem:[#allocation35_spill] sm:$0xff] %v10390_v42  ;;  %v4215_v23 = vadd.f32 %v7423_v31, %v10280_v13 }
 0x229   : > { %v10393_v40 = vpop.f32.mrf.mxu1  ;;  %v10395_v22 = vpop.f32.mrf.mxu0 }
 0x22a   : > { %10836 = vst [vmem:[#allocation37_spill] sm:$0xff] %v10395_v22  ;;  %v10397_v62 = vadd.f32 %v7471_v25, %v4215_v23 }
 0x22b   : > { %v10399_v49 = vpop.f32.mrf.mxu1  ;;  %v7479_v6 = vpop.f32.mrf.mxu0 }
 0x22d   : > { %v10401_v52 = vpop.f32.mrf.mxu1  ;;  %v10403_v58 = vpop.f32.mrf.mxu0 }
 0x22e   : > { %10837 = vst [vmem:[#allocation39_spill] sm:$0xff] %v10403_v58 }
 0x22f   : > { %v7427_v59 = vpop.f32.mrf.mxu1  ;;  %v10405_v24 = vpop.f32.mrf.mxu0 }
 0x230   : > { %10838 = vst [vmem:[#allocation23_spill] sm:$0xff] %v10405_v24  ;;  %v4219_v28 = vadd.f32 %v7427_v59, %v10292_v50 }
 0x231   : > { %v10408_v35 = vpop.f32.mrf.mxu1  ;;  %v10410_v13 = vpop.f32.mrf.mxu0 }
 0x232   : > { %10839 = vst [vmem:[#allocation40_spill] sm:$0xff] %v10410_v13  ;;  %v10412_v31 = vadd.f32 %v7475_v2, %v4219_v28 }
 0x233   : > { %v10414_v25 = vpop.f32.mrf.mxu1  ;;  %v7483_v23 = vpop.f32.mrf.mxu0 }
 0x234   : > { %10840 = vst [vmem:[#allocation33_spill] sm:$0xff] %v10412_v31 }
 0x235   : > { %v10416_v51 = vpop.f32.mrf.mxu1  ;;  %v10418_v26 = vpop.f32.mrf.mxu0 }
 0x236   : > { %10841 = vst [vmem:[#allocation25_spill] sm:$0xff] %v10418_v26 }
 0x237   : > { %v7431_v46 = vpop.f32.mrf.mxu1  ;;  %v10420_v58 = vpop.f32.mrf.mxu0 }
 0x238   : > { %10842 = vst [vmem:[#allocation27_spill] sm:$0xff] %v10420_v58  ;;  %v4223_v24 = vadd.f32 %v7431_v46, %v10304_v36 }
 0x239   : > { %v10423_v22 = vpop.f32.mrf.mxu1  ;;  %v10425_v50 = vpop.f32.mrf.mxu0 }
 0x23a   : > { %10843 = vst [vmem:[#allocation28_spill] sm:$0xff] %v10423_v22  ;;  %10844 = vst [vmem:[#allocation30_spill] sm:$0xff] %v10425_v50  ;;  %v10427_v59 = vadd.f32 %v7479_v6, %v4223_v24 }
 0x23b   : > { %v10429_v28 = vpop.f32.mrf.mxu1  ;;  %v7487_v2 = vpop.f32.mrf.mxu0 }
 0x23c   : > { %10845 = vst [vmem:[#allocation11_spill] sm:$0xff] %v10427_v59  ;;  %10846 = vst [vmem:[#allocation13_spill] sm:$0xff] %v10429_v28 }
 0x23d   : > { %v10431_v13 = vpop.f32.mrf.mxu1  ;;  %v10433_v38 = vpop.f32.mrf.mxu0 }
 0x23e   : > { %10847 = vst [vmem:[#allocation3_spill] sm:$0xff] %v10431_v13  ;;  %10848 = vst [vmem:[#allocation15_spill] sm:$0xff] %v10433_v38 }
 0x23f   : > { %v7435_v44 = vpop.f32.mrf.mxu1  ;;  %v10435_v26 = vpop.f32.mrf.mxu0 }
 0x240   : > { %10849 = vst [vmem:[#allocation17_spill] sm:$0xff] %v10435_v26  ;;  %v4227_v58 = vadd.f32 %v7435_v44, %v10316_v63 }
 0x241   : > { %v10438_v31 = vpop.f32.mrf.mxu1  ;;  %v10440_v36 = vpop.f32.mrf.mxu0 }
 0x242   : > { %10850 = vst [vmem:[#allocation18_spill] sm:$0xff] %v10438_v31  ;;  %10851 = vst [vmem:[#allocation20_spill] sm:$0xff] %v10440_v36  ;;  %v10442_v46 = vadd.f32 %v7483_v23, %v4227_v58  ;;  %v4202_v31 = vadd.f32 %v10356_v45, %v10253_v15  ;;  %v4208_v15 = vadd.f32 %v10369_v12, %v10262_v18 }
 0x243   : > { %v10444_v24 = vpop.f32.mrf.mxu1  ;;  %v7555_v6 = vpop.f32.mrf.mxu0 }
 0x244   : > { %10852 = vst [vmem:[#allocation22_spill] sm:$0xff] %v10442_v46  ;;  %10853 = vst [vmem:[#allocation24_spill] sm:$0xff] %v10444_v24  ;;  %v4204_v46 = vadd.f32 %v10352_v56, %v10250_v32  ;;  %v4589_v32 = vadd.f32 %v10329_v37, %v4202_v31  ;;  %v4205_v56 = vadd.f32 %v10363_v33, %v10259_v7 }
 0x245   : > { %v10446_v50 = vpop.f32.mrf.mxu1  ;;  %v5713_v59 = vpop.f32.mrf.mxu0 }
 0x246   : > { %10854 = vst [vmem:[#allocation26_spill] sm:$0xff] %v10446_v50 }
 0x247   : > { %v7439_v13 = vpop.f32.mrf.mxu1  ;;  %v7556_v28 = vpop.f32.mrf.mxu0 }
 0x248   : > { %v4231_v38 = vadd.f32 %v7439_v13, %v10332_v54 }
 0x249   : > { %v10449_v22 = vpop.f32.mrf.mxu1  ;;  %v5716_v26 = vpop.f32.mrf.mxu0 }
 0x24a   : > { %10855 = vst [vmem:[#allocation29_spill] sm:$0xff] %v10449_v22  ;;  %v10451_v44 = vadd.f32 %v7487_v2, %v4231_v38  ;;  %v4591_v2 = vadd.f32 %v10324_v3, %v4204_v46  ;;  %v4206_v3 = vadd.f32 %v10371_v30, %v10265_v1  ;;  %v4595_v1 = vadd.f32 %v10342_v43, %v4208_v15 }
 0x24b   : > { %v10453_v63 = vpop.f32.mrf.mxu1  ;;  %v7559_v36 = vpop.f32.mrf.mxu0 }
 0x24c   : > { %10856 = vst [vmem:[#allocation31_spill] sm:$0xff] %v10451_v44  ;;  %10857 = vst [vmem:[#allocation32_spill] sm:$0xff] %v10453_v63 }
 0x24d   : > { %v10455_v58 = vpop.f32.mrf.mxu1  ;;  %v5729_v23 = vpop.f32.mrf.mxu0 }
 0x24e   : > { %10858 = vst [vmem:[#allocation34_spill] sm:$0xff] %v10455_v58 }
 0x24f   : > { %v7507_v50 = vpop.f32.mrf.mxu1  ;;  %v7560_v24 = vpop.f32.mrf.mxu0 }
 0x250   : > { %v5344_v22 = vadd.f32 %v7507_v50, %v10350_v0 }
 0x251   : > { %v5215_v54 = vpop.f32.mrf.mxu1  ;;  %v5732_v13 = vpop.f32.mrf.mxu0 }
 0x252   : > { %v5342_v38 = vadd.f32 %v5215_v54, %v10354_v41  ;;  %v5842_v0 = vadd.f32 %v7555_v6, %v5344_v22  ;;  %v4592_v22 = vadd.f32 %v10337_v55, %v4205_v56  ;;  %v4212_v56 = vadd.f32 %v10384_v11, %v10274_v8 }
 0x253   : > { %v7508_v44 = vpop.f32.mrf.mxu1  ;;  %v10464_v58 = vpop.f32.mrf.mxu0 }
 0x254   : > { %v5345_v63 = vadd.f32 %v7508_v44, %v4591_v2  ;;  %v5840_v50 = vadd.f32 %v5713_v59, %v5342_v38  ;;  %v4209_v44 = vadd.f32 %v10378_v57, %v10271_v17  ;;  %v6071_v55 = vmul.f32 %v5842_v0, %v5842_v0 }
 0x255   : > { %v5218_v45 = vpop.f32.mrf.mxu1  ;;  %v10471_v42 = vpop.f32.mrf.mxu0 }
 0x256   : > { %v5843_v41 = vadd.f32 %v7556_v28, %v5345_v63  ;;  %v5343_v54 = vadd.f32 %v5218_v45, %v4589_v32  ;;  %v6069_v59 = vmul.f32 %v5840_v50, %v5840_v50 }
 0x257   : > { %v7511_v7 = vpop.f32.mrf.mxu1  ;;  %v10482_v37 = vpop.f32.mrf.mxu0 }
 0x258   : > { %v6835_v18 = vpack.c.bf16 %v5843_v41, %v5842_v0  ;;  %v5841_v33 = vadd.f32 %v5716_v26, %v5343_v54  ;;  %v5348_v12 = vadd.f32 %v7511_v7, %v10367_v21  ;;  %v4593_v21 = vadd.f32 %v10347_v47, %v4206_v3 }
 0x259   : > { %v5231_v31 = vpop.f32.mrf.mxu1  ;;  %v10487_v30 = vpop.f32.mrf.mxu0  ;;  %v6072_v15 = vmul.f32 %v5843_v41, %v5843_v41 }
 0x25a   : > { %6922 = vst [vmem:[%s10480_s11 + $0x8] sm:$0xff] %v6835_v18   ;;  %v6830_v28 = vpack.c.bf16 %v5841_v33, %v5840_v50  ;;  %v6032_v46 = vadd.f32 %v5841_v33, %v5840_v50  ;;  %v6070_v6 = vmul.f32 %v5841_v33, %v5841_v33  ;;  %v5346_v63 = vadd.f32 %v5231_v31, %v4592_v22 }
 0x25b   : > { %v7512_v26 = vpop.f32.mrf.mxu1  ;;  %v10493_v38 = vpop.f32.mrf.mxu0  ;;  %v5846_v45 = vadd.f32 %v7559_v36, %v5348_v12  ;;  %v4210_v18 = vadd.f32 %v10386_v16, %v10277_v61  ;;  %v4596_v33 = vadd.f32 %v10358_v4, %v4209_v44  ;;  %v4599_v61 = vadd.f32 %v10360_v29, %v4212_v56 }
 0x25c   : > { %6831 = vst [vmem:[%s10480_s11] sm:$0xff] %v6830_v28   ;;  %v6033_v2 = vadd.f32 %v6032_v46, %v5842_v0  ;;  %v6101_v43 = vadd.f32 %v6070_v6, %v6069_v59  ;;  %v5349_v32 = vadd.f32 %v7512_v26, %v4595_v1  ;;  %v5844_v50 = vadd.f32 %v5729_v23, %v5346_v63 }
 0x25d   : > { %v5234_v54 = vpop.f32.mrf.mxu1  ;;  %v10498_v7 = vpop.f32.mrf.mxu0  ;;  %v4216_v44 = vadd.f32 %v10399_v49, %v10286_v39  ;;  %v4597_v26 = vadd.f32 %v10365_v60, %v4210_v18 }
 0x25e   : > { %v6102_v17 = vadd.f32 %v6101_v43, %v6071_v55  ;;  %v6034_v57 = vadd.f32 %v6033_v2, %v5843_v41  ;;  %v5847_v47 = vadd.f32 %v7560_v24, %v5349_v32  ;;  %v5347_v3 = vadd.f32 %v5234_v54, %v4593_v21 }
 0x25f   : > { %v7515_v0 = vpop.f32.mrf.mxu1  ;;  %v10503_v22 = vpop.f32.mrf.mxu0  ;;  %v6073_v11 = vmul.f32 %v5844_v50, %v5844_v50  ;;  %v6075_v21 = vmul.f32 %v5846_v45, %v5846_v45 }
 0x260   : > { %v6035_v8 = vadd.f32 %v6034_v57, %v5844_v50  ;;  %v6103_v36 = vadd.f32 %v6102_v17, %v6072_v15  ;;  %v6845_v23 = vpack.c.bf16 %v5847_v47, %v5846_v45  ;;  %v5845_v12 = vadd.f32 %v5732_v13, %v5347_v3 }
 0x261   : > { %v5247_v31 = vpop.f32.mrf.mxu1  ;;  %v10505_v1 = vpop.f32.mrf.mxu0  ;;  %v5352_v24 = vadd.f32 %v7515_v0, %v10382_v19  ;;  %v4213_v13 = vadd.f32 %v10393_v40, %v10283_v34  ;;  %v6076_v40 = vmul.f32 %v5847_v47, %v5847_v47  ;;  %v4603_v3 = vadd.f32 %v10375_v20, %v4216_v44 }
 0x262   : > { %v6104_v41 = vadd.f32 %v6103_v36, %v6073_v11  ;;  %6924 = vst [vmem:[%s10480_s11 + $0x18] sm:$0xff] %v6845_v23   ;;  %v5350_v59 = vadd.f32 %v5247_v31, %v4596_v33  ;;  %v6840_v16 = vpack.c.bf16 %v5845_v12, %v5844_v50  ;;  %v6036_v4 = vadd.f32 %v6035_v8, %v5845_v12 }
 0x263   : > { %v6074_v28 = vmul.f32 %v5845_v12, %v5845_v12  ;;  %v7516_v46 = vpop.f32.mrf.mxu1  ;;  %v10510_v6 = vpop.f32.mrf.mxu0  ;;  %v5850_v32 = vadd.f32 %v10464_v58, %v5352_v24  ;;  %v4600_v54 = vadd.f32 %v10373_v9, %v4213_v13  ;;  %v4217_v9 = vadd.f32 %v10408_v35, %v10295_v53 }
 0x264   : > { %v5353_v63 = vadd.f32 %v7516_v46, %v4599_v61  ;;  %6923 = vst [vmem:[%s10480_s11 + $0x10] sm:$0xff] %v6840_v16   ;;  %v6037_v19 = vadd.f32 %v6036_v4, %v5846_v45  ;;  %v5848_v29 = vadd.f32 %v10471_v42, %v5350_v59  ;;  %v4214_v45 = vadd.f32 %v10401_v52, %v10289_v10 }
 0x265   : > { %v6105_v55 = vadd.f32 %v6104_v41, %v6074_v28  ;;  %v5250_v2 = vpop.f32.mrf.mxu1  ;;  %v10519_v43 = vpop.f32.mrf.mxu0  ;;  %v4220_v36 = vadd.f32 %v10414_v25, %v10298_v48  ;;  %v6079_v12 = vmul.f32 %v5850_v32, %v5850_v32  ;;  %v4604_v13 = vadd.f32 %v10388_v5, %v4217_v9  ;;  %v10861_v5 = vld [vmem:[#allocation8_spill] sm:$0xff] }
 0x266   : > { %v5851_v56 = vadd.f32 %v10482_v37, %v5353_v63  ;;  %v5351_v34 = vadd.f32 %v5250_v2, %v4597_v26  ;;  %v6038_v49 = vadd.f32 %v6037_v19, %v5847_v47  ;;  %v6077_v58 = vmul.f32 %v5848_v29, %v5848_v29  ;;  %v10859_v26 = vld [vmem:[#allocation35_spill] sm:$0xff]  ;;  %v10860_v2 = vld [vmem:[#allocation33_spill] sm:$0xff] }
 0x267   : > { %v6106_v39 = vadd.f32 %v6105_v55, %v6075_v21  ;;  %v7519_v15 = vpop.f32.mrf.mxu1  ;;  %v10523_v60 = vpop.f32.mrf.mxu0  ;;  %v4601_v23 = vadd.f32 %v10380_v14, %v4214_v45  ;;  %v4218_v14 = vadd.f32 %v10416_v51, %v10301_v27  ;;  %v4607_v21 = vadd.f32 %v10859_v26, %v4220_v36  ;;  %v10866_v36 = vld [vmem:[#allocation10_spill] sm:$0xff] }
 0x268   : > { %v6855_v50 = vpack.c.bf16 %v5851_v56, %v5850_v32  ;;  %v5849_v42 = vadd.f32 %v10487_v30, %v5351_v34  ;;  %v6039_v17 = vadd.f32 %v6038_v49, %v5848_v29  ;;  %v5356_v33 = vadd.f32 %v7519_v15, %v10397_v62  ;;  %v10863_v49 = vld [vmem:[#allocation9_spill] sm:$0xff] }
 0x269   : > { %v6107_v37 = vadd.f32 %v6106_v39, %v6076_v40  ;;  %v5263_v57 = vpop.f32.mrf.mxu1  ;;  %v10530_v18 = vpop.f32.mrf.mxu0  ;;  %v6080_v35 = vmul.f32 %v5851_v56, %v5851_v56  ;;  %v10862_v40 = vld [vmem:[#allocation28_spill] sm:$0xff]  ;;  %v10864_v15 = vld [vmem:[#allocation13_spill] sm:$0xff] }
 0x26a   : > { %6926 = vst [vmem:[%s10480_s11 + $0x28] sm:$0xff] %v6855_v50   ;;  %v6850_v47 = vpack.c.bf16 %v5849_v42, %v5848_v29  ;;  %v6078_v0 = vmul.f32 %v5849_v42, %v5849_v42  ;;  %v5354_v10 = vadd.f32 %v5263_v57, %v4600_v54  ;;  %v6040_v8 = vadd.f32 %v6039_v17, %v5849_v42  ;;  %v10865_v42 = vld [vmem:[#allocation37_spill] sm:$0xff] }
 0x26b   : > { %v6108_v52 = vadd.f32 %v6107_v37, %v6077_v58  ;;  %v7520_v30 = vpop.f32.mrf.mxu1  ;;  %v10534_v11 = vpop.f32.mrf.mxu0  ;;  %v5854_v61 = vadd.f32 %v10493_v38, %v5356_v33  ;;  %v4221_v39 = vadd.f32 %v10862_v40, %v10861_v5  ;;  %v4224_v45 = vadd.f32 %v10864_v15, %v10863_v49 }
 0x26c   : > { %6925 = vst [vmem:[%s10480_s11 + $0x20] sm:$0xff] %v6850_v47   ;;  %v5357_v20 = vadd.f32 %v7520_v30, %v4603_v3  ;;  %v6041_v31 = vadd.f32 %v6040_v8, %v5850_v32  ;;  %v5852_v62 = vadd.f32 %v10498_v7, %v5354_v10  ;;  %v4605_v54 = vadd.f32 %v10865_v42, %v4218_v14  ;;  %v10876_v42 = vld [vmem:[#allocation16_spill] sm:$0xff] }
 0x26d   : > { %v6109_v41 = vadd.f32 %v6108_v52, %v6078_v0  ;;  %v5266_v24 = vpop.f32.mrf.mxu1  ;;  %v10543_v59 = vpop.f32.mrf.mxu0  ;;  %v6083_v17 = vmul.f32 %v5854_v61, %v5854_v61 }
 0x26e   : > { %v5855_v16 = vadd.f32 %v10503_v22, %v5357_v20  ;;  %v5355_v53 = vadd.f32 %v5266_v24, %v4601_v23  ;;  %v6042_v25 = vadd.f32 %v6041_v31, %v5851_v56  ;;  %v6081_v38 = vmul.f32 %v5852_v62, %v5852_v62  ;;  %v10867_v20 = vld [vmem:[#allocation3_spill] sm:$0xff] }
 0x26f   : > { %v6110_v48 = vadd.f32 %v6109_v41, %v6079_v12  ;;  %v7523_v4 = vpop.f32.mrf.mxu1  ;;  %v10547_v28 = vpop.f32.mrf.mxu0  ;;  %v4222_v23 = vadd.f32 %v10867_v20, %v10866_v36 }
 0x270   : > { %v6865_v46 = vpack.c.bf16 %v5855_v16, %v5854_v61  ;;  %v5853_v7 = vadd.f32 %v10505_v1, %v5355_v53  ;;  %v6043_v44 = vadd.f32 %v6042_v25, %v5852_v62  ;;  %v5360_v32 = vadd.f32 %v7523_v4, %v10860_v2 }
 0x271   : > { %v6111_v22 = vadd.f32 %v6110_v48, %v6080_v35  ;;  %v5279_v63 = vpop.f32.mrf.mxu1  ;;  %v10554_v19 = vpop.f32.mrf.mxu0  ;;  %v6084_v10 = vmul.f32 %v5855_v16, %v5855_v16  ;;  %v10870_v48 = vld [vmem:[#allocation11_spill] sm:$0xff] }
 0x272   : > { %6928 = vst [vmem:[%s10480_s11 + $0x38] sm:$0xff] %v6865_v46   ;;  %v6860_v55 = vpack.c.bf16 %v5853_v7, %v5852_v62  ;;  %v6082_v29 = vmul.f32 %v5853_v7, %v5853_v7  ;;  %v5358_v27 = vadd.f32 %v5279_v63, %v4604_v13  ;;  %v6044_v56 = vadd.f32 %v6043_v44, %v5853_v7  ;;  %v10872_v44 = vld [vmem:[#allocation18_spill] sm:$0xff]  ;;  %v10874_v63 = vld [vmem:[#allocation24_spill] sm:$0xff] }
 0x273   : > { %v6112_v51 = vadd.f32 %v6111_v22, %v6081_v38  ;;  %v7524_v1 = vpop.f32.mrf.mxu1  ;;  %v10558_v34 = vpop.f32.mrf.mxu0  ;;  %v5858_v47 = vadd.f32 %v10510_v6, %v5360_v32  ;;  %v10873_v22 = vld [vmem:[#allocation14_spill] sm:$0xff] }
 0x274   : > { %6927 = vst [vmem:[%s10480_s11 + $0x30] sm:$0xff] %v6860_v55   ;;  %v5361_v50 = vadd.f32 %v7524_v1, %v4607_v21  ;;  %v6045_v58 = vadd.f32 %v6044_v56, %v5854_v61  ;;  %v5856_v57 = vadd.f32 %v10519_v43, %v5358_v27  ;;  %v10868_v43 = vld [vmem:[#allocation39_spill] sm:$0xff]  ;;  %v4228_v26 = vadd.f32 %v10874_v63, %v10873_v22  ;;  %v10875_v55 = vld [vmem:[#allocation40_spill] sm:$0xff] }
 0x275   : > { %v6113_v37 = vadd.f32 %v6112_v51, %v6082_v29  ;;  %v5282_v3 = vpop.f32.mrf.mxu1  ;;  %v10569_v9 = vpop.f32.mrf.mxu0  ;;  %v4608_v41 = vadd.f32 %v10868_v43, %v4221_v39  ;;  %v10869_v61 = vld [vmem:[#allocation23_spill] sm:$0xff]  ;;  %v4609_v29 = vadd.f32 %v10875_v55, %v4222_v23  ;;  %v6087_v2 = vmul.f32 %v5858_v47, %v5858_v47  ;;  %v10882_v43 = vld [vmem:[#allocation29_spill] sm:$0xff] }
 0x276   : > { %v5859_v0 = vadd.f32 %v10523_v60, %v5361_v50  ;;  %v5359_v33 = vadd.f32 %v5282_v3, %v4605_v54  ;;  %v6046_v8 = vadd.f32 %v6045_v58, %v5855_v16  ;;  %v6085_v6 = vmul.f32 %v5856_v57, %v5856_v57  ;;  %v10877_v54 = vld [vmem:[#allocation26_spill] sm:$0xff] }
 0x277   : > { %v6114_v52 = vadd.f32 %v6113_v37, %v6083_v17  ;;  %v7527_v30 = vpop.f32.mrf.mxu1  ;;  %v4611_v53 = vadd.f32 %v10869_v61, %v4224_v45  ;;  %v7580_v13 = vpop.f32.mrf.mxu0  ;;  %v4226_v17 = vadd.f32 %v10877_v54, %v10876_v42  ;;  %v10885_v61 = vld [vmem:[#allocation30_spill] sm:$0xff] }
 0x278   : > { %v6875_v12 = vpack.c.bf16 %v5859_v0, %v5858_v47  ;;  %v5857_v31 = vadd.f32 %v10530_v18, %v5359_v33  ;;  %v6047_v62 = vadd.f32 %v6046_v8, %v5856_v57  ;;  %v5364_v25 = vadd.f32 %v7527_v30, %v10870_v48  ;;  %v10871_v18 = vld [vmem:[#allocation12_spill] sm:$0xff]  ;;  %v10879_v33 = vld [vmem:[#allocation27_spill] sm:$0xff]  ;;  %v10880_v8 = vld [vmem:[#allocation22_spill] sm:$0xff] }
 0x279   : > { %v6115_v60 = vadd.f32 %v6114_v52, %v6084_v10  ;;  %v5295_v24 = vpop.f32.mrf.mxu1  ;;  %v4225_v38 = vadd.f32 %v10872_v44, %v10871_v18  ;;  %v6088_v39 = vmul.f32 %v5859_v0, %v5859_v0  ;;  %v5812_v50 = vpop.f32.mrf.mxu0  ;;  %v4615_v10 = vadd.f32 %v10879_v33, %v4228_v26  ;;  %v10886_v26 = vld [vmem:[#allocation21_spill] sm:$0xff] }
 0x27a   : > { %6930 = vst [vmem:[%s10480_s11 + $0x48] sm:$0xff] %v6875_v12   ;;  %v6870_v16 = vpack.c.bf16 %v5857_v31, %v5856_v57  ;;  %v6086_v35 = vmul.f32 %v5857_v31, %v5857_v31  ;;  %v5362_v4 = vadd.f32 %v5295_v24, %v4608_v41  ;;  %v6048_v46 = vadd.f32 %v6047_v62, %v5857_v31  ;;  %v10878_v57 = vld [vmem:[#allocation25_spill] sm:$0xff]  ;;  %v10883_v62 = vld [vmem:[#allocation6_spill] sm:$0xff] }
 0x27b   : > { %v6116_v14 = vadd.f32 %v6115_v60, %v6085_v6  ;;  %v7528_v7 = vpop.f32.mrf.mxu1  ;;  %v5862_v1 = vadd.f32 %v10534_v11, %v5364_v25  ;;  %v7583_v31 = vpop.f32.mrf.mxu0  ;;  %v10884_v6 = vld [vmem:[#allocation32_spill] sm:$0xff] }
 0x27c   : > { %6929 = vst [vmem:[%s10480_s11 + $0x40] sm:$0xff] %v6870_v16   ;;  %v5365_v21 = vadd.f32 %v7528_v7, %v4611_v53  ;;  %v6049_v32 = vadd.f32 %v6048_v46, %v5858_v47  ;;  %v5860_v51 = vadd.f32 %v10543_v59, %v5362_v4  ;;  %v4612_v59 = vadd.f32 %v10878_v57, %v4225_v38 }
 0x27d   : > { %v6117_v27 = vadd.f32 %v6116_v14, %v6086_v35  ;;  %v5298_v56 = vpop.f32.mrf.mxu1  ;;  %v4232_v60 = vadd.f32 %v10884_v6, %v10883_v62  ;;  %v4613_v53 = vadd.f32 %v10885_v61, %v4226_v17  ;;  %v6091_v16 = vmul.f32 %v5862_v1, %v5862_v1  ;;  %v5825_v63 = vpop.f32.mrf.mxu0 }
 0x27e   : > { %v5863_v5 = vadd.f32 %v10547_v28, %v5365_v21  ;;  %v5363_v40 = vadd.f32 %v5298_v56, %v4609_v29  ;;  %v6050_v15 = vadd.f32 %v6049_v32, %v5859_v0  ;;  %v6089_v11 = vmul.f32 %v5860_v51, %v5860_v51  ;;  %v10887_v21 = vld [vmem:[#allocation34_spill] sm:$0xff]  ;;  %v10888_v32 = vld [vmem:[#allocation15_spill] sm:$0xff] }
 0x27f   : > { %v6118_v49 = vadd.f32 %v6117_v27, %v6087_v2  ;;  %v7531_v45 = vpop.f32.mrf.mxu1  ;;  %v4230_v55 = vadd.f32 %v10887_v21, %v10886_v26  ;;  %v7584_v54 = vpop.f32.mrf.mxu0 }
 0x280   : > { %v6885_v58 = vpack.c.bf16 %v5863_v5, %v5862_v1  ;;  %v5861_v37 = vadd.f32 %v10554_v19, %v5363_v40  ;;  %v6051_v3 = vadd.f32 %v6050_v15, %v5860_v51  ;;  %v5368_v30 = vadd.f32 %v7531_v45, %v10880_v8  ;;  %v10881_v19 = vld [vmem:[#allocation19_spill] sm:$0xff] }
 0x281   : > { %v6119_v47 = vadd.f32 %v6118_v49, %v6088_v39  ;;  %v5311_v28 = vpop.f32.mrf.mxu1  ;;  %v4229_v41 = vadd.f32 %v10882_v43, %v10881_v19  ;;  %v6092_v18 = vmul.f32 %v5863_v5, %v5863_v5 }
 0x282   : > { %6932 = vst [vmem:[%s10480_s11 + $0x58] sm:$0xff] %v6885_v58   ;;  %v6880_v52 = vpack.c.bf16 %v5861_v37, %v5860_v51  ;;  %v6090_v0 = vmul.f32 %v5861_v37, %v5861_v37  ;;  %v5366_v36 = vadd.f32 %v5311_v28, %v4612_v59  ;;  %v6052_v23 = vadd.f32 %v6051_v3, %v5861_v37  ;;  %v10891_v58 = vld [vmem:[#allocation20_spill] sm:$0xff] }
 0x283   : > { %v6120_v20 = vadd.f32 %v6119_v47, %v6089_v11  ;;  %v7532_v12 = vpop.f32.mrf.mxu1  ;;  %v5866_v14 = vadd.f32 %v10558_v34, %v5368_v30  ;;  %v4616_v27 = vadd.f32 %v10888_v32, %v4229_v41  ;;  %v4617_v37 = vadd.f32 %v10891_v58, %v4230_v55  ;;  %v5828_v30 = vpop.f32.mrf.mxu0 }
 0x284   : > { %6931 = vst [vmem:[%s10480_s11 + $0x50] sm:$0xff] %v6880_v52   ;;  %v5369_v24 = vadd.f32 %v7532_v12, %v4615_v10  ;;  %v6053_v35 = vadd.f32 %v6052_v23, %v5862_v1  ;;  %v5864_v25 = vadd.f32 %v10569_v9, %v5366_v36 }
 0x285   : > { %v6121_v48 = vadd.f32 %v6120_v20, %v6090_v0  ;;  %v5314_v4 = vpop.f32.mrf.mxu1  ;;  %v6095_v57 = vmul.f32 %v5866_v14, %v5866_v14 }
 0x286   : > { %v5867_v46 = vadd.f32 %v7580_v13, %v5369_v24  ;;  %v5367_v7 = vadd.f32 %v5314_v4, %v4613_v53  ;;  %v6054_v38 = vadd.f32 %v6053_v35, %v5863_v5  ;;  %v6093_v51 = vmul.f32 %v5864_v25, %v5864_v25  ;;  %v10889_v13 = vld [vmem:[#allocation17_spill] sm:$0xff]  ;;  %v10890_v5 = vld [vmem:[#allocation31_spill] sm:$0xff] }
 0x287   : > { %v6122_v44 = vadd.f32 %v6121_v48, %v6091_v16  ;;  %v7535_v22 = vpop.f32.mrf.mxu1  ;;  %v4619_v1 = vadd.f32 %v10889_v13, %v4232_v60 }
 0x288   : > { %v6895_v29 = vpack.c.bf16 %v5867_v46, %v5866_v14  ;;  %v5865_v2 = vadd.f32 %v5812_v50, %v5367_v7  ;;  %v6055_v9 = vadd.f32 %v6054_v38, %v5864_v25  ;;  %v5372_v49 = vadd.f32 %v7535_v22, %v10890_v5 }
 0x289   : > { %v6123_v56 = vadd.f32 %v6122_v44, %v6092_v18  ;;  %v5327_v34 = vpop.f32.mrf.mxu1  ;;  %v6096_v52 = vmul.f32 %v5867_v46, %v5867_v46 }
 0x28a   : > { %6934 = vst [vmem:[%s10480_s11 + $0x68] sm:$0xff] %v6895_v29   ;;  %v6890_v40 = vpack.c.bf16 %v5865_v2, %v5864_v25  ;;  %v6094_v39 = vmul.f32 %v5865_v2, %v5865_v2  ;;  %v5370_v15 = vadd.f32 %v5327_v34, %v4616_v27  ;;  %v6056_v42 = vadd.f32 %v6055_v9, %v5865_v2 }
 0x28b   : > { %v6124_v45 = vadd.f32 %v6123_v56, %v6093_v51  ;;  %v7536_v17 = vpop.f32.mrf.mxu1  ;;  %v5870_v28 = vadd.f32 %v7583_v31, %v5372_v49 }
 0x28c   : > { %6933 = vst [vmem:[%s10480_s11 + $0x60] sm:$0xff] %v6890_v40   ;;  %v5373_v50 = vadd.f32 %v7536_v17, %v4619_v1  ;;  %v6057_v59 = vadd.f32 %v6056_v42, %v5866_v14  ;;  %v5868_v11 = vadd.f32 %v5825_v63, %v5370_v15 }
 0x28d   : > { %v6125_v3 = vadd.f32 %v6124_v45, %v6094_v39  ;;  %v5330_v47 = vpop.f32.mrf.mxu1  ;;  %v6099_v60 = vmul.f32 %v5870_v28, %v5870_v28 }
 0x28e   : > { %v5871_v33 = vadd.f32 %v7584_v54, %v5373_v50  ;;  %v5371_v10 = vadd.f32 %v5330_v47, %v4617_v37  ;;  %v6058_v8 = vadd.f32 %v6057_v59, %v5867_v46  ;;  %v6097_v12 = vmul.f32 %v5868_v11, %v5868_v11 }
 0x28f   : > { %v6126_v0 = vadd.f32 %v6125_v3, %v6095_v57 }
 0x290   : > { %v6905_v36 = vpack.c.bf16 %v5871_v33, %v5870_v28  ;;  %v5869_v20 = vadd.f32 %v5828_v30, %v5371_v10  ;;  %v6059_v23 = vadd.f32 %v6058_v8, %v5868_v11  ;;  %v6100_v61 = vmul.f32 %v5871_v33, %v5871_v33 }
 0x291   : > { %v6127_v19 = vadd.f32 %v6126_v0, %v6096_v52 }
 0x292   : > { %6936 = vst [vmem:[%s10480_s11 + $0x78] sm:$0xff] %v6905_v36   ;;  %v6900_v43 = vpack.c.bf16 %v5869_v20, %v5868_v11  ;;  %v6098_v41 = vmul.f32 %v5869_v20, %v5869_v20  ;;  %v6060_v6 = vadd.f32 %v6059_v23, %v5869_v20 }
 0x293   : > { %v6128_v62 = vadd.f32 %v6127_v19, %v6097_v12 }
 0x294   : > { %6935 = vst [vmem:[%s10480_s11 + $0x70] sm:$0xff] %v6900_v43   ;;  %v6061_v31 = vadd.f32 %v6060_v6, %v5870_v28 }
 0x295   : > { %v6129_v24 = vadd.f32 %v6128_v62, %v6098_v41 }
 0x296   : > { %v6062_v53 = vadd.f32 %v6061_v31, %v5871_v33 }
 0x297   : > { %v6130_v16 = vadd.f32 %v6129_v24, %v6099_v60 }
 0x298   : > { %v6063_v35 = vrot.slane %v6062_v53, 4 }
 0x299   : > { %v6131_v48 = vadd.f32 %v6130_v16, %v6100_v61 }
 0x29a   : > { %v6064_v25 = vadd.f32 %v6063_v35, %v6062_v53 }
 0x29b   : > { %v6132_v4 = vrot.slane %v6131_v48, 4 }
 0x29c   : > { %v6065_v14 = vrot.slane %v6064_v25, 2 }
 0x29d   : > { %v6133_v46 = vadd.f32 %v6132_v4, %v6131_v48 }
 0x29e   : > { %v6066_v7 = vadd.f32 %v6065_v14, %v6064_v25 }
 0x29f   : > { %v6134_v18 = vrot.slane %v6133_v46, 2 }
 0x2a0   : > { %v6067_v44 = vrot.slane %v6066_v7, 1 }
 0x2a1   : > { %v6135_v38 = vadd.f32 %v6134_v18, %v6133_v46 }
 0x2a2   : > { %v6068_v63 = vadd.f32 %v6067_v44, %v6066_v7 }
 0x2a3   : > { %v6136_v22 = vrot.slane %v6135_v38, 1 }
 0x2a5   : > { %v6137_v26 = vadd.f32 %v6136_v22, %v6135_v38 }
 0x2a7   : > { %v6139_v21 = vsel %vm418_vm0, %v6068_v63, %v6137_v26 }
 0x2a8   : > { %6140 = vst [vmem:[%s235_s14] sm:$0x3] %v6139_v21 }
 0x2a9 PF: > { %s16_s18 = sadd.s32 1, %s7765_s18  }
 0x2aa   : > { %p13_p4 = scmp.ge.s32.totalorder %s16_s18, 4  }
 0x2ac   :  { %15 = sbr.rel (!%p13_p4) target bundleno = 1 (0x1), region = 89 }

</bundles_post_ra>
